<compile_context>
chip_gen: v5e
topology: v5e:2x2
jax: 0.10.0
libtpu: 0.0.40
codegen_flags: <defaults>
</compile_context>

<pallas_src>
import math

import numpy as np
import jax
import jax.numpy as jnp
from jax.experimental import pallas as pl
from jax.experimental.pallas import tpu as pltpu


# ---------------------------------------------------------------------------
# Host-side constant builders (trace-time glue; all tiny).
# ---------------------------------------------------------------------------

def _row_select(hin, ho, k, stride, pad):
    """A[kh, oh, ih] = 1 iff ih == stride*oh + kh - pad (zero padding folded in)."""
    a = np.zeros((k, ho, hin), np.float32)
    for kh in range(k):
        for oh in range(ho):
            ih = stride * oh + kh - pad
            if 0 <= ih < hin:
                a[kh, oh, ih] = 1.0
    return a


def _col_weights(w, win, wo, stride, pad):
    """B[kh, iw*Cin+c, ow*Cout+d] = sum_{kw: stride*ow+kw-pad == iw} w[kh,kw,c,d]."""
    k, _, cin, cout = w.shape
    t = np.zeros((k, win, wo), np.float32)
    for kw in range(k):
        for ow in range(wo):
            iw = stride * ow + kw - pad
            if 0 <= iw < win:
                t[kw, iw, ow] = 1.0
    b = jnp.einsum("kio,hkcd->hicod", jnp.asarray(t), w)
    return b.reshape(k, win * cin, wo * cout)


def _ps_consts(h, w, c, r):
    """PixelShuffle(r) on the 2D layout:  out = sum_i U[i] @ y @ V[i].

    y is the conv output (h, w*r*r*c) with torch channel order q = c*r*r+i*r+j;
    out is (r*h, r*w*c)."""
    u = np.zeros((r, r * h, h), np.float32)
    v = np.zeros((r, w * r * r * c, r * w * c), np.float32)
    for i in range(r):
        for hh in range(h):
            u[i, r * hh + i, hh] = 1.0
        for ww in range(w):
            for cc in range(c):
                for j in range(r):
                    v[i, ww * r * r * c + cc * r * r + i * r + j,
                         (r * ww + j) * c + cc] = 1.0
    return u, v


def _const_index_map(ndim):
    zeros = (0,) * ndim
    return lambda i: zeros


# ---------------------------------------------------------------------------
# Fused Pallas forward pass.
# ---------------------------------------------------------------------------

def build_usrn_pallas(params, batch, hin, win):
    """Returns run(x2d) -> (sr2x_2d, sr4x_2d); x2d is (batch, hin, win*n_colors)."""
    n_colors = params["head"][0].shape[2]
    s_feats = params["shrink"][0].shape[3]

    consts = []            # arrays passed to pallas_call after x
    dedup = {}             # weight-independent constants shared by geometry

    def add(arr, key=None):
        if key is not None and key in dedup:
            return dedup[key]
        consts.append(arr)
        idx = len(consts) - 1
        if key is not None:
            dedup[key] = idx
        return idx

    def conv_cfg(wb, h_in, w_in, stride, pad, relu):
        wgt, bias = wb
        k, _, cin, cout = wgt.shape
        ho = (h_in + 2 * pad - k) // stride + 1
        wo = (w_in + 2 * pad - k) // stride + 1
        # per-tap: is the row-selection matrix an identity (skip its matmul)?
        a_id = tuple(stride == 1 and kh == pad and ho == h_in for kh in range(k))
        a_idx = None
        if not all(a_id):
            a_idx = add(jnp.asarray(_row_select(h_in, ho, k, stride, pad)),
                        key=("A", h_in, ho, k, stride, pad))
        b_idx = add(_col_weights(wgt, w_in, wo, stride, pad))
        bias_idx = add(jnp.tile(bias, wo).reshape(1, wo * cout))
        return dict(k=k, relu=relu, ho=ho, n=wo * cout, a_id=a_id,
                    a_idx=a_idx, b_idx=b_idx, bias_idx=bias_idx)

    ps_cache = {}

    def ps_cfg(h, w, c, r):
        key = (h, w, c, r)
        if key not in ps_cache:
            u, v = _ps_consts(h, w, c, r)
            ps_cache[key] = dict(r=r, u_idx=add(jnp.asarray(u)),
                                 v_idx=add(jnp.asarray(v)))
        return ps_cache[key]

    # --- network plan (all indices into `consts`) ---------------------------
    head = conv_cfg(params["head"], hin, win, 1, 1, False)
    shrink = conv_cfg(params["shrink"], hin, win, 1, 0, True)
    bodies = []
    for name in ("body0", "body1"):
        blocks = []
        for blk in params[name]:
            blocks.append(dict(
                d1=conv_cfg(blk["down1"], hin, win, 2, 1, True),
                d2=conv_cfg(blk["down2"], hin // 2, win // 2, 2, 1, True),
                u1=conv_cfg(blk["up1"], hin // 4, win // 4, 1, 1, True),
                u2=conv_cfg(blk["up2"], hin // 2, win // 2, 1, 1, True),
                ps1=ps_cfg(hin // 4, win // 4, s_feats, 2),
                ps2=ps_cfg(hin // 2, win // 2, s_feats, 2)))
        bodies.append(blocks)
    tail0 = conv_cfg(params["tail0"], hin, win, 1, 1, False)
    tail1 = conv_cfg(params["tail1"], hin, win, 1, 1, False)
    ps_t0 = ps_cfg(hin, win, n_colors, 2)
    ps_t1 = ps_cfg(hin, win, n_colors, 4)

    n_consts = len(consts)

    # --- kernel body ---------------------------------------------------------

    def conv(cfg, crefs, xv):
        # bias folded into the accumulator init
        acc = jnp.broadcast_to(crefs[cfg["bias_idx"]][...], (cfg["ho"], cfg["n"]))
        b_ref = crefs[cfg["b_idx"]]
        for kh in range(cfg["k"]):
            if cfg["a_id"][kh]:
                t = xv
            else:
                t = jnp.dot(crefs[cfg["a_idx"]][kh], xv,
                            preferred_element_type=jnp.float32)
            acc = acc + jnp.dot(t, b_ref[kh], preferred_element_type=jnp.float32)
        if cfg["relu"]:
            acc = jnp.maximum(acc, 0.0)
        return acc

    def pixel_shuffle(cfg, crefs, xv):
        u_ref, v_ref = crefs[cfg["u_idx"]], crefs[cfg["v_idx"]]
        out = None
        for i in range(cfg["r"]):
            part = jnp.dot(
                u_ref[i],
                jnp.dot(xv, v_ref[i], preferred_element_type=jnp.float32),
                preferred_element_type=jnp.float32)
            out = part if out is None else out + part
        return out

    def ublock(blk, crefs, xv):
        xd1 = conv(blk["d1"], crefs, xv)
        xd2 = conv(blk["d2"], crefs, xd1)
        xu1 = pixel_shuffle(blk["ps1"], crefs, conv(blk["u1"], crefs, xd2)) + xd1
        xu2 = pixel_shuffle(blk["ps2"], crefs, conv(blk["u2"], crefs, xu1)) + xv
        return xu2

    def kernel(*refs):
        x_ref = refs[0]
        crefs = refs[1:1 + n_consts]
        out2_ref = refs[1 + n_consts]
        out4_ref = refs[2 + n_consts]

        xv = x_ref[0]                              # (hin, win*n_colors), f32
        xv = conv(head, crefs, xv)
        xv = conv(shrink, crefs, xv)
        for blk in bodies[0]:
            xv = ublock(blk, crefs, xv)
        sr2 = pixel_shuffle(ps_t0, crefs, conv(tail0, crefs, xv))
        out2_ref[0] = sr2.astype(out2_ref.dtype)
        for blk in bodies[1]:
            xv = ublock(blk, crefs, xv)
        sr4 = pixel_shuffle(ps_t1, crefs, conv(tail1, crefs, xv))
        out4_ref[0] = sr4.astype(out4_ref.dtype)

    # --- pallas_call ---------------------------------------------------------

    c_in = win * n_colors
    in_specs = [pl.BlockSpec((1, hin, c_in), lambda i: (i, 0, 0))]
    for arr in consts:
        in_specs.append(pl.BlockSpec(tuple(arr.shape), _const_index_map(arr.ndim)))
    out_shape = (
        jax.ShapeDtypeStruct((batch, 2 * hin, 2 * win * n_colors), jnp.float32),
        jax.ShapeDtypeStruct((batch, 4 * hin, 4 * win * n_colors), jnp.float32),
    )
    out_specs = (
        pl.BlockSpec((1, 2 * hin, 2 * win * n_colors), lambda i: (i, 0, 0)),
        pl.BlockSpec((1, 4 * hin, 4 * win * n_colors), lambda i: (i, 0, 0)),
    )
    call = pl.pallas_call(
        kernel,
        grid=(batch,),
        out_shape=out_shape,
        in_specs=in_specs,
        out_specs=out_specs,
        compiler_params=pltpu.CompilerParams(
            dimension_semantics=("parallel",),          # 2-wide -> both v7x TCs
            vmem_limit_bytes=48 * 1024 * 1024),
    )

    def run(x2d):
        return call(x2d, *consts)

    return run


def usrn_forward_pallas(params, x_nchw):
    n, c, h, w = x_nchw.shape
    # single boundary transform to the lane-dense (H, W*C) layout
    x2d = jnp.transpose(x_nchw, (0, 2, 3, 1)).reshape(n, h, w * c)
    run = build_usrn_pallas(params, n, h, w)
    sr2_2d, sr4_2d = run(x2d)
    sr2 = sr2_2d.reshape(n, 2 * h, 2 * w, c).transpose(0, 3, 1, 2)
    sr4 = sr4_2d.reshape(n, 4 * h, 4 * w, c).transpose(0, 3, 1, 2)
    return [sr2, sr4]


# ---------------------------------------------------------------------------
# Plain-JAX reference (correctness check only).
# ---------------------------------------------------------------------------

def conv2d_ref(x, w, b, *, stride=1, padding=1, relu=False):
    out = jax.lax.conv_general_dilated(
        x, w, window_strides=(stride, stride),
        padding=[(padding, padding), (padding, padding)],
        dimension_numbers=("NHWC", "HWIO", "NHWC"),
        precision=jax.lax.Precision.HIGHEST)
    out = out + b
    if relu:
        out = jnp.maximum(out, 0.0)
    return out


def pixel_shuffle_nhwc(x, r):
    n, h, w, cr2 = x.shape
    c = cr2 // (r * r)
    x = x.reshape(n, h, w, c, r, r)
    x = x.transpose(0, 1, 4, 2, 5, 3)
    return x.reshape(n, h * r, w * r, c)


def ublock_ref(p, x):
    d1 = conv2d_ref(x, *p["down1"], stride=2, padding=1, relu=True)
    d2 = conv2d_ref(d1, *p["down2"], stride=2, padding=1, relu=True)
    u1 = pixel_shuffle_nhwc(
        conv2d_ref(d2, *p["up1"], stride=1, padding=1, relu=True), 2) + d1
    u2 = pixel_shuffle_nhwc(
        conv2d_ref(u1, *p["up2"], stride=1, padding=1, relu=True), 2) + x
    return u2


def usrn_forward_ref(params, x_nchw):
    x = jnp.transpose(x_nchw, (0, 2, 3, 1))
    x = conv2d_ref(x, *params["head"], stride=1, padding=1, relu=False)
    x = conv2d_ref(x, *params["shrink"], stride=1, padding=0, relu=True)
    results = []
    for blk in params["body0"]:
        x = ublock_ref(blk, x)
    sr = pixel_shuffle_nhwc(
        conv2d_ref(x, *params["tail0"], stride=1, padding=1, relu=False), 2)
    results.append(jnp.transpose(sr, (0, 3, 1, 2)))
    for blk in params["body1"]:
        x = ublock_ref(blk, x)
    sr = pixel_shuffle_nhwc(
        conv2d_ref(x, *params["tail1"], stride=1, padding=1, relu=False), 4)
    results.append(jnp.transpose(sr, (0, 3, 1, 2)))
    return results


# ---------------------------------------------------------------------------
# Parameters.
# ---------------------------------------------------------------------------

def _init_conv(key, cin, cout, k):
    kw_key, kb_key = jax.random.split(key)
    fan_in = cin * k * k
    w = jax.random.normal(kw_key, (k, k, cin, cout), jnp.float32) / math.sqrt(fan_in)
    b = 0.01 * jax.random.normal(kb_key, (cout,), jnp.float32)
    return (w, b)


def init_usrn(key, n_colors, n_feats, n_resblocks):
    s_feats = n_feats // 4
    n_layers = 4 + 8 * n_resblocks
    keys = iter(jax.random.split(key, n_layers))
    params = {}
    params["head"] = _init_conv(next(keys), n_colors, n_feats, 3)
    params["shrink"] = _init_conv(next(keys), n_feats, s_feats, 1)
    for body in ("body0", "body1"):
        blocks = []
        for _ in range(n_resblocks):
            blocks.append({
                "down1": _init_conv(next(keys), s_feats, s_feats, 3),
                "down2": _init_conv(next(keys), s_feats, s_feats, 3),
                "up1": _init_conv(next(keys), s_feats, 4 * s_feats, 3),
                "up2": _init_conv(next(keys), s_feats, 4 * s_feats, 3),
            })
        params[body] = blocks
    params["tail0"] = _init_conv(next(keys), s_feats, 4 * n_colors, 3)
    params["tail1"] = _init_conv(next(keys), s_feats, 16 * n_colors, 3)
    return params


if __name__ == "__main__":
    # opt.n_colors=3, opt.n_feats=16 (s_feats=4), opt.n_resblocks=2, scale=[2,4]
    n_colors, n_feats, n_resblocks = 3, 16, 2
    key = jax.random.PRNGKey(0)
    pkey, xkey = jax.random.split(key)
    params = init_usrn(pkey, n_colors, n_feats, n_resblocks)
    x = jax.random.normal(xkey, (2, n_colors, 16, 16), jnp.float32)   # NCHW

    fwd_pallas = jax.jit(usrn_forward_pallas)
    fwd_ref = jax.jit(usrn_forward_ref)

    out_pallas = jax.block_until_ready(fwd_pallas(params, x))
    out_ref = jax.block_until_ready(fwd_ref(params, x))

    assert out_pallas[0].shape == (2, n_colors, 32, 32)
    assert out_pallas[1].shape == (2, n_colors, 64, 64)
    for o, r in zip(out_pallas, out_ref):
        err = float(jnp.max(jnp.abs(o - r)))
        assert jnp.allclose(o, r, rtol=1e-2, atol=1e-2), f"max abs err {err}"

    print("KERNEL_OK")
</pallas_src>

<mosaic_0001>
module attributes {stable_mosaic.version = 11 : i64} {
  func.func @kernel(%arg0: i32, %arg1: memref<1x16x48xf32, #tpu.memory_space<vmem>>, %arg2: memref<3x16x16xf32, #tpu.memory_space<vmem>>, %arg3: memref<3x48x256xf32, #tpu.memory_space<vmem>>, %arg4: memref<1x256xf32, #tpu.memory_space<vmem>>, %arg5: memref<1x256x64xf32, #tpu.memory_space<vmem>>, %arg6: memref<1x64xf32, #tpu.memory_space<vmem>>, %arg7: memref<3x8x16xf32, #tpu.memory_space<vmem>>, %arg8: memref<3x64x32xf32, #tpu.memory_space<vmem>>, %arg9: memref<1x32xf32, #tpu.memory_space<vmem>>, %arg10: memref<3x4x8xf32, #tpu.memory_space<vmem>>, %arg11: memref<3x32x16xf32, #tpu.memory_space<vmem>>, %arg12: memref<1x16xf32, #tpu.memory_space<vmem>>, %arg13: memref<3x4x4xf32, #tpu.memory_space<vmem>>, %arg14: memref<3x16x64xf32, #tpu.memory_space<vmem>>, %arg15: memref<1x64xf32, #tpu.memory_space<vmem>>, %arg16: memref<3x8x8xf32, #tpu.memory_space<vmem>>, %arg17: memref<3x32x128xf32, #tpu.memory_space<vmem>>, %arg18: memref<1x128xf32, #tpu.memory_space<vmem>>, %arg19: memref<2x8x4xf32, #tpu.memory_space<vmem>>, %arg20: memref<2x64x32xf32, #tpu.memory_space<vmem>>, %arg21: memref<2x16x8xf32, #tpu.memory_space<vmem>>, %arg22: memref<2x128x64xf32, #tpu.memory_space<vmem>>, %arg23: memref<3x64x32xf32, #tpu.memory_space<vmem>>, %arg24: memref<1x32xf32, #tpu.memory_space<vmem>>, %arg25: memref<3x32x16xf32, #tpu.memory_space<vmem>>, %arg26: memref<1x16xf32, #tpu.memory_space<vmem>>, %arg27: memref<3x16x64xf32, #tpu.memory_space<vmem>>, %arg28: memref<1x64xf32, #tpu.memory_space<vmem>>, %arg29: memref<3x32x128xf32, #tpu.memory_space<vmem>>, %arg30: memref<1x128xf32, #tpu.memory_space<vmem>>, %arg31: memref<3x64x32xf32, #tpu.memory_space<vmem>>, %arg32: memref<1x32xf32, #tpu.memory_space<vmem>>, %arg33: memref<3x32x16xf32, #tpu.memory_space<vmem>>, %arg34: memref<1x16xf32, #tpu.memory_space<vmem>>, %arg35: memref<3x16x64xf32, #tpu.memory_space<vmem>>, %arg36: memref<1x64xf32, #tpu.memory_space<vmem>>, %arg37: memref<3x32x128xf32, #tpu.memory_space<vmem>>, %arg38: memref<1x128xf32, #tpu.memory_space<vmem>>, %arg39: memref<3x64x32xf32, #tpu.memory_space<vmem>>, %arg40: memref<1x32xf32, #tpu.memory_space<vmem>>, %arg41: memref<3x32x16xf32, #tpu.memory_space<vmem>>, %arg42: memref<1x16xf32, #tpu.memory_space<vmem>>, %arg43: memref<3x16x64xf32, #tpu.memory_space<vmem>>, %arg44: memref<1x64xf32, #tpu.memory_space<vmem>>, %arg45: memref<3x32x128xf32, #tpu.memory_space<vmem>>, %arg46: memref<1x128xf32, #tpu.memory_space<vmem>>, %arg47: memref<3x64x192xf32, #tpu.memory_space<vmem>>, %arg48: memref<1x192xf32, #tpu.memory_space<vmem>>, %arg49: memref<3x64x768xf32, #tpu.memory_space<vmem>>, %arg50: memref<1x768xf32, #tpu.memory_space<vmem>>, %arg51: memref<2x32x16xf32, #tpu.memory_space<vmem>>, %arg52: memref<2x192x96xf32, #tpu.memory_space<vmem>>, %arg53: memref<4x64x16xf32, #tpu.memory_space<vmem>>, %arg54: memref<4x768x192xf32, #tpu.memory_space<vmem>>, %arg55: memref<1x32x96xf32, #tpu.memory_space<vmem>>, %arg56: memref<1x64x192xf32, #tpu.memory_space<vmem>>) attributes {dimension_semantics = [#tpu.dimension_semantics<parallel>], iteration_bounds = array<i64: 2>, scalar_prefetch = 0 : i64, scratch_operands = 0 : i64, tpu.core_type = #tpu.core_type<tc>, window_params = [{transform_indices = @transform_0, window_bounds = array<i64: 1, 16, 48>}, {pipeline_mode = #tpu.pipeline_mode<synchronous>, transform_indices = @transform_1, window_bounds = array<i64: 3, 16, 16>}, {pipeline_mode = #tpu.pipeline_mode<synchronous>, transform_indices = @transform_2, window_bounds = array<i64: 3, 48, 256>}, {pipeline_mode = #tpu.pipeline_mode<synchronous>, transform_indices = @transform_3, window_bounds = array<i64: 1, 256>}, {pipeline_mode = #tpu.pipeline_mode<synchronous>, transform_indices = @transform_4, window_bounds = array<i64: 1, 256, 64>}, {pipeline_mode = #tpu.pipeline_mode<synchronous>, transform_indices = @transform_5, window_bounds = array<i64: 1, 64>}, {pipeline_mode = #tpu.pipeline_mode<synchronous>, transform_indices = @transform_6, window_bounds = array<i64: 3, 8, 16>}, {pipeline_mode = #tpu.pipeline_mode<synchronous>, transform_indices = @transform_7, window_bounds = array<i64: 3, 64, 32>}, {pipeline_mode = #tpu.pipeline_mode<synchronous>, transform_indices = @transform_8, window_bounds = array<i64: 1, 32>}, {pipeline_mode = #tpu.pipeline_mode<synchronous>, transform_indices = @transform_9, window_bounds = array<i64: 3, 4, 8>}, {pipeline_mode = #tpu.pipeline_mode<synchronous>, transform_indices = @transform_10, window_bounds = array<i64: 3, 32, 16>}, {pipeline_mode = #tpu.pipeline_mode<synchronous>, transform_indices = @transform_11, window_bounds = array<i64: 1, 16>}, {pipeline_mode = #tpu.pipeline_mode<synchronous>, transform_indices = @transform_12, window_bounds = array<i64: 3, 4, 4>}, {pipeline_mode = #tpu.pipeline_mode<synchronous>, transform_indices = @transform_13, window_bounds = array<i64: 3, 16, 64>}, {pipeline_mode = #tpu.pipeline_mode<synchronous>, transform_indices = @transform_14, window_bounds = array<i64: 1, 64>}, {pipeline_mode = #tpu.pipeline_mode<synchronous>, transform_indices = @transform_15, window_bounds = array<i64: 3, 8, 8>}, {pipeline_mode = #tpu.pipeline_mode<synchronous>, transform_indices = @transform_16, window_bounds = array<i64: 3, 32, 128>}, {pipeline_mode = #tpu.pipeline_mode<synchronous>, transform_indices = @transform_17, window_bounds = array<i64: 1, 128>}, {pipeline_mode = #tpu.pipeline_mode<synchronous>, transform_indices = @transform_18, window_bounds = array<i64: 2, 8, 4>}, {pipeline_mode = #tpu.pipeline_mode<synchronous>, transform_indices = @transform_19, window_bounds = array<i64: 2, 64, 32>}, {pipeline_mode = #tpu.pipeline_mode<synchronous>, transform_indices = @transform_20, window_bounds = array<i64: 2, 16, 8>}, {pipeline_mode = #tpu.pipeline_mode<synchronous>, transform_indices = @transform_21, window_bounds = array<i64: 2, 128, 64>}, {pipeline_mode = #tpu.pipeline_mode<synchronous>, transform_indices = @transform_22, window_bounds = array<i64: 3, 64, 32>}, {pipeline_mode = #tpu.pipeline_mode<synchronous>, transform_indices = @transform_23, window_bounds = array<i64: 1, 32>}, {pipeline_mode = #tpu.pipeline_mode<synchronous>, transform_indices = @transform_24, window_bounds = array<i64: 3, 32, 16>}, {pipeline_mode = #tpu.pipeline_mode<synchronous>, transform_indices = @transform_25, window_bounds = array<i64: 1, 16>}, {pipeline_mode = #tpu.pipeline_mode<synchronous>, transform_indices = @transform_26, window_bounds = array<i64: 3, 16, 64>}, {pipeline_mode = #tpu.pipeline_mode<synchronous>, transform_indices = @transform_27, window_bounds = array<i64: 1, 64>}, {pipeline_mode = #tpu.pipeline_mode<synchronous>, transform_indices = @transform_28, window_bounds = array<i64: 3, 32, 128>}, {pipeline_mode = #tpu.pipeline_mode<synchronous>, transform_indices = @transform_29, window_bounds = array<i64: 1, 128>}, {pipeline_mode = #tpu.pipeline_mode<synchronous>, transform_indices = @transform_30, window_bounds = array<i64: 3, 64, 32>}, {pipeline_mode = #tpu.pipeline_mode<synchronous>, transform_indices = @transform_31, window_bounds = array<i64: 1, 32>}, {pipeline_mode = #tpu.pipeline_mode<synchronous>, transform_indices = @transform_32, window_bounds = array<i64: 3, 32, 16>}, {pipeline_mode = #tpu.pipeline_mode<synchronous>, transform_indices = @transform_33, window_bounds = array<i64: 1, 16>}, {pipeline_mode = #tpu.pipeline_mode<synchronous>, transform_indices = @transform_34, window_bounds = array<i64: 3, 16, 64>}, {pipeline_mode = #tpu.pipeline_mode<synchronous>, transform_indices = @transform_35, window_bounds = array<i64: 1, 64>}, {pipeline_mode = #tpu.pipeline_mode<synchronous>, transform_indices = @transform_36, window_bounds = array<i64: 3, 32, 128>}, {pipeline_mode = #tpu.pipeline_mode<synchronous>, transform_indices = @transform_37, window_bounds = array<i64: 1, 128>}, {pipeline_mode = #tpu.pipeline_mode<synchronous>, transform_indices = @transform_38, window_bounds = array<i64: 3, 64, 32>}, {pipeline_mode = #tpu.pipeline_mode<synchronous>, transform_indices = @transform_39, window_bounds = array<i64: 1, 32>}, {pipeline_mode = #tpu.pipeline_mode<synchronous>, transform_indices = @transform_40, window_bounds = array<i64: 3, 32, 16>}, {pipeline_mode = #tpu.pipeline_mode<synchronous>, transform_indices = @transform_41, window_bounds = array<i64: 1, 16>}, {pipeline_mode = #tpu.pipeline_mode<synchronous>, transform_indices = @transform_42, window_bounds = array<i64: 3, 16, 64>}, {pipeline_mode = #tpu.pipeline_mode<synchronous>, transform_indices = @transform_43, window_bounds = array<i64: 1, 64>}, {pipeline_mode = #tpu.pipeline_mode<synchronous>, transform_indices = @transform_44, window_bounds = array<i64: 3, 32, 128>}, {pipeline_mode = #tpu.pipeline_mode<synchronous>, transform_indices = @transform_45, window_bounds = array<i64: 1, 128>}, {pipeline_mode = #tpu.pipeline_mode<synchronous>, transform_indices = @transform_46, window_bounds = array<i64: 3, 64, 192>}, {pipeline_mode = #tpu.pipeline_mode<synchronous>, transform_indices = @transform_47, window_bounds = array<i64: 1, 192>}, {pipeline_mode = #tpu.pipeline_mode<synchronous>, transform_indices = @transform_48, window_bounds = array<i64: 3, 64, 768>}, {pipeline_mode = #tpu.pipeline_mode<synchronous>, transform_indices = @transform_49, window_bounds = array<i64: 1, 768>}, {pipeline_mode = #tpu.pipeline_mode<synchronous>, transform_indices = @transform_50, window_bounds = array<i64: 2, 32, 16>}, {pipeline_mode = #tpu.pipeline_mode<synchronous>, transform_indices = @transform_51, window_bounds = array<i64: 2, 192, 96>}, {pipeline_mode = #tpu.pipeline_mode<synchronous>, transform_indices = @transform_52, window_bounds = array<i64: 4, 64, 16>}, {pipeline_mode = #tpu.pipeline_mode<synchronous>, transform_indices = @transform_53, window_bounds = array<i64: 4, 768, 192>}, {transform_indices = @transform_54, window_bounds = array<i64: 1, 32, 96>}, {transform_indices = @transform_55, window_bounds = array<i64: 1, 64, 192>}]} {
    %c0 = arith.constant 0 : index
    %c0_0 = arith.constant 0 : index
    %c0_1 = arith.constant 0 : index
    %0 = vector.load %arg1[%c0, %c0_0, %c0_1] : memref<1x16x48xf32, #tpu.memory_space<vmem>>, vector<1x16x48xf32>
    %1 = vector.shape_cast %0 : vector<1x16x48xf32> to vector<16x48xf32>
    %c0_2 = arith.constant 0 : index
    %c0_3 = arith.constant 0 : index
    %2 = vector.load %arg4[%c0_2, %c0_3] : memref<1x256xf32, #tpu.memory_space<vmem>>, vector<1x256xf32>
    %3 = vector.shape_cast %2 : vector<1x256xf32> to vector<1x256xf32>
    %4 = vector.broadcast %3 : vector<1x256xf32> to vector<16x256xf32>
    %c0_4 = arith.constant 0 : index
    %c0_5 = arith.constant 0 : index
    %c0_6 = arith.constant 0 : index
    %5 = vector.load %arg2[%c0_4, %c0_5, %c0_6] : memref<3x16x16xf32, #tpu.memory_space<vmem>>, vector<1x16x16xf32>
    %6 = vector.shape_cast %5 : vector<1x16x16xf32> to vector<16x16xf32>
    %cst = arith.constant dense<0.000000e+00> : vector<16x48xf32>
    %7 = tpu.matmul %6, %1, %cst {dimension_numbers = #tpu.dot_dimension_numbers<[1], [0], [0], [1], [0, 0, 1, 1], [], []>} : vector<16x16xf32>, vector<16x48xf32>, vector<16x48xf32> -> vector<16x48xf32>
    %c0_7 = arith.constant 0 : index
    %c0_8 = arith.constant 0 : index
    %c0_9 = arith.constant 0 : index
    %8 = vector.load %arg3[%c0_7, %c0_8, %c0_9] : memref<3x48x256xf32, #tpu.memory_space<vmem>>, vector<1x48x256xf32>
    %9 = vector.shape_cast %8 : vector<1x48x256xf32> to vector<48x256xf32>
    %cst_10 = arith.constant dense<0.000000e+00> : vector<16x256xf32>
    %10 = tpu.matmul %7, %9, %cst_10 {dimension_numbers = #tpu.dot_dimension_numbers<[1], [0], [0], [1], [0, 0, 1, 1], [], []>} : vector<16x48xf32>, vector<48x256xf32>, vector<16x256xf32> -> vector<16x256xf32>
    %11 = arith.addf %4, %10 : vector<16x256xf32>
    %c1 = arith.constant 1 : index
    %c0_11 = arith.constant 0 : index
    %c0_12 = arith.constant 0 : index
    %12 = vector.load %arg3[%c1, %c0_11, %c0_12] : memref<3x48x256xf32, #tpu.memory_space<vmem>>, vector<1x48x256xf32>
    %13 = vector.shape_cast %12 : vector<1x48x256xf32> to vector<48x256xf32>
    %cst_13 = arith.constant dense<0.000000e+00> : vector<16x256xf32>
    %14 = tpu.matmul %1, %13, %cst_13 {dimension_numbers = #tpu.dot_dimension_numbers<[1], [0], [0], [1], [0, 0, 1, 1], [], []>} : vector<16x48xf32>, vector<48x256xf32>, vector<16x256xf32> -> vector<16x256xf32>
    %15 = arith.addf %11, %14 : vector<16x256xf32>
    %c2 = arith.constant 2 : index
    %c0_14 = arith.constant 0 : index
    %c0_15 = arith.constant 0 : index
    %16 = vector.load %arg2[%c2, %c0_14, %c0_15] : memref<3x16x16xf32, #tpu.memory_space<vmem>>, vector<1x16x16xf32>
    %17 = vector.shape_cast %16 : vector<1x16x16xf32> to vector<16x16xf32>
    %cst_16 = arith.constant dense<0.000000e+00> : vector<16x48xf32>
    %18 = tpu.matmul %17, %1, %cst_16 {dimension_numbers = #tpu.dot_dimension_numbers<[1], [0], [0], [1], [0, 0, 1, 1], [], []>} : vector<16x16xf32>, vector<16x48xf32>, vector<16x48xf32> -> vector<16x48xf32>
    %c2_17 = arith.constant 2 : index
    %c0_18 = arith.constant 0 : index
    %c0_19 = arith.constant 0 : index
    %19 = vector.load %arg3[%c2_17, %c0_18, %c0_19] : memref<3x48x256xf32, #tpu.memory_space<vmem>>, vector<1x48x256xf32>
    %20 = vector.shape_cast %19 : vector<1x48x256xf32> to vector<48x256xf32>
    %cst_20 = arith.constant dense<0.000000e+00> : vector<16x256xf32>
    %21 = tpu.matmul %18, %20, %cst_20 {dimension_numbers = #tpu.dot_dimension_numbers<[1], [0], [0], [1], [0, 0, 1, 1], [], []>} : vector<16x48xf32>, vector<48x256xf32>, vector<16x256xf32> -> vector<16x256xf32>
    %22 = arith.addf %15, %21 : vector<16x256xf32>
    %c0_21 = arith.constant 0 : index
    %c0_22 = arith.constant 0 : index
    %23 = vector.load %arg6[%c0_21, %c0_22] : memref<1x64xf32, #tpu.memory_space<vmem>>, vector<1x64xf32>
    %24 = vector.shape_cast %23 : vector<1x64xf32> to vector<1x64xf32>
    %25 = vector.broadcast %24 : vector<1x64xf32> to vector<16x64xf32>
    %c0_23 = arith.constant 0 : index
    %c0_24 = arith.constant 0 : index
    %c0_25 = arith.constant 0 : index
    %26 = vector.load %arg5[%c0_23, %c0_24, %c0_25] : memref<1x256x64xf32, #tpu.memory_space<vmem>>, vector<1x256x64xf32>
    %27 = vector.shape_cast %26 : vector<1x256x64xf32> to vector<256x64xf32>
    %cst_26 = arith.constant dense<0.000000e+00> : vector<16x64xf32>
    %28 = tpu.matmul %22, %27, %cst_26 {dimension_numbers = #tpu.dot_dimension_numbers<[1], [0], [0], [1], [0, 0, 1, 1], [], []>} : vector<16x256xf32>, vector<256x64xf32>, vector<16x64xf32> -> vector<16x64xf32>
    %29 = arith.addf %25, %28 : vector<16x64xf32>
    %cst_27 = arith.constant 0.000000e+00 : f32
    %30 = vector.broadcast %cst_27 : f32 to vector<16x64xf32>
    %31 = arith.maximumf %29, %30 : vector<16x64xf32>
    %c0_28 = arith.constant 0 : index
    %c0_29 = arith.constant 0 : index
    %32 = vector.load %arg9[%c0_28, %c0_29] : memref<1x32xf32, #tpu.memory_space<vmem>>, vector<1x32xf32>
    %33 = vector.shape_cast %32 : vector<1x32xf32> to vector<1x32xf32>
    %34 = vector.broadcast %33 : vector<1x32xf32> to vector<8x32xf32>
    %c0_30 = arith.constant 0 : index
    %c0_31 = arith.constant 0 : index
    %c0_32 = arith.constant 0 : index
    %35 = vector.load %arg7[%c0_30, %c0_31, %c0_32] : memref<3x8x16xf32, #tpu.memory_space<vmem>>, vector<1x8x16xf32>
    %36 = vector.shape_cast %35 : vector<1x8x16xf32> to vector<8x16xf32>
    %cst_33 = arith.constant dense<0.000000e+00> : vector<8x64xf32>
    %37 = tpu.matmul %36, %31, %cst_33 {dimension_numbers = #tpu.dot_dimension_numbers<[1], [0], [0], [1], [0, 0, 1, 1], [], []>} : vector<8x16xf32>, vector<16x64xf32>, vector<8x64xf32> -> vector<8x64xf32>
    %c0_34 = arith.constant 0 : index
    %c0_35 = arith.constant 0 : index
    %c0_36 = arith.constant 0 : index
    %38 = vector.load %arg8[%c0_34, %c0_35, %c0_36] : memref<3x64x32xf32, #tpu.memory_space<vmem>>, vector<1x64x32xf32>
    %39 = vector.shape_cast %38 : vector<1x64x32xf32> to vector<64x32xf32>
    %cst_37 = arith.constant dense<0.000000e+00> : vector<8x32xf32>
    %40 = tpu.matmul %37, %39, %cst_37 {dimension_numbers = #tpu.dot_dimension_numbers<[1], [0], [0], [1], [0, 0, 1, 1], [], []>} : vector<8x64xf32>, vector<64x32xf32>, vector<8x32xf32> -> vector<8x32xf32>
    %41 = arith.addf %34, %40 : vector<8x32xf32>
    %c1_38 = arith.constant 1 : index
    %c0_39 = arith.constant 0 : index
    %c0_40 = arith.constant 0 : index
    %42 = vector.load %arg7[%c1_38, %c0_39, %c0_40] : memref<3x8x16xf32, #tpu.memory_space<vmem>>, vector<1x8x16xf32>
    %43 = vector.shape_cast %42 : vector<1x8x16xf32> to vector<8x16xf32>
    %cst_41 = arith.constant dense<0.000000e+00> : vector<8x64xf32>
    %44 = tpu.matmul %43, %31, %cst_41 {dimension_numbers = #tpu.dot_dimension_numbers<[1], [0], [0], [1], [0, 0, 1, 1], [], []>} : vector<8x16xf32>, vector<16x64xf32>, vector<8x64xf32> -> vector<8x64xf32>
    %c1_42 = arith.constant 1 : index
    %c0_43 = arith.constant 0 : index
    %c0_44 = arith.constant 0 : index
    %45 = vector.load %arg8[%c1_42, %c0_43, %c0_44] : memref<3x64x32xf32, #tpu.memory_space<vmem>>, vector<1x64x32xf32>
    %46 = vector.shape_cast %45 : vector<1x64x32xf32> to vector<64x32xf32>
    %cst_45 = arith.constant dense<0.000000e+00> : vector<8x32xf32>
    %47 = tpu.matmul %44, %46, %cst_45 {dimension_numbers = #tpu.dot_dimension_numbers<[1], [0], [0], [1], [0, 0, 1, 1], [], []>} : vector<8x64xf32>, vector<64x32xf32>, vector<8x32xf32> -> vector<8x32xf32>
    %48 = arith.addf %41, %47 : vector<8x32xf32>
    %c2_46 = arith.constant 2 : index
    %c0_47 = arith.constant 0 : index
    %c0_48 = arith.constant 0 : index
    %49 = vector.load %arg7[%c2_46, %c0_47, %c0_48] : memref<3x8x16xf32, #tpu.memory_space<vmem>>, vector<1x8x16xf32>
    %50 = vector.shape_cast %49 : vector<1x8x16xf32> to vector<8x16xf32>
    %cst_49 = arith.constant dense<0.000000e+00> : vector<8x64xf32>
    %51 = tpu.matmul %50, %31, %cst_49 {dimension_numbers = #tpu.dot_dimension_numbers<[1], [0], [0], [1], [0, 0, 1, 1], [], []>} : vector<8x16xf32>, vector<16x64xf32>, vector<8x64xf32> -> vector<8x64xf32>
    %c2_50 = arith.constant 2 : index
    %c0_51 = arith.constant 0 : index
    %c0_52 = arith.constant 0 : index
    %52 = vector.load %arg8[%c2_50, %c0_51, %c0_52] : memref<3x64x32xf32, #tpu.memory_space<vmem>>, vector<1x64x32xf32>
    %53 = vector.shape_cast %52 : vector<1x64x32xf32> to vector<64x32xf32>
    %cst_53 = arith.constant dense<0.000000e+00> : vector<8x32xf32>
    %54 = tpu.matmul %51, %53, %cst_53 {dimension_numbers = #tpu.dot_dimension_numbers<[1], [0], [0], [1], [0, 0, 1, 1], [], []>} : vector<8x64xf32>, vector<64x32xf32>, vector<8x32xf32> -> vector<8x32xf32>
    %55 = arith.addf %48, %54 : vector<8x32xf32>
    %cst_54 = arith.constant 0.000000e+00 : f32
    %56 = vector.broadcast %cst_54 : f32 to vector<8x32xf32>
    %57 = arith.maximumf %55, %56 : vector<8x32xf32>
    %c0_55 = arith.constant 0 : index
    %c0_56 = arith.constant 0 : index
    %58 = vector.load %arg12[%c0_55, %c0_56] : memref<1x16xf32, #tpu.memory_space<vmem>>, vector<1x16xf32>
    %59 = vector.shape_cast %58 : vector<1x16xf32> to vector<1x16xf32>
    %60 = vector.broadcast %59 : vector<1x16xf32> to vector<4x16xf32>
    %c0_57 = arith.constant 0 : index
    %c0_58 = arith.constant 0 : index
    %c0_59 = arith.constant 0 : index
    %61 = vector.load %arg10[%c0_57, %c0_58, %c0_59] : memref<3x4x8xf32, #tpu.memory_space<vmem>>, vector<1x4x8xf32>
    %62 = vector.shape_cast %61 : vector<1x4x8xf32> to vector<4x8xf32>
    %cst_60 = arith.constant dense<0.000000e+00> : vector<4x32xf32>
    %63 = tpu.matmul %62, %57, %cst_60 {dimension_numbers = #tpu.dot_dimension_numbers<[1], [0], [0], [1], [0, 0, 1, 1], [], []>} : vector<4x8xf32>, vector<8x32xf32>, vector<4x32xf32> -> vector<4x32xf32>
    %c0_61 = arith.constant 0 : index
    %c0_62 = arith.constant 0 : index
    %c0_63 = arith.constant 0 : index
    %64 = vector.load %arg11[%c0_61, %c0_62, %c0_63] : memref<3x32x16xf32, #tpu.memory_space<vmem>>, vector<1x32x16xf32>
    %65 = vector.shape_cast %64 : vector<1x32x16xf32> to vector<32x16xf32>
    %cst_64 = arith.constant dense<0.000000e+00> : vector<4x16xf32>
    %66 = tpu.matmul %63, %65, %cst_64 {dimension_numbers = #tpu.dot_dimension_numbers<[1], [0], [0], [1], [0, 0, 1, 1], [], []>} : vector<4x32xf32>, vector<32x16xf32>, vector<4x16xf32> -> vector<4x16xf32>
    %67 = arith.addf %60, %66 : vector<4x16xf32>
    %c1_65 = arith.constant 1 : index
    %c0_66 = arith.constant 0 : index
    %c0_67 = arith.constant 0 : index
    %68 = vector.load %arg10[%c1_65, %c0_66, %c0_67] : memref<3x4x8xf32, #tpu.memory_space<vmem>>, vector<1x4x8xf32>
    %69 = vector.shape_cast %68 : vector<1x4x8xf32> to vector<4x8xf32>
    %cst_68 = arith.constant dense<0.000000e+00> : vector<4x32xf32>
    %70 = tpu.matmul %69, %57, %cst_68 {dimension_numbers = #tpu.dot_dimension_numbers<[1], [0], [0], [1], [0, 0, 1, 1], [], []>} : vector<4x8xf32>, vector<8x32xf32>, vector<4x32xf32> -> vector<4x32xf32>
    %c1_69 = arith.constant 1 : index
    %c0_70 = arith.constant 0 : index
    %c0_71 = arith.constant 0 : index
    %71 = vector.load %arg11[%c1_69, %c0_70, %c0_71] : memref<3x32x16xf32, #tpu.memory_space<vmem>>, vector<1x32x16xf32>
    %72 = vector.shape_cast %71 : vector<1x32x16xf32> to vector<32x16xf32>
    %cst_72 = arith.constant dense<0.000000e+00> : vector<4x16xf32>
    %73 = tpu.matmul %70, %72, %cst_72 {dimension_numbers = #tpu.dot_dimension_numbers<[1], [0], [0], [1], [0, 0, 1, 1], [], []>} : vector<4x32xf32>, vector<32x16xf32>, vector<4x16xf32> -> vector<4x16xf32>
    %74 = arith.addf %67, %73 : vector<4x16xf32>
    %c2_73 = arith.constant 2 : index
    %c0_74 = arith.constant 0 : index
    %c0_75 = arith.constant 0 : index
    %75 = vector.load %arg10[%c2_73, %c0_74, %c0_75] : memref<3x4x8xf32, #tpu.memory_space<vmem>>, vector<1x4x8xf32>
    %76 = vector.shape_cast %75 : vector<1x4x8xf32> to vector<4x8xf32>
    %cst_76 = arith.constant dense<0.000000e+00> : vector<4x32xf32>
    %77 = tpu.matmul %76, %57, %cst_76 {dimension_numbers = #tpu.dot_dimension_numbers<[1], [0], [0], [1], [0, 0, 1, 1], [], []>} : vector<4x8xf32>, vector<8x32xf32>, vector<4x32xf32> -> vector<4x32xf32>
    %c2_77 = arith.constant 2 : index
    %c0_78 = arith.constant 0 : index
    %c0_79 = arith.constant 0 : index
    %78 = vector.load %arg11[%c2_77, %c0_78, %c0_79] : memref<3x32x16xf32, #tpu.memory_space<vmem>>, vector<1x32x16xf32>
    %79 = vector.shape_cast %78 : vector<1x32x16xf32> to vector<32x16xf32>
    %cst_80 = arith.constant dense<0.000000e+00> : vector<4x16xf32>
    %80 = tpu.matmul %77, %79, %cst_80 {dimension_numbers = #tpu.dot_dimension_numbers<[1], [0], [0], [1], [0, 0, 1, 1], [], []>} : vector<4x32xf32>, vector<32x16xf32>, vector<4x16xf32> -> vector<4x16xf32>
    %81 = arith.addf %74, %80 : vector<4x16xf32>
    %cst_81 = arith.constant 0.000000e+00 : f32
    %82 = vector.broadcast %cst_81 : f32 to vector<4x16xf32>
    %83 = arith.maximumf %81, %82 : vector<4x16xf32>
    %c0_82 = arith.constant 0 : index
    %c0_83 = arith.constant 0 : index
    %84 = vector.load %arg15[%c0_82, %c0_83] : memref<1x64xf32, #tpu.memory_space<vmem>>, vector<1x64xf32>
    %85 = vector.shape_cast %84 : vector<1x64xf32> to vector<1x64xf32>
    %86 = vector.broadcast %85 : vector<1x64xf32> to vector<4x64xf32>
    %c0_84 = arith.constant 0 : index
    %c0_85 = arith.constant 0 : index
    %c0_86 = arith.constant 0 : index
    %87 = vector.load %arg13[%c0_84, %c0_85, %c0_86] : memref<3x4x4xf32, #tpu.memory_space<vmem>>, vector<1x4x4xf32>
    %88 = vector.shape_cast %87 : vector<1x4x4xf32> to vector<4x4xf32>
    %cst_87 = arith.constant dense<0.000000e+00> : vector<4x16xf32>
    %89 = tpu.matmul %88, %83, %cst_87 {dimension_numbers = #tpu.dot_dimension_numbers<[1], [0], [0], [1], [0, 0, 1, 1], [], []>} : vector<4x4xf32>, vector<4x16xf32>, vector<4x16xf32> -> vector<4x16xf32>
    %c0_88 = arith.constant 0 : index
    %c0_89 = arith.constant 0 : index
    %c0_90 = arith.constant 0 : index
    %90 = vector.load %arg14[%c0_88, %c0_89, %c0_90] : memref<3x16x64xf32, #tpu.memory_space<vmem>>, vector<1x16x64xf32>
    %91 = vector.shape_cast %90 : vector<1x16x64xf32> to vector<16x64xf32>
    %cst_91 = arith.constant dense<0.000000e+00> : vector<4x64xf32>
    %92 = tpu.matmul %89, %91, %cst_91 {dimension_numbers = #tpu.dot_dimension_numbers<[1], [0], [0], [1], [0, 0, 1, 1], [], []>} : vector<4x16xf32>, vector<16x64xf32>, vector<4x64xf32> -> vector<4x64xf32>
    %93 = arith.addf %86, %92 : vector<4x64xf32>
    %c1_92 = arith.constant 1 : index
    %c0_93 = arith.constant 0 : index
    %c0_94 = arith.constant 0 : index
    %94 = vector.load %arg14[%c1_92, %c0_93, %c0_94] : memref<3x16x64xf32, #tpu.memory_space<vmem>>, vector<1x16x64xf32>
    %95 = vector.shape_cast %94 : vector<1x16x64xf32> to vector<16x64xf32>
    %cst_95 = arith.constant dense<0.000000e+00> : vector<4x64xf32>
    %96 = tpu.matmul %83, %95, %cst_95 {dimension_numbers = #tpu.dot_dimension_numbers<[1], [0], [0], [1], [0, 0, 1, 1], [], []>} : vector<4x16xf32>, vector<16x64xf32>, vector<4x64xf32> -> vector<4x64xf32>
    %97 = arith.addf %93, %96 : vector<4x64xf32>
    %c2_96 = arith.constant 2 : index
    %c0_97 = arith.constant 0 : index
    %c0_98 = arith.constant 0 : index
    %98 = vector.load %arg13[%c2_96, %c0_97, %c0_98] : memref<3x4x4xf32, #tpu.memory_space<vmem>>, vector<1x4x4xf32>
    %99 = vector.shape_cast %98 : vector<1x4x4xf32> to vector<4x4xf32>
    %cst_99 = arith.constant dense<0.000000e+00> : vector<4x16xf32>
    %100 = tpu.matmul %99, %83, %cst_99 {dimension_numbers = #tpu.dot_dimension_numbers<[1], [0], [0], [1], [0, 0, 1, 1], [], []>} : vector<4x4xf32>, vector<4x16xf32>, vector<4x16xf32> -> vector<4x16xf32>
    %c2_100 = arith.constant 2 : index
    %c0_101 = arith.constant 0 : index
    %c0_102 = arith.constant 0 : index
    %101 = vector.load %arg14[%c2_100, %c0_101, %c0_102] : memref<3x16x64xf32, #tpu.memory_space<vmem>>, vector<1x16x64xf32>
    %102 = vector.shape_cast %101 : vector<1x16x64xf32> to vector<16x64xf32>
    %cst_103 = arith.constant dense<0.000000e+00> : vector<4x64xf32>
    %103 = tpu.matmul %100, %102, %cst_103 {dimension_numbers = #tpu.dot_dimension_numbers<[1], [0], [0], [1], [0, 0, 1, 1], [], []>} : vector<4x16xf32>, vector<16x64xf32>, vector<4x64xf32> -> vector<4x64xf32>
    %104 = arith.addf %97, %103 : vector<4x64xf32>
    %cst_104 = arith.constant 0.000000e+00 : f32
    %105 = vector.broadcast %cst_104 : f32 to vector<4x64xf32>
    %106 = arith.maximumf %104, %105 : vector<4x64xf32>
    %c0_105 = arith.constant 0 : index
    %c0_106 = arith.constant 0 : index
    %c0_107 = arith.constant 0 : index
    %107 = vector.load %arg19[%c0_105, %c0_106, %c0_107] : memref<2x8x4xf32, #tpu.memory_space<vmem>>, vector<1x8x4xf32>
    %108 = vector.shape_cast %107 : vector<1x8x4xf32> to vector<8x4xf32>
    %c0_108 = arith.constant 0 : index
    %c0_109 = arith.constant 0 : index
    %c0_110 = arith.constant 0 : index
    %109 = vector.load %arg20[%c0_108, %c0_109, %c0_110] : memref<2x64x32xf32, #tpu.memory_space<vmem>>, vector<1x64x32xf32>
    %110 = vector.shape_cast %109 : vector<1x64x32xf32> to vector<64x32xf32>
    %cst_111 = arith.constant dense<0.000000e+00> : vector<4x32xf32>
    %111 = tpu.matmul %106, %110, %cst_111 {dimension_numbers = #tpu.dot_dimension_numbers<[1], [0], [0], [1], [0, 0, 1, 1], [], []>} : vector<4x64xf32>, vector<64x32xf32>, vector<4x32xf32> -> vector<4x32xf32>
    %cst_112 = arith.constant dense<0.000000e+00> : vector<8x32xf32>
    %112 = tpu.matmul %108, %111, %cst_112 {dimension_numbers = #tpu.dot_dimension_numbers<[1], [0], [0], [1], [0, 0, 1, 1], [], []>} : vector<8x4xf32>, vector<4x32xf32>, vector<8x32xf32> -> vector<8x32xf32>
    %c1_113 = arith.constant 1 : index
    %c0_114 = arith.constant 0 : index
    %c0_115 = arith.constant 0 : index
    %113 = vector.load %arg19[%c1_113, %c0_114, %c0_115] : memref<2x8x4xf32, #tpu.memory_space<vmem>>, vector<1x8x4xf32>
    %114 = vector.shape_cast %113 : vector<1x8x4xf32> to vector<8x4xf32>
    %c1_116 = arith.constant 1 : index
    %c0_117 = arith.constant 0 : index
    %c0_118 = arith.constant 0 : index
    %115 = vector.load %arg20[%c1_116, %c0_117, %c0_118] : memref<2x64x32xf32, #tpu.memory_space<vmem>>, vector<1x64x32xf32>
    %116 = vector.shape_cast %115 : vector<1x64x32xf32> to vector<64x32xf32>
    %cst_119 = arith.constant dense<0.000000e+00> : vector<4x32xf32>
    %117 = tpu.matmul %106, %116, %cst_119 {dimension_numbers = #tpu.dot_dimension_numbers<[1], [0], [0], [1], [0, 0, 1, 1], [], []>} : vector<4x64xf32>, vector<64x32xf32>, vector<4x32xf32> -> vector<4x32xf32>
    %cst_120 = arith.constant dense<0.000000e+00> : vector<8x32xf32>
    %118 = tpu.matmul %114, %117, %cst_120 {dimension_numbers = #tpu.dot_dimension_numbers<[1], [0], [0], [1], [0, 0, 1, 1], [], []>} : vector<8x4xf32>, vector<4x32xf32>, vector<8x32xf32> -> vector<8x32xf32>
    %119 = arith.addf %112, %118 : vector<8x32xf32>
    %120 = arith.addf %119, %57 : vector<8x32xf32>
    %c0_121 = arith.constant 0 : index
    %c0_122 = arith.constant 0 : index
    %121 = vector.load %arg18[%c0_121, %c0_122] : memref<1x128xf32, #tpu.memory_space<vmem>>, vector<1x128xf32>
    %122 = vector.shape_cast %121 : vector<1x128xf32> to vector<1x128xf32>
    %123 = vector.broadcast %122 : vector<1x128xf32> to vector<8x128xf32>
    %c0_123 = arith.constant 0 : index
    %c0_124 = arith.constant 0 : index
    %c0_125 = arith.constant 0 : index
    %124 = vector.load %arg16[%c0_123, %c0_124, %c0_125] : memref<3x8x8xf32, #tpu.memory_space<vmem>>, vector<1x8x8xf32>
    %125 = vector.shape_cast %124 : vector<1x8x8xf32> to vector<8x8xf32>
    %cst_126 = arith.constant dense<0.000000e+00> : vector<8x32xf32>
    %126 = tpu.matmul %125, %120, %cst_126 {dimension_numbers = #tpu.dot_dimension_numbers<[1], [0], [0], [1], [0, 0, 1, 1], [], []>} : vector<8x8xf32>, vector<8x32xf32>, vector<8x32xf32> -> vector<8x32xf32>
    %c0_127 = arith.constant 0 : index
    %c0_128 = arith.constant 0 : index
    %c0_129 = arith.constant 0 : index
    %127 = vector.load %arg17[%c0_127, %c0_128, %c0_129] : memref<3x32x128xf32, #tpu.memory_space<vmem>>, vector<1x32x128xf32>
    %128 = vector.shape_cast %127 : vector<1x32x128xf32> to vector<32x128xf32>
    %cst_130 = arith.constant dense<0.000000e+00> : vector<8x128xf32>
    %129 = tpu.matmul %126, %128, %cst_130 {dimension_numbers = #tpu.dot_dimension_numbers<[1], [0], [0], [1], [0, 0, 1, 1], [], []>} : vector<8x32xf32>, vector<32x128xf32>, vector<8x128xf32> -> vector<8x128xf32>
    %130 = arith.addf %123, %129 : vector<8x128xf32>
    %c1_131 = arith.constant 1 : index
    %c0_132 = arith.constant 0 : index
    %c0_133 = arith.constant 0 : index
    %131 = vector.load %arg17[%c1_131, %c0_132, %c0_133] : memref<3x32x128xf32, #tpu.memory_space<vmem>>, vector<1x32x128xf32>
    %132 = vector.shape_cast %131 : vector<1x32x128xf32> to vector<32x128xf32>
    %cst_134 = arith.constant dense<0.000000e+00> : vector<8x128xf32>
    %133 = tpu.matmul %120, %132, %cst_134 {dimension_numbers = #tpu.dot_dimension_numbers<[1], [0], [0], [1], [0, 0, 1, 1], [], []>} : vector<8x32xf32>, vector<32x128xf32>, vector<8x128xf32> -> vector<8x128xf32>
    %134 = arith.addf %130, %133 : vector<8x128xf32>
    %c2_135 = arith.constant 2 : index
    %c0_136 = arith.constant 0 : index
    %c0_137 = arith.constant 0 : index
    %135 = vector.load %arg16[%c2_135, %c0_136, %c0_137] : memref<3x8x8xf32, #tpu.memory_space<vmem>>, vector<1x8x8xf32>
    %136 = vector.shape_cast %135 : vector<1x8x8xf32> to vector<8x8xf32>
    %cst_138 = arith.constant dense<0.000000e+00> : vector<8x32xf32>
    %137 = tpu.matmul %136, %120, %cst_138 {dimension_numbers = #tpu.dot_dimension_numbers<[1], [0], [0], [1], [0, 0, 1, 1], [], []>} : vector<8x8xf32>, vector<8x32xf32>, vector<8x32xf32> -> vector<8x32xf32>
    %c2_139 = arith.constant 2 : index
    %c0_140 = arith.constant 0 : index
    %c0_141 = arith.constant 0 : index
    %138 = vector.load %arg17[%c2_139, %c0_140, %c0_141] : memref<3x32x128xf32, #tpu.memory_space<vmem>>, vector<1x32x128xf32>
    %139 = vector.shape_cast %138 : vector<1x32x128xf32> to vector<32x128xf32>
    %cst_142 = arith.constant dense<0.000000e+00> : vector<8x128xf32>
    %140 = tpu.matmul %137, %139, %cst_142 {dimension_numbers = #tpu.dot_dimension_numbers<[1], [0], [0], [1], [0, 0, 1, 1], [], []>} : vector<8x32xf32>, vector<32x128xf32>, vector<8x128xf32> -> vector<8x128xf32>
    %141 = arith.addf %134, %140 : vector<8x128xf32>
    %cst_143 = arith.constant 0.000000e+00 : f32
    %142 = vector.broadcast %cst_143 : f32 to vector<8x128xf32>
    %143 = arith.maximumf %141, %142 : vector<8x128xf32>
    %c0_144 = arith.constant 0 : index
    %c0_145 = arith.constant 0 : index
    %c0_146 = arith.constant 0 : index
    %144 = vector.load %arg21[%c0_144, %c0_145, %c0_146] : memref<2x16x8xf32, #tpu.memory_space<vmem>>, vector<1x16x8xf32>
    %145 = vector.shape_cast %144 : vector<1x16x8xf32> to vector<16x8xf32>
    %c0_147 = arith.constant 0 : index
    %c0_148 = arith.constant 0 : index
    %c0_149 = arith.constant 0 : index
    %146 = vector.load %arg22[%c0_147, %c0_148, %c0_149] : memref<2x128x64xf32, #tpu.memory_space<vmem>>, vector<1x128x64xf32>
    %147 = vector.shape_cast %146 : vector<1x128x64xf32> to vector<128x64xf32>
    %cst_150 = arith.constant dense<0.000000e+00> : vector<8x64xf32>
    %148 = tpu.matmul %143, %147, %cst_150 {dimension_numbers = #tpu.dot_dimension_numbers<[1], [0], [0], [1], [0, 0, 1, 1], [], []>} : vector<8x128xf32>, vector<128x64xf32>, vector<8x64xf32> -> vector<8x64xf32>
    %cst_151 = arith.constant dense<0.000000e+00> : vector<16x64xf32>
    %149 = tpu.matmul %145, %148, %cst_151 {dimension_numbers = #tpu.dot_dimension_numbers<[1], [0], [0], [1], [0, 0, 1, 1], [], []>} : vector<16x8xf32>, vector<8x64xf32>, vector<16x64xf32> -> vector<16x64xf32>
    %c1_152 = arith.constant 1 : index
    %c0_153 = arith.constant 0 : index
    %c0_154 = arith.constant 0 : index
    %150 = vector.load %arg21[%c1_152, %c0_153, %c0_154] : memref<2x16x8xf32, #tpu.memory_space<vmem>>, vector<1x16x8xf32>
    %151 = vector.shape_cast %150 : vector<1x16x8xf32> to vector<16x8xf32>
    %c1_155 = arith.constant 1 : index
    %c0_156 = arith.constant 0 : index
    %c0_157 = arith.constant 0 : index
    %152 = vector.load %arg22[%c1_155, %c0_156, %c0_157] : memref<2x128x64xf32, #tpu.memory_space<vmem>>, vector<1x128x64xf32>
    %153 = vector.shape_cast %152 : vector<1x128x64xf32> to vector<128x64xf32>
    %cst_158 = arith.constant dense<0.000000e+00> : vector<8x64xf32>
    %154 = tpu.matmul %143, %153, %cst_158 {dimension_numbers = #tpu.dot_dimension_numbers<[1], [0], [0], [1], [0, 0, 1, 1], [], []>} : vector<8x128xf32>, vector<128x64xf32>, vector<8x64xf32> -> vector<8x64xf32>
    %cst_159 = arith.constant dense<0.000000e+00> : vector<16x64xf32>
    %155 = tpu.matmul %151, %154, %cst_159 {dimension_numbers = #tpu.dot_dimension_numbers<[1], [0], [0], [1], [0, 0, 1, 1], [], []>} : vector<16x8xf32>, vector<8x64xf32>, vector<16x64xf32> -> vector<16x64xf32>
    %156 = arith.addf %149, %155 : vector<16x64xf32>
    %157 = arith.addf %156, %31 : vector<16x64xf32>
    %c0_160 = arith.constant 0 : index
    %c0_161 = arith.constant 0 : index
    %158 = vector.load %arg24[%c0_160, %c0_161] : memref<1x32xf32, #tpu.memory_space<vmem>>, vector<1x32xf32>
    %159 = vector.shape_cast %158 : vector<1x32xf32> to vector<1x32xf32>
    %160 = vector.broadcast %159 : vector<1x32xf32> to vector<8x32xf32>
    %c0_162 = arith.constant 0 : index
    %c0_163 = arith.constant 0 : index
    %c0_164 = arith.constant 0 : index
    %161 = vector.load %arg7[%c0_162, %c0_163, %c0_164] : memref<3x8x16xf32, #tpu.memory_space<vmem>>, vector<1x8x16xf32>
    %162 = vector.shape_cast %161 : vector<1x8x16xf32> to vector<8x16xf32>
    %cst_165 = arith.constant dense<0.000000e+00> : vector<8x64xf32>
    %163 = tpu.matmul %162, %157, %cst_165 {dimension_numbers = #tpu.dot_dimension_numbers<[1], [0], [0], [1], [0, 0, 1, 1], [], []>} : vector<8x16xf32>, vector<16x64xf32>, vector<8x64xf32> -> vector<8x64xf32>
    %c0_166 = arith.constant 0 : index
    %c0_167 = arith.constant 0 : index
    %c0_168 = arith.constant 0 : index
    %164 = vector.load %arg23[%c0_166, %c0_167, %c0_168] : memref<3x64x32xf32, #tpu.memory_space<vmem>>, vector<1x64x32xf32>
    %165 = vector.shape_cast %164 : vector<1x64x32xf32> to vector<64x32xf32>
    %cst_169 = arith.constant dense<0.000000e+00> : vector<8x32xf32>
    %166 = tpu.matmul %163, %165, %cst_169 {dimension_numbers = #tpu.dot_dimension_numbers<[1], [0], [0], [1], [0, 0, 1, 1], [], []>} : vector<8x64xf32>, vector<64x32xf32>, vector<8x32xf32> -> vector<8x32xf32>
    %167 = arith.addf %160, %166 : vector<8x32xf32>
    %c1_170 = arith.constant 1 : index
    %c0_171 = arith.constant 0 : index
    %c0_172 = arith.constant 0 : index
    %168 = vector.load %arg7[%c1_170, %c0_171, %c0_172] : memref<3x8x16xf32, #tpu.memory_space<vmem>>, vector<1x8x16xf32>
    %169 = vector.shape_cast %168 : vector<1x8x16xf32> to vector<8x16xf32>
    %cst_173 = arith.constant dense<0.000000e+00> : vector<8x64xf32>
    %170 = tpu.matmul %169, %157, %cst_173 {dimension_numbers = #tpu.dot_dimension_numbers<[1], [0], [0], [1], [0, 0, 1, 1], [], []>} : vector<8x16xf32>, vector<16x64xf32>, vector<8x64xf32> -> vector<8x64xf32>
    %c1_174 = arith.constant 1 : index
    %c0_175 = arith.constant 0 : index
    %c0_176 = arith.constant 0 : index
    %171 = vector.load %arg23[%c1_174, %c0_175, %c0_176] : memref<3x64x32xf32, #tpu.memory_space<vmem>>, vector<1x64x32xf32>
    %172 = vector.shape_cast %171 : vector<1x64x32xf32> to vector<64x32xf32>
    %cst_177 = arith.constant dense<0.000000e+00> : vector<8x32xf32>
    %173 = tpu.matmul %170, %172, %cst_177 {dimension_numbers = #tpu.dot_dimension_numbers<[1], [0], [0], [1], [0, 0, 1, 1], [], []>} : vector<8x64xf32>, vector<64x32xf32>, vector<8x32xf32> -> vector<8x32xf32>
    %174 = arith.addf %167, %173 : vector<8x32xf32>
    %c2_178 = arith.constant 2 : index
    %c0_179 = arith.constant 0 : index
    %c0_180 = arith.constant 0 : index
    %175 = vector.load %arg7[%c2_178, %c0_179, %c0_180] : memref<3x8x16xf32, #tpu.memory_space<vmem>>, vector<1x8x16xf32>
    %176 = vector.shape_cast %175 : vector<1x8x16xf32> to vector<8x16xf32>
    %cst_181 = arith.constant dense<0.000000e+00> : vector<8x64xf32>
    %177 = tpu.matmul %176, %157, %cst_181 {dimension_numbers = #tpu.dot_dimension_numbers<[1], [0], [0], [1], [0, 0, 1, 1], [], []>} : vector<8x16xf32>, vector<16x64xf32>, vector<8x64xf32> -> vector<8x64xf32>
    %c2_182 = arith.constant 2 : index
    %c0_183 = arith.constant 0 : index
    %c0_184 = arith.constant 0 : index
    %178 = vector.load %arg23[%c2_182, %c0_183, %c0_184] : memref<3x64x32xf32, #tpu.memory_space<vmem>>, vector<1x64x32xf32>
    %179 = vector.shape_cast %178 : vector<1x64x32xf32> to vector<64x32xf32>
    %cst_185 = arith.constant dense<0.000000e+00> : vector<8x32xf32>
    %180 = tpu.matmul %177, %179, %cst_185 {dimension_numbers = #tpu.dot_dimension_numbers<[1], [0], [0], [1], [0, 0, 1, 1], [], []>} : vector<8x64xf32>, vector<64x32xf32>, vector<8x32xf32> -> vector<8x32xf32>
    %181 = arith.addf %174, %180 : vector<8x32xf32>
    %cst_186 = arith.constant 0.000000e+00 : f32
    %182 = vector.broadcast %cst_186 : f32 to vector<8x32xf32>
    %183 = arith.maximumf %181, %182 : vector<8x32xf32>
    %c0_187 = arith.constant 0 : index
    %c0_188 = arith.constant 0 : index
    %184 = vector.load %arg26[%c0_187, %c0_188] : memref<1x16xf32, #tpu.memory_space<vmem>>, vector<1x16xf32>
    %185 = vector.shape_cast %184 : vector<1x16xf32> to vector<1x16xf32>
    %186 = vector.broadcast %185 : vector<1x16xf32> to vector<4x16xf32>
    %c0_189 = arith.constant 0 : index
    %c0_190 = arith.constant 0 : index
    %c0_191 = arith.constant 0 : index
    %187 = vector.load %arg10[%c0_189, %c0_190, %c0_191] : memref<3x4x8xf32, #tpu.memory_space<vmem>>, vector<1x4x8xf32>
    %188 = vector.shape_cast %187 : vector<1x4x8xf32> to vector<4x8xf32>
    %cst_192 = arith.constant dense<0.000000e+00> : vector<4x32xf32>
    %189 = tpu.matmul %188, %183, %cst_192 {dimension_numbers = #tpu.dot_dimension_numbers<[1], [0], [0], [1], [0, 0, 1, 1], [], []>} : vector<4x8xf32>, vector<8x32xf32>, vector<4x32xf32> -> vector<4x32xf32>
    %c0_193 = arith.constant 0 : index
    %c0_194 = arith.constant 0 : index
    %c0_195 = arith.constant 0 : index
    %190 = vector.load %arg25[%c0_193, %c0_194, %c0_195] : memref<3x32x16xf32, #tpu.memory_space<vmem>>, vector<1x32x16xf32>
    %191 = vector.shape_cast %190 : vector<1x32x16xf32> to vector<32x16xf32>
    %cst_196 = arith.constant dense<0.000000e+00> : vector<4x16xf32>
    %192 = tpu.matmul %189, %191, %cst_196 {dimension_numbers = #tpu.dot_dimension_numbers<[1], [0], [0], [1], [0, 0, 1, 1], [], []>} : vector<4x32xf32>, vector<32x16xf32>, vector<4x16xf32> -> vector<4x16xf32>
    %193 = arith.addf %186, %192 : vector<4x16xf32>
    %c1_197 = arith.constant 1 : index
    %c0_198 = arith.constant 0 : index
    %c0_199 = arith.constant 0 : index
    %194 = vector.load %arg10[%c1_197, %c0_198, %c0_199] : memref<3x4x8xf32, #tpu.memory_space<vmem>>, vector<1x4x8xf32>
    %195 = vector.shape_cast %194 : vector<1x4x8xf32> to vector<4x8xf32>
    %cst_200 = arith.constant dense<0.000000e+00> : vector<4x32xf32>
    %196 = tpu.matmul %195, %183, %cst_200 {dimension_numbers = #tpu.dot_dimension_numbers<[1], [0], [0], [1], [0, 0, 1, 1], [], []>} : vector<4x8xf32>, vector<8x32xf32>, vector<4x32xf32> -> vector<4x32xf32>
    %c1_201 = arith.constant 1 : index
    %c0_202 = arith.constant 0 : index
    %c0_203 = arith.constant 0 : index
    %197 = vector.load %arg25[%c1_201, %c0_202, %c0_203] : memref<3x32x16xf32, #tpu.memory_space<vmem>>, vector<1x32x16xf32>
    %198 = vector.shape_cast %197 : vector<1x32x16xf32> to vector<32x16xf32>
    %cst_204 = arith.constant dense<0.000000e+00> : vector<4x16xf32>
    %199 = tpu.matmul %196, %198, %cst_204 {dimension_numbers = #tpu.dot_dimension_numbers<[1], [0], [0], [1], [0, 0, 1, 1], [], []>} : vector<4x32xf32>, vector<32x16xf32>, vector<4x16xf32> -> vector<4x16xf32>
    %200 = arith.addf %193, %199 : vector<4x16xf32>
    %c2_205 = arith.constant 2 : index
    %c0_206 = arith.constant 0 : index
    %c0_207 = arith.constant 0 : index
    %201 = vector.load %arg10[%c2_205, %c0_206, %c0_207] : memref<3x4x8xf32, #tpu.memory_space<vmem>>, vector<1x4x8xf32>
    %202 = vector.shape_cast %201 : vector<1x4x8xf32> to vector<4x8xf32>
    %cst_208 = arith.constant dense<0.000000e+00> : vector<4x32xf32>
    %203 = tpu.matmul %202, %183, %cst_208 {dimension_numbers = #tpu.dot_dimension_numbers<[1], [0], [0], [1], [0, 0, 1, 1], [], []>} : vector<4x8xf32>, vector<8x32xf32>, vector<4x32xf32> -> vector<4x32xf32>
    %c2_209 = arith.constant 2 : index
    %c0_210 = arith.constant 0 : index
    %c0_211 = arith.constant 0 : index
    %204 = vector.load %arg25[%c2_209, %c0_210, %c0_211] : memref<3x32x16xf32, #tpu.memory_space<vmem>>, vector<1x32x16xf32>
    %205 = vector.shape_cast %204 : vector<1x32x16xf32> to vector<32x16xf32>
    %cst_212 = arith.constant dense<0.000000e+00> : vector<4x16xf32>
    %206 = tpu.matmul %203, %205, %cst_212 {dimension_numbers = #tpu.dot_dimension_numbers<[1], [0], [0], [1], [0, 0, 1, 1], [], []>} : vector<4x32xf32>, vector<32x16xf32>, vector<4x16xf32> -> vector<4x16xf32>
    %207 = arith.addf %200, %206 : vector<4x16xf32>
    %cst_213 = arith.constant 0.000000e+00 : f32
    %208 = vector.broadcast %cst_213 : f32 to vector<4x16xf32>
    %209 = arith.maximumf %207, %208 : vector<4x16xf32>
    %c0_214 = arith.constant 0 : index
    %c0_215 = arith.constant 0 : index
    %210 = vector.load %arg28[%c0_214, %c0_215] : memref<1x64xf32, #tpu.memory_space<vmem>>, vector<1x64xf32>
    %211 = vector.shape_cast %210 : vector<1x64xf32> to vector<1x64xf32>
    %212 = vector.broadcast %211 : vector<1x64xf32> to vector<4x64xf32>
    %c0_216 = arith.constant 0 : index
    %c0_217 = arith.constant 0 : index
    %c0_218 = arith.constant 0 : index
    %213 = vector.load %arg13[%c0_216, %c0_217, %c0_218] : memref<3x4x4xf32, #tpu.memory_space<vmem>>, vector<1x4x4xf32>
    %214 = vector.shape_cast %213 : vector<1x4x4xf32> to vector<4x4xf32>
    %cst_219 = arith.constant dense<0.000000e+00> : vector<4x16xf32>
    %215 = tpu.matmul %214, %209, %cst_219 {dimension_numbers = #tpu.dot_dimension_numbers<[1], [0], [0], [1], [0, 0, 1, 1], [], []>} : vector<4x4xf32>, vector<4x16xf32>, vector<4x16xf32> -> vector<4x16xf32>
    %c0_220 = arith.constant 0 : index
    %c0_221 = arith.constant 0 : index
    %c0_222 = arith.constant 0 : index
    %216 = vector.load %arg27[%c0_220, %c0_221, %c0_222] : memref<3x16x64xf32, #tpu.memory_space<vmem>>, vector<1x16x64xf32>
    %217 = vector.shape_cast %216 : vector<1x16x64xf32> to vector<16x64xf32>
    %cst_223 = arith.constant dense<0.000000e+00> : vector<4x64xf32>
    %218 = tpu.matmul %215, %217, %cst_223 {dimension_numbers = #tpu.dot_dimension_numbers<[1], [0], [0], [1], [0, 0, 1, 1], [], []>} : vector<4x16xf32>, vector<16x64xf32>, vector<4x64xf32> -> vector<4x64xf32>
    %219 = arith.addf %212, %218 : vector<4x64xf32>
    %c1_224 = arith.constant 1 : index
    %c0_225 = arith.constant 0 : index
    %c0_226 = arith.constant 0 : index
    %220 = vector.load %arg27[%c1_224, %c0_225, %c0_226] : memref<3x16x64xf32, #tpu.memory_space<vmem>>, vector<1x16x64xf32>
    %221 = vector.shape_cast %220 : vector<1x16x64xf32> to vector<16x64xf32>
    %cst_227 = arith.constant dense<0.000000e+00> : vector<4x64xf32>
    %222 = tpu.matmul %209, %221, %cst_227 {dimension_numbers = #tpu.dot_dimension_numbers<[1], [0], [0], [1], [0, 0, 1, 1], [], []>} : vector<4x16xf32>, vector<16x64xf32>, vector<4x64xf32> -> vector<4x64xf32>
    %223 = arith.addf %219, %222 : vector<4x64xf32>
    %c2_228 = arith.constant 2 : index
    %c0_229 = arith.constant 0 : index
    %c0_230 = arith.constant 0 : index
    %224 = vector.load %arg13[%c2_228, %c0_229, %c0_230] : memref<3x4x4xf32, #tpu.memory_space<vmem>>, vector<1x4x4xf32>
    %225 = vector.shape_cast %224 : vector<1x4x4xf32> to vector<4x4xf32>
    %cst_231 = arith.constant dense<0.000000e+00> : vector<4x16xf32>
    %226 = tpu.matmul %225, %209, %cst_231 {dimension_numbers = #tpu.dot_dimension_numbers<[1], [0], [0], [1], [0, 0, 1, 1], [], []>} : vector<4x4xf32>, vector<4x16xf32>, vector<4x16xf32> -> vector<4x16xf32>
    %c2_232 = arith.constant 2 : index
    %c0_233 = arith.constant 0 : index
    %c0_234 = arith.constant 0 : index
    %227 = vector.load %arg27[%c2_232, %c0_233, %c0_234] : memref<3x16x64xf32, #tpu.memory_space<vmem>>, vector<1x16x64xf32>
    %228 = vector.shape_cast %227 : vector<1x16x64xf32> to vector<16x64xf32>
    %cst_235 = arith.constant dense<0.000000e+00> : vector<4x64xf32>
    %229 = tpu.matmul %226, %228, %cst_235 {dimension_numbers = #tpu.dot_dimension_numbers<[1], [0], [0], [1], [0, 0, 1, 1], [], []>} : vector<4x16xf32>, vector<16x64xf32>, vector<4x64xf32> -> vector<4x64xf32>
    %230 = arith.addf %223, %229 : vector<4x64xf32>
    %cst_236 = arith.constant 0.000000e+00 : f32
    %231 = vector.broadcast %cst_236 : f32 to vector<4x64xf32>
    %232 = arith.maximumf %230, %231 : vector<4x64xf32>
    %c0_237 = arith.constant 0 : index
    %c0_238 = arith.constant 0 : index
    %c0_239 = arith.constant 0 : index
    %233 = vector.load %arg19[%c0_237, %c0_238, %c0_239] : memref<2x8x4xf32, #tpu.memory_space<vmem>>, vector<1x8x4xf32>
    %234 = vector.shape_cast %233 : vector<1x8x4xf32> to vector<8x4xf32>
    %c0_240 = arith.constant 0 : index
    %c0_241 = arith.constant 0 : index
    %c0_242 = arith.constant 0 : index
    %235 = vector.load %arg20[%c0_240, %c0_241, %c0_242] : memref<2x64x32xf32, #tpu.memory_space<vmem>>, vector<1x64x32xf32>
    %236 = vector.shape_cast %235 : vector<1x64x32xf32> to vector<64x32xf32>
    %cst_243 = arith.constant dense<0.000000e+00> : vector<4x32xf32>
    %237 = tpu.matmul %232, %236, %cst_243 {dimension_numbers = #tpu.dot_dimension_numbers<[1], [0], [0], [1], [0, 0, 1, 1], [], []>} : vector<4x64xf32>, vector<64x32xf32>, vector<4x32xf32> -> vector<4x32xf32>
    %cst_244 = arith.constant dense<0.000000e+00> : vector<8x32xf32>
    %238 = tpu.matmul %234, %237, %cst_244 {dimension_numbers = #tpu.dot_dimension_numbers<[1], [0], [0], [1], [0, 0, 1, 1], [], []>} : vector<8x4xf32>, vector<4x32xf32>, vector<8x32xf32> -> vector<8x32xf32>
    %c1_245 = arith.constant 1 : index
    %c0_246 = arith.constant 0 : index
    %c0_247 = arith.constant 0 : index
    %239 = vector.load %arg19[%c1_245, %c0_246, %c0_247] : memref<2x8x4xf32, #tpu.memory_space<vmem>>, vector<1x8x4xf32>
    %240 = vector.shape_cast %239 : vector<1x8x4xf32> to vector<8x4xf32>
    %c1_248 = arith.constant 1 : index
    %c0_249 = arith.constant 0 : index
    %c0_250 = arith.constant 0 : index
    %241 = vector.load %arg20[%c1_248, %c0_249, %c0_250] : memref<2x64x32xf32, #tpu.memory_space<vmem>>, vector<1x64x32xf32>
    %242 = vector.shape_cast %241 : vector<1x64x32xf32> to vector<64x32xf32>
    %cst_251 = arith.constant dense<0.000000e+00> : vector<4x32xf32>
    %243 = tpu.matmul %232, %242, %cst_251 {dimension_numbers = #tpu.dot_dimension_numbers<[1], [0], [0], [1], [0, 0, 1, 1], [], []>} : vector<4x64xf32>, vector<64x32xf32>, vector<4x32xf32> -> vector<4x32xf32>
    %cst_252 = arith.constant dense<0.000000e+00> : vector<8x32xf32>
    %244 = tpu.matmul %240, %243, %cst_252 {dimension_numbers = #tpu.dot_dimension_numbers<[1], [0], [0], [1], [0, 0, 1, 1], [], []>} : vector<8x4xf32>, vector<4x32xf32>, vector<8x32xf32> -> vector<8x32xf32>
    %245 = arith.addf %238, %244 : vector<8x32xf32>
    %246 = arith.addf %245, %183 : vector<8x32xf32>
    %c0_253 = arith.constant 0 : index
    %c0_254 = arith.constant 0 : index
    %247 = vector.load %arg30[%c0_253, %c0_254] : memref<1x128xf32, #tpu.memory_space<vmem>>, vector<1x128xf32>
    %248 = vector.shape_cast %247 : vector<1x128xf32> to vector<1x128xf32>
    %249 = vector.broadcast %248 : vector<1x128xf32> to vector<8x128xf32>
    %c0_255 = arith.constant 0 : index
    %c0_256 = arith.constant 0 : index
    %c0_257 = arith.constant 0 : index
    %250 = vector.load %arg16[%c0_255, %c0_256, %c0_257] : memref<3x8x8xf32, #tpu.memory_space<vmem>>, vector<1x8x8xf32>
    %251 = vector.shape_cast %250 : vector<1x8x8xf32> to vector<8x8xf32>
    %cst_258 = arith.constant dense<0.000000e+00> : vector<8x32xf32>
    %252 = tpu.matmul %251, %246, %cst_258 {dimension_numbers = #tpu.dot_dimension_numbers<[1], [0], [0], [1], [0, 0, 1, 1], [], []>} : vector<8x8xf32>, vector<8x32xf32>, vector<8x32xf32> -> vector<8x32xf32>
    %c0_259 = arith.constant 0 : index
    %c0_260 = arith.constant 0 : index
    %c0_261 = arith.constant 0 : index
    %253 = vector.load %arg29[%c0_259, %c0_260, %c0_261] : memref<3x32x128xf32, #tpu.memory_space<vmem>>, vector<1x32x128xf32>
    %254 = vector.shape_cast %253 : vector<1x32x128xf32> to vector<32x128xf32>
    %cst_262 = arith.constant dense<0.000000e+00> : vector<8x128xf32>
    %255 = tpu.matmul %252, %254, %cst_262 {dimension_numbers = #tpu.dot_dimension_numbers<[1], [0], [0], [1], [0, 0, 1, 1], [], []>} : vector<8x32xf32>, vector<32x128xf32>, vector<8x128xf32> -> vector<8x128xf32>
    %256 = arith.addf %249, %255 : vector<8x128xf32>
    %c1_263 = arith.constant 1 : index
    %c0_264 = arith.constant 0 : index
    %c0_265 = arith.constant 0 : index
    %257 = vector.load %arg29[%c1_263, %c0_264, %c0_265] : memref<3x32x128xf32, #tpu.memory_space<vmem>>, vector<1x32x128xf32>
    %258 = vector.shape_cast %257 : vector<1x32x128xf32> to vector<32x128xf32>
    %cst_266 = arith.constant dense<0.000000e+00> : vector<8x128xf32>
    %259 = tpu.matmul %246, %258, %cst_266 {dimension_numbers = #tpu.dot_dimension_numbers<[1], [0], [0], [1], [0, 0, 1, 1], [], []>} : vector<8x32xf32>, vector<32x128xf32>, vector<8x128xf32> -> vector<8x128xf32>
    %260 = arith.addf %256, %259 : vector<8x128xf32>
    %c2_267 = arith.constant 2 : index
    %c0_268 = arith.constant 0 : index
    %c0_269 = arith.constant 0 : index
    %261 = vector.load %arg16[%c2_267, %c0_268, %c0_269] : memref<3x8x8xf32, #tpu.memory_space<vmem>>, vector<1x8x8xf32>
    %262 = vector.shape_cast %261 : vector<1x8x8xf32> to vector<8x8xf32>
    %cst_270 = arith.constant dense<0.000000e+00> : vector<8x32xf32>
    %263 = tpu.matmul %262, %246, %cst_270 {dimension_numbers = #tpu.dot_dimension_numbers<[1], [0], [0], [1], [0, 0, 1, 1], [], []>} : vector<8x8xf32>, vector<8x32xf32>, vector<8x32xf32> -> vector<8x32xf32>
    %c2_271 = arith.constant 2 : index
    %c0_272 = arith.constant 0 : index
    %c0_273 = arith.constant 0 : index
    %264 = vector.load %arg29[%c2_271, %c0_272, %c0_273] : memref<3x32x128xf32, #tpu.memory_space<vmem>>, vector<1x32x128xf32>
    %265 = vector.shape_cast %264 : vector<1x32x128xf32> to vector<32x128xf32>
    %cst_274 = arith.constant dense<0.000000e+00> : vector<8x128xf32>
    %266 = tpu.matmul %263, %265, %cst_274 {dimension_numbers = #tpu.dot_dimension_numbers<[1], [0], [0], [1], [0, 0, 1, 1], [], []>} : vector<8x32xf32>, vector<32x128xf32>, vector<8x128xf32> -> vector<8x128xf32>
    %267 = arith.addf %260, %266 : vector<8x128xf32>
    %cst_275 = arith.constant 0.000000e+00 : f32
    %268 = vector.broadcast %cst_275 : f32 to vector<8x128xf32>
    %269 = arith.maximumf %267, %268 : vector<8x128xf32>
    %c0_276 = arith.constant 0 : index
    %c0_277 = arith.constant 0 : index
    %c0_278 = arith.constant 0 : index
    %270 = vector.load %arg21[%c0_276, %c0_277, %c0_278] : memref<2x16x8xf32, #tpu.memory_space<vmem>>, vector<1x16x8xf32>
    %271 = vector.shape_cast %270 : vector<1x16x8xf32> to vector<16x8xf32>
    %c0_279 = arith.constant 0 : index
    %c0_280 = arith.constant 0 : index
    %c0_281 = arith.constant 0 : index
    %272 = vector.load %arg22[%c0_279, %c0_280, %c0_281] : memref<2x128x64xf32, #tpu.memory_space<vmem>>, vector<1x128x64xf32>
    %273 = vector.shape_cast %272 : vector<1x128x64xf32> to vector<128x64xf32>
    %cst_282 = arith.constant dense<0.000000e+00> : vector<8x64xf32>
    %274 = tpu.matmul %269, %273, %cst_282 {dimension_numbers = #tpu.dot_dimension_numbers<[1], [0], [0], [1], [0, 0, 1, 1], [], []>} : vector<8x128xf32>, vector<128x64xf32>, vector<8x64xf32> -> vector<8x64xf32>
    %cst_283 = arith.constant dense<0.000000e+00> : vector<16x64xf32>
    %275 = tpu.matmul %271, %274, %cst_283 {dimension_numbers = #tpu.dot_dimension_numbers<[1], [0], [0], [1], [0, 0, 1, 1], [], []>} : vector<16x8xf32>, vector<8x64xf32>, vector<16x64xf32> -> vector<16x64xf32>
    %c1_284 = arith.constant 1 : index
    %c0_285 = arith.constant 0 : index
    %c0_286 = arith.constant 0 : index
    %276 = vector.load %arg21[%c1_284, %c0_285, %c0_286] : memref<2x16x8xf32, #tpu.memory_space<vmem>>, vector<1x16x8xf32>
    %277 = vector.shape_cast %276 : vector<1x16x8xf32> to vector<16x8xf32>
    %c1_287 = arith.constant 1 : index
    %c0_288 = arith.constant 0 : index
    %c0_289 = arith.constant 0 : index
    %278 = vector.load %arg22[%c1_287, %c0_288, %c0_289] : memref<2x128x64xf32, #tpu.memory_space<vmem>>, vector<1x128x64xf32>
    %279 = vector.shape_cast %278 : vector<1x128x64xf32> to vector<128x64xf32>
    %cst_290 = arith.constant dense<0.000000e+00> : vector<8x64xf32>
    %280 = tpu.matmul %269, %279, %cst_290 {dimension_numbers = #tpu.dot_dimension_numbers<[1], [0], [0], [1], [0, 0, 1, 1], [], []>} : vector<8x128xf32>, vector<128x64xf32>, vector<8x64xf32> -> vector<8x64xf32>
    %cst_291 = arith.constant dense<0.000000e+00> : vector<16x64xf32>
    %281 = tpu.matmul %277, %280, %cst_291 {dimension_numbers = #tpu.dot_dimension_numbers<[1], [0], [0], [1], [0, 0, 1, 1], [], []>} : vector<16x8xf32>, vector<8x64xf32>, vector<16x64xf32> -> vector<16x64xf32>
    %282 = arith.addf %275, %281 : vector<16x64xf32>
    %283 = arith.addf %282, %157 : vector<16x64xf32>
    %c0_292 = arith.constant 0 : index
    %c0_293 = arith.constant 0 : index
    %284 = vector.load %arg48[%c0_292, %c0_293] : memref<1x192xf32, #tpu.memory_space<vmem>>, vector<1x192xf32>
    %285 = vector.shape_cast %284 : vector<1x192xf32> to vector<1x192xf32>
    %286 = vector.broadcast %285 : vector<1x192xf32> to vector<16x192xf32>
    %c0_294 = arith.constant 0 : index
    %c0_295 = arith.constant 0 : index
    %c0_296 = arith.constant 0 : index
    %287 = vector.load %arg2[%c0_294, %c0_295, %c0_296] : memref<3x16x16xf32, #tpu.memory_space<vmem>>, vector<1x16x16xf32>
    %288 = vector.shape_cast %287 : vector<1x16x16xf32> to vector<16x16xf32>
    %cst_297 = arith.constant dense<0.000000e+00> : vector<16x64xf32>
    %289 = tpu.matmul %288, %283, %cst_297 {dimension_numbers = #tpu.dot_dimension_numbers<[1], [0], [0], [1], [0, 0, 1, 1], [], []>} : vector<16x16xf32>, vector<16x64xf32>, vector<16x64xf32> -> vector<16x64xf32>
    %c0_298 = arith.constant 0 : index
    %c0_299 = arith.constant 0 : index
    %c0_300 = arith.constant 0 : index
    %290 = vector.load %arg47[%c0_298, %c0_299, %c0_300] : memref<3x64x192xf32, #tpu.memory_space<vmem>>, vector<1x64x192xf32>
    %291 = vector.shape_cast %290 : vector<1x64x192xf32> to vector<64x192xf32>
    %cst_301 = arith.constant dense<0.000000e+00> : vector<16x192xf32>
    %292 = tpu.matmul %289, %291, %cst_301 {dimension_numbers = #tpu.dot_dimension_numbers<[1], [0], [0], [1], [0, 0, 1, 1], [], []>} : vector<16x64xf32>, vector<64x192xf32>, vector<16x192xf32> -> vector<16x192xf32>
    %293 = arith.addf %286, %292 : vector<16x192xf32>
    %c1_302 = arith.constant 1 : index
    %c0_303 = arith.constant 0 : index
    %c0_304 = arith.constant 0 : index
    %294 = vector.load %arg47[%c1_302, %c0_303, %c0_304] : memref<3x64x192xf32, #tpu.memory_space<vmem>>, vector<1x64x192xf32>
    %295 = vector.shape_cast %294 : vector<1x64x192xf32> to vector<64x192xf32>
    %cst_305 = arith.constant dense<0.000000e+00> : vector<16x192xf32>
    %296 = tpu.matmul %283, %295, %cst_305 {dimension_numbers = #tpu.dot_dimension_numbers<[1], [0], [0], [1], [0, 0, 1, 1], [], []>} : vector<16x64xf32>, vector<64x192xf32>, vector<16x192xf32> -> vector<16x192xf32>
    %297 = arith.addf %293, %296 : vector<16x192xf32>
    %c2_306 = arith.constant 2 : index
    %c0_307 = arith.constant 0 : index
    %c0_308 = arith.constant 0 : index
    %298 = vector.load %arg2[%c2_306, %c0_307, %c0_308] : memref<3x16x16xf32, #tpu.memory_space<vmem>>, vector<1x16x16xf32>
    %299 = vector.shape_cast %298 : vector<1x16x16xf32> to vector<16x16xf32>
    %cst_309 = arith.constant dense<0.000000e+00> : vector<16x64xf32>
    %300 = tpu.matmul %299, %283, %cst_309 {dimension_numbers = #tpu.dot_dimension_numbers<[1], [0], [0], [1], [0, 0, 1, 1], [], []>} : vector<16x16xf32>, vector<16x64xf32>, vector<16x64xf32> -> vector<16x64xf32>
    %c2_310 = arith.constant 2 : index
    %c0_311 = arith.constant 0 : index
    %c0_312 = arith.constant 0 : index
    %301 = vector.load %arg47[%c2_310, %c0_311, %c0_312] : memref<3x64x192xf32, #tpu.memory_space<vmem>>, vector<1x64x192xf32>
    %302 = vector.shape_cast %301 : vector<1x64x192xf32> to vector<64x192xf32>
    %cst_313 = arith.constant dense<0.000000e+00> : vector<16x192xf32>
    %303 = tpu.matmul %300, %302, %cst_313 {dimension_numbers = #tpu.dot_dimension_numbers<[1], [0], [0], [1], [0, 0, 1, 1], [], []>} : vector<16x64xf32>, vector<64x192xf32>, vector<16x192xf32> -> vector<16x192xf32>
    %304 = arith.addf %297, %303 : vector<16x192xf32>
    %c0_314 = arith.constant 0 : index
    %c0_315 = arith.constant 0 : index
    %c0_316 = arith.constant 0 : index
    %305 = vector.load %arg51[%c0_314, %c0_315, %c0_316] : memref<2x32x16xf32, #tpu.memory_space<vmem>>, vector<1x32x16xf32>
    %306 = vector.shape_cast %305 : vector<1x32x16xf32> to vector<32x16xf32>
    %c0_317 = arith.constant 0 : index
    %c0_318 = arith.constant 0 : index
    %c0_319 = arith.constant 0 : index
    %307 = vector.load %arg52[%c0_317, %c0_318, %c0_319] : memref<2x192x96xf32, #tpu.memory_space<vmem>>, vector<1x192x96xf32>
    %308 = vector.shape_cast %307 : vector<1x192x96xf32> to vector<192x96xf32>
    %cst_320 = arith.constant dense<0.000000e+00> : vector<16x96xf32>
    %309 = tpu.matmul %304, %308, %cst_320 {dimension_numbers = #tpu.dot_dimension_numbers<[1], [0], [0], [1], [0, 0, 1, 1], [], []>} : vector<16x192xf32>, vector<192x96xf32>, vector<16x96xf32> -> vector<16x96xf32>
    %cst_321 = arith.constant dense<0.000000e+00> : vector<32x96xf32>
    %310 = tpu.matmul %306, %309, %cst_321 {dimension_numbers = #tpu.dot_dimension_numbers<[1], [0], [0], [1], [0, 0, 1, 1], [], []>} : vector<32x16xf32>, vector<16x96xf32>, vector<32x96xf32> -> vector<32x96xf32>
    %c1_322 = arith.constant 1 : index
    %c0_323 = arith.constant 0 : index
    %c0_324 = arith.constant 0 : index
    %311 = vector.load %arg51[%c1_322, %c0_323, %c0_324] : memref<2x32x16xf32, #tpu.memory_space<vmem>>, vector<1x32x16xf32>
    %312 = vector.shape_cast %311 : vector<1x32x16xf32> to vector<32x16xf32>
    %c1_325 = arith.constant 1 : index
    %c0_326 = arith.constant 0 : index
    %c0_327 = arith.constant 0 : index
    %313 = vector.load %arg52[%c1_325, %c0_326, %c0_327] : memref<2x192x96xf32, #tpu.memory_space<vmem>>, vector<1x192x96xf32>
    %314 = vector.shape_cast %313 : vector<1x192x96xf32> to vector<192x96xf32>
    %cst_328 = arith.constant dense<0.000000e+00> : vector<16x96xf32>
    %315 = tpu.matmul %304, %314, %cst_328 {dimension_numbers = #tpu.dot_dimension_numbers<[1], [0], [0], [1], [0, 0, 1, 1], [], []>} : vector<16x192xf32>, vector<192x96xf32>, vector<16x96xf32> -> vector<16x96xf32>
    %cst_329 = arith.constant dense<0.000000e+00> : vector<32x96xf32>
    %316 = tpu.matmul %312, %315, %cst_329 {dimension_numbers = #tpu.dot_dimension_numbers<[1], [0], [0], [1], [0, 0, 1, 1], [], []>} : vector<32x16xf32>, vector<16x96xf32>, vector<32x96xf32> -> vector<32x96xf32>
    %317 = arith.addf %310, %316 : vector<32x96xf32>
    %c0_330 = arith.constant 0 : index
    %c0_331 = arith.constant 0 : index
    %c0_332 = arith.constant 0 : index
    %318 = vector.load %arg55[%c0_330, %c0_331, %c0_332] : memref<1x32x96xf32, #tpu.memory_space<vmem>>, vector<1x32x96xf32>
    %319 = vector.shape_cast %318 : vector<1x32x96xf32> to vector<32x96xf32>
    %320 = vector.shape_cast %317 : vector<32x96xf32> to vector<1x32x96xf32>
    tpu.vector_store %arg55[%c0_330, %c0_331, %c0_332], %320 {strides = array<i32>} : memref<1x32x96xf32, #tpu.memory_space<vmem>>, vector<1x32x96xf32>,
    %c0_333 = arith.constant 0 : index
    %c0_334 = arith.constant 0 : index
    %321 = vector.load %arg32[%c0_333, %c0_334] : memref<1x32xf32, #tpu.memory_space<vmem>>, vector<1x32xf32>
    %322 = vector.shape_cast %321 : vector<1x32xf32> to vector<1x32xf32>
    %323 = vector.broadcast %322 : vector<1x32xf32> to vector<8x32xf32>
    %c0_335 = arith.constant 0 : index
    %c0_336 = arith.constant 0 : index
    %c0_337 = arith.constant 0 : index
    %324 = vector.load %arg7[%c0_335, %c0_336, %c0_337] : memref<3x8x16xf32, #tpu.memory_space<vmem>>, vector<1x8x16xf32>
    %325 = vector.shape_cast %324 : vector<1x8x16xf32> to vector<8x16xf32>
    %cst_338 = arith.constant dense<0.000000e+00> : vector<8x64xf32>
    %326 = tpu.matmul %325, %283, %cst_338 {dimension_numbers = #tpu.dot_dimension_numbers<[1], [0], [0], [1], [0, 0, 1, 1], [], []>} : vector<8x16xf32>, vector<16x64xf32>, vector<8x64xf32> -> vector<8x64xf32>
    %c0_339 = arith.constant 0 : index
    %c0_340 = arith.constant 0 : index
    %c0_341 = arith.constant 0 : index
    %327 = vector.load %arg31[%c0_339, %c0_340, %c0_341] : memref<3x64x32xf32, #tpu.memory_space<vmem>>, vector<1x64x32xf32>
    %328 = vector.shape_cast %327 : vector<1x64x32xf32> to vector<64x32xf32>
    %cst_342 = arith.constant dense<0.000000e+00> : vector<8x32xf32>
    %329 = tpu.matmul %326, %328, %cst_342 {dimension_numbers = #tpu.dot_dimension_numbers<[1], [0], [0], [1], [0, 0, 1, 1], [], []>} : vector<8x64xf32>, vector<64x32xf32>, vector<8x32xf32> -> vector<8x32xf32>
    %330 = arith.addf %323, %329 : vector<8x32xf32>
    %c1_343 = arith.constant 1 : index
    %c0_344 = arith.constant 0 : index
    %c0_345 = arith.constant 0 : index
    %331 = vector.load %arg7[%c1_343, %c0_344, %c0_345] : memref<3x8x16xf32, #tpu.memory_space<vmem>>, vector<1x8x16xf32>
    %332 = vector.shape_cast %331 : vector<1x8x16xf32> to vector<8x16xf32>
    %cst_346 = arith.constant dense<0.000000e+00> : vector<8x64xf32>
    %333 = tpu.matmul %332, %283, %cst_346 {dimension_numbers = #tpu.dot_dimension_numbers<[1], [0], [0], [1], [0, 0, 1, 1], [], []>} : vector<8x16xf32>, vector<16x64xf32>, vector<8x64xf32> -> vector<8x64xf32>
    %c1_347 = arith.constant 1 : index
    %c0_348 = arith.constant 0 : index
    %c0_349 = arith.constant 0 : index
    %334 = vector.load %arg31[%c1_347, %c0_348, %c0_349] : memref<3x64x32xf32, #tpu.memory_space<vmem>>, vector<1x64x32xf32>
    %335 = vector.shape_cast %334 : vector<1x64x32xf32> to vector<64x32xf32>
    %cst_350 = arith.constant dense<0.000000e+00> : vector<8x32xf32>
    %336 = tpu.matmul %333, %335, %cst_350 {dimension_numbers = #tpu.dot_dimension_numbers<[1], [0], [0], [1], [0, 0, 1, 1], [], []>} : vector<8x64xf32>, vector<64x32xf32>, vector<8x32xf32> -> vector<8x32xf32>
    %337 = arith.addf %330, %336 : vector<8x32xf32>
    %c2_351 = arith.constant 2 : index
    %c0_352 = arith.constant 0 : index
    %c0_353 = arith.constant 0 : index
    %338 = vector.load %arg7[%c2_351, %c0_352, %c0_353] : memref<3x8x16xf32, #tpu.memory_space<vmem>>, vector<1x8x16xf32>
    %339 = vector.shape_cast %338 : vector<1x8x16xf32> to vector<8x16xf32>
    %cst_354 = arith.constant dense<0.000000e+00> : vector<8x64xf32>
    %340 = tpu.matmul %339, %283, %cst_354 {dimension_numbers = #tpu.dot_dimension_numbers<[1], [0], [0], [1], [0, 0, 1, 1], [], []>} : vector<8x16xf32>, vector<16x64xf32>, vector<8x64xf32> -> vector<8x64xf32>
    %c2_355 = arith.constant 2 : index
    %c0_356 = arith.constant 0 : index
    %c0_357 = arith.constant 0 : index
    %341 = vector.load %arg31[%c2_355, %c0_356, %c0_357] : memref<3x64x32xf32, #tpu.memory_space<vmem>>, vector<1x64x32xf32>
    %342 = vector.shape_cast %341 : vector<1x64x32xf32> to vector<64x32xf32>
    %cst_358 = arith.constant dense<0.000000e+00> : vector<8x32xf32>
    %343 = tpu.matmul %340, %342, %cst_358 {dimension_numbers = #tpu.dot_dimension_numbers<[1], [0], [0], [1], [0, 0, 1, 1], [], []>} : vector<8x64xf32>, vector<64x32xf32>, vector<8x32xf32> -> vector<8x32xf32>
    %344 = arith.addf %337, %343 : vector<8x32xf32>
    %cst_359 = arith.constant 0.000000e+00 : f32
    %345 = vector.broadcast %cst_359 : f32 to vector<8x32xf32>
    %346 = arith.maximumf %344, %345 : vector<8x32xf32>
    %c0_360 = arith.constant 0 : index
    %c0_361 = arith.constant 0 : index
    %347 = vector.load %arg34[%c0_360, %c0_361] : memref<1x16xf32, #tpu.memory_space<vmem>>, vector<1x16xf32>
    %348 = vector.shape_cast %347 : vector<1x16xf32> to vector<1x16xf32>
    %349 = vector.broadcast %348 : vector<1x16xf32> to vector<4x16xf32>
    %c0_362 = arith.constant 0 : index
    %c0_363 = arith.constant 0 : index
    %c0_364 = arith.constant 0 : index
    %350 = vector.load %arg10[%c0_362, %c0_363, %c0_364] : memref<3x4x8xf32, #tpu.memory_space<vmem>>, vector<1x4x8xf32>
    %351 = vector.shape_cast %350 : vector<1x4x8xf32> to vector<4x8xf32>
    %cst_365 = arith.constant dense<0.000000e+00> : vector<4x32xf32>
    %352 = tpu.matmul %351, %346, %cst_365 {dimension_numbers = #tpu.dot_dimension_numbers<[1], [0], [0], [1], [0, 0, 1, 1], [], []>} : vector<4x8xf32>, vector<8x32xf32>, vector<4x32xf32> -> vector<4x32xf32>
    %c0_366 = arith.constant 0 : index
    %c0_367 = arith.constant 0 : index
    %c0_368 = arith.constant 0 : index
    %353 = vector.load %arg33[%c0_366, %c0_367, %c0_368] : memref<3x32x16xf32, #tpu.memory_space<vmem>>, vector<1x32x16xf32>
    %354 = vector.shape_cast %353 : vector<1x32x16xf32> to vector<32x16xf32>
    %cst_369 = arith.constant dense<0.000000e+00> : vector<4x16xf32>
    %355 = tpu.matmul %352, %354, %cst_369 {dimension_numbers = #tpu.dot_dimension_numbers<[1], [0], [0], [1], [0, 0, 1, 1], [], []>} : vector<4x32xf32>, vector<32x16xf32>, vector<4x16xf32> -> vector<4x16xf32>
    %356 = arith.addf %349, %355 : vector<4x16xf32>
    %c1_370 = arith.constant 1 : index
    %c0_371 = arith.constant 0 : index
    %c0_372 = arith.constant 0 : index
    %357 = vector.load %arg10[%c1_370, %c0_371, %c0_372] : memref<3x4x8xf32, #tpu.memory_space<vmem>>, vector<1x4x8xf32>
    %358 = vector.shape_cast %357 : vector<1x4x8xf32> to vector<4x8xf32>
    %cst_373 = arith.constant dense<0.000000e+00> : vector<4x32xf32>
    %359 = tpu.matmul %358, %346, %cst_373 {dimension_numbers = #tpu.dot_dimension_numbers<[1], [0], [0], [1], [0, 0, 1, 1], [], []>} : vector<4x8xf32>, vector<8x32xf32>, vector<4x32xf32> -> vector<4x32xf32>
    %c1_374 = arith.constant 1 : index
    %c0_375 = arith.constant 0 : index
    %c0_376 = arith.constant 0 : index
    %360 = vector.load %arg33[%c1_374, %c0_375, %c0_376] : memref<3x32x16xf32, #tpu.memory_space<vmem>>, vector<1x32x16xf32>
    %361 = vector.shape_cast %360 : vector<1x32x16xf32> to vector<32x16xf32>
    %cst_377 = arith.constant dense<0.000000e+00> : vector<4x16xf32>
    %362 = tpu.matmul %359, %361, %cst_377 {dimension_numbers = #tpu.dot_dimension_numbers<[1], [0], [0], [1], [0, 0, 1, 1], [], []>} : vector<4x32xf32>, vector<32x16xf32>, vector<4x16xf32> -> vector<4x16xf32>
    %363 = arith.addf %356, %362 : vector<4x16xf32>
    %c2_378 = arith.constant 2 : index
    %c0_379 = arith.constant 0 : index
    %c0_380 = arith.constant 0 : index
    %364 = vector.load %arg10[%c2_378, %c0_379, %c0_380] : memref<3x4x8xf32, #tpu.memory_space<vmem>>, vector<1x4x8xf32>
    %365 = vector.shape_cast %364 : vector<1x4x8xf32> to vector<4x8xf32>
    %cst_381 = arith.constant dense<0.000000e+00> : vector<4x32xf32>
    %366 = tpu.matmul %365, %346, %cst_381 {dimension_numbers = #tpu.dot_dimension_numbers<[1], [0], [0], [1], [0, 0, 1, 1], [], []>} : vector<4x8xf32>, vector<8x32xf32>, vector<4x32xf32> -> vector<4x32xf32>
    %c2_382 = arith.constant 2 : index
    %c0_383 = arith.constant 0 : index
    %c0_384 = arith.constant 0 : index
    %367 = vector.load %arg33[%c2_382, %c0_383, %c0_384] : memref<3x32x16xf32, #tpu.memory_space<vmem>>, vector<1x32x16xf32>
    %368 = vector.shape_cast %367 : vector<1x32x16xf32> to vector<32x16xf32>
    %cst_385 = arith.constant dense<0.000000e+00> : vector<4x16xf32>
    %369 = tpu.matmul %366, %368, %cst_385 {dimension_numbers = #tpu.dot_dimension_numbers<[1], [0], [0], [1], [0, 0, 1, 1], [], []>} : vector<4x32xf32>, vector<32x16xf32>, vector<4x16xf32> -> vector<4x16xf32>
    %370 = arith.addf %363, %369 : vector<4x16xf32>
    %cst_386 = arith.constant 0.000000e+00 : f32
    %371 = vector.broadcast %cst_386 : f32 to vector<4x16xf32>
    %372 = arith.maximumf %370, %371 : vector<4x16xf32>
    %c0_387 = arith.constant 0 : index
    %c0_388 = arith.constant 0 : index
    %373 = vector.load %arg36[%c0_387, %c0_388] : memref<1x64xf32, #tpu.memory_space<vmem>>, vector<1x64xf32>
    %374 = vector.shape_cast %373 : vector<1x64xf32> to vector<1x64xf32>
    %375 = vector.broadcast %374 : vector<1x64xf32> to vector<4x64xf32>
    %c0_389 = arith.constant 0 : index
    %c0_390 = arith.constant 0 : index
    %c0_391 = arith.constant 0 : index
    %376 = vector.load %arg13[%c0_389, %c0_390, %c0_391] : memref<3x4x4xf32, #tpu.memory_space<vmem>>, vector<1x4x4xf32>
    %377 = vector.shape_cast %376 : vector<1x4x4xf32> to vector<4x4xf32>
    %cst_392 = arith.constant dense<0.000000e+00> : vector<4x16xf32>
    %378 = tpu.matmul %377, %372, %cst_392 {dimension_numbers = #tpu.dot_dimension_numbers<[1], [0], [0], [1], [0, 0, 1, 1], [], []>} : vector<4x4xf32>, vector<4x16xf32>, vector<4x16xf32> -> vector<4x16xf32>
    %c0_393 = arith.constant 0 : index
    %c0_394 = arith.constant 0 : index
    %c0_395 = arith.constant 0 : index
    %379 = vector.load %arg35[%c0_393, %c0_394, %c0_395] : memref<3x16x64xf32, #tpu.memory_space<vmem>>, vector<1x16x64xf32>
    %380 = vector.shape_cast %379 : vector<1x16x64xf32> to vector<16x64xf32>
    %cst_396 = arith.constant dense<0.000000e+00> : vector<4x64xf32>
    %381 = tpu.matmul %378, %380, %cst_396 {dimension_numbers = #tpu.dot_dimension_numbers<[1], [0], [0], [1], [0, 0, 1, 1], [], []>} : vector<4x16xf32>, vector<16x64xf32>, vector<4x64xf32> -> vector<4x64xf32>
    %382 = arith.addf %375, %381 : vector<4x64xf32>
    %c1_397 = arith.constant 1 : index
    %c0_398 = arith.constant 0 : index
    %c0_399 = arith.constant 0 : index
    %383 = vector.load %arg35[%c1_397, %c0_398, %c0_399] : memref<3x16x64xf32, #tpu.memory_space<vmem>>, vector<1x16x64xf32>
    %384 = vector.shape_cast %383 : vector<1x16x64xf32> to vector<16x64xf32>
    %cst_400 = arith.constant dense<0.000000e+00> : vector<4x64xf32>
    %385 = tpu.matmul %372, %384, %cst_400 {dimension_numbers = #tpu.dot_dimension_numbers<[1], [0], [0], [1], [0, 0, 1, 1], [], []>} : vector<4x16xf32>, vector<16x64xf32>, vector<4x64xf32> -> vector<4x64xf32>
    %386 = arith.addf %382, %385 : vector<4x64xf32>
    %c2_401 = arith.constant 2 : index
    %c0_402 = arith.constant 0 : index
    %c0_403 = arith.constant 0 : index
    %387 = vector.load %arg13[%c2_401, %c0_402, %c0_403] : memref<3x4x4xf32, #tpu.memory_space<vmem>>, vector<1x4x4xf32>
    %388 = vector.shape_cast %387 : vector<1x4x4xf32> to vector<4x4xf32>
    %cst_404 = arith.constant dense<0.000000e+00> : vector<4x16xf32>
    %389 = tpu.matmul %388, %372, %cst_404 {dimension_numbers = #tpu.dot_dimension_numbers<[1], [0], [0], [1], [0, 0, 1, 1], [], []>} : vector<4x4xf32>, vector<4x16xf32>, vector<4x16xf32> -> vector<4x16xf32>
    %c2_405 = arith.constant 2 : index
    %c0_406 = arith.constant 0 : index
    %c0_407 = arith.constant 0 : index
    %390 = vector.load %arg35[%c2_405, %c0_406, %c0_407] : memref<3x16x64xf32, #tpu.memory_space<vmem>>, vector<1x16x64xf32>
    %391 = vector.shape_cast %390 : vector<1x16x64xf32> to vector<16x64xf32>
    %cst_408 = arith.constant dense<0.000000e+00> : vector<4x64xf32>
    %392 = tpu.matmul %389, %391, %cst_408 {dimension_numbers = #tpu.dot_dimension_numbers<[1], [0], [0], [1], [0, 0, 1, 1], [], []>} : vector<4x16xf32>, vector<16x64xf32>, vector<4x64xf32> -> vector<4x64xf32>
    %393 = arith.addf %386, %392 : vector<4x64xf32>
    %cst_409 = arith.constant 0.000000e+00 : f32
    %394 = vector.broadcast %cst_409 : f32 to vector<4x64xf32>
    %395 = arith.maximumf %393, %394 : vector<4x64xf32>
    %c0_410 = arith.constant 0 : index
    %c0_411 = arith.constant 0 : index
    %c0_412 = arith.constant 0 : index
    %396 = vector.load %arg19[%c0_410, %c0_411, %c0_412] : memref<2x8x4xf32, #tpu.memory_space<vmem>>, vector<1x8x4xf32>
    %397 = vector.shape_cast %396 : vector<1x8x4xf32> to vector<8x4xf32>
    %c0_413 = arith.constant 0 : index
    %c0_414 = arith.constant 0 : index
    %c0_415 = arith.constant 0 : index
    %398 = vector.load %arg20[%c0_413, %c0_414, %c0_415] : memref<2x64x32xf32, #tpu.memory_space<vmem>>, vector<1x64x32xf32>
    %399 = vector.shape_cast %398 : vector<1x64x32xf32> to vector<64x32xf32>
    %cst_416 = arith.constant dense<0.000000e+00> : vector<4x32xf32>
    %400 = tpu.matmul %395, %399, %cst_416 {dimension_numbers = #tpu.dot_dimension_numbers<[1], [0], [0], [1], [0, 0, 1, 1], [], []>} : vector<4x64xf32>, vector<64x32xf32>, vector<4x32xf32> -> vector<4x32xf32>
    %cst_417 = arith.constant dense<0.000000e+00> : vector<8x32xf32>
    %401 = tpu.matmul %397, %400, %cst_417 {dimension_numbers = #tpu.dot_dimension_numbers<[1], [0], [0], [1], [0, 0, 1, 1], [], []>} : vector<8x4xf32>, vector<4x32xf32>, vector<8x32xf32> -> vector<8x32xf32>
    %c1_418 = arith.constant 1 : index
    %c0_419 = arith.constant 0 : index
    %c0_420 = arith.constant 0 : index
    %402 = vector.load %arg19[%c1_418, %c0_419, %c0_420] : memref<2x8x4xf32, #tpu.memory_space<vmem>>, vector<1x8x4xf32>
    %403 = vector.shape_cast %402 : vector<1x8x4xf32> to vector<8x4xf32>
    %c1_421 = arith.constant 1 : index
    %c0_422 = arith.constant 0 : index
    %c0_423 = arith.constant 0 : index
    %404 = vector.load %arg20[%c1_421, %c0_422, %c0_423] : memref<2x64x32xf32, #tpu.memory_space<vmem>>, vector<1x64x32xf32>
    %405 = vector.shape_cast %404 : vector<1x64x32xf32> to vector<64x32xf32>
    %cst_424 = arith.constant dense<0.000000e+00> : vector<4x32xf32>
    %406 = tpu.matmul %395, %405, %cst_424 {dimension_numbers = #tpu.dot_dimension_numbers<[1], [0], [0], [1], [0, 0, 1, 1], [], []>} : vector<4x64xf32>, vector<64x32xf32>, vector<4x32xf32> -> vector<4x32xf32>
    %cst_425 = arith.constant dense<0.000000e+00> : vector<8x32xf32>
    %407 = tpu.matmul %403, %406, %cst_425 {dimension_numbers = #tpu.dot_dimension_numbers<[1], [0], [0], [1], [0, 0, 1, 1], [], []>} : vector<8x4xf32>, vector<4x32xf32>, vector<8x32xf32> -> vector<8x32xf32>
    %408 = arith.addf %401, %407 : vector<8x32xf32>
    %409 = arith.addf %408, %346 : vector<8x32xf32>
    %c0_426 = arith.constant 0 : index
    %c0_427 = arith.constant 0 : index
    %410 = vector.load %arg38[%c0_426, %c0_427] : memref<1x128xf32, #tpu.memory_space<vmem>>, vector<1x128xf32>
    %411 = vector.shape_cast %410 : vector<1x128xf32> to vector<1x128xf32>
    %412 = vector.broadcast %411 : vector<1x128xf32> to vector<8x128xf32>
    %c0_428 = arith.constant 0 : index
    %c0_429 = arith.constant 0 : index
    %c0_430 = arith.constant 0 : index
    %413 = vector.load %arg16[%c0_428, %c0_429, %c0_430] : memref<3x8x8xf32, #tpu.memory_space<vmem>>, vector<1x8x8xf32>
    %414 = vector.shape_cast %413 : vector<1x8x8xf32> to vector<8x8xf32>
    %cst_431 = arith.constant dense<0.000000e+00> : vector<8x32xf32>
    %415 = tpu.matmul %414, %409, %cst_431 {dimension_numbers = #tpu.dot_dimension_numbers<[1], [0], [0], [1], [0, 0, 1, 1], [], []>} : vector<8x8xf32>, vector<8x32xf32>, vector<8x32xf32> -> vector<8x32xf32>
    %c0_432 = arith.constant 0 : index
    %c0_433 = arith.constant 0 : index
    %c0_434 = arith.constant 0 : index
    %416 = vector.load %arg37[%c0_432, %c0_433, %c0_434] : memref<3x32x128xf32, #tpu.memory_space<vmem>>, vector<1x32x128xf32>
    %417 = vector.shape_cast %416 : vector<1x32x128xf32> to vector<32x128xf32>
    %cst_435 = arith.constant dense<0.000000e+00> : vector<8x128xf32>
    %418 = tpu.matmul %415, %417, %cst_435 {dimension_numbers = #tpu.dot_dimension_numbers<[1], [0], [0], [1], [0, 0, 1, 1], [], []>} : vector<8x32xf32>, vector<32x128xf32>, vector<8x128xf32> -> vector<8x128xf32>
    %419 = arith.addf %412, %418 : vector<8x128xf32>
    %c1_436 = arith.constant 1 : index
    %c0_437 = arith.constant 0 : index
    %c0_438 = arith.constant 0 : index
    %420 = vector.load %arg37[%c1_436, %c0_437, %c0_438] : memref<3x32x128xf32, #tpu.memory_space<vmem>>, vector<1x32x128xf32>
    %421 = vector.shape_cast %420 : vector<1x32x128xf32> to vector<32x128xf32>
    %cst_439 = arith.constant dense<0.000000e+00> : vector<8x128xf32>
    %422 = tpu.matmul %409, %421, %cst_439 {dimension_numbers = #tpu.dot_dimension_numbers<[1], [0], [0], [1], [0, 0, 1, 1], [], []>} : vector<8x32xf32>, vector<32x128xf32>, vector<8x128xf32> -> vector<8x128xf32>
    %423 = arith.addf %419, %422 : vector<8x128xf32>
    %c2_440 = arith.constant 2 : index
    %c0_441 = arith.constant 0 : index
    %c0_442 = arith.constant 0 : index
    %424 = vector.load %arg16[%c2_440, %c0_441, %c0_442] : memref<3x8x8xf32, #tpu.memory_space<vmem>>, vector<1x8x8xf32>
    %425 = vector.shape_cast %424 : vector<1x8x8xf32> to vector<8x8xf32>
    %cst_443 = arith.constant dense<0.000000e+00> : vector<8x32xf32>
    %426 = tpu.matmul %425, %409, %cst_443 {dimension_numbers = #tpu.dot_dimension_numbers<[1], [0], [0], [1], [0, 0, 1, 1], [], []>} : vector<8x8xf32>, vector<8x32xf32>, vector<8x32xf32> -> vector<8x32xf32>
    %c2_444 = arith.constant 2 : index
    %c0_445 = arith.constant 0 : index
    %c0_446 = arith.constant 0 : index
    %427 = vector.load %arg37[%c2_444, %c0_445, %c0_446] : memref<3x32x128xf32, #tpu.memory_space<vmem>>, vector<1x32x128xf32>
    %428 = vector.shape_cast %427 : vector<1x32x128xf32> to vector<32x128xf32>
    %cst_447 = arith.constant dense<0.000000e+00> : vector<8x128xf32>
    %429 = tpu.matmul %426, %428, %cst_447 {dimension_numbers = #tpu.dot_dimension_numbers<[1], [0], [0], [1], [0, 0, 1, 1], [], []>} : vector<8x32xf32>, vector<32x128xf32>, vector<8x128xf32> -> vector<8x128xf32>
    %430 = arith.addf %423, %429 : vector<8x128xf32>
    %cst_448 = arith.constant 0.000000e+00 : f32
    %431 = vector.broadcast %cst_448 : f32 to vector<8x128xf32>
    %432 = arith.maximumf %430, %431 : vector<8x128xf32>
    %c0_449 = arith.constant 0 : index
    %c0_450 = arith.constant 0 : index
    %c0_451 = arith.constant 0 : index
    %433 = vector.load %arg21[%c0_449, %c0_450, %c0_451] : memref<2x16x8xf32, #tpu.memory_space<vmem>>, vector<1x16x8xf32>
    %434 = vector.shape_cast %433 : vector<1x16x8xf32> to vector<16x8xf32>
    %c0_452 = arith.constant 0 : index
    %c0_453 = arith.constant 0 : index
    %c0_454 = arith.constant 0 : index
    %435 = vector.load %arg22[%c0_452, %c0_453, %c0_454] : memref<2x128x64xf32, #tpu.memory_space<vmem>>, vector<1x128x64xf32>
    %436 = vector.shape_cast %435 : vector<1x128x64xf32> to vector<128x64xf32>
    %cst_455 = arith.constant dense<0.000000e+00> : vector<8x64xf32>
    %437 = tpu.matmul %432, %436, %cst_455 {dimension_numbers = #tpu.dot_dimension_numbers<[1], [0], [0], [1], [0, 0, 1, 1], [], []>} : vector<8x128xf32>, vector<128x64xf32>, vector<8x64xf32> -> vector<8x64xf32>
    %cst_456 = arith.constant dense<0.000000e+00> : vector<16x64xf32>
    %438 = tpu.matmul %434, %437, %cst_456 {dimension_numbers = #tpu.dot_dimension_numbers<[1], [0], [0], [1], [0, 0, 1, 1], [], []>} : vector<16x8xf32>, vector<8x64xf32>, vector<16x64xf32> -> vector<16x64xf32>
    %c1_457 = arith.constant 1 : index
    %c0_458 = arith.constant 0 : index
    %c0_459 = arith.constant 0 : index
    %439 = vector.load %arg21[%c1_457, %c0_458, %c0_459] : memref<2x16x8xf32, #tpu.memory_space<vmem>>, vector<1x16x8xf32>
    %440 = vector.shape_cast %439 : vector<1x16x8xf32> to vector<16x8xf32>
    %c1_460 = arith.constant 1 : index
    %c0_461 = arith.constant 0 : index
    %c0_462 = arith.constant 0 : index
    %441 = vector.load %arg22[%c1_460, %c0_461, %c0_462] : memref<2x128x64xf32, #tpu.memory_space<vmem>>, vector<1x128x64xf32>
    %442 = vector.shape_cast %441 : vector<1x128x64xf32> to vector<128x64xf32>
    %cst_463 = arith.constant dense<0.000000e+00> : vector<8x64xf32>
    %443 = tpu.matmul %432, %442, %cst_463 {dimension_numbers = #tpu.dot_dimension_numbers<[1], [0], [0], [1], [0, 0, 1, 1], [], []>} : vector<8x128xf32>, vector<128x64xf32>, vector<8x64xf32> -> vector<8x64xf32>
    %cst_464 = arith.constant dense<0.000000e+00> : vector<16x64xf32>
    %444 = tpu.matmul %440, %443, %cst_464 {dimension_numbers = #tpu.dot_dimension_numbers<[1], [0], [0], [1], [0, 0, 1, 1], [], []>} : vector<16x8xf32>, vector<8x64xf32>, vector<16x64xf32> -> vector<16x64xf32>
    %445 = arith.addf %438, %444 : vector<16x64xf32>
    %446 = arith.addf %445, %283 : vector<16x64xf32>
    %c0_465 = arith.constant 0 : index
    %c0_466 = arith.constant 0 : index
    %447 = vector.load %arg40[%c0_465, %c0_466] : memref<1x32xf32, #tpu.memory_space<vmem>>, vector<1x32xf32>
    %448 = vector.shape_cast %447 : vector<1x32xf32> to vector<1x32xf32>
    %449 = vector.broadcast %448 : vector<1x32xf32> to vector<8x32xf32>
    %c0_467 = arith.constant 0 : index
    %c0_468 = arith.constant 0 : index
    %c0_469 = arith.constant 0 : index
    %450 = vector.load %arg7[%c0_467, %c0_468, %c0_469] : memref<3x8x16xf32, #tpu.memory_space<vmem>>, vector<1x8x16xf32>
    %451 = vector.shape_cast %450 : vector<1x8x16xf32> to vector<8x16xf32>
    %cst_470 = arith.constant dense<0.000000e+00> : vector<8x64xf32>
    %452 = tpu.matmul %451, %446, %cst_470 {dimension_numbers = #tpu.dot_dimension_numbers<[1], [0], [0], [1], [0, 0, 1, 1], [], []>} : vector<8x16xf32>, vector<16x64xf32>, vector<8x64xf32> -> vector<8x64xf32>
    %c0_471 = arith.constant 0 : index
    %c0_472 = arith.constant 0 : index
    %c0_473 = arith.constant 0 : index
    %453 = vector.load %arg39[%c0_471, %c0_472, %c0_473] : memref<3x64x32xf32, #tpu.memory_space<vmem>>, vector<1x64x32xf32>
    %454 = vector.shape_cast %453 : vector<1x64x32xf32> to vector<64x32xf32>
    %cst_474 = arith.constant dense<0.000000e+00> : vector<8x32xf32>
    %455 = tpu.matmul %452, %454, %cst_474 {dimension_numbers = #tpu.dot_dimension_numbers<[1], [0], [0], [1], [0, 0, 1, 1], [], []>} : vector<8x64xf32>, vector<64x32xf32>, vector<8x32xf32> -> vector<8x32xf32>
    %456 = arith.addf %449, %455 : vector<8x32xf32>
    %c1_475 = arith.constant 1 : index
    %c0_476 = arith.constant 0 : index
    %c0_477 = arith.constant 0 : index
    %457 = vector.load %arg7[%c1_475, %c0_476, %c0_477] : memref<3x8x16xf32, #tpu.memory_space<vmem>>, vector<1x8x16xf32>
    %458 = vector.shape_cast %457 : vector<1x8x16xf32> to vector<8x16xf32>
    %cst_478 = arith.constant dense<0.000000e+00> : vector<8x64xf32>
    %459 = tpu.matmul %458, %446, %cst_478 {dimension_numbers = #tpu.dot_dimension_numbers<[1], [0], [0], [1], [0, 0, 1, 1], [], []>} : vector<8x16xf32>, vector<16x64xf32>, vector<8x64xf32> -> vector<8x64xf32>
    %c1_479 = arith.constant 1 : index
    %c0_480 = arith.constant 0 : index
    %c0_481 = arith.constant 0 : index
    %460 = vector.load %arg39[%c1_479, %c0_480, %c0_481] : memref<3x64x32xf32, #tpu.memory_space<vmem>>, vector<1x64x32xf32>
    %461 = vector.shape_cast %460 : vector<1x64x32xf32> to vector<64x32xf32>
    %cst_482 = arith.constant dense<0.000000e+00> : vector<8x32xf32>
    %462 = tpu.matmul %459, %461, %cst_482 {dimension_numbers = #tpu.dot_dimension_numbers<[1], [0], [0], [1], [0, 0, 1, 1], [], []>} : vector<8x64xf32>, vector<64x32xf32>, vector<8x32xf32> -> vector<8x32xf32>
    %463 = arith.addf %456, %462 : vector<8x32xf32>
    %c2_483 = arith.constant 2 : index
    %c0_484 = arith.constant 0 : index
    %c0_485 = arith.constant 0 : index
    %464 = vector.load %arg7[%c2_483, %c0_484, %c0_485] : memref<3x8x16xf32, #tpu.memory_space<vmem>>, vector<1x8x16xf32>
    %465 = vector.shape_cast %464 : vector<1x8x16xf32> to vector<8x16xf32>
    %cst_486 = arith.constant dense<0.000000e+00> : vector<8x64xf32>
    %466 = tpu.matmul %465, %446, %cst_486 {dimension_numbers = #tpu.dot_dimension_numbers<[1], [0], [0], [1], [0, 0, 1, 1], [], []>} : vector<8x16xf32>, vector<16x64xf32>, vector<8x64xf32> -> vector<8x64xf32>
    %c2_487 = arith.constant 2 : index
    %c0_488 = arith.constant 0 : index
    %c0_489 = arith.constant 0 : index
    %467 = vector.load %arg39[%c2_487, %c0_488, %c0_489] : memref<3x64x32xf32, #tpu.memory_space<vmem>>, vector<1x64x32xf32>
    %468 = vector.shape_cast %467 : vector<1x64x32xf32> to vector<64x32xf32>
    %cst_490 = arith.constant dense<0.000000e+00> : vector<8x32xf32>
    %469 = tpu.matmul %466, %468, %cst_490 {dimension_numbers = #tpu.dot_dimension_numbers<[1], [0], [0], [1], [0, 0, 1, 1], [], []>} : vector<8x64xf32>, vector<64x32xf32>, vector<8x32xf32> -> vector<8x32xf32>
    %470 = arith.addf %463, %469 : vector<8x32xf32>
    %cst_491 = arith.constant 0.000000e+00 : f32
    %471 = vector.broadcast %cst_491 : f32 to vector<8x32xf32>
    %472 = arith.maximumf %470, %471 : vector<8x32xf32>
    %c0_492 = arith.constant 0 : index
    %c0_493 = arith.constant 0 : index
    %473 = vector.load %arg42[%c0_492, %c0_493] : memref<1x16xf32, #tpu.memory_space<vmem>>, vector<1x16xf32>
    %474 = vector.shape_cast %473 : vector<1x16xf32> to vector<1x16xf32>
    %475 = vector.broadcast %474 : vector<1x16xf32> to vector<4x16xf32>
    %c0_494 = arith.constant 0 : index
    %c0_495 = arith.constant 0 : index
    %c0_496 = arith.constant 0 : index
    %476 = vector.load %arg10[%c0_494, %c0_495, %c0_496] : memref<3x4x8xf32, #tpu.memory_space<vmem>>, vector<1x4x8xf32>
    %477 = vector.shape_cast %476 : vector<1x4x8xf32> to vector<4x8xf32>
    %cst_497 = arith.constant dense<0.000000e+00> : vector<4x32xf32>
    %478 = tpu.matmul %477, %472, %cst_497 {dimension_numbers = #tpu.dot_dimension_numbers<[1], [0], [0], [1], [0, 0, 1, 1], [], []>} : vector<4x8xf32>, vector<8x32xf32>, vector<4x32xf32> -> vector<4x32xf32>
    %c0_498 = arith.constant 0 : index
    %c0_499 = arith.constant 0 : index
    %c0_500 = arith.constant 0 : index
    %479 = vector.load %arg41[%c0_498, %c0_499, %c0_500] : memref<3x32x16xf32, #tpu.memory_space<vmem>>, vector<1x32x16xf32>
    %480 = vector.shape_cast %479 : vector<1x32x16xf32> to vector<32x16xf32>
    %cst_501 = arith.constant dense<0.000000e+00> : vector<4x16xf32>
    %481 = tpu.matmul %478, %480, %cst_501 {dimension_numbers = #tpu.dot_dimension_numbers<[1], [0], [0], [1], [0, 0, 1, 1], [], []>} : vector<4x32xf32>, vector<32x16xf32>, vector<4x16xf32> -> vector<4x16xf32>
    %482 = arith.addf %475, %481 : vector<4x16xf32>
    %c1_502 = arith.constant 1 : index
    %c0_503 = arith.constant 0 : index
    %c0_504 = arith.constant 0 : index
    %483 = vector.load %arg10[%c1_502, %c0_503, %c0_504] : memref<3x4x8xf32, #tpu.memory_space<vmem>>, vector<1x4x8xf32>
    %484 = vector.shape_cast %483 : vector<1x4x8xf32> to vector<4x8xf32>
    %cst_505 = arith.constant dense<0.000000e+00> : vector<4x32xf32>
    %485 = tpu.matmul %484, %472, %cst_505 {dimension_numbers = #tpu.dot_dimension_numbers<[1], [0], [0], [1], [0, 0, 1, 1], [], []>} : vector<4x8xf32>, vector<8x32xf32>, vector<4x32xf32> -> vector<4x32xf32>
    %c1_506 = arith.constant 1 : index
    %c0_507 = arith.constant 0 : index
    %c0_508 = arith.constant 0 : index
    %486 = vector.load %arg41[%c1_506, %c0_507, %c0_508] : memref<3x32x16xf32, #tpu.memory_space<vmem>>, vector<1x32x16xf32>
    %487 = vector.shape_cast %486 : vector<1x32x16xf32> to vector<32x16xf32>
    %cst_509 = arith.constant dense<0.000000e+00> : vector<4x16xf32>
    %488 = tpu.matmul %485, %487, %cst_509 {dimension_numbers = #tpu.dot_dimension_numbers<[1], [0], [0], [1], [0, 0, 1, 1], [], []>} : vector<4x32xf32>, vector<32x16xf32>, vector<4x16xf32> -> vector<4x16xf32>
    %489 = arith.addf %482, %488 : vector<4x16xf32>
    %c2_510 = arith.constant 2 : index
    %c0_511 = arith.constant 0 : index
    %c0_512 = arith.constant 0 : index
    %490 = vector.load %arg10[%c2_510, %c0_511, %c0_512] : memref<3x4x8xf32, #tpu.memory_space<vmem>>, vector<1x4x8xf32>
    %491 = vector.shape_cast %490 : vector<1x4x8xf32> to vector<4x8xf32>
    %cst_513 = arith.constant dense<0.000000e+00> : vector<4x32xf32>
    %492 = tpu.matmul %491, %472, %cst_513 {dimension_numbers = #tpu.dot_dimension_numbers<[1], [0], [0], [1], [0, 0, 1, 1], [], []>} : vector<4x8xf32>, vector<8x32xf32>, vector<4x32xf32> -> vector<4x32xf32>
    %c2_514 = arith.constant 2 : index
    %c0_515 = arith.constant 0 : index
    %c0_516 = arith.constant 0 : index
    %493 = vector.load %arg41[%c2_514, %c0_515, %c0_516] : memref<3x32x16xf32, #tpu.memory_space<vmem>>, vector<1x32x16xf32>
    %494 = vector.shape_cast %493 : vector<1x32x16xf32> to vector<32x16xf32>
    %cst_517 = arith.constant dense<0.000000e+00> : vector<4x16xf32>
    %495 = tpu.matmul %492, %494, %cst_517 {dimension_numbers = #tpu.dot_dimension_numbers<[1], [0], [0], [1], [0, 0, 1, 1], [], []>} : vector<4x32xf32>, vector<32x16xf32>, vector<4x16xf32> -> vector<4x16xf32>
    %496 = arith.addf %489, %495 : vector<4x16xf32>
    %cst_518 = arith.constant 0.000000e+00 : f32
    %497 = vector.broadcast %cst_518 : f32 to vector<4x16xf32>
    %498 = arith.maximumf %496, %497 : vector<4x16xf32>
    %c0_519 = arith.constant 0 : index
    %c0_520 = arith.constant 0 : index
    %499 = vector.load %arg44[%c0_519, %c0_520] : memref<1x64xf32, #tpu.memory_space<vmem>>, vector<1x64xf32>
    %500 = vector.shape_cast %499 : vector<1x64xf32> to vector<1x64xf32>
    %501 = vector.broadcast %500 : vector<1x64xf32> to vector<4x64xf32>
    %c0_521 = arith.constant 0 : index
    %c0_522 = arith.constant 0 : index
    %c0_523 = arith.constant 0 : index
    %502 = vector.load %arg13[%c0_521, %c0_522, %c0_523] : memref<3x4x4xf32, #tpu.memory_space<vmem>>, vector<1x4x4xf32>
    %503 = vector.shape_cast %502 : vector<1x4x4xf32> to vector<4x4xf32>
    %cst_524 = arith.constant dense<0.000000e+00> : vector<4x16xf32>
    %504 = tpu.matmul %503, %498, %cst_524 {dimension_numbers = #tpu.dot_dimension_numbers<[1], [0], [0], [1], [0, 0, 1, 1], [], []>} : vector<4x4xf32>, vector<4x16xf32>, vector<4x16xf32> -> vector<4x16xf32>
    %c0_525 = arith.constant 0 : index
    %c0_526 = arith.constant 0 : index
    %c0_527 = arith.constant 0 : index
    %505 = vector.load %arg43[%c0_525, %c0_526, %c0_527] : memref<3x16x64xf32, #tpu.memory_space<vmem>>, vector<1x16x64xf32>
    %506 = vector.shape_cast %505 : vector<1x16x64xf32> to vector<16x64xf32>
    %cst_528 = arith.constant dense<0.000000e+00> : vector<4x64xf32>
    %507 = tpu.matmul %504, %506, %cst_528 {dimension_numbers = #tpu.dot_dimension_numbers<[1], [0], [0], [1], [0, 0, 1, 1], [], []>} : vector<4x16xf32>, vector<16x64xf32>, vector<4x64xf32> -> vector<4x64xf32>
    %508 = arith.addf %501, %507 : vector<4x64xf32>
    %c1_529 = arith.constant 1 : index
    %c0_530 = arith.constant 0 : index
    %c0_531 = arith.constant 0 : index
    %509 = vector.load %arg43[%c1_529, %c0_530, %c0_531] : memref<3x16x64xf32, #tpu.memory_space<vmem>>, vector<1x16x64xf32>
    %510 = vector.shape_cast %509 : vector<1x16x64xf32> to vector<16x64xf32>
    %cst_532 = arith.constant dense<0.000000e+00> : vector<4x64xf32>
    %511 = tpu.matmul %498, %510, %cst_532 {dimension_numbers = #tpu.dot_dimension_numbers<[1], [0], [0], [1], [0, 0, 1, 1], [], []>} : vector<4x16xf32>, vector<16x64xf32>, vector<4x64xf32> -> vector<4x64xf32>
    %512 = arith.addf %508, %511 : vector<4x64xf32>
    %c2_533 = arith.constant 2 : index
    %c0_534 = arith.constant 0 : index
    %c0_535 = arith.constant 0 : index
    %513 = vector.load %arg13[%c2_533, %c0_534, %c0_535] : memref<3x4x4xf32, #tpu.memory_space<vmem>>, vector<1x4x4xf32>
    %514 = vector.shape_cast %513 : vector<1x4x4xf32> to vector<4x4xf32>
    %cst_536 = arith.constant dense<0.000000e+00> : vector<4x16xf32>
    %515 = tpu.matmul %514, %498, %cst_536 {dimension_numbers = #tpu.dot_dimension_numbers<[1], [0], [0], [1], [0, 0, 1, 1], [], []>} : vector<4x4xf32>, vector<4x16xf32>, vector<4x16xf32> -> vector<4x16xf32>
    %c2_537 = arith.constant 2 : index
    %c0_538 = arith.constant 0 : index
    %c0_539 = arith.constant 0 : index
    %516 = vector.load %arg43[%c2_537, %c0_538, %c0_539] : memref<3x16x64xf32, #tpu.memory_space<vmem>>, vector<1x16x64xf32>
    %517 = vector.shape_cast %516 : vector<1x16x64xf32> to vector<16x64xf32>
    %cst_540 = arith.constant dense<0.000000e+00> : vector<4x64xf32>
    %518 = tpu.matmul %515, %517, %cst_540 {dimension_numbers = #tpu.dot_dimension_numbers<[1], [0], [0], [1], [0, 0, 1, 1], [], []>} : vector<4x16xf32>, vector<16x64xf32>, vector<4x64xf32> -> vector<4x64xf32>
    %519 = arith.addf %512, %518 : vector<4x64xf32>
    %cst_541 = arith.constant 0.000000e+00 : f32
    %520 = vector.broadcast %cst_541 : f32 to vector<4x64xf32>
    %521 = arith.maximumf %519, %520 : vector<4x64xf32>
    %c0_542 = arith.constant 0 : index
    %c0_543 = arith.constant 0 : index
    %c0_544 = arith.constant 0 : index
    %522 = vector.load %arg19[%c0_542, %c0_543, %c0_544] : memref<2x8x4xf32, #tpu.memory_space<vmem>>, vector<1x8x4xf32>
    %523 = vector.shape_cast %522 : vector<1x8x4xf32> to vector<8x4xf32>
    %c0_545 = arith.constant 0 : index
    %c0_546 = arith.constant 0 : index
    %c0_547 = arith.constant 0 : index
    %524 = vector.load %arg20[%c0_545, %c0_546, %c0_547] : memref<2x64x32xf32, #tpu.memory_space<vmem>>, vector<1x64x32xf32>
    %525 = vector.shape_cast %524 : vector<1x64x32xf32> to vector<64x32xf32>
    %cst_548 = arith.constant dense<0.000000e+00> : vector<4x32xf32>
    %526 = tpu.matmul %521, %525, %cst_548 {dimension_numbers = #tpu.dot_dimension_numbers<[1], [0], [0], [1], [0, 0, 1, 1], [], []>} : vector<4x64xf32>, vector<64x32xf32>, vector<4x32xf32> -> vector<4x32xf32>
    %cst_549 = arith.constant dense<0.000000e+00> : vector<8x32xf32>
    %527 = tpu.matmul %523, %526, %cst_549 {dimension_numbers = #tpu.dot_dimension_numbers<[1], [0], [0], [1], [0, 0, 1, 1], [], []>} : vector<8x4xf32>, vector<4x32xf32>, vector<8x32xf32> -> vector<8x32xf32>
    %c1_550 = arith.constant 1 : index
    %c0_551 = arith.constant 0 : index
    %c0_552 = arith.constant 0 : index
    %528 = vector.load %arg19[%c1_550, %c0_551, %c0_552] : memref<2x8x4xf32, #tpu.memory_space<vmem>>, vector<1x8x4xf32>
    %529 = vector.shape_cast %528 : vector<1x8x4xf32> to vector<8x4xf32>
    %c1_553 = arith.constant 1 : index
    %c0_554 = arith.constant 0 : index
    %c0_555 = arith.constant 0 : index
    %530 = vector.load %arg20[%c1_553, %c0_554, %c0_555] : memref<2x64x32xf32, #tpu.memory_space<vmem>>, vector<1x64x32xf32>
    %531 = vector.shape_cast %530 : vector<1x64x32xf32> to vector<64x32xf32>
    %cst_556 = arith.constant dense<0.000000e+00> : vector<4x32xf32>
    %532 = tpu.matmul %521, %531, %cst_556 {dimension_numbers = #tpu.dot_dimension_numbers<[1], [0], [0], [1], [0, 0, 1, 1], [], []>} : vector<4x64xf32>, vector<64x32xf32>, vector<4x32xf32> -> vector<4x32xf32>
    %cst_557 = arith.constant dense<0.000000e+00> : vector<8x32xf32>
    %533 = tpu.matmul %529, %532, %cst_557 {dimension_numbers = #tpu.dot_dimension_numbers<[1], [0], [0], [1], [0, 0, 1, 1], [], []>} : vector<8x4xf32>, vector<4x32xf32>, vector<8x32xf32> -> vector<8x32xf32>
    %534 = arith.addf %527, %533 : vector<8x32xf32>
    %535 = arith.addf %534, %472 : vector<8x32xf32>
    %c0_558 = arith.constant 0 : index
    %c0_559 = arith.constant 0 : index
    %536 = vector.load %arg46[%c0_558, %c0_559] : memref<1x128xf32, #tpu.memory_space<vmem>>, vector<1x128xf32>
    %537 = vector.shape_cast %536 : vector<1x128xf32> to vector<1x128xf32>
    %538 = vector.broadcast %537 : vector<1x128xf32> to vector<8x128xf32>
    %c0_560 = arith.constant 0 : index
    %c0_561 = arith.constant 0 : index
    %c0_562 = arith.constant 0 : index
    %539 = vector.load %arg16[%c0_560, %c0_561, %c0_562] : memref<3x8x8xf32, #tpu.memory_space<vmem>>, vector<1x8x8xf32>
    %540 = vector.shape_cast %539 : vector<1x8x8xf32> to vector<8x8xf32>
    %cst_563 = arith.constant dense<0.000000e+00> : vector<8x32xf32>
    %541 = tpu.matmul %540, %535, %cst_563 {dimension_numbers = #tpu.dot_dimension_numbers<[1], [0], [0], [1], [0, 0, 1, 1], [], []>} : vector<8x8xf32>, vector<8x32xf32>, vector<8x32xf32> -> vector<8x32xf32>
    %c0_564 = arith.constant 0 : index
    %c0_565 = arith.constant 0 : index
    %c0_566 = arith.constant 0 : index
    %542 = vector.load %arg45[%c0_564, %c0_565, %c0_566] : memref<3x32x128xf32, #tpu.memory_space<vmem>>, vector<1x32x128xf32>
    %543 = vector.shape_cast %542 : vector<1x32x128xf32> to vector<32x128xf32>
    %cst_567 = arith.constant dense<0.000000e+00> : vector<8x128xf32>
    %544 = tpu.matmul %541, %543, %cst_567 {dimension_numbers = #tpu.dot_dimension_numbers<[1], [0], [0], [1], [0, 0, 1, 1], [], []>} : vector<8x32xf32>, vector<32x128xf32>, vector<8x128xf32> -> vector<8x128xf32>
    %545 = arith.addf %538, %544 : vector<8x128xf32>
    %c1_568 = arith.constant 1 : index
    %c0_569 = arith.constant 0 : index
    %c0_570 = arith.constant 0 : index
    %546 = vector.load %arg45[%c1_568, %c0_569, %c0_570] : memref<3x32x128xf32, #tpu.memory_space<vmem>>, vector<1x32x128xf32>
    %547 = vector.shape_cast %546 : vector<1x32x128xf32> to vector<32x128xf32>
    %cst_571 = arith.constant dense<0.000000e+00> : vector<8x128xf32>
    %548 = tpu.matmul %535, %547, %cst_571 {dimension_numbers = #tpu.dot_dimension_numbers<[1], [0], [0], [1], [0, 0, 1, 1], [], []>} : vector<8x32xf32>, vector<32x128xf32>, vector<8x128xf32> -> vector<8x128xf32>
    %549 = arith.addf %545, %548 : vector<8x128xf32>
    %c2_572 = arith.constant 2 : index
    %c0_573 = arith.constant 0 : index
    %c0_574 = arith.constant 0 : index
    %550 = vector.load %arg16[%c2_572, %c0_573, %c0_574] : memref<3x8x8xf32, #tpu.memory_space<vmem>>, vector<1x8x8xf32>
    %551 = vector.shape_cast %550 : vector<1x8x8xf32> to vector<8x8xf32>
    %cst_575 = arith.constant dense<0.000000e+00> : vector<8x32xf32>
    %552 = tpu.matmul %551, %535, %cst_575 {dimension_numbers = #tpu.dot_dimension_numbers<[1], [0], [0], [1], [0, 0, 1, 1], [], []>} : vector<8x8xf32>, vector<8x32xf32>, vector<8x32xf32> -> vector<8x32xf32>
    %c2_576 = arith.constant 2 : index
    %c0_577 = arith.constant 0 : index
    %c0_578 = arith.constant 0 : index
    %553 = vector.load %arg45[%c2_576, %c0_577, %c0_578] : memref<3x32x128xf32, #tpu.memory_space<vmem>>, vector<1x32x128xf32>
    %554 = vector.shape_cast %553 : vector<1x32x128xf32> to vector<32x128xf32>
    %cst_579 = arith.constant dense<0.000000e+00> : vector<8x128xf32>
    %555 = tpu.matmul %552, %554, %cst_579 {dimension_numbers = #tpu.dot_dimension_numbers<[1], [0], [0], [1], [0, 0, 1, 1], [], []>} : vector<8x32xf32>, vector<32x128xf32>, vector<8x128xf32> -> vector<8x128xf32>
    %556 = arith.addf %549, %555 : vector<8x128xf32>
    %cst_580 = arith.constant 0.000000e+00 : f32
    %557 = vector.broadcast %cst_580 : f32 to vector<8x128xf32>
    %558 = arith.maximumf %556, %557 : vector<8x128xf32>
    %c0_581 = arith.constant 0 : index
    %c0_582 = arith.constant 0 : index
    %c0_583 = arith.constant 0 : index
    %559 = vector.load %arg21[%c0_581, %c0_582, %c0_583] : memref<2x16x8xf32, #tpu.memory_space<vmem>>, vector<1x16x8xf32>
    %560 = vector.shape_cast %559 : vector<1x16x8xf32> to vector<16x8xf32>
    %c0_584 = arith.constant 0 : index
    %c0_585 = arith.constant 0 : index
    %c0_586 = arith.constant 0 : index
    %561 = vector.load %arg22[%c0_584, %c0_585, %c0_586] : memref<2x128x64xf32, #tpu.memory_space<vmem>>, vector<1x128x64xf32>
    %562 = vector.shape_cast %561 : vector<1x128x64xf32> to vector<128x64xf32>
    %cst_587 = arith.constant dense<0.000000e+00> : vector<8x64xf32>
    %563 = tpu.matmul %558, %562, %cst_587 {dimension_numbers = #tpu.dot_dimension_numbers<[1], [0], [0], [1], [0, 0, 1, 1], [], []>} : vector<8x128xf32>, vector<128x64xf32>, vector<8x64xf32> -> vector<8x64xf32>
    %cst_588 = arith.constant dense<0.000000e+00> : vector<16x64xf32>
    %564 = tpu.matmul %560, %563, %cst_588 {dimension_numbers = #tpu.dot_dimension_numbers<[1], [0], [0], [1], [0, 0, 1, 1], [], []>} : vector<16x8xf32>, vector<8x64xf32>, vector<16x64xf32> -> vector<16x64xf32>
    %c1_589 = arith.constant 1 : index
    %c0_590 = arith.constant 0 : index
    %c0_591 = arith.constant 0 : index
    %565 = vector.load %arg21[%c1_589, %c0_590, %c0_591] : memref<2x16x8xf32, #tpu.memory_space<vmem>>, vector<1x16x8xf32>
    %566 = vector.shape_cast %565 : vector<1x16x8xf32> to vector<16x8xf32>
    %c1_592 = arith.constant 1 : index
    %c0_593 = arith.constant 0 : index
    %c0_594 = arith.constant 0 : index
    %567 = vector.load %arg22[%c1_592, %c0_593, %c0_594] : memref<2x128x64xf32, #tpu.memory_space<vmem>>, vector<1x128x64xf32>
    %568 = vector.shape_cast %567 : vector<1x128x64xf32> to vector<128x64xf32>
    %cst_595 = arith.constant dense<0.000000e+00> : vector<8x64xf32>
    %569 = tpu.matmul %558, %568, %cst_595 {dimension_numbers = #tpu.dot_dimension_numbers<[1], [0], [0], [1], [0, 0, 1, 1], [], []>} : vector<8x128xf32>, vector<128x64xf32>, vector<8x64xf32> -> vector<8x64xf32>
    %cst_596 = arith.constant dense<0.000000e+00> : vector<16x64xf32>
    %570 = tpu.matmul %566, %569, %cst_596 {dimension_numbers = #tpu.dot_dimension_numbers<[1], [0], [0], [1], [0, 0, 1, 1], [], []>} : vector<16x8xf32>, vector<8x64xf32>, vector<16x64xf32> -> vector<16x64xf32>
    %571 = arith.addf %564, %570 : vector<16x64xf32>
    %572 = arith.addf %571, %446 : vector<16x64xf32>
    %c0_597 = arith.constant 0 : index
    %c0_598 = arith.constant 0 : index
    %573 = vector.load %arg50[%c0_597, %c0_598] : memref<1x768xf32, #tpu.memory_space<vmem>>, vector<1x768xf32>
    %574 = vector.shape_cast %573 : vector<1x768xf32> to vector<1x768xf32>
    %575 = vector.broadcast %574 : vector<1x768xf32> to vector<16x768xf32>
    %c0_599 = arith.constant 0 : index
    %c0_600 = arith.constant 0 : index
    %c0_601 = arith.constant 0 : index
    %576 = vector.load %arg2[%c0_599, %c0_600, %c0_601] : memref<3x16x16xf32, #tpu.memory_space<vmem>>, vector<1x16x16xf32>
    %577 = vector.shape_cast %576 : vector<1x16x16xf32> to vector<16x16xf32>
    %cst_602 = arith.constant dense<0.000000e+00> : vector<16x64xf32>
    %578 = tpu.matmul %577, %572, %cst_602 {dimension_numbers = #tpu.dot_dimension_numbers<[1], [0], [0], [1], [0, 0, 1, 1], [], []>} : vector<16x16xf32>, vector<16x64xf32>, vector<16x64xf32> -> vector<16x64xf32>
    %c0_603 = arith.constant 0 : index
    %c0_604 = arith.constant 0 : index
    %c0_605 = arith.constant 0 : index
    %579 = vector.load %arg49[%c0_603, %c0_604, %c0_605] : memref<3x64x768xf32, #tpu.memory_space<vmem>>, vector<1x64x768xf32>
    %580 = vector.shape_cast %579 : vector<1x64x768xf32> to vector<64x768xf32>
    %cst_606 = arith.constant dense<0.000000e+00> : vector<16x768xf32>
    %581 = tpu.matmul %578, %580, %cst_606 {dimension_numbers = #tpu.dot_dimension_numbers<[1], [0], [0], [1], [0, 0, 1, 1], [], []>} : vector<16x64xf32>, vector<64x768xf32>, vector<16x768xf32> -> vector<16x768xf32>
    %582 = arith.addf %575, %581 : vector<16x768xf32>
    %c1_607 = arith.constant 1 : index
    %c0_608 = arith.constant 0 : index
    %c0_609 = arith.constant 0 : index
    %583 = vector.load %arg49[%c1_607, %c0_608, %c0_609] : memref<3x64x768xf32, #tpu.memory_space<vmem>>, vector<1x64x768xf32>
    %584 = vector.shape_cast %583 : vector<1x64x768xf32> to vector<64x768xf32>
    %cst_610 = arith.constant dense<0.000000e+00> : vector<16x768xf32>
    %585 = tpu.matmul %572, %584, %cst_610 {dimension_numbers = #tpu.dot_dimension_numbers<[1], [0], [0], [1], [0, 0, 1, 1], [], []>} : vector<16x64xf32>, vector<64x768xf32>, vector<16x768xf32> -> vector<16x768xf32>
    %586 = arith.addf %582, %585 : vector<16x768xf32>
    %c2_611 = arith.constant 2 : index
    %c0_612 = arith.constant 0 : index
    %c0_613 = arith.constant 0 : index
    %587 = vector.load %arg2[%c2_611, %c0_612, %c0_613] : memref<3x16x16xf32, #tpu.memory_space<vmem>>, vector<1x16x16xf32>
    %588 = vector.shape_cast %587 : vector<1x16x16xf32> to vector<16x16xf32>
    %cst_614 = arith.constant dense<0.000000e+00> : vector<16x64xf32>
    %589 = tpu.matmul %588, %572, %cst_614 {dimension_numbers = #tpu.dot_dimension_numbers<[1], [0], [0], [1], [0, 0, 1, 1], [], []>} : vector<16x16xf32>, vector<16x64xf32>, vector<16x64xf32> -> vector<16x64xf32>
    %c2_615 = arith.constant 2 : index
    %c0_616 = arith.constant 0 : index
    %c0_617 = arith.constant 0 : index
    %590 = vector.load %arg49[%c2_615, %c0_616, %c0_617] : memref<3x64x768xf32, #tpu.memory_space<vmem>>, vector<1x64x768xf32>
    %591 = vector.shape_cast %590 : vector<1x64x768xf32> to vector<64x768xf32>
    %cst_618 = arith.constant dense<0.000000e+00> : vector<16x768xf32>
    %592 = tpu.matmul %589, %591, %cst_618 {dimension_numbers = #tpu.dot_dimension_numbers<[1], [0], [0], [1], [0, 0, 1, 1], [], []>} : vector<16x64xf32>, vector<64x768xf32>, vector<16x768xf32> -> vector<16x768xf32>
    %593 = arith.addf %586, %592 : vector<16x768xf32>
    %c0_619 = arith.constant 0 : index
    %c0_620 = arith.constant 0 : index
    %c0_621 = arith.constant 0 : index
    %594 = vector.load %arg53[%c0_619, %c0_620, %c0_621] : memref<4x64x16xf32, #tpu.memory_space<vmem>>, vector<1x64x16xf32>
    %595 = vector.shape_cast %594 : vector<1x64x16xf32> to vector<64x16xf32>
    %c0_622 = arith.constant 0 : index
    %c0_623 = arith.constant 0 : index
    %c0_624 = arith.constant 0 : index
    %596 = vector.load %arg54[%c0_622, %c0_623, %c0_624] : memref<4x768x192xf32, #tpu.memory_space<vmem>>, vector<1x768x192xf32>
    %597 = vector.shape_cast %596 : vector<1x768x192xf32> to vector<768x192xf32>
    %cst_625 = arith.constant dense<0.000000e+00> : vector<16x192xf32>
    %598 = tpu.matmul %593, %597, %cst_625 {dimension_numbers = #tpu.dot_dimension_numbers<[1], [0], [0], [1], [0, 0, 1, 1], [], []>} : vector<16x768xf32>, vector<768x192xf32>, vector<16x192xf32> -> vector<16x192xf32>
    %cst_626 = arith.constant dense<0.000000e+00> : vector<64x192xf32>
    %599 = tpu.matmul %595, %598, %cst_626 {dimension_numbers = #tpu.dot_dimension_numbers<[1], [0], [0], [1], [0, 0, 1, 1], [], []>} : vector<64x16xf32>, vector<16x192xf32>, vector<64x192xf32> -> vector<64x192xf32>
    %c1_627 = arith.constant 1 : index
    %c0_628 = arith.constant 0 : index
    %c0_629 = arith.constant 0 : index
    %600 = vector.load %arg53[%c1_627, %c0_628, %c0_629] : memref<4x64x16xf32, #tpu.memory_space<vmem>>, vector<1x64x16xf32>
    %601 = vector.shape_cast %600 : vector<1x64x16xf32> to vector<64x16xf32>
    %c1_630 = arith.constant 1 : index
    %c0_631 = arith.constant 0 : index
    %c0_632 = arith.constant 0 : index
    %602 = vector.load %arg54[%c1_630, %c0_631, %c0_632] : memref<4x768x192xf32, #tpu.memory_space<vmem>>, vector<1x768x192xf32>
    %603 = vector.shape_cast %602 : vector<1x768x192xf32> to vector<768x192xf32>
    %cst_633 = arith.constant dense<0.000000e+00> : vector<16x192xf32>
    %604 = tpu.matmul %593, %603, %cst_633 {dimension_numbers = #tpu.dot_dimension_numbers<[1], [0], [0], [1], [0, 0, 1, 1], [], []>} : vector<16x768xf32>, vector<768x192xf32>, vector<16x192xf32> -> vector<16x192xf32>
    %cst_634 = arith.constant dense<0.000000e+00> : vector<64x192xf32>
    %605 = tpu.matmul %601, %604, %cst_634 {dimension_numbers = #tpu.dot_dimension_numbers<[1], [0], [0], [1], [0, 0, 1, 1], [], []>} : vector<64x16xf32>, vector<16x192xf32>, vector<64x192xf32> -> vector<64x192xf32>
    %606 = arith.addf %599, %605 : vector<64x192xf32>
    %c2_635 = arith.constant 2 : index
    %c0_636 = arith.constant 0 : index
    %c0_637 = arith.constant 0 : index
    %607 = vector.load %arg53[%c2_635, %c0_636, %c0_637] : memref<4x64x16xf32, #tpu.memory_space<vmem>>, vector<1x64x16xf32>
    %608 = vector.shape_cast %607 : vector<1x64x16xf32> to vector<64x16xf32>
    %c2_638 = arith.constant 2 : index
    %c0_639 = arith.constant 0 : index
    %c0_640 = arith.constant 0 : index
    %609 = vector.load %arg54[%c2_638, %c0_639, %c0_640] : memref<4x768x192xf32, #tpu.memory_space<vmem>>, vector<1x768x192xf32>
    %610 = vector.shape_cast %609 : vector<1x768x192xf32> to vector<768x192xf32>
    %cst_641 = arith.constant dense<0.000000e+00> : vector<16x192xf32>
    %611 = tpu.matmul %593, %610, %cst_641 {dimension_numbers = #tpu.dot_dimension_numbers<[1], [0], [0], [1], [0, 0, 1, 1], [], []>} : vector<16x768xf32>, vector<768x192xf32>, vector<16x192xf32> -> vector<16x192xf32>
    %cst_642 = arith.constant dense<0.000000e+00> : vector<64x192xf32>
    %612 = tpu.matmul %608, %611, %cst_642 {dimension_numbers = #tpu.dot_dimension_numbers<[1], [0], [0], [1], [0, 0, 1, 1], [], []>} : vector<64x16xf32>, vector<16x192xf32>, vector<64x192xf32> -> vector<64x192xf32>
    %613 = arith.addf %606, %612 : vector<64x192xf32>
    %c3 = arith.constant 3 : index
    %c0_643 = arith.constant 0 : index
    %c0_644 = arith.constant 0 : index
    %614 = vector.load %arg53[%c3, %c0_643, %c0_644] : memref<4x64x16xf32, #tpu.memory_space<vmem>>, vector<1x64x16xf32>
    %615 = vector.shape_cast %614 : vector<1x64x16xf32> to vector<64x16xf32>
    %c3_645 = arith.constant 3 : index
    %c0_646 = arith.constant 0 : index
    %c0_647 = arith.constant 0 : index
    %616 = vector.load %arg54[%c3_645, %c0_646, %c0_647] : memref<4x768x192xf32, #tpu.memory_space<vmem>>, vector<1x768x192xf32>
    %617 = vector.shape_cast %616 : vector<1x768x192xf32> to vector<768x192xf32>
    %cst_648 = arith.constant dense<0.000000e+00> : vector<16x192xf32>
    %618 = tpu.matmul %593, %617, %cst_648 {dimension_numbers = #tpu.dot_dimension_numbers<[1], [0], [0], [1], [0, 0, 1, 1], [], []>} : vector<16x768xf32>, vector<768x192xf32>, vector<16x192xf32> -> vector<16x192xf32>
    %cst_649 = arith.constant dense<0.000000e+00> : vector<64x192xf32>
    %619 = tpu.matmul %615, %618, %cst_649 {dimension_numbers = #tpu.dot_dimension_numbers<[1], [0], [0], [1], [0, 0, 1, 1], [], []>} : vector<64x16xf32>, vector<16x192xf32>, vector<64x192xf32> -> vector<64x192xf32>
    %620 = arith.addf %613, %619 : vector<64x192xf32>
    %c0_650 = arith.constant 0 : index
    %c0_651 = arith.constant 0 : index
    %c0_652 = arith.constant 0 : index
    %621 = vector.load %arg56[%c0_650, %c0_651, %c0_652] : memref<1x64x192xf32, #tpu.memory_space<vmem>>, vector<1x64x192xf32>
    %622 = vector.shape_cast %621 : vector<1x64x192xf32> to vector<64x192xf32>
    %623 = vector.shape_cast %620 : vector<64x192xf32> to vector<1x64x192xf32>
    tpu.vector_store %arg56[%c0_650, %c0_651, %c0_652], %623 {strides = array<i32>} : memref<1x64x192xf32, #tpu.memory_space<vmem>>, vector<1x64x192xf32>,
    return
  }
  func.func @transform_0(%arg0: i32) -> (i32, i32, i32) {
    %c0_i32 = arith.constant 0 : i32
    %c0_i32_0 = arith.constant 0 : i32
    %c0_i32_1 = arith.constant 0 : i32
    return %arg0, %c0_i32, %c0_i32_0 : i32, i32, i32
  }
  func.func @transform_1(%arg0: i32) -> (i32, i32, i32) {
    %c0_i32 = arith.constant 0 : i32
    %c0_i32_0 = arith.constant 0 : i32
    %c0_i32_1 = arith.constant 0 : i32
    %c0_i32_2 = arith.constant 0 : i32
    return %c0_i32, %c0_i32_0, %c0_i32_1 : i32, i32, i32
  }
  func.func @transform_2(%arg0: i32) -> (i32, i32, i32) {
    %c0_i32 = arith.constant 0 : i32
    %c0_i32_0 = arith.constant 0 : i32
    %c0_i32_1 = arith.constant 0 : i32
    %c0_i32_2 = arith.constant 0 : i32
    return %c0_i32, %c0_i32_0, %c0_i32_1 : i32, i32, i32
  }
  func.func @transform_3(%arg0: i32) -> (i32, i32) {
    %c0_i32 = arith.constant 0 : i32
    %c0_i32_0 = arith.constant 0 : i32
    %c0_i32_1 = arith.constant 0 : i32
    return %c0_i32, %c0_i32_0 : i32, i32
  }
  func.func @transform_4(%arg0: i32) -> (i32, i32, i32) {
    %c0_i32 = arith.constant 0 : i32
    %c0_i32_0 = arith.constant 0 : i32
    %c0_i32_1 = arith.constant 0 : i32
    %c0_i32_2 = arith.constant 0 : i32
    return %c0_i32, %c0_i32_0, %c0_i32_1 : i32, i32, i32
  }
  func.func @transform_5(%arg0: i32) -> (i32, i32) {
    %c0_i32 = arith.constant 0 : i32
    %c0_i32_0 = arith.constant 0 : i32
    %c0_i32_1 = arith.constant 0 : i32
    return %c0_i32, %c0_i32_0 : i32, i32
  }
  func.func @transform_6(%arg0: i32) -> (i32, i32, i32) {
    %c0_i32 = arith.constant 0 : i32
    %c0_i32_0 = arith.constant 0 : i32
    %c0_i32_1 = arith.constant 0 : i32
    %c0_i32_2 = arith.constant 0 : i32
    return %c0_i32, %c0_i32_0, %c0_i32_1 : i32, i32, i32
  }
  func.func @transform_7(%arg0: i32) -> (i32, i32, i32) {
    %c0_i32 = arith.constant 0 : i32
    %c0_i32_0 = arith.constant 0 : i32
    %c0_i32_1 = arith.constant 0 : i32
    %c0_i32_2 = arith.constant 0 : i32
    return %c0_i32, %c0_i32_0, %c0_i32_1 : i32, i32, i32
  }
  func.func @transform_8(%arg0: i32) -> (i32, i32) {
    %c0_i32 = arith.constant 0 : i32
    %c0_i32_0 = arith.constant 0 : i32
    %c0_i32_1 = arith.constant 0 : i32
    return %c0_i32, %c0_i32_0 : i32, i32
  }
  func.func @transform_9(%arg0: i32) -> (i32, i32, i32) {
    %c0_i32 = arith.constant 0 : i32
    %c0_i32_0 = arith.constant 0 : i32
    %c0_i32_1 = arith.constant 0 : i32
    %c0_i32_2 = arith.constant 0 : i32
    return %c0_i32, %c0_i32_0, %c0_i32_1 : i32, i32, i32
  }
  func.func @transform_10(%arg0: i32) -> (i32, i32, i32) {
    %c0_i32 = arith.constant 0 : i32
    %c0_i32_0 = arith.constant 0 : i32
    %c0_i32_1 = arith.constant 0 : i32
    %c0_i32_2 = arith.constant 0 : i32
    return %c0_i32, %c0_i32_0, %c0_i32_1 : i32, i32, i32
  }
  func.func @transform_11(%arg0: i32) -> (i32, i32) {
    %c0_i32 = arith.constant 0 : i32
    %c0_i32_0 = arith.constant 0 : i32
    %c0_i32_1 = arith.constant 0 : i32
    return %c0_i32, %c0_i32_0 : i32, i32
  }
  func.func @transform_12(%arg0: i32) -> (i32, i32, i32) {
    %c0_i32 = arith.constant 0 : i32
    %c0_i32_0 = arith.constant 0 : i32
    %c0_i32_1 = arith.constant 0 : i32
    %c0_i32_2 = arith.constant 0 : i32
    return %c0_i32, %c0_i32_0, %c0_i32_1 : i32, i32, i32
  }
  func.func @transform_13(%arg0: i32) -> (i32, i32, i32) {
    %c0_i32 = arith.constant 0 : i32
    %c0_i32_0 = arith.constant 0 : i32
    %c0_i32_1 = arith.constant 0 : i32
    %c0_i32_2 = arith.constant 0 : i32
    return %c0_i32, %c0_i32_0, %c0_i32_1 : i32, i32, i32
  }
  func.func @transform_14(%arg0: i32) -> (i32, i32) {
    %c0_i32 = arith.constant 0 : i32
    %c0_i32_0 = arith.constant 0 : i32
    %c0_i32_1 = arith.constant 0 : i32
    return %c0_i32, %c0_i32_0 : i32, i32
  }
  func.func @transform_15(%arg0: i32) -> (i32, i32, i32) {
    %c0_i32 = arith.constant 0 : i32
    %c0_i32_0 = arith.constant 0 : i32
    %c0_i32_1 = arith.constant 0 : i32
    %c0_i32_2 = arith.constant 0 : i32
    return %c0_i32, %c0_i32_0, %c0_i32_1 : i32, i32, i32
  }
  func.func @transform_16(%arg0: i32) -> (i32, i32, i32) {
    %c0_i32 = arith.constant 0 : i32
    %c0_i32_0 = arith.constant 0 : i32
    %c0_i32_1 = arith.constant 0 : i32
    %c0_i32_2 = arith.constant 0 : i32
    return %c0_i32, %c0_i32_0, %c0_i32_1 : i32, i32, i32
  }
  func.func @transform_17(%arg0: i32) -> (i32, i32) {
    %c0_i32 = arith.constant 0 : i32
    %c0_i32_0 = arith.constant 0 : i32
    %c0_i32_1 = arith.constant 0 : i32
    return %c0_i32, %c0_i32_0 : i32, i32
  }
  func.func @transform_18(%arg0: i32) -> (i32, i32, i32) {
    %c0_i32 = arith.constant 0 : i32
    %c0_i32_0 = arith.constant 0 : i32
    %c0_i32_1 = arith.constant 0 : i32
    %c0_i32_2 = arith.constant 0 : i32
    return %c0_i32, %c0_i32_0, %c0_i32_1 : i32, i32, i32
  }
  func.func @transform_19(%arg0: i32) -> (i32, i32, i32) {
    %c0_i32 = arith.constant 0 : i32
    %c0_i32_0 = arith.constant 0 : i32
    %c0_i32_1 = arith.constant 0 : i32
    %c0_i32_2 = arith.constant 0 : i32
    return %c0_i32, %c0_i32_0, %c0_i32_1 : i32, i32, i32
  }
  func.func @transform_20(%arg0: i32) -> (i32, i32, i32) {
    %c0_i32 = arith.constant 0 : i32
    %c0_i32_0 = arith.constant 0 : i32
    %c0_i32_1 = arith.constant 0 : i32
    %c0_i32_2 = arith.constant 0 : i32
    return %c0_i32, %c0_i32_0, %c0_i32_1 : i32, i32, i32
  }
  func.func @transform_21(%arg0: i32) -> (i32, i32, i32) {
    %c0_i32 = arith.constant 0 : i32
    %c0_i32_0 = arith.constant 0 : i32
    %c0_i32_1 = arith.constant 0 : i32
    %c0_i32_2 = arith.constant 0 : i32
    return %c0_i32, %c0_i32_0, %c0_i32_1 : i32, i32, i32
  }
  func.func @transform_22(%arg0: i32) -> (i32, i32, i32) {
    %c0_i32 = arith.constant 0 : i32
    %c0_i32_0 = arith.constant 0 : i32
    %c0_i32_1 = arith.constant 0 : i32
    %c0_i32_2 = arith.constant 0 : i32
    return %c0_i32, %c0_i32_0, %c0_i32_1 : i32, i32, i32
  }
  func.func @transform_23(%arg0: i32) -> (i32, i32) {
    %c0_i32 = arith.constant 0 : i32
    %c0_i32_0 = arith.constant 0 : i32
    %c0_i32_1 = arith.constant 0 : i32
    return %c0_i32, %c0_i32_0 : i32, i32
  }
  func.func @transform_24(%arg0: i32) -> (i32, i32, i32) {
    %c0_i32 = arith.constant 0 : i32
    %c0_i32_0 = arith.constant 0 : i32
    %c0_i32_1 = arith.constant 0 : i32
    %c0_i32_2 = arith.constant 0 : i32
    return %c0_i32, %c0_i32_0, %c0_i32_1 : i32, i32, i32
  }
  func.func @transform_25(%arg0: i32) -> (i32, i32) {
    %c0_i32 = arith.constant 0 : i32
    %c0_i32_0 = arith.constant 0 : i32
    %c0_i32_1 = arith.constant 0 : i32
    return %c0_i32, %c0_i32_0 : i32, i32
  }
  func.func @transform_26(%arg0: i32) -> (i32, i32, i32) {
    %c0_i32 = arith.constant 0 : i32
    %c0_i32_0 = arith.constant 0 : i32
    %c0_i32_1 = arith.constant 0 : i32
    %c0_i32_2 = arith.constant 0 : i32
    return %c0_i32, %c0_i32_0, %c0_i32_1 : i32, i32, i32
  }
  func.func @transform_27(%arg0: i32) -> (i32, i32) {
    %c0_i32 = arith.constant 0 : i32
    %c0_i32_0 = arith.constant 0 : i32
    %c0_i32_1 = arith.constant 0 : i32
    return %c0_i32, %c0_i32_0 : i32, i32
  }
  func.func @transform_28(%arg0: i32) -> (i32, i32, i32) {
    %c0_i32 = arith.constant 0 : i32
    %c0_i32_0 = arith.constant 0 : i32
    %c0_i32_1 = arith.constant 0 : i32
    %c0_i32_2 = arith.constant 0 : i32
    return %c0_i32, %c0_i32_0, %c0_i32_1 : i32, i32, i32
  }
  func.func @transform_29(%arg0: i32) -> (i32, i32) {
    %c0_i32 = arith.constant 0 : i32
    %c0_i32_0 = arith.constant 0 : i32
    %c0_i32_1 = arith.constant 0 : i32
    return %c0_i32, %c0_i32_0 : i32, i32
  }
  func.func @transform_30(%arg0: i32) -> (i32, i32, i32) {
    %c0_i32 = arith.constant 0 : i32
    %c0_i32_0 = arith.constant 0 : i32
    %c0_i32_1 = arith.constant 0 : i32
    %c0_i32_2 = arith.constant 0 : i32
    return %c0_i32, %c0_i32_0, %c0_i32_1 : i32, i32, i32
  }
  func.func @transform_31(%arg0: i32) -> (i32, i32) {
    %c0_i32 = arith.constant 0 : i32
    %c0_i32_0 = arith.constant 0 : i32
    %c0_i32_1 = arith.constant 0 : i32
    return %c0_i32, %c0_i32_0 : i32, i32
  }
  func.func @transform_32(%arg0: i32) -> (i32, i32, i32) {
    %c0_i32 = arith.constant 0 : i32
    %c0_i32_0 = arith.constant 0 : i32
    %c0_i32_1 = arith.constant 0 : i32
    %c0_i32_2 = arith.constant 0 : i32
    return %c0_i32, %c0_i32_0, %c0_i32_1 : i32, i32, i32
  }
  func.func @transform_33(%arg0: i32) -> (i32, i32) {
    %c0_i32 = arith.constant 0 : i32
    %c0_i32_0 = arith.constant 0 : i32
    %c0_i32_1 = arith.constant 0 : i32
    return %c0_i32, %c0_i32_0 : i32, i32
  }
  func.func @transform_34(%arg0: i32) -> (i32, i32, i32) {
    %c0_i32 = arith.constant 0 : i32
    %c0_i32_0 = arith.constant 0 : i32
    %c0_i32_1 = arith.constant 0 : i32
    %c0_i32_2 = arith.constant 0 : i32
    return %c0_i32, %c0_i32_0, %c0_i32_1 : i32, i32, i32
  }
  func.func @transform_35(%arg0: i32) -> (i32, i32) {
    %c0_i32 = arith.constant 0 : i32
    %c0_i32_0 = arith.constant 0 : i32
    %c0_i32_1 = arith.constant 0 : i32
    return %c0_i32, %c0_i32_0 : i32, i32
  }
  func.func @transform_36(%arg0: i32) -> (i32, i32, i32) {
    %c0_i32 = arith.constant 0 : i32
    %c0_i32_0 = arith.constant 0 : i32
    %c0_i32_1 = arith.constant 0 : i32
    %c0_i32_2 = arith.constant 0 : i32
    return %c0_i32, %c0_i32_0, %c0_i32_1 : i32, i32, i32
  }
  func.func @transform_37(%arg0: i32) -> (i32, i32) {
    %c0_i32 = arith.constant 0 : i32
    %c0_i32_0 = arith.constant 0 : i32
    %c0_i32_1 = arith.constant 0 : i32
    return %c0_i32, %c0_i32_0 : i32, i32
  }
  func.func @transform_38(%arg0: i32) -> (i32, i32, i32) {
    %c0_i32 = arith.constant 0 : i32
    %c0_i32_0 = arith.constant 0 : i32
    %c0_i32_1 = arith.constant 0 : i32
    %c0_i32_2 = arith.constant 0 : i32
    return %c0_i32, %c0_i32_0, %c0_i32_1 : i32, i32, i32
  }
  func.func @transform_39(%arg0: i32) -> (i32, i32) {
    %c0_i32 = arith.constant 0 : i32
    %c0_i32_0 = arith.constant 0 : i32
    %c0_i32_1 = arith.constant 0 : i32
    return %c0_i32, %c0_i32_0 : i32, i32
  }
  func.func @transform_40(%arg0: i32) -> (i32, i32, i32) {
    %c0_i32 = arith.constant 0 : i32
    %c0_i32_0 = arith.constant 0 : i32
    %c0_i32_1 = arith.constant 0 : i32
    %c0_i32_2 = arith.constant 0 : i32
    return %c0_i32, %c0_i32_0, %c0_i32_1 : i32, i32, i32
  }
  func.func @transform_41(%arg0: i32) -> (i32, i32) {
    %c0_i32 = arith.constant 0 : i32
    %c0_i32_0 = arith.constant 0 : i32
    %c0_i32_1 = arith.constant 0 : i32
    return %c0_i32, %c0_i32_0 : i32, i32
  }
  func.func @transform_42(%arg0: i32) -> (i32, i32, i32) {
    %c0_i32 = arith.constant 0 : i32
    %c0_i32_0 = arith.constant 0 : i32
    %c0_i32_1 = arith.constant 0 : i32
    %c0_i32_2 = arith.constant 0 : i32
    return %c0_i32, %c0_i32_0, %c0_i32_1 : i32, i32, i32
  }
  func.func @transform_43(%arg0: i32) -> (i32, i32) {
    %c0_i32 = arith.constant 0 : i32
    %c0_i32_0 = arith.constant 0 : i32
    %c0_i32_1 = arith.constant 0 : i32
    return %c0_i32, %c0_i32_0 : i32, i32
  }
  func.func @transform_44(%arg0: i32) -> (i32, i32, i32) {
    %c0_i32 = arith.constant 0 : i32
    %c0_i32_0 = arith.constant 0 : i32
    %c0_i32_1 = arith.constant 0 : i32
    %c0_i32_2 = arith.constant 0 : i32
    return %c0_i32, %c0_i32_0, %c0_i32_1 : i32, i32, i32
  }
  func.func @transform_45(%arg0: i32) -> (i32, i32) {
    %c0_i32 = arith.constant 0 : i32
    %c0_i32_0 = arith.constant 0 : i32
    %c0_i32_1 = arith.constant 0 : i32
    return %c0_i32, %c0_i32_0 : i32, i32
  }
  func.func @transform_46(%arg0: i32) -> (i32, i32, i32) {
    %c0_i32 = arith.constant 0 : i32
    %c0_i32_0 = arith.constant 0 : i32
    %c0_i32_1 = arith.constant 0 : i32
    %c0_i32_2 = arith.constant 0 : i32
    return %c0_i32, %c0_i32_0, %c0_i32_1 : i32, i32, i32
  }
  func.func @transform_47(%arg0: i32) -> (i32, i32) {
    %c0_i32 = arith.constant 0 : i32
    %c0_i32_0 = arith.constant 0 : i32
    %c0_i32_1 = arith.constant 0 : i32
    return %c0_i32, %c0_i32_0 : i32, i32
  }
  func.func @transform_48(%arg0: i32) -> (i32, i32, i32) {
    %c0_i32 = arith.constant 0 : i32
    %c0_i32_0 = arith.constant 0 : i32
    %c0_i32_1 = arith.constant 0 : i32
    %c0_i32_2 = arith.constant 0 : i32
    return %c0_i32, %c0_i32_0, %c0_i32_1 : i32, i32, i32
  }
  func.func @transform_49(%arg0: i32) -> (i32, i32) {
    %c0_i32 = arith.constant 0 : i32
    %c0_i32_0 = arith.constant 0 : i32
    %c0_i32_1 = arith.constant 0 : i32
    return %c0_i32, %c0_i32_0 : i32, i32
  }
  func.func @transform_50(%arg0: i32) -> (i32, i32, i32) {
    %c0_i32 = arith.constant 0 : i32
    %c0_i32_0 = arith.constant 0 : i32
    %c0_i32_1 = arith.constant 0 : i32
    %c0_i32_2 = arith.constant 0 : i32
    return %c0_i32, %c0_i32_0, %c0_i32_1 : i32, i32, i32
  }
  func.func @transform_51(%arg0: i32) -> (i32, i32, i32) {
    %c0_i32 = arith.constant 0 : i32
    %c0_i32_0 = arith.constant 0 : i32
    %c0_i32_1 = arith.constant 0 : i32
    %c0_i32_2 = arith.constant 0 : i32
    return %c0_i32, %c0_i32_0, %c0_i32_1 : i32, i32, i32
  }
  func.func @transform_52(%arg0: i32) -> (i32, i32, i32) {
    %c0_i32 = arith.constant 0 : i32
    %c0_i32_0 = arith.constant 0 : i32
    %c0_i32_1 = arith.constant 0 : i32
    %c0_i32_2 = arith.constant 0 : i32
    return %c0_i32, %c0_i32_0, %c0_i32_1 : i32, i32, i32
  }
  func.func @transform_53(%arg0: i32) -> (i32, i32, i32) {
    %c0_i32 = arith.constant 0 : i32
    %c0_i32_0 = arith.constant 0 : i32
    %c0_i32_1 = arith.constant 0 : i32
    %c0_i32_2 = arith.constant 0 : i32
    return %c0_i32, %c0_i32_0, %c0_i32_1 : i32, i32, i32
  }
  func.func @transform_54(%arg0: i32) -> (i32, i32, i32) {
    %c0_i32 = arith.constant 0 : i32
    %c0_i32_0 = arith.constant 0 : i32
    %c0_i32_1 = arith.constant 0 : i32
    return %arg0, %c0_i32, %c0_i32_0 : i32, i32, i32
  }
  func.func @transform_55(%arg0: i32) -> (i32, i32, i32) {
    %c0_i32 = arith.constant 0 : i32
    %c0_i32_0 = arith.constant 0 : i32
    %c0_i32_1 = arith.constant 0 : i32
    return %arg0, %c0_i32, %c0_i32_0 : i32, i32, i32
  }
}

</mosaic_0001>

<bundles_post_ra>
// kernel: tile.198
= control target key start
LH: loop header
LB: loop body
LE: loop exit
PB: predicated region body
PF: predicated region fallthrough
CT: control target
= control target key end

     0   :  { %s28_s0 = inlined_call_operand.vmem [shape: f32[48], index: 0, kind: input, shape index: {}]   ;;  %s29_s1 = inlined_call_operand.vmem [shape: f32[16,48], index: 1, kind: output, shape index: {}]  }
   0x1   :  { %v4_v0 = vld [vmem:[%s28_s0] ss:$0 sm:$0xff] }
   0x2   :  { %5 = vst [vmem:[%s29_s1] sm:$0xff] %v4_v0 }
   0x3   :  { %8 = vst [vmem:[%s29_s1 + $0x8] sm:$0xff] %v4_v0 }

// kernel: tile.103
= control target key start
LH: loop header
LB: loop body
LE: loop exit
PB: predicated region body
PF: predicated region fallthrough
CT: control target
= control target key end

     0   :  { %s28_s0 = inlined_call_operand.vmem [shape: f32[16], index: 0, kind: input, shape index: {}]   ;;  %s29_s1 = inlined_call_operand.vmem [shape: f32[16,16], index: 1, kind: output, shape index: {}]  }
   0x1   :  { %v4_v0 = vld [vmem:[%s28_s0] ss:$0 sm:$0xff] }
   0x2   :  { %5 = vst [vmem:[%s29_s1] sm:$0xff] %v4_v0 }
   0x3   :  { %8 = vst [vmem:[%s29_s1 + $0x8] sm:$0xff] %v4_v0 }

// kernel: tile.104
= control target key start
LH: loop header
LB: loop body
LE: loop exit
PB: predicated region body
PF: predicated region fallthrough
CT: control target
= control target key end

     0   :  { %s7_s6 = smov 3  ;;  %s21_s9 = smov 3  ;;  %vm4_vm0 = vcmask 130048   ;;  %vm11_vm1 = vcmask 1048448   ;;  %vm18_vm2 = vcmask 917248   ;;  %vm25_vm3 = vcmask 786048   ;;  %s129_s0 = inlined_call_operand.vmem [shape: f32[16,16], index: 0, kind: input, shape index: {}]   ;;  %s130_s1 = inlined_call_operand.vmem [shape: f32[1,256], index: 1, kind: output, shape index: {}]  }
   0x1   :  { %v67_v0 = vld [vmem:[%s129_s0 + $0x7] ss:$8 sm:%s7_s6]   ;;  %s82_s10 = smov 112   ;;  %v69_v1 = vld [vmem:[%s129_s0 + $0x5] ss:$8 sm:%s21_s9]   ;;  %s83_s13 = smov 80  }
   0x2   :  { %9 = vrot.lane.b32.xlu0 %v67_v0, %s82_s10  ;;  %23 = vrot.lane.b32.xlu1 %v69_v1, %s83_s13  ;;  %s14_s14 = smov 3  ;;  %s28_s15 = smov 3  ;;  %vm32_vm4 = vcmask 654848   ;;  %vm39_vm5 = vcmask 523648   ;;  %vm46_vm6 = vcmask 392448   ;;  %vm53_vm7 = vcmask 261248  }
   0x3   :  { %s35_s16 = smov 3  ;;  %v68_v3 = vld [vmem:[%s129_s0 + $0x6] ss:$8 sm:%s14_s14]   ;;  %s84_s21 = smov 48   ;;  %v70_v4 = vld [vmem:[%s129_s0 + $0x4] ss:$8 sm:%s28_s15]  }
   0x4   :  { %v71_v2 = vld [vmem:[%s129_s0 + $0x3] ss:$8 sm:%s35_s16]   ;;  %s42_s24 = smov 3  ;;  %s85_s25 = smov 96  }
   0x5   :  { %37 = vrot.lane.b32.xlu2 %v71_v2, %s84_s21  ;;  %s86_s26 = smov 64   ;;  %s49_s27 = smov 3  ;;  %v72_v5 = vld [vmem:[%s129_s0 + $0x2] ss:$8 sm:%s42_s24]  }
   0x6   :  { %v73_v6 = vld [vmem:[%s129_s0 + $0x1] ss:$8 sm:%s49_s27]   ;;  %s87_s3 = smov 32   ;;  %s88_s4 = smov 16  }
   0x7   :  { %s2_s5 = smov 3 }
   0x8   :  { %v3_v7 = vld [vmem:[%s129_s0] ss:$8 sm:%s2_s5]  }
   0x9   :  { %5 = vst.msk [vmem:[#allocation0] ss:$8 sm:$0x3] %vm4_vm0, %v3_v7  }
   0xa   :  { %16 = vrot.lane.b32.xlu0 %v68_v3, %s85_s25  ;;  %30 = vrot.lane.b32.xlu1 %v70_v4, %s86_s26 }
   0xd   :  { %44 = vrot.lane.b32.xlu2 %v72_v5, %s87_s3 }
  0x12   :  { %51 = vrot.lane.b32.xlu0 %v73_v6, %s88_s4 }
  0x5f   :  { %v38_v8 = vpop.permute.xlu2 %37  }
  0x67   :  { %v45_v9 = vpop.permute.xlu2 %44  }
  0x74   :  { %v10_v10 = vpop.permute.xlu0 %9   ;;  %v24_v11 = vpop.permute.xlu1 %23  }
  0x75   :  { %12 = vst.msk [vmem:[#allocation0] ss:$8 sm:$0x3] %vm11_vm1, %v10_v10  }
  0x7c   :  { %v17_v12 = vpop.permute.xlu0 %16   ;;  %v31_v13 = vpop.permute.xlu1 %30  }
  0x7d   :  { %19 = vst.msk [vmem:[#allocation0] ss:$8 sm:$0x3] %vm18_vm2, %v17_v12  }
  0x7e   :  { %26 = vst.msk [vmem:[#allocation0] ss:$8 sm:$0x3] %vm25_vm3, %v24_v11  }
  0x7f   :  { %33 = vst.msk [vmem:[#allocation0] ss:$8 sm:$0x3] %vm32_vm4, %v31_v13  }
  0x80   :  { %40 = vst.msk [vmem:[#allocation0] ss:$8 sm:$0x3] %vm39_vm5, %v38_v8  }
  0x81   :  { %47 = vst.msk [vmem:[#allocation0] ss:$8 sm:$0x3] %vm46_vm6, %v45_v9  }
  0x84   :  { %v52_v14 = vpop.permute.xlu0 %51  }
  0x85   :  { %54 = vst.msk [vmem:[#allocation0] ss:$8 sm:$0x3] %vm53_vm7, %v52_v14  }
  0x8c   :  { %v57_v15 = vld [vmem:[#allocation0] sm:$0x1]  ;;  %v62_v16 = vld [vmem:[#allocation0 + $0x8] sm:$0x1] }
  0x8d   :  { %60 = vst [vmem:[%s130_s1] sm:$0x1] %v57_v15 }
  0x8e   :  { %74 = vst [vmem:[%s130_s1 + $0x1] sm:$0x1] %v62_v16 }

// kernel: tile.199
= control target key start
LH: loop header
LB: loop body
LE: loop exit
PB: predicated region body
PF: predicated region fallthrough
CT: control target
= control target key end

     0   :  { %s7_s6 = smov 3  ;;  %s10_s7 = smov 3  ;;  %vm12_vm0 = vcmask 130048   ;;  %vm16_vm1 = vcmask 261120   ;;  %vm4_vm2 = vcmask 392192   ;;  %vm19_vm3 = vcmask 1048448   ;;  %s202_s0 = inlined_call_operand.vmem [shape: f32[16,48], index: 0, kind: input, shape index: {}]   ;;  %s203_s1 = inlined_call_operand.vmem [shape: f32[1,768], index: 1, kind: output, shape index: {}]  }
   0x1   :  { %v112_v0 = vld [vmem:[%s202_s0 + $0xd] ss:$-8 sm:%s7_s6]   ;;  %s38_s12 = smov 3  ;;  %s23_s15 = smov 3  ;;  %vm42_vm4 = vcmask 1048192   ;;  %vm65_vm5 = vcmask 654592  }
   0x2   :  { %v113_v1 = vld [vmem:[%s202_s0 + $0xd] ss:$-8 sm:%s10_s7]   ;;  %v116_v3 = vld [vmem:[%s202_s0 + $0xf] ss:$-8 sm:%s38_s12]   ;;  %s133_s16 = smov 112   ;;  %s134_s17 = smov 80  }
   0x3   :  { %v13_v2 = vsel %vm12_vm0, %v113_v1, %v112_v0  ;;  %40 = vrot.lane.b32.xlu1 %v116_v3, %s134_s17  ;;  %s26_s18 = smov 3  ;;  %v114_v4 = vld [vmem:[%s202_s0 + $0xa] ss:$-8 sm:%s23_s15]   ;;  %s46_s23 = smov 3  ;;  %vm35_vm6 = vcmask 1048320   ;;  %vm58_vm7 = vcmask 785792  }
   0x4   :  { %14 = vrot.lane.b32.xlu0 %v13_v2, %s133_s16  ;;  %v115_v5 = vld [vmem:[%s202_s0 + $0x2] ss:$8 sm:%s26_s18]   ;;  %s54_s24 = smov 3  ;;  %s135_s29 = smov 48   ;;  %vm50_vm8 = vcmask 916992   ;;  %vm73_vm9 = vcmask 523392  }
   0x5   :  { %v118_v6 = vld [vmem:[%s202_s0 + $0x1] ss:$8 sm:%s54_s24]   ;;  %v29_v7 = vsel %vm16_vm1, %v115_v5, %v114_v4  ;;  %v117_v8 = vld [vmem:[%s202_s0 + $0xc] ss:$-8 sm:%s46_s23]   ;;  %s61_s30 = smov 3  ;;  %s136_s2 = smov 96  }
   0x6   :  { %56 = vrot.lane.b32.xlu2 %v118_v6, %s135_s29  ;;  %s137_s3 = smov 64   ;;  %s69_s4 = smov 3  ;;  %v119_v9 = vld [vmem:[%s202_s0 + $0xe] ss:$-8 sm:%s61_s30]  }
   0x7   :  { %v120_v10 = vld [vmem:[%s202_s0 + $0xb] ss:$-8 sm:%s69_s4]   ;;  %s138_s9 = smov 32   ;;  %s139_s10 = smov 16  }
   0x8   :  { %s2_s11 = smov 3 }
   0x9   :  { %v3_v11 = vld [vmem:[%s202_s0] ss:$8 sm:%s2_s11]  }
   0xa   :  { %5 = vst.msk [vmem:[#allocation0] ss:$24 sm:$0x3] %vm4_vm2, %v3_v11  }
   0xb   :  { %48 = vrot.lane.b32.xlu1 %v117_v8, %s137_s3 }
   0xc   :  { %30 = vrot.lane.b32.xlu0 %v29_v7, %s136_s2 }
   0xe   :  { %63 = vrot.lane.b32.xlu2 %v119_v9, %s138_s9 }
  0x14   :  { %71 = vrot.lane.b32.xlu0 %v120_v10, %s139_s10 }
  0x60   :  { %v57_v12 = vpop.permute.xlu2 %56  }
  0x68   :  { %v64_v13 = vpop.permute.xlu2 %63  }
  0x75   :  { %v41_v15 = vpop.permute.xlu1 %40  }
  0x76   :  { %v15_v14 = vpop.permute.xlu0 %14  }
  0x77   :  { %18 = vst.msk [vmem:[#allocation0 + $0x28] ss:$-24 sm:$0x3] %vm16_vm1, %v15_v14  }
  0x78   :  { %21 = vst.msk [vmem:[#allocation0 + $0x20] ss:$-24 sm:$0x3] %vm19_vm3, %v15_v14  }
  0x79   :  { %44 = vst.msk [vmem:[#allocation0 + $0x28] ss:$-24 sm:$0x3] %vm42_vm4, %v41_v15  }
  0x7a   :  { %67 = vst.msk [vmem:[#allocation0 + $0x28] ss:$-24 sm:$0x3] %vm65_vm5, %v64_v13  }
  0x7d   :  { %v49_v17 = vpop.permute.xlu1 %48  }
  0x7e   :  { %v31_v16 = vpop.permute.xlu0 %30  }
  0x7f   :  { %34 = vst.msk [vmem:[#allocation0 + $0x20] ss:$-24 sm:$0x3] %vm12_vm0, %v31_v16  }
  0x80   :  { %36 = vst.msk [vmem:[#allocation0] ss:$24 sm:$0x3] %vm35_vm6, %v31_v16  }
  0x81   :  { %59 = vst.msk [vmem:[#allocation0] ss:$24 sm:$0x3] %vm58_vm7, %v57_v12   ;;  %v89_v18 = vld [vmem:[#allocation0 + $0x10] sm:$0x1] }
  0x82   :  { %52 = vst.msk [vmem:[#allocation0 + $0x20] ss:$-24 sm:$0x3] %vm50_vm8, %v49_v17   ;;  %v107_v19 = vld [vmem:[#allocation0 + $0x28] sm:$0x1] }
  0x83   :  { %122 = vst [vmem:[%s203_s1 + $0x2] sm:$0x1] %v89_v18 }
  0x84   :  { %125 = vst [vmem:[%s203_s1 + $0x5] sm:$0x1] %v107_v19 }
  0x86   :  { %v72_v20 = vpop.permute.xlu0 %71  }
  0x87   :  { %75 = vst.msk [vmem:[#allocation0 + $0x20] ss:$-24 sm:$0x3] %vm73_vm9, %v72_v20  }
  0x88   :  { %v78_v21 = vld [vmem:[#allocation0] sm:$0x1]  ;;  %v95_v22 = vld [vmem:[#allocation0 + $0x18] sm:$0x1] }
  0x89   :  { %81 = vst [vmem:[%s203_s1] sm:$0x1] %v78_v21 }
  0x8a   :  { %123 = vst [vmem:[%s203_s1 + $0x3] sm:$0x1] %v95_v22 }
  0x8e   :  { %v83_v23 = vld [vmem:[#allocation0 + $0x8] sm:$0x1]  ;;  %v101_v24 = vld [vmem:[#allocation0 + $0x20] sm:$0x1] }
  0x8f   :  { %121 = vst [vmem:[%s203_s1 + $0x1] sm:$0x1] %v83_v23 }
  0x90   :  { %124 = vst [vmem:[%s203_s1 + $0x4] sm:$0x1] %v101_v24 }

// kernel: tile.193
= control target key start
LH: loop header
LB: loop body
LE: loop exit
PB: predicated region body
PF: predicated region fallthrough
CT: control target
= control target key end

     0   :  { %s28_s0 = inlined_call_operand.vmem [shape: f32[12], index: 0, kind: input, shape index: {}]   ;;  %s29_s1 = inlined_call_operand.vmem [shape: f32[16,12], index: 1, kind: output, shape index: {}]  }
   0x1   :  { %v4_v0 = vld [vmem:[%s28_s0] ss:$0 sm:$0xff] }
   0x2   :  { %5 = vst [vmem:[%s29_s1] sm:$0xff] %v4_v0 }
   0x3   :  { %8 = vst [vmem:[%s29_s1 + $0x8] sm:$0xff] %v4_v0 }

// kernel: tile.194
= control target key start
LH: loop header
LB: loop body
LE: loop exit
PB: predicated region body
PF: predicated region fallthrough
CT: control target
= control target key end

     0   :  { %vm9_vm0 = vcmask 64512   ;;  %s151_s12 = smov 120   ;;  %s152_s13 = smov 96   ;;  %vm3_vm1 = vcmask 97280   ;;  %vm13_vm2 = vcmask 31744   ;;  %vm16_vm3 = vcmask 1048512   ;;  %s233_s0 = inlined_call_operand.vmem [shape: f32[16,12], index: 0, kind: input, shape index: {}]   ;;  %s234_s1 = inlined_call_operand.vmem [shape: f32[1,192], index: 1, kind: output, shape index: {}]  }
   0x1   :  { %v119_v0 = vld [vmem:[%s233_s0 + $0xa] sm:$0x1]   ;;  %v122_v3 = vld [vmem:[%s233_s0 + $0x8] sm:$0x1]   ;;  %v124_v4 = vld [vmem:[%s233_s0 + $0x6] sm:$0x1]  }
   0x2   :  { %v120_v1 = vld [vmem:[%s233_s0 + $0xa] sm:$0x1]   ;;  %26 = vrot.lane.b32.xlu1 %v122_v3, %s152_s13  ;;  %s153_s16 = smov 72   ;;  %v121_v5 = vld [vmem:[%s233_s0 + $0x9] sm:$0x1]   ;;  %s154_s21 = smov 108  }
   0x3   :  { %v10_v2 = vsel %vm9_vm0, %v120_v1, %v119_v0  ;;  %38 = vrot.lane.b32.xlu2 %v124_v4, %s153_s16  ;;  %v123_v6 = vld [vmem:[%s233_s0 + $0x7] sm:$0x1]   ;;  %s155_s22 = smov 84   ;;  %v125_v7 = vld [vmem:[%s233_s0 + $0x5] sm:$0x1]   ;;  %s156_s25 = smov 60  }
   0x4   :  { %11 = vrot.lane.b32.xlu0 %v10_v2, %s151_s12  ;;  %v126_v8 = vld [vmem:[%s233_s0 + $0xf] sm:$0x1]   ;;  %v127_v9 = vld [vmem:[%s233_s0 + $0x4] sm:$0x1]   ;;  %s157_s30 = smov 52   ;;  %s158_s2 = smov 48  }
   0x5   :  { %v128_v10 = vld [vmem:[%s233_s0 + $0xe] sm:$0x1]   ;;  %s159_s5 = smov 40   ;;  %v129_v11 = vld [vmem:[%s233_s0 + $0x3] sm:$0x1]   ;;  %s160_s10 = smov 36  }
   0x6   :  { %v130_v12 = vld [vmem:[%s233_s0 + $0xd] sm:$0x1]   ;;  %s161_s11 = smov 28   ;;  %v131_v13 = vld [vmem:[%s233_s0 + $0x2] sm:$0x1]   ;;  %s162_s14 = smov 24  }
   0x7   :  { %v132_v14 = vld [vmem:[%s233_s0 + $0xc] sm:$0x1]   ;;  %v133_v15 = vld [vmem:[%s233_s0 + $0x1] sm:$0x1]   ;;  %s163_s19 = smov 16   ;;  %s164_s20 = smov 12  }
   0x8   :  { %v134_v16 = vld [vmem:[%s233_s0 + $0xb] sm:$0x1]   ;;  %s165_s23 = smov 4   ;;  %v2_v17 = vld [vmem:[%s233_s0] sm:$0x1]   ;;  %vm22_vm4 = vcmask 982880  }
   0x9   :  { %4 = vst.msk [vmem:[#allocation0] sm:$0x1] %vm3_vm1, %v2_v17   ;;  %vm28_vm5 = vcmask 884480   ;;  %vm34_vm6 = vcmask 786080   ;;  %vm40_vm7 = vcmask 687680   ;;  %vm46_vm8 = vcmask 589280  }
   0xa   :  { %32 = vrot.lane.b32.xlu1 %v123_v6, %s155_s22  ;;  %vm52_vm9 = vcmask 523680   ;;  %vm65_vm10 = vcmask 425280   ;;  %vm59_vm11 = vcmask 490880   ;;  %vm72_vm12 = vcmask 392480  }
   0xb   :  { %44 = vrot.lane.b32.xlu2 %v125_v7, %s156_s25  ;;  %vm85_vm13 = vcmask 294080   ;;  %vm78_vm14 = vcmask 326880   ;;  %vm91_vm15 = vcmask 228480   ;;  %vm104_vm0 = vcmask 130080  }
   0xc   :  { %20 = vrot.lane.b32.xlu0 %v121_v5, %s154_s21  ;;  %vm98_vm1 = vcmask 195680  }
  0x12   :  { %57 = vrot.lane.b32.xlu1 %v127_v9, %s158_s2 }
  0x13   :  { %63 = vrot.lane.b32.xlu2 %v128_v10, %s159_s5 }
  0x14   :  { %50 = vrot.lane.b32.xlu0 %v126_v8, %s157_s30 }
  0x1a   :  { %76 = vrot.lane.b32.xlu1 %v130_v12, %s161_s11 }
  0x1b   :  { %83 = vrot.lane.b32.xlu2 %v131_v13, %s162_s14 }
  0x1c   :  { %70 = vrot.lane.b32.xlu0 %v129_v11, %s160_s10 }
  0x22   :  { %96 = vrot.lane.b32.xlu1 %v133_v15, %s164_s20 }
  0x23   :  { %102 = vrot.lane.b32.xlu2 %v134_v16, %s165_s23 }
  0x24   :  { %89 = vrot.lane.b32.xlu0 %v132_v14, %s163_s19 }
  0x5d   :  { %v39_v18 = vpop.permute.xlu2 %38  }
  0x65   :  { %v45_v19 = vpop.permute.xlu2 %44  }
  0x6d   :  { %v64_v20 = vpop.permute.xlu2 %63  }
  0x74   :  { %v27_v22 = vpop.permute.xlu1 %26  }
  0x75   :  { %v84_v23 = vpop.permute.xlu2 %83  }
  0x76   :  { %v12_v21 = vpop.permute.xlu0 %11  }
  0x77   :  { %15 = vst.msk [vmem:[#allocation0 + $0x8] sm:$0x1] %vm13_vm2, %v12_v21  }
  0x78   :  { %17 = vst.msk [vmem:[#allocation0] sm:$0x1] %vm16_vm3, %v12_v21  }
  0x7c   :  { %v33_v25 = vpop.permute.xlu1 %32  }
  0x7d   :  { %v103_v26 = vpop.permute.xlu2 %102  }
  0x7e   :  { %v21_v24 = vpop.permute.xlu0 %20  }
  0x7f   :  { %23 = vst.msk [vmem:[#allocation0] sm:$0x1] %vm22_vm4, %v21_v24  }
  0x80   :  { %29 = vst.msk [vmem:[#allocation0] sm:$0x1] %vm28_vm5, %v27_v22  }
  0x81   :  { %35 = vst.msk [vmem:[#allocation0] sm:$0x1] %vm34_vm6, %v33_v25  }
  0x82   :  { %41 = vst.msk [vmem:[#allocation0] sm:$0x1] %vm40_vm7, %v39_v18  }
  0x83   :  { %47 = vst.msk [vmem:[#allocation0] sm:$0x1] %vm46_vm8, %v45_v19  }
  0x84   :  { %v58_v28 = vpop.permute.xlu1 %57  }
  0x85   :  { %60 = vst.msk [vmem:[#allocation0] sm:$0x1] %vm59_vm11, %v58_v28  }
  0x86   :  { %v51_v27 = vpop.permute.xlu0 %50  }
  0x87   :  { %54 = vst.msk [vmem:[#allocation0 + $0x8] sm:$0x1] %vm52_vm9, %v51_v27  }
  0x88   :  { %67 = vst.msk [vmem:[#allocation0 + $0x8] sm:$0x1] %vm65_vm10, %v64_v20  }
  0x8c   :  { %v77_v30 = vpop.permute.xlu1 %76  }
  0x8d   :  { %80 = vst.msk [vmem:[#allocation0 + $0x8] sm:$0x1] %vm78_vm14, %v77_v30  }
  0x8e   :  { %v71_v29 = vpop.permute.xlu0 %70  }
  0x8f   :  { %73 = vst.msk [vmem:[#allocation0] sm:$0x1] %vm72_vm12, %v71_v29  }
  0x90   :  { %86 = vst.msk [vmem:[#allocation0] sm:$0x1] %vm85_vm13, %v84_v23  }
  0x94   :  { %v97_v32 = vpop.permute.xlu1 %96  }
  0x95   :  { %99 = vst.msk [vmem:[#allocation0] sm:$0x1] %vm98_vm1, %v97_v32  }
  0x96   :  { %v90_v31 = vpop.permute.xlu0 %89  }
  0x97   :  { %93 = vst.msk [vmem:[#allocation0 + $0x8] sm:$0x1] %vm91_vm15, %v90_v31  }
  0x98   :  { %106 = vst.msk [vmem:[#allocation0 + $0x8] sm:$0x1] %vm104_vm0, %v103_v26  }
  0x9c   :  { %v109_v34 = vld [vmem:[#allocation0] sm:$0x1] }
  0x9d   :  { %112 = vst [vmem:[%s234_s1] sm:$0x1] %v109_v34 }
  0x9f   :  { %v114_v33 = vld [vmem:[#allocation0 + $0x8] sm:$0x1] }
  0xa0   :  { %135 = vst [vmem:[%s234_s1 + $0x1] sm:$0x1] %v114_v33 }

// kernel: tile.108
= control target key start
LH: loop header
LB: loop body
LE: loop exit
PB: predicated region body
PF: predicated region fallthrough
CT: control target
= control target key end

     0   :  { %s28_s0 = inlined_call_operand.vmem [shape: f32[4], index: 0, kind: input, shape index: {}]   ;;  %s29_s1 = inlined_call_operand.vmem [shape: f32[16,4], index: 1, kind: output, shape index: {}]  }
   0x1   :  { %v4_v0 = vld [vmem:[%s28_s0] ss:$0 sm:$0xff] }
   0x2   :  { %5 = vst [vmem:[%s29_s1] sm:$0xff] %v4_v0 }
   0x3   :  { %8 = vst [vmem:[%s29_s1 + $0x8] sm:$0xff] %v4_v0 }

// kernel: tile.109
= control target key start
LH: loop header
LB: loop body
LE: loop exit
PB: predicated region body
PF: predicated region fallthrough
CT: control target
= control target key end

     0   :  { %s131_s10 = smov 60   ;;  %s132_s11 = smov 52   ;;  %vm3_vm0 = vcmask 31744   ;;  %vm9_vm1 = vcmask 523744   ;;  %vm15_vm2 = vcmask 490944   ;;  %vm21_vm3 = vcmask 458144   ;;  %s207_s0 = inlined_call_operand.vmem [shape: f32[16,4], index: 0, kind: input, shape index: {}]   ;;  %s208_s1 = inlined_call_operand.vmem [shape: f32[1,64], index: 1, kind: output, shape index: {}]  }
   0x1   :  { %v101_v0 = vld [vmem:[%s207_s0 + $0xf] sm:$0x1]   ;;  %v103_v1 = vld [vmem:[%s207_s0 + $0xd] sm:$0x1]   ;;  %v105_v2 = vld [vmem:[%s207_s0 + $0xb] sm:$0x1]  }
   0x2   :  { %7 = vrot.lane.b32.xlu0 %v101_v0, %s131_s10  ;;  %19 = vrot.lane.b32.xlu1 %v103_v1, %s132_s11  ;;  %s133_s14 = smov 44   ;;  %v102_v3 = vld [vmem:[%s207_s0 + $0xe] sm:$0x1]   ;;  %v104_v4 = vld [vmem:[%s207_s0 + $0xc] sm:$0x1]   ;;  %s134_s19 = smov 56  }
   0x3   :  { %31 = vrot.lane.b32.xlu2 %v105_v2, %s133_s14  ;;  %s135_s20 = smov 48   ;;  %v106_v5 = vld [vmem:[%s207_s0 + $0xa] sm:$0x1]   ;;  %s136_s23 = smov 40   ;;  %v107_v6 = vld [vmem:[%s207_s0 + $0x9] sm:$0x1]  }
   0x4   :  { %v108_v7 = vld [vmem:[%s207_s0 + $0x8] sm:$0x1]   ;;  %s137_s28 = smov 36   ;;  %s138_s29 = smov 32   ;;  %v109_v8 = vld [vmem:[%s207_s0 + $0x7] sm:$0x1]  }
   0x5   :  { %s139_s3 = smov 28   ;;  %v110_v9 = vld [vmem:[%s207_s0 + $0x6] sm:$0x1]   ;;  %v111_v10 = vld [vmem:[%s207_s0 + $0x5] sm:$0x1]   ;;  %s140_s8 = smov 24  }
   0x6   :  { %s141_s9 = smov 20   ;;  %v112_v11 = vld [vmem:[%s207_s0 + $0x4] sm:$0x1]   ;;  %s142_s12 = smov 16   ;;  %v113_v12 = vld [vmem:[%s207_s0 + $0x3] sm:$0x1]  }
   0x7   :  { %v114_v13 = vld [vmem:[%s207_s0 + $0x2] sm:$0x1]   ;;  %s143_s17 = smov 12   ;;  %s144_s18 = smov 8   ;;  %v115_v14 = vld [vmem:[%s207_s0 + $0x1] sm:$0x1]  }
   0x8   :  { %s145_s21 = smov 4   ;;  %v2_v15 = vld [vmem:[%s207_s0] sm:$0x1]   ;;  %vm27_vm4 = vcmask 425344   ;;  %vm33_vm5 = vcmask 392544   ;;  %vm39_vm6 = vcmask 359744  }
   0x9   :  { %4 = vst.msk [vmem:[#allocation0] sm:$0x1] %vm3_vm0, %v2_v15   ;;  %vm45_vm7 = vcmask 326944   ;;  %vm51_vm8 = vcmask 294144   ;;  %vm57_vm9 = vcmask 261344   ;;  %vm63_vm10 = vcmask 228544  }
   0xa   :  { %13 = vrot.lane.b32.xlu0 %v102_v3, %s134_s19  ;;  %25 = vrot.lane.b32.xlu1 %v104_v4, %s135_s20  ;;  %vm69_vm11 = vcmask 195744   ;;  %vm75_vm12 = vcmask 162944   ;;  %vm81_vm13 = vcmask 130144   ;;  %vm87_vm14 = vcmask 97344  }
   0xb   :  { %37 = vrot.lane.b32.xlu2 %v106_v5, %s136_s23  ;;  %vm93_vm15 = vcmask 64544  }
  0x12   :  { %43 = vrot.lane.b32.xlu0 %v107_v6, %s137_s28  ;;  %49 = vrot.lane.b32.xlu1 %v108_v7, %s138_s29 }
  0x13   :  { %55 = vrot.lane.b32.xlu2 %v109_v8, %s139_s3 }
  0x1a   :  { %61 = vrot.lane.b32.xlu0 %v110_v9, %s140_s8  ;;  %67 = vrot.lane.b32.xlu1 %v111_v10, %s141_s9 }
  0x1b   :  { %73 = vrot.lane.b32.xlu2 %v112_v11, %s142_s12 }
  0x22   :  { %79 = vrot.lane.b32.xlu0 %v113_v12, %s143_s17  ;;  %85 = vrot.lane.b32.xlu1 %v114_v13, %s144_s18 }
  0x23   :  { %91 = vrot.lane.b32.xlu2 %v115_v14, %s145_s21 }
  0x5d   :  { %v32_v16 = vpop.permute.xlu2 %31  }
  0x65   :  { %v38_v17 = vpop.permute.xlu2 %37  }
  0x6d   :  { %v56_v18 = vpop.permute.xlu2 %55  }
  0x74   :  { %v8_v19 = vpop.permute.xlu0 %7   ;;  %v20_v20 = vpop.permute.xlu1 %19  }
  0x75   :  { %10 = vst.msk [vmem:[#allocation0] sm:$0x1] %vm9_vm1, %v8_v19   ;;  %v74_v21 = vpop.permute.xlu2 %73  }
  0x7c   :  { %v14_v22 = vpop.permute.xlu0 %13   ;;  %v26_v23 = vpop.permute.xlu1 %25  }
  0x7d   :  { %16 = vst.msk [vmem:[#allocation0] sm:$0x1] %vm15_vm2, %v14_v22   ;;  %v92_v24 = vpop.permute.xlu2 %91  }
  0x7e   :  { %22 = vst.msk [vmem:[#allocation0] sm:$0x1] %vm21_vm3, %v20_v20  }
  0x7f   :  { %28 = vst.msk [vmem:[#allocation0] sm:$0x1] %vm27_vm4, %v26_v23  }
  0x80   :  { %34 = vst.msk [vmem:[#allocation0] sm:$0x1] %vm33_vm5, %v32_v16  }
  0x81   :  { %40 = vst.msk [vmem:[#allocation0] sm:$0x1] %vm39_vm6, %v38_v17  }
  0x84   :  { %v44_v25 = vpop.permute.xlu0 %43   ;;  %v50_v26 = vpop.permute.xlu1 %49  }
  0x85   :  { %46 = vst.msk [vmem:[#allocation0] sm:$0x1] %vm45_vm7, %v44_v25  }
  0x86   :  { %52 = vst.msk [vmem:[#allocation0] sm:$0x1] %vm51_vm8, %v50_v26  }
  0x87   :  { %58 = vst.msk [vmem:[#allocation0] sm:$0x1] %vm57_vm9, %v56_v18  }
  0x8c   :  { %v62_v27 = vpop.permute.xlu0 %61   ;;  %v68_v28 = vpop.permute.xlu1 %67  }
  0x8d   :  { %64 = vst.msk [vmem:[#allocation0] sm:$0x1] %vm63_vm10, %v62_v27  }
  0x8e   :  { %70 = vst.msk [vmem:[#allocation0] sm:$0x1] %vm69_vm11, %v68_v28  }
  0x8f   :  { %76 = vst.msk [vmem:[#allocation0] sm:$0x1] %vm75_vm12, %v74_v21  }
  0x94   :  { %v80_v29 = vpop.permute.xlu0 %79   ;;  %v86_v30 = vpop.permute.xlu1 %85  }
  0x95   :  { %82 = vst.msk [vmem:[#allocation0] sm:$0x1] %vm81_vm13, %v80_v29  }
  0x96   :  { %88 = vst.msk [vmem:[#allocation0] sm:$0x1] %vm87_vm14, %v86_v30  }
  0x97   :  { %94 = vst.msk [vmem:[#allocation0] sm:$0x1] %vm93_vm15, %v92_v24  }
  0x9e   :  { %v97_v31 = vld [vmem:[#allocation0] sm:$0x1] }
  0x9f   :  { %100 = vst [vmem:[%s208_s1] sm:$0x1] %v97_v31 }

// kernel: tile.113
= control target key start
LH: loop header
LB: loop body
LE: loop exit
PB: predicated region body
PF: predicated region fallthrough
CT: control target
= control target key end

     0   :  { %s22_s0 = inlined_call_operand.vmem [shape: f32[4], index: 0, kind: input, shape index: {}]   ;;  %s23_s1 = inlined_call_operand.vmem [shape: f32[8,4], index: 1, kind: output, shape index: {}]  }
   0x1   :  { %v4_v0 = vld [vmem:[%s22_s0] ss:$0 sm:$0xff] }
   0x2   :  { %5 = vst [vmem:[%s23_s1] sm:$0xff] %v4_v0 }

// kernel: tile.114
= control target key start
LH: loop header
LB: loop body
LE: loop exit
PB: predicated region body
PF: predicated region fallthrough
CT: control target
= control target key end

     0   :  { %s67_s10 = smov 28   ;;  %s68_s11 = smov 20   ;;  %vm3_vm0 = vcmask 31744   ;;  %vm9_vm1 = vcmask 261344   ;;  %vm15_vm2 = vcmask 228544   ;;  %vm21_vm3 = vcmask 195744   ;;  %s111_s0 = inlined_call_operand.vmem [shape: f32[8,4], index: 0, kind: input, shape index: {}]   ;;  %s112_s1 = inlined_call_operand.vmem [shape: f32[1,32], index: 1, kind: output, shape index: {}]  }
   0x1   :  { %v53_v0 = vld [vmem:[%s111_s0 + $0x7] sm:$0x1]   ;;  %v55_v1 = vld [vmem:[%s111_s0 + $0x5] sm:$0x1]   ;;  %v57_v2 = vld [vmem:[%s111_s0 + $0x3] sm:$0x1]  }
   0x2   :  { %7 = vrot.lane.b32.xlu0 %v53_v0, %s67_s10  ;;  %19 = vrot.lane.b32.xlu1 %v55_v1, %s68_s11  ;;  %s69_s14 = smov 12   ;;  %v54_v3 = vld [vmem:[%s111_s0 + $0x6] sm:$0x1]   ;;  %v56_v4 = vld [vmem:[%s111_s0 + $0x4] sm:$0x1]   ;;  %s70_s21 = smov 24  }
   0x3   :  { %31 = vrot.lane.b32.xlu2 %v57_v2, %s69_s14  ;;  %v58_v5 = vld [vmem:[%s111_s0 + $0x2] sm:$0x1]   ;;  %s71_s22 = smov 16   ;;  %s72_s23 = smov 8   ;;  %v59_v6 = vld [vmem:[%s111_s0 + $0x1] sm:$0x1]  }
   0x4   :  { %s73_s26 = smov 4   ;;  %v2_v7 = vld [vmem:[%s111_s0] sm:$0x1]   ;;  %vm27_vm4 = vcmask 162944   ;;  %vm33_vm5 = vcmask 130144   ;;  %vm39_vm6 = vcmask 97344  }
   0x5   :  { %4 = vst.msk [vmem:[#allocation0] sm:$0x1] %vm3_vm0, %v2_v7   ;;  %vm45_vm7 = vcmask 64544  }
   0xa   :  { %13 = vrot.lane.b32.xlu0 %v54_v3, %s70_s21  ;;  %25 = vrot.lane.b32.xlu1 %v56_v4, %s71_s22 }
   0xb   :  { %37 = vrot.lane.b32.xlu2 %v58_v5, %s72_s23 }
  0x12   :  { %43 = vrot.lane.b32.xlu0 %v59_v6, %s73_s26 }
  0x5d   :  { %v32_v8 = vpop.permute.xlu2 %31  }
  0x65   :  { %v38_v9 = vpop.permute.xlu2 %37  }
  0x74   :  { %v8_v10 = vpop.permute.xlu0 %7   ;;  %v20_v11 = vpop.permute.xlu1 %19  }
  0x75   :  { %10 = vst.msk [vmem:[#allocation0] sm:$0x1] %vm9_vm1, %v8_v10  }
  0x7c   :  { %v14_v12 = vpop.permute.xlu0 %13   ;;  %v26_v13 = vpop.permute.xlu1 %25  }
  0x7d   :  { %16 = vst.msk [vmem:[#allocation0] sm:$0x1] %vm15_vm2, %v14_v12  }
  0x7e   :  { %22 = vst.msk [vmem:[#allocation0] sm:$0x1] %vm21_vm3, %v20_v11  }
  0x7f   :  { %28 = vst.msk [vmem:[#allocation0] sm:$0x1] %vm27_vm4, %v26_v13  }
  0x80   :  { %34 = vst.msk [vmem:[#allocation0] sm:$0x1] %vm33_vm5, %v32_v8  }
  0x81   :  { %40 = vst.msk [vmem:[#allocation0] sm:$0x1] %vm39_vm6, %v38_v9  }
  0x84   :  { %v44_v14 = vpop.permute.xlu0 %43  }
  0x85   :  { %46 = vst.msk [vmem:[#allocation0] sm:$0x1] %vm45_vm7, %v44_v14  }
  0x8c   :  { %v49_v15 = vld [vmem:[#allocation0] sm:$0x1] }
  0x8d   :  { %52 = vst [vmem:[%s112_s1] sm:$0x1] %v49_v15 }

// kernel: tile.128
= control target key start
LH: loop header
LB: loop body
LE: loop exit
PB: predicated region body
PF: predicated region fallthrough
CT: control target
= control target key end

     0   :  { %s22_s0 = inlined_call_operand.vmem [shape: f32[16], index: 0, kind: input, shape index: {}]   ;;  %s23_s1 = inlined_call_operand.vmem [shape: f32[8,16], index: 1, kind: output, shape index: {}]  }
   0x1   :  { %v4_v0 = vld [vmem:[%s22_s0] ss:$0 sm:$0xff] }
   0x2   :  { %5 = vst [vmem:[%s23_s1] sm:$0xff] %v4_v0 }

// kernel: tile.129
= control target key start
LH: loop header
LB: loop body
LE: loop exit
PB: predicated region body
PF: predicated region fallthrough
CT: control target
= control target key end

     0   :  { %s67_s10 = smov 112   ;;  %s68_s11 = smov 80   ;;  %vm3_vm0 = vcmask 130048   ;;  %vm9_vm1 = vcmask 1048448   ;;  %vm15_vm2 = vcmask 917248   ;;  %vm21_vm3 = vcmask 786048   ;;  %s111_s0 = inlined_call_operand.vmem [shape: f32[8,16], index: 0, kind: input, shape index: {}]   ;;  %s112_s1 = inlined_call_operand.vmem [shape: f32[1,128], index: 1, kind: output, shape index: {}]  }
   0x1   :  { %v53_v0 = vld [vmem:[%s111_s0 + $0x7] sm:$0x1]   ;;  %v55_v1 = vld [vmem:[%s111_s0 + $0x5] sm:$0x1]   ;;  %v57_v2 = vld [vmem:[%s111_s0 + $0x3] sm:$0x1]  }
   0x2   :  { %7 = vrot.lane.b32.xlu0 %v53_v0, %s67_s10  ;;  %19 = vrot.lane.b32.xlu1 %v55_v1, %s68_s11  ;;  %s69_s14 = smov 48   ;;  %v54_v3 = vld [vmem:[%s111_s0 + $0x6] sm:$0x1]   ;;  %v56_v4 = vld [vmem:[%s111_s0 + $0x4] sm:$0x1]   ;;  %s70_s21 = smov 96  }
   0x3   :  { %31 = vrot.lane.b32.xlu2 %v57_v2, %s69_s14  ;;  %v58_v5 = vld [vmem:[%s111_s0 + $0x2] sm:$0x1]   ;;  %s71_s22 = smov 64   ;;  %s72_s23 = smov 32   ;;  %v59_v6 = vld [vmem:[%s111_s0 + $0x1] sm:$0x1]  }
   0x4   :  { %s73_s26 = smov 16   ;;  %v2_v7 = vld [vmem:[%s111_s0] sm:$0x1]   ;;  %vm27_vm4 = vcmask 654848   ;;  %vm33_vm5 = vcmask 523648   ;;  %vm39_vm6 = vcmask 392448  }
   0x5   :  { %4 = vst.msk [vmem:[#allocation0] sm:$0x1] %vm3_vm0, %v2_v7   ;;  %vm45_vm7 = vcmask 261248  }
   0xa   :  { %13 = vrot.lane.b32.xlu0 %v54_v3, %s70_s21  ;;  %25 = vrot.lane.b32.xlu1 %v56_v4, %s71_s22 }
   0xb   :  { %37 = vrot.lane.b32.xlu2 %v58_v5, %s72_s23 }
  0x12   :  { %43 = vrot.lane.b32.xlu0 %v59_v6, %s73_s26 }
  0x5d   :  { %v32_v8 = vpop.permute.xlu2 %31  }
  0x65   :  { %v38_v9 = vpop.permute.xlu2 %37  }
  0x74   :  { %v8_v10 = vpop.permute.xlu0 %7   ;;  %v20_v11 = vpop.permute.xlu1 %19  }
  0x75   :  { %10 = vst.msk [vmem:[#allocation0] sm:$0x1] %vm9_vm1, %v8_v10  }
  0x7c   :  { %v14_v12 = vpop.permute.xlu0 %13   ;;  %v26_v13 = vpop.permute.xlu1 %25  }
  0x7d   :  { %16 = vst.msk [vmem:[#allocation0] sm:$0x1] %vm15_vm2, %v14_v12  }
  0x7e   :  { %22 = vst.msk [vmem:[#allocation0] sm:$0x1] %vm21_vm3, %v20_v11  }
  0x7f   :  { %28 = vst.msk [vmem:[#allocation0] sm:$0x1] %vm27_vm4, %v26_v13  }
  0x80   :  { %34 = vst.msk [vmem:[#allocation0] sm:$0x1] %vm33_vm5, %v32_v8  }
  0x81   :  { %40 = vst.msk [vmem:[#allocation0] sm:$0x1] %vm39_vm6, %v38_v9  }
  0x84   :  { %v44_v14 = vpop.permute.xlu0 %43  }
  0x85   :  { %46 = vst.msk [vmem:[#allocation0] sm:$0x1] %vm45_vm7, %v44_v14  }
  0x8c   :  { %v49_v15 = vld [vmem:[#allocation0] sm:$0x1] }
  0x8d   :  { %52 = vst [vmem:[%s112_s1] sm:$0x1] %v49_v15 }

// kernel: tile.118
= control target key start
LH: loop header
LB: loop body
LE: loop exit
PB: predicated region body
PF: predicated region fallthrough
CT: control target
= control target key end

     0   :  { %s22_s0 = inlined_call_operand.vmem [shape: f32[4], index: 0, kind: input, shape index: {}]   ;;  %s23_s1 = inlined_call_operand.vmem [shape: f32[4,4], index: 1, kind: output, shape index: {}]  }
   0x1   :  { %v4_v0 = vld [vmem:[%s22_s0] ss:$0 sm:$0xff] }
   0x2   :  { %5 = vst [vmem:[%s23_s1] sm:$0xf] %v4_v0 }

// kernel: tile.119
= control target key start
LH: loop header
LB: loop body
LE: loop exit
PB: predicated region body
PF: predicated region fallthrough
CT: control target
= control target key end

     0   :  { %s37_s8 = smov 4   ;;  %s38_s9 = smov 8   ;;  %vm7_vm0 = vcmask 31744   ;;  %vm13_vm1 = vcmask 130144   ;;  %vm19_vm2 = vcmask 97344   ;;  %vm25_vm3 = vcmask 64544   ;;  %s55_s0 = inlined_call_operand.vmem [shape: f32[4,4], index: 0, kind: input, shape index: {}]   ;;  %s56_s1 = inlined_call_operand.vmem [shape: f32[1,16], index: 1, kind: output, shape index: {}]  }
   0x1   :  { %v4_v0 = vld [vmem:[%s55_s0] sm:$0xf]  ;;  %s36_s0 = smov 12  }
   0x2   :  { %5 = vst [vmem:[#allocation1] sm:$0xf] %v4_v0 }
   0x9   :  { %v10_v1 = vld [vmem:[#allocation1 + $0x3] sm:$0x1]   ;;  %v22_v2 = vld [vmem:[#allocation1 + $0x1] sm:$0x1]   ;;  %v16_v3 = vld [vmem:[#allocation1 + $0x2] sm:$0x1]  }
   0xa   :  { %11 = vrot.lane.b32.xlu0 %v10_v1, %s36_s0  ;;  %23 = vrot.lane.b32.xlu1 %v22_v2, %s37_s8  ;;  %v6_v4 = vld [vmem:[#allocation1] sm:$0x1]  }
   0xb   :  { %8 = vst.msk [vmem:[#allocation0] sm:$0x1] %vm7_vm0, %v6_v4  }
  0x12   :  { %17 = vrot.lane.b32.xlu0 %v16_v3, %s38_s9 }
  0x7c   :  { %v12_v5 = vpop.permute.xlu0 %11   ;;  %v24_v6 = vpop.permute.xlu1 %23  }
  0x7d   :  { %14 = vst.msk [vmem:[#allocation0] sm:$0x1] %vm13_vm1, %v12_v5  }
  0x84   :  { %v18_v7 = vpop.permute.xlu0 %17  }
  0x85   :  { %20 = vst.msk [vmem:[#allocation0] sm:$0x1] %vm19_vm2, %v18_v7  }
  0x86   :  { %26 = vst.msk [vmem:[#allocation0] sm:$0x1] %vm25_vm3, %v24_v6  }
  0x8d   :  { %v29_v8 = vld [vmem:[#allocation0] sm:$0x1] }
  0x8e   :  { %32 = vst [vmem:[%s56_s1] sm:$0x1] %v29_v8 }

// kernel: tile.124
= control target key start
LH: loop header
LB: loop body
LE: loop exit
PB: predicated region body
PF: predicated region fallthrough
CT: control target
= control target key end

     0   :  { %s37_s8 = smov 16   ;;  %s38_s9 = smov 32   ;;  %vm7_vm0 = vcmask 130048   ;;  %vm13_vm1 = vcmask 523648   ;;  %vm19_vm2 = vcmask 392448   ;;  %vm25_vm3 = vcmask 261248   ;;  %s55_s0 = inlined_call_operand.vmem [shape: f32[4,16], index: 0, kind: input, shape index: {}]   ;;  %s56_s1 = inlined_call_operand.vmem [shape: f32[1,64], index: 1, kind: output, shape index: {}]  }
   0x1   :  { %v4_v0 = vld [vmem:[%s55_s0] sm:$0xf]  ;;  %s36_s0 = smov 48  }
   0x2   :  { %5 = vst [vmem:[#allocation1] sm:$0xf] %v4_v0 }
   0x9   :  { %v10_v1 = vld [vmem:[#allocation1 + $0x3] sm:$0x1]   ;;  %v22_v2 = vld [vmem:[#allocation1 + $0x1] sm:$0x1]   ;;  %v16_v3 = vld [vmem:[#allocation1 + $0x2] sm:$0x1]  }
   0xa   :  { %11 = vrot.lane.b32.xlu0 %v10_v1, %s36_s0  ;;  %23 = vrot.lane.b32.xlu1 %v22_v2, %s37_s8  ;;  %v6_v4 = vld [vmem:[#allocation1] sm:$0x1]  }
   0xb   :  { %8 = vst.msk [vmem:[#allocation0] sm:$0x1] %vm7_vm0, %v6_v4  }
  0x12   :  { %17 = vrot.lane.b32.xlu0 %v16_v3, %s38_s9 }
  0x7c   :  { %v12_v5 = vpop.permute.xlu0 %11   ;;  %v24_v6 = vpop.permute.xlu1 %23  }
  0x7d   :  { %14 = vst.msk [vmem:[#allocation0] sm:$0x1] %vm13_vm1, %v12_v5  }
  0x84   :  { %v18_v7 = vpop.permute.xlu0 %17  }
  0x85   :  { %20 = vst.msk [vmem:[#allocation0] sm:$0x1] %vm19_vm2, %v18_v7  }
  0x86   :  { %26 = vst.msk [vmem:[#allocation0] sm:$0x1] %vm25_vm3, %v24_v6  }
  0x8d   :  { %v29_v8 = vld [vmem:[#allocation0] sm:$0x1] }
  0x8e   :  { %32 = vst [vmem:[%s56_s1] sm:$0x1] %v29_v8 }

// kernel: tile.123
= control target key start
LH: loop header
LB: loop body
LE: loop exit
PB: predicated region body
PF: predicated region fallthrough
CT: control target
= control target key end

     0   :  { %s22_s0 = inlined_call_operand.vmem [shape: f32[16], index: 0, kind: input, shape index: {}]   ;;  %s23_s1 = inlined_call_operand.vmem [shape: f32[4,16], index: 1, kind: output, shape index: {}]  }
   0x1   :  { %v4_v0 = vld [vmem:[%s22_s0] ss:$0 sm:$0xff] }
   0x2   :  { %5 = vst [vmem:[%s23_s1] sm:$0xf] %v4_v0 }

// kernel: usrn_forward_pallas.1
= control target key start
LH: loop header
LB: loop body
LE: loop exit
PB: predicated region body
PF: predicated region fallthrough
CT: control target
= control target key end

     0   :  { %s10362_s6 = smov 1   ;;  %s10363_s10 = smov 2   ;;  %s13567_s0 = inlined_call_operand.smem [shape: u32[56], index: -1, kind: input, shape index: {}] }
   0x1   :  { %s10425_s5 = sld [smem:[%s13567_s0]]   ;;  %s10364_s14 = smov 3  }
   0x2   :  { %s10430_s9 = sld [smem:[%s13567_s0 + %s10362_s6]]   ;;  %s10365_s18 = smov 4  }
   0x3   :  { %s10435_s13 = sld [smem:[%s13567_s0 + %s10363_s10]]   ;;  %s10366_s22 = smov 5  }
   0x4   :  { %s10440_s17 = sld [smem:[%s13567_s0 + %s10364_s14]]   ;;  %s10367_s26 = smov 6  }
   0x5   :  { %s10445_s21 = sld [smem:[%s13567_s0 + %s10365_s18]]   ;;  %s10368_s30 = smov 7  }
   0x6   :  { %s10450_s25 = sld [smem:[%s13567_s0 + %s10366_s22]]   ;;  %s10369_s4 = smov 8  }
   0x7   :  { %s10455_s29 = sld [smem:[%s13567_s0 + %s10367_s26]]   ;;  %s10370_s10 = smov 9  }
   0x8   :  { %s10460_s3 = sld [smem:[%s13567_s0 + %s10368_s30]]   ;;  %s10371_s15 = smov 10  }
   0x9   :  { %s10465_s8 = sld [smem:[%s13567_s0 + %s10369_s4]]   ;;  %s10372_s20 = smov 11  }
   0xa   :  { %s10470_s14 = sld [smem:[%s13567_s0 + %s10370_s10]]   ;;  %s10373_s26 = smov 12  }
   0xb   :  { %s10475_s19 = sld [smem:[%s13567_s0 + %s10371_s15]]   ;;  %s10374_s1 = smov 13  }
   0xc   :  { %s10480_s24 = sld [smem:[%s13567_s0 + %s10372_s20]]   ;;  %s10375_s7 = smov 14  }
   0xd   :  { %s10485_s30 = sld [smem:[%s13567_s0 + %s10373_s26]]   ;;  %s10376_s15 = smov 15  }
   0xe   :  { %13635 = sst [smem:[#allocation2_spill]] %s10460_s3  ;;  %s10377_s22 = smov 16  }
   0xf   :  { %s10490_s6 = sld [smem:[%s13567_s0 + %s10374_s1]]   ;;  %s10378_s28 = smov 17  }
  0x10   :  { %s10495_s12 = sld [smem:[%s13567_s0 + %s10375_s7]]   ;;  %s10379_s7 = smov 18  }
  0x11   :  { %s10500_s20 = sld [smem:[%s13567_s0 + %s10376_s15]]   ;;  %s10380_s15 = smov 19  }
  0x12   :  { %s10505_s27 = sld [smem:[%s13567_s0 + %s10377_s22]]   ;;  %s10381_s22 = smov 20  }
  0x13   :  { %s10510_s4 = sld [smem:[%s13567_s0 + %s10378_s28]]   ;;  %s10382_s28 = smov 21  }
  0x16   :  { %13636 = sst [smem:[#allocation3_spill]] %s10495_s12 }
  0x17   :  { %13637 = sst [smem:[#allocation4_spill]] %s10500_s20 }
  0x18   :  { %13638 = sst [smem:[#allocation5_spill]] %s10505_s27 }
  0x19   :  { %13639 = sst [smem:[#allocation6_spill]] %s10510_s4 }
  0x1a   :  { %s10515_s12 = sld [smem:[%s13567_s0 + %s10379_s7]]   ;;  %s10383_s7 = smov 22  }
  0x1b   :  { %s10520_s20 = sld [smem:[%s13567_s0 + %s10380_s15]]   ;;  %s10384_s15 = smov 23  }
  0x1c   :  { %s10525_s27 = sld [smem:[%s13567_s0 + %s10381_s22]]   ;;  %s10385_s22 = smov 24  }
  0x1d   :  { %s10530_s4 = sld [smem:[%s13567_s0 + %s10382_s28]]   ;;  %s10386_s28 = smov 25  }
  0x20   :  { %13640 = sst [smem:[#allocation7_spill]] %s10515_s12 }
  0x21   :  { %13641 = sst [smem:[#allocation8_spill]] %s10520_s20 }
  0x22   :  { %13642 = sst [smem:[#allocation9_spill]] %s10525_s27 }
  0x23   :  { %13643 = sst [smem:[#allocation10_spill]] %s10530_s4 }
  0x24   :  { %s10535_s12 = sld [smem:[%s13567_s0 + %s10383_s7]]   ;;  %s10387_s7 = smov 26  }
  0x25   :  { %s10540_s20 = sld [smem:[%s13567_s0 + %s10384_s15]]   ;;  %s10388_s15 = smov 27  }
  0x26   :  { %s10545_s27 = sld [smem:[%s13567_s0 + %s10385_s22]]   ;;  %s10389_s22 = smov 28  }
  0x27   :  { %s10550_s4 = sld [smem:[%s13567_s0 + %s10386_s28]]   ;;  %s10390_s28 = smov 29  }
  0x2a   :  { %13644 = sst [smem:[#allocation11_spill]] %s10535_s12 }
  0x2b   :  { %13645 = sst [smem:[#allocation12_spill]] %s10540_s20 }
  0x2c   :  { %13646 = sst [smem:[#allocation13_spill]] %s10545_s27 }
  0x2d   :  { %13647 = sst [smem:[#allocation14_spill]] %s10550_s4 }
  0x2e   :  { %s10555_s12 = sld [smem:[%s13567_s0 + %s10387_s7]]   ;;  %s10391_s7 = smov 30  }
  0x2f   :  { %s10560_s20 = sld [smem:[%s13567_s0 + %s10388_s15]]   ;;  %s10392_s15 = smov 31  }
  0x30   :  { %s10565_s27 = sld [smem:[%s13567_s0 + %s10389_s22]]   ;;  %s10393_s22 = smov 32  }
  0x31   :  { %s10570_s4 = sld [smem:[%s13567_s0 + %s10390_s28]]   ;;  %s10394_s28 = smov 33  }
  0x34   :  { %13648 = sst [smem:[#allocation15_spill]] %s10555_s12 }
  0x35   :  { %13649 = sst [smem:[#allocation16_spill]] %s10560_s20 }
  0x36   :  { %13650 = sst [smem:[#allocation17_spill]] %s10565_s27 }
  0x37   :  { %13651 = sst [smem:[#allocation18_spill]] %s10570_s4 }
  0x38   :  { %s10575_s12 = sld [smem:[%s13567_s0 + %s10391_s7]]   ;;  %s10395_s7 = smov 34  }
  0x39   :  { %s10580_s20 = sld [smem:[%s13567_s0 + %s10392_s15]]   ;;  %s10396_s15 = smov 35  }
  0x3a   :  { %s10585_s27 = sld [smem:[%s13567_s0 + %s10393_s22]]   ;;  %s10397_s22 = smov 36  }
  0x3b   :  { %s10590_s4 = sld [smem:[%s13567_s0 + %s10394_s28]]   ;;  %s10398_s28 = smov 37  }
  0x3e   :  { %13652 = sst [smem:[#allocation19_spill]] %s10575_s12 }
  0x3f   :  { %13653 = sst [smem:[#allocation20_spill]] %s10580_s20 }
  0x40   :  { %13654 = sst [smem:[#allocation21_spill]] %s10585_s27 }
  0x41   :  { %13655 = sst [smem:[#allocation22_spill]] %s10590_s4 }
  0x42   :  { %s10595_s12 = sld [smem:[%s13567_s0 + %s10395_s7]]   ;;  %s10399_s7 = smov 38  }
  0x43   :  { %s10600_s20 = sld [smem:[%s13567_s0 + %s10396_s15]]   ;;  %s10400_s15 = smov 39  }
  0x44   :  { %s10605_s27 = sld [smem:[%s13567_s0 + %s10397_s22]]   ;;  %s10401_s22 = smov 40  }
  0x45   :  { %s10610_s4 = sld [smem:[%s13567_s0 + %s10398_s28]]   ;;  %s10402_s28 = smov 41  }
  0x48   :  { %13656 = sst [smem:[#allocation23_spill]] %s10595_s12 }
  0x49   :  { %13657 = sst [smem:[#allocation24_spill]] %s10600_s20 }
  0x4a   :  { %13658 = sst [smem:[#allocation25_spill]] %s10605_s27 }
  0x4b   :  { %13659 = sst [smem:[#allocation26_spill]] %s10610_s4 }
  0x4c   :  { %s10615_s12 = sld [smem:[%s13567_s0 + %s10399_s7]]   ;;  %s10403_s7 = smov 42  }
  0x4d   :  { %s10620_s20 = sld [smem:[%s13567_s0 + %s10400_s15]]   ;;  %s10404_s15 = smov 43  }
  0x4e   :  { %s10625_s27 = sld [smem:[%s13567_s0 + %s10401_s22]]   ;;  %s10405_s22 = smov 44  }
  0x4f   :  { %s10630_s4 = sld [smem:[%s13567_s0 + %s10402_s28]]   ;;  %s10406_s28 = smov 45  }
  0x52   :  { %13660 = sst [smem:[#allocation27_spill]] %s10615_s12 }
  0x53   :  { %13661 = sst [smem:[#allocation28_spill]] %s10620_s20 }
  0x54   :  { %13662 = sst [smem:[#allocation29_spill]] %s10625_s27 }
  0x55   :  { %13663 = sst [smem:[#allocation30_spill]] %s10630_s4 }
  0x56   :  { %s10635_s12 = sld [smem:[%s13567_s0 + %s10403_s7]]   ;;  %s10407_s7 = smov 46  }
  0x57   :  { %s10640_s20 = sld [smem:[%s13567_s0 + %s10404_s15]]   ;;  %s10408_s15 = smov 47  }
  0x58   :  { %s10645_s27 = sld [smem:[%s13567_s0 + %s10405_s22]]   ;;  %s10409_s22 = smov 48  }
  0x59   :  { %s10650_s4 = sld [smem:[%s13567_s0 + %s10406_s28]]   ;;  %s10410_s28 = smov 49  }
  0x5c   :  { %13664 = sst [smem:[#allocation31_spill]] %s10635_s12 }
  0x5d   :  { %13665 = sst [smem:[#allocation32_spill]] %s10640_s20 }
  0x5e   :  { %13666 = sst [smem:[#allocation33_spill]] %s10645_s27 }
  0x5f   :  { %13667 = sst [smem:[#allocation34_spill]] %s10650_s4 }
  0x60   :  { %s10655_s12 = sld [smem:[%s13567_s0 + %s10407_s7]]   ;;  %s10411_s7 = smov 50  }
  0x61   :  { %s10660_s20 = sld [smem:[%s13567_s0 + %s10408_s15]]   ;;  %s10412_s15 = smov 51  }
  0x62   :  { %s10665_s27 = sld [smem:[%s13567_s0 + %s10409_s22]]   ;;  %s10413_s22 = smov 52  }
  0x63   :  { %s10670_s4 = sld [smem:[%s13567_s0 + %s10410_s28]]   ;;  %s10414_s28 = smov 53  }
  0x66   :  { %13668 = sst [smem:[#allocation35_spill]] %s10655_s12 }
  0x67   :  { %13669 = sst [smem:[#allocation36_spill]] %s10660_s20 }
  0x68   :  { %13670 = sst [smem:[#allocation37_spill]] %s10665_s27 }
  0x69   :  { %13671 = sst [smem:[#allocation38_spill]] %s10670_s4 }
  0x6a   :  { %s10675_s12 = sld [smem:[%s13567_s0 + %s10411_s7]]   ;;  %s10415_s7 = smov 54  }
  0x6b   :  { %s10680_s20 = sld [smem:[%s13567_s0 + %s10412_s15]]   ;;  %s10416_s15 = smov 55  }
  0x6c   :  { %s10685_s27 = sld [smem:[%s13567_s0 + %s10413_s22]]   ;;  %s10702_s22 = smov 0  }
  0x6d   :  { %s10690_s4 = sld [smem:[%s13567_s0 + %s10414_s28]]  }
  0x70   :  { %13672 = sst [smem:[#allocation39_spill]] %s10675_s12 }
  0x71   :  { %13673 = sst [smem:[#allocation40_spill]] %s10680_s20 }
  0x72   :  { %s10695_s12 = sld [smem:[%s13567_s0 + %s10415_s7]]  }
  0x73   :  { %s10700_s20 = sld [smem:[%s13567_s0 + %s10416_s15]]  }
  0x74 LB: > { %s13674_s3 = sld [smem:[#allocation2_spill]]  ;;  %s8976_s23 = sadd.s32 4294967295, %s10360_s22   ;;  %s10360_s22 = sphi %s10702_s22, %s122_s22  }
  0x75   : > { %p8980_p0 = scmp.ge.s32.totalorder %s10360_s22, 1  ;;  %p1496_p1 = scmp.lt.s32.totalorder %s10360_s22, 3 }
  0x77   : > { %p1497_p2 = pnand %p8980_p0, %p1496_p1 }
  0x79   : > { %1500 = sbr.rel (%p1497_p2) target bundleno = 9305 (0x2459), region = 236 }
  0x7e   : > { %p1629_p3 = scmp.lt.s32.totalorder %s8976_s23, 1  ;;  %v1694_v0 = vld [vmem:[%s10435_s13 + $0x50] sm:$0xff]  ;;  %v1692_v1 = vld [vmem:[%s10435_s13 + $0x40] sm:$0xff]  ;;  %vm1654_vm0 = vcmask 130048   ;;  %v1695_v8 = vld [vmem:[%s10435_s13 + $0x58] sm:$0xff]  ;;  %vm1696_vm1 = vcmask 392192  }
  0x7f   : > { %1713 = vmatpush.msra.mxu1 %v1694_v0  ;;  %v1690_v2 = vld [vmem:[%s10435_s13 + $0x30] sm:$0xff]  ;;  %v1688_v3 = vld [vmem:[%s10435_s13 + $0x20] sm:$0xff]  ;;  %v1693_v9 = vld [vmem:[%s10435_s13 + $0x48] sm:$0xff]  ;;  %vm2045_vm2 = vcmask 523264   ;;  %vm2192_vm3 = vcmask 64512   ;;  %vm2220_vm4 = vcmask 261120  }
  0x80   : > { %s13802_s23 = smov (!%p1629_p3, %s8976_s23), 1  ;;  %v1686_v4 = vld [vmem:[%s10435_s13 + $0x10] sm:$0xff]  ;;  %v1652_v5 = vld [vmem:[%s10430_s9] sm:$0xff]  ;;  %v1691_v10 = vld [vmem:[%s10435_s13 + $0x38] sm:$0xff]  ;;  %vm2363_vm5 = vcmask 1043456   ;;  %s13675_s28 = sld [smem:[#allocation8_spill]] }
  0x81   : > { %1714 = vmatpush.msra.mxu1 %v1692_v1  ;;  %s10267_s0 = sshll.u32 %s13802_s23, 4  ;;  %v1689_v11 = vld [vmem:[%s10435_s13 + $0x28] sm:$0xff]  ;;  %v1687_v13 = vld [vmem:[%s10435_s13 + $0x18] sm:$0xff]  ;;  %v1684_v14 = vld [vmem:[%s10435_s13] sm:$0xff]  ;;  %vm2359_vm6 = vcmask 31744   ;;  %s13676_s1 = sld [smem:[#allocation3_spill]] }
  0x82   : > { %s1633_s26 = scalar_lea.vmem %s10425_s5, %s10267_s0  ;;  %v1653_v12 = vld [vmem:[%s10430_s9 + $0x8] sm:$0xff]  ;;  %v9003_v16 = vld [vmem:[%s10435_s13 + $0xb0] sm:$0xff]  ;;  %v9004_v17 = vld [vmem:[%s10435_s13 + $0xb8] sm:$0xff]  ;;  %s13677_s2 = sld [smem:[#allocation5_spill]]  ;;  %vm4144_vm7 = vcmask 785408  }
  0x83   : > { %1715 = vmatpush.msra.mxu1 %v1690_v2  ;;  %v1645_v6 = vld [vmem:[%s1633_s26 + $0x8] sm:$0xff]  ;;  %v1644_v7 = vld [vmem:[%s1633_s26] sm:$0xff]  ;;  %v8999_v20 = vld [vmem:[%s10435_s13 + $0x90] sm:$0xff]  ;;  %s13678_s7 = sld [smem:[#allocation7_spill]] }
  0x84   : > { %1675 = vmatpush.msra.mxu0 %v1645_v6  ;;  %v1685_v15 = vld [vmem:[%s10435_s13 + $0x8] sm:$0xff]  ;;  %v9001_v18 = vld [vmem:[%s10435_s13 + $0xa0] sm:$0xff]  ;;  %v9000_v21 = vld [vmem:[%s10435_s13 + $0x98] sm:$0xff]  ;;  %s13679_s10 = sld [smem:[#allocation4_spill]] }
  0x85   : > { %1716 = vmatpush.msra.mxu1 %v1688_v3  ;;  %v9002_v19 = vld [vmem:[%s10435_s13 + $0xa8] sm:$0xff]  ;;  %v8997_v22 = vld [vmem:[%s10435_s13 + $0x80] sm:$0xff]  ;;  %v8995_v24 = vld [vmem:[%s10435_s13 + $0x70] sm:$0xff]  ;;  %s13680_s11 = sld [smem:[#allocation10_spill]] }
  0x86   : > { %1676 = vmatpush.msra.mxu0 %v1644_v7  ;;  %v8998_v23 = vld [vmem:[%s10435_s13 + $0x88] sm:$0xff]  ;;  %v8996_v25 = vld [vmem:[%s10435_s13 + $0x78] sm:$0xff]  ;;  %v8993_v26 = vld [vmem:[%s10435_s13 + $0x60] sm:$0xff]  ;;  %s13690_s15 = sld [smem:[#allocation6_spill]] }
  0x87   : > { %1717 = vmatpush.msra.mxu1 %v1686_v4  ;;  %8987 = vmatmul.msk.f32.vlgmr.msra.gmra.mxu0 %vm1654_vm0, %v1652_v5  ;;  %v8994_v27 = vld [vmem:[%s10435_s13 + $0x68] sm:$0xff]  ;;  %v9009_v30 = vld [vmem:[%s10430_s9 + $0x20] sm:$0xff]  ;;  %v9023_v32 = vld [vmem:[%s10435_s13 + $0x110] sm:$0xff]  ;;  %s13693_s16 = sld [smem:[#allocation9_spill]] }
  0x88   : > { %1736 = vmatpush.msrb.mxu0 %v1695_v8  ;;  %v9010_v31 = vld [vmem:[%s10430_s9 + $0x28] sm:$0xff]  ;;  %v9024_v33 = vld [vmem:[%s10435_s13 + $0x118] sm:$0xff]  ;;  %1883 = vmatpush.msra.mxu2 %v9023_v32  ;;  %v9021_v34 = vld [vmem:[%s10435_s13 + $0x100] sm:$0xff]  ;;  %s13695_s18 = sld [smem:[#allocation11_spill]] }
  0x89   : > { %1718 = vmatpush.msra.mxu1 %v1684_v14  ;;  %1906 = vmatpush.msra.mxu3 %v9024_v33  ;;  %v9022_v35 = vld [vmem:[%s10435_s13 + $0x108] sm:$0xff]  ;;  %v9019_v36 = vld [vmem:[%s10435_s13 + $0xf0] sm:$0xff]  ;;  %v9020_v37 = vld [vmem:[%s10435_s13 + $0xf8] sm:$0xff]  ;;  %s13700_s0 = sld [smem:[#allocation13_spill]] }
  0x8a   : > { %1737 = vmatpush.msrb.mxu0 %v1693_v9  ;;  %1884 = vmatpush.msra.mxu2 %v9021_v34  ;;  %v9017_v38 = vld [vmem:[%s10435_s13 + $0xe0] sm:$0xff]  ;;  %v9018_v39 = vld [vmem:[%s10435_s13 + $0xe8] sm:$0xff]  ;;  %v9015_v40 = vld [vmem:[%s10435_s13 + $0xd0] sm:$0xff]  ;;  %s13701_s26 = sld [smem:[#allocation12_spill]] }
  0x8b   : > { %1782 = vmatpush.msrb.mxu1 %v9003_v16  ;;  %1907 = vmatpush.msra.mxu3 %v9022_v35  ;;  %v9016_v41 = vld [vmem:[%s10435_s13 + $0xd8] sm:$0xff]  ;;  %v9013_v42 = vld [vmem:[%s10435_s13 + $0xc0] sm:$0xff]  ;;  %v9014_v43 = vld [vmem:[%s10435_s13 + $0xc8] sm:$0xff] }
  0x8c   : > { %1738 = vmatpush.msrb.mxu0 %v1691_v10  ;;  %1885 = vmatpush.msra.mxu2 %v9019_v36  ;;  %v1942_v46 = vld [vmem:[%s10445_s21 + $0x78] sm:$0xff]  ;;  %v1941_v48 = vld [vmem:[%s10445_s21 + $0x70] sm:$0xff]  ;;  %v1940_v50 = vld [vmem:[%s10445_s21 + $0x68] sm:$0xff] }
  0x8d   : > { %1783 = vmatpush.msrb.mxu1 %v9001_v18  ;;  %1908 = vmatpush.msra.mxu3 %v9020_v37  ;;  %v1958_v47 = vld [vmem:[%s10445_s21 + $0xf8] sm:$0xff]  ;;  %v1957_v49 = vld [vmem:[%s10445_s21 + $0xf0] sm:$0xff]  ;;  %v1956_v51 = vld [vmem:[%s10445_s21 + $0xe8] sm:$0xff] }
  0x8e   : > { %1739 = vmatpush.msrb.mxu0 %v1689_v11  ;;  %1886 = vmatpush.msra.mxu2 %v9017_v38  ;;  %v1939_v52 = vld [vmem:[%s10445_s21 + $0x60] sm:$0xff]  ;;  %v1938_v54 = vld [vmem:[%s10445_s21 + $0x58] sm:$0xff]  ;;  %v1937_v57 = vld [vmem:[%s10445_s21 + $0x50] sm:$0xff] }
  0x8f   : > { %8988 = vmatmul.msk.f32.gmra.mxu0 %vm1654_vm0, %v1653_v12  ;;  %1784 = vmatpush.msrb.mxu1 %v8999_v20  ;;  %v1955_v53 = vld [vmem:[%s10445_s21 + $0xe0] sm:$0xff]  ;;  %v1954_v55 = vld [vmem:[%s10445_s21 + $0xd8] sm:$0xff]  ;;  %v1953_v58 = vld [vmem:[%s10445_s21 + $0xd0] sm:$0xff] }
  0x90   : > { %1740 = vmatpush.msrb.mxu0 %v1687_v13  ;;  %1909 = vmatpush.msra.mxu3 %v9018_v39  ;;  %v1936_v59 = vld [vmem:[%s10445_s21 + $0x48] sm:$0xff]  ;;  %v1935_v61 = vld [vmem:[%s10445_s21 + $0x40] sm:$0xff]  ;;  %v1934_v63 = vld [vmem:[%s10445_s21 + $0x38] sm:$0xff] }
  0x91   : > { %1785 = vmatpush.msrb.mxu1 %v8997_v22  ;;  %1887 = vmatpush.msra.mxu2 %v9015_v40  ;;  %v1952_v60 = vld [vmem:[%s10445_s21 + $0xc8] sm:$0xff]  ;;  %v1951_v62 = vld [vmem:[%s10445_s21 + $0xc0] sm:$0xff]  ;;  %v1950_v0 = vld [vmem:[%s10445_s21 + $0xb8] sm:$0xff] }
  0x92   : > { %1741 = vmatpush.msrb.mxu0 %v1685_v15  ;;  %1910 = vmatpush.msra.mxu3 %v9016_v41  ;;  %v1933_v2 = vld [vmem:[%s10445_s21 + $0x30] sm:$0xff]  ;;  %v1932_v4 = vld [vmem:[%s10445_s21 + $0x28] sm:$0xff]  ;;  %v1930_v8 = vld [vmem:[%s10445_s21 + $0x18] sm:$0xff] }
  0x93   : > { %1786 = vmatpush.msrb.mxu1 %v8995_v24  ;;  %1888 = vmatpush.msra.mxu2 %v9013_v42  ;;  %v1949_v3 = vld [vmem:[%s10445_s21 + $0xb0] sm:$0xff]  ;;  %v1948_v5 = vld [vmem:[%s10445_s21 + $0xa8] sm:$0xff]  ;;  %v1946_v9 = vld [vmem:[%s10445_s21 + $0x98] sm:$0xff] }
  0x94   : > { %1805 = vmatpush.msra.mxu0 %v9004_v17  ;;  %1911 = vmatpush.msra.mxu3 %v9014_v43  ;;  %v1929_v11 = vld [vmem:[%s10445_s21 + $0x10] sm:$0xff]  ;;  %v1928_v14 = vld [vmem:[%s10445_s21 + $0x8] sm:$0xff]  ;;  %v1927_v16 = vld [vmem:[%s10445_s21] sm:$0xff] }
  0x95   : > { %1787 = vmatpush.msrb.mxu1 %v8993_v26  ;;  %v1945_v12 = vld [vmem:[%s10445_s21 + $0x90] sm:$0xff]  ;;  %v1944_v15 = vld [vmem:[%s10445_s21 + $0x88] sm:$0xff]  ;;  %v1943_v17 = vld [vmem:[%s10445_s21 + $0x80] sm:$0xff] }
  0x96   : > { %1806 = vmatpush.msra.mxu0 %v9002_v19  ;;  %v1646_v20 = vld [vmem:[%s10440_s17] sm:$0x3]  ;;  %v2044_v43 = vld [vmem:[%s13674_s3 + $0x38] sm:$0xff] }
  0x97   : > { %v1649_v22 = vperm.slane %v1646_v20, 1  ;;  %2057 = vmatpush.msrb.mxu3 %v2044_v43 }
  0x98   : > { %1807 = vmatpush.msra.mxu0 %v9000_v21  ;;  %v1648_v21 = vperm.slane %v1646_v20, 0  ;;  %v2217_v20 = vld [vmem:[%s10475_s19 + $0x8] sm:$0xff] }
  0x9a   : > { %1808 = vmatpush.msra.mxu0 %v8998_v23 }
  0x9c   : > { %1809 = vmatpush.msra.mxu0 %v8996_v25 }
  0x9e   : > { %1810 = vmatpush.msra.mxu0 %v8994_v27 }
 0x104   : > { %v1678_v28 = vpop.f32.mrf.mxu0 }
 0x105   : > { %8989 = vmatmul.msk.f32.vlgmr.msra.gmra.mxu1 %vm1696_vm1, %v1678_v28  ;;  %8991 = vmatmul.msk.f32.vlgmr.msrb.gmra.mxu0 %vm1696_vm1, %v1678_v28 }
 0x106   : > { %1845 = vmatpush.msra.mxu1 %v1645_v6  ;;  %1959 = vmatpush.msrb.mxu0 %v1942_v46  ;;  %v2041_v46 = vld [vmem:[%s13674_s3 + $0x20] sm:$0xff] }
 0x108   : > { %1846 = vmatpush.msra.mxu1 %v1644_v7  ;;  %1960 = vmatpush.msrb.mxu0 %v1941_v48 }
 0x10a   : > { %1961 = vmatpush.msrb.mxu0 %v1940_v50 }
 0x10c   : > { %v1681_v29 = vpop.f32.mrf.mxu0  ;;  %1962 = vmatpush.msrb.mxu0 %v1939_v52 }
 0x10d   : > { %8990 = vmatmul.msk.f32.gmra.mxu1 %vm1696_vm1, %v1681_v29  ;;  %8992 = vmatmul.msk.f32.gmra.mxu0 %vm1696_vm1, %v1681_v29 }
 0x10e   : > { %1963 = vmatpush.msrb.mxu0 %v1938_v54 }
 0x110   : > { %1964 = vmatpush.msrb.mxu0 %v1937_v57 }
 0x112   : > { %1965 = vmatpush.msrb.mxu0 %v1936_v59 }
 0x114   : > { %1966 = vmatpush.msrb.mxu0 %v1935_v61  ;;  %v9040_v61 = vld [vmem:[%s13674_s3 + $0x78] sm:$0xff] }
 0x115   : > { %9005 = vmatmul.msk.f32.vlgmr.msrb.gmra.mxu1 %vm1696_vm1, %v1644_v7  ;;  %9007 = vmatmul.msk.f32.vlgmr.msra.gmra.mxu0 %vm1696_vm1, %v1644_v7  ;;  %v1947_v7 = vld [vmem:[%s10445_s21 + $0xa0] sm:$0xff] }
 0x116   : > { %1982 = vmatpush.msrb.mxu1 %v1958_v47  ;;  %1967 = vmatpush.msrb.mxu0 %v1934_v63  ;;  %v10333_v47 = vld [vmem:[%s10450_s25] ss:$0 sm:$0xff]  ;;  %v9038_v63 = vld [vmem:[%s13674_s3 + $0x68] sm:$0xff] }
 0x118   : > { %1983 = vmatpush.msrb.mxu1 %v1957_v49  ;;  %1968 = vmatpush.msrb.mxu0 %v1933_v2  ;;  %v9037_v2 = vld [vmem:[%s13674_s3 + $0x60] sm:$0xff] }
 0x11a   : > { %1984 = vmatpush.msrb.mxu1 %v1956_v51  ;;  %1969 = vmatpush.msrb.mxu0 %v1932_v4  ;;  %v2040_v51 = vld [vmem:[%s13674_s3 + $0x18] sm:$0xff] }
 0x11b   : > { %v9051_v4 = vld [vmem:[%s13674_s3 + $0xb8] sm:$0xff] }
 0x11c   : > { %1985 = vmatpush.msrb.mxu1 %v1955_v53  ;;  %v2039_v53 = vld [vmem:[%s13674_s3 + $0x10] sm:$0xff] }
 0x11d   : > { %9006 = vmatmul.msk.f32.gmra.mxu1 %vm1696_vm1, %v1645_v6  ;;  %9008 = vmatmul.msk.f32.gmra.mxu0 %vm1696_vm1, %v1645_v6  ;;  %v1931_v6 = vld [vmem:[%s10445_s21 + $0x20] sm:$0xff] }
 0x11e   : > { %1986 = vmatpush.msrb.mxu1 %v1954_v55  ;;  %1970 = vmatpush.msrb.mxu0 %v1931_v6  ;;  %v9050_v6 = vld [vmem:[%s13674_s3 + $0xb0] sm:$0xff] }
 0x120   : > { %1987 = vmatpush.msrb.mxu1 %v1953_v58  ;;  %1971 = vmatpush.msrb.mxu0 %v1930_v8  ;;  %v2037_v58 = vld [vmem:[%s13674_s3] sm:$0xff]  ;;  %v9034_v8 = vld [vmem:[%s13674_s3 + $0x48] sm:$0xff] }
 0x122   : > { %1988 = vmatpush.msrb.mxu1 %v1952_v60  ;;  %1972 = vmatpush.msrb.mxu0 %v1929_v11  ;;  %v10827_v60 = vld [vmem:[%s10455_s29] sm:$0xff]  ;;  %v9047_v11 = vld [vmem:[%s13674_s3 + $0x98] sm:$0xff] }
 0x124   : > { %1989 = vmatpush.msrb.mxu1 %v1951_v62  ;;  %1973 = vmatpush.msrb.mxu0 %v1928_v14  ;;  %v9039_v62 = vld [vmem:[%s13674_s3 + $0x70] sm:$0xff]  ;;  %v9044_v14 = vld [vmem:[%s13674_s3 + $0x80] sm:$0xff] }
 0x125   : > { %9011 = vmatmul.msk.f32.vlgmr.msra.gmra.mxu1 %vm1654_vm0, %v9009_v30 }
 0x126   : > { %1990 = vmatpush.msrb.mxu1 %v1950_v0  ;;  %1974 = vmatpush.msrb.mxu0 %v1927_v16  ;;  %v10839_v0 = vld [vmem:[%s10455_s29 + $0x8] sm:$0xff] }
 0x128   : > { %1991 = vmatpush.msrb.mxu1 %v1949_v3  ;;  %v9036_v3 = vld [vmem:[%s13674_s3 + $0x58] sm:$0xff]  ;;  %2173 = vmatpush.msra.mxu0 %v9051_v4  ;;  %v10933_v4 = vld [vmem:[%s13675_s28 + $0x70] sm:$0xff] }
 0x12a   : > { %1992 = vmatpush.msrb.mxu1 %v1948_v5  ;;  %v9035_v5 = vld [vmem:[%s13674_s3 + $0x50] sm:$0xff]  ;;  %2174 = vmatpush.msra.mxu0 %v9050_v6 }
 0x12c   : > { %1993 = vmatpush.msrb.mxu1 %v1947_v7  ;;  %v9049_v7 = vld [vmem:[%s13674_s3 + $0xa8] sm:$0xff] }
 0x12d   : > { %9012 = vmatmul.msk.f32.gmra.mxu1 %vm1654_vm0, %v9010_v31  ;;  %2175 = vmatpush.msra.mxu0 %v9049_v7  ;;  %v10940_v7 = vld [vmem:[%s13675_s28 + $0x28] sm:$0xff] }
 0x12e   : > { %1994 = vmatpush.msrb.mxu1 %v1946_v9  ;;  %v9033_v9 = vld [vmem:[%s13674_s3 + $0x40] sm:$0xff] }
 0x130   : > { %1995 = vmatpush.msrb.mxu1 %v1945_v12  ;;  %v9046_v12 = vld [vmem:[%s13674_s3 + $0x90] sm:$0xff] }
 0x132   : > { %1996 = vmatpush.msrb.mxu1 %v1944_v15 }
 0x134   : > { %1997 = vmatpush.msrb.mxu1 %v1943_v17 }
 0x182   : > { %v10766_v44 = vpop.f32.mrf.mxu1  ;;  %v1743_v18 = vpop.f32.mrf.mxu0 }
 0x183   : > { %v1749_v24 = vadd.f32 %v10766_v44, %v1648_v21  ;;  %v1750_v25 = vadd.f32 %v1743_v18, %v1649_v22  ;;  %v2043_v44 = vld [vmem:[%s13674_s3 + $0x30] sm:$0xff]  ;;  %v2219_v18 = vld [vmem:[%s10475_s19 + $0x18] sm:$0xff] }
 0x184   : > { %2058 = vmatpush.msrb.mxu3 %v2043_v44  ;;  %v9073_v44 = vld [vmem:[%s10490_s6 + $0x18] sm:$0xff] }
 0x18a   : > { %v10768_v45 = vpop.f32.mrf.mxu1  ;;  %v1746_v19 = vpop.f32.mrf.mxu0 }
 0x18b   : > { %v1751_v33 = vadd.f32 %v10768_v45, %v1648_v21  ;;  %v1752_v34 = vadd.f32 %v1746_v19, %v1649_v22  ;;  %v2042_v45 = vld [vmem:[%s13674_s3 + $0x28] sm:$0xff]  ;;  %v2218_v19 = vld [vmem:[%s10475_s19 + $0x10] sm:$0xff]  ;;  %v10334_v22 = vld [vmem:[%s10465_s8] ss:$0 sm:$0xff] }
 0x18c   : > { %2059 = vmatpush.msrb.mxu3 %v2042_v45  ;;  %v9072_v45 = vld [vmem:[%s10490_s6 + $0x10] sm:$0xff] }
 0x18e   : > { %2060 = vmatpush.msrb.mxu3 %v2041_v46  ;;  %v2388_v46 = vld [vmem:[%s10490_s6 + $0x8] sm:$0xff] }
 0x190   : > { %2061 = vmatpush.msrb.mxu3 %v2040_v51 }
 0x192   : > { %v10780_v56 = vpop.f32.mrf.mxu1  ;;  %v1812_v23 = vpop.f32.mrf.mxu0  ;;  %2062 = vmatpush.msrb.mxu3 %v2039_v53 }
 0x193   : > { %v1818_v26 = vadd.f32 %v10780_v56, %v1749_v24  ;;  %v1819_v27 = vadd.f32 %v1812_v23, %v1750_v25  ;;  %v2038_v56 = vld [vmem:[%s13674_s3 + $0x8] sm:$0xff] }
 0x194   : > { %2063 = vmatpush.msrb.mxu3 %v2038_v56  ;;  %v10909_v56 = vld [vmem:[%s10485_s30 + $0x8] sm:$0xf] }
 0x196   : > { %2064 = vmatpush.msrb.mxu3 %v2037_v58  ;;  %v2387_v58 = vld [vmem:[%s10490_s6] sm:$0xff] }
 0x19a   : > { %v1792_v1 = vpop.f32.mrf.mxu1  ;;  %v1815_v32 = vpop.f32.mrf.mxu0 }
 0x19b   : > { %v1820_v35 = vadd.f32 %v1792_v1, %v1751_v33  ;;  %v1821_v36 = vadd.f32 %v1815_v32, %v1752_v34  ;;  %v10845_v1 = vld [vmem:[%s10455_s29 + $0x10] sm:$0xff]  ;;  %v2216_v32 = vld [vmem:[%s10475_s19] sm:$0xff]  ;;  %v9060_v33 = vld [vmem:[%s10475_s19 + $0x38] sm:$0xff] }
 0x19c   : > { %v9067_v34 = vld [vmem:[%s10475_s19 + $0x58] sm:$0xff]  ;;  %2290 = vmatpush.msra.mxu1 %v9060_v33 }
 0x1a2   : > { %v1848_v10 = vpop.f32.mrf.mxu1 }
 0x1a3   : > { %9025 = vmatmul.msk.f32.vlgmr.msra.gmra.mxu2 %vm1696_vm1, %v1848_v10  ;;  %9027 = vmatmul.msk.f32.vlgmr.msra.gmra.mxu3 %vm1696_vm1, %v1848_v10  ;;  %v9048_v10 = vld [vmem:[%s13674_s3 + $0xa0] sm:$0xff] }
 0x1a4   : > { %2115 = vmatpush.msra.mxu3 %v9040_v61  ;;  %2176 = vmatpush.msra.mxu0 %v9048_v10  ;;  %v9079_v61 = vld [vmem:[%s10490_s6 + $0x28] sm:$0xff]  ;;  %v10951_v10 = vld [vmem:[%s13675_s28 + $0x60] sm:$0xff] }
 0x1a6   : > { %2116 = vmatpush.msra.mxu3 %v9039_v62  ;;  %2177 = vmatpush.msra.mxu0 %v9047_v11  ;;  %v9078_v62 = vld [vmem:[%s10490_s6 + $0x20] sm:$0xff]  ;;  %v10954_v11 = vld [vmem:[%s13675_s28 + $0x18] sm:$0xff] }
 0x1a8   : > { %2117 = vmatpush.msra.mxu3 %v9038_v63  ;;  %2178 = vmatpush.msra.mxu0 %v9046_v12  ;;  %v10922_v63 = vld [vmem:[%s13675_s28 + $0x38] sm:$0xff] }
 0x1a9   : > { %v10957_v12 = vld [vmem:[%s13675_s28 + $0x58] sm:$0xff] }
 0x1aa   : > { %v1851_v13 = vpop.f32.mrf.mxu1  ;;  %2118 = vmatpush.msra.mxu3 %v9037_v2  ;;  %v10925_v2 = vld [vmem:[%s13675_s28 + $0x78] sm:$0xff] }
 0x1ab   : > { %9026 = vmatmul.msk.f32.gmra.mxu2 %vm1696_vm1, %v1851_v13  ;;  %9028 = vmatmul.msk.f32.gmra.mxu3 %vm1696_vm1, %v1851_v13  ;;  %v9045_v13 = vld [vmem:[%s13674_s3 + $0x88] sm:$0xff] }
 0x1ac   : > { %2119 = vmatpush.msra.mxu3 %v9036_v3  ;;  %2179 = vmatpush.msra.mxu0 %v9045_v13  ;;  %v10928_v3 = vld [vmem:[%s13675_s28 + $0x30] sm:$0xff] }
 0x1ad   : > { %v10964_v13 = vld [vmem:[%s13675_s28 + $0x10] sm:$0xff] }
 0x1ae   : > { %2120 = vmatpush.msra.mxu3 %v9035_v5  ;;  %2180 = vmatpush.msra.mxu0 %v9044_v14  ;;  %v10967_v14 = vld [vmem:[%s13675_s28 + $0x50] sm:$0xff] }
 0x1b0   : > { %2121 = vmatpush.msra.mxu3 %v9034_v8  ;;  %v10943_v8 = vld [vmem:[%s13675_s28 + $0x68] sm:$0xff] }
 0x1b2   : > { %2122 = vmatpush.msra.mxu3 %v9033_v9  ;;  %v10948_v9 = vld [vmem:[%s13675_s28 + $0x20] sm:$0xff] }
 0x226   : > { %v1890_v28 = vpop.f32.mrf.mxu2  ;;  %v1913_v29 = vpop.f32.mrf.mxu3 }
 0x227   : > { %v1919_v30 = vadd.f32 %v1890_v28, %v1818_v26  ;;  %v1920_v31 = vadd.f32 %v1913_v29, %v1819_v27  ;;  %v10872_v29 = vld [vmem:[%s10470_s14] sm:$0xf] }
 0x229   : > { %1975 = vmatmul.f32.vlgmr.msrb.gmra.mxu0 %v1919_v30  ;;  %1998 = vmatmul.f32.vlgmr.msrb.gmra.mxu1 %v1920_v31  ;;  %v10875_v30 = vld [vmem:[%s10470_s14 + $0x4] sm:$0xf]  ;;  %v10885_v31 = vld [vmem:[%s10470_s14 + $0x8] sm:$0xf] }
 0x22e   : > { %v1893_v37 = vpop.f32.mrf.mxu2  ;;  %v1916_v38 = vpop.f32.mrf.mxu3 }
 0x22f   : > { %v1921_v39 = vadd.f32 %v1893_v37, %v1820_v35  ;;  %v1922_v40 = vadd.f32 %v1916_v38, %v1821_v36  ;;  %v9059_v35 = vld [vmem:[%s10475_s19 + $0x30] sm:$0xff]  ;;  %v9058_v37 = vld [vmem:[%s10475_s19 + $0x28] sm:$0xff] }
 0x230   : > { %v9066_v36 = vld [vmem:[%s10475_s19 + $0x50] sm:$0xff]  ;;  %v9065_v38 = vld [vmem:[%s10475_s19 + $0x48] sm:$0xff]  ;;  %2291 = vmatpush.msra.mxu1 %v9059_v35 }
 0x231   : > { %1978 = vmatmul.f32.gmra.mxu0 %v1921_v39  ;;  %2001 = vmatmul.f32.gmra.mxu1 %v1922_v40  ;;  %v9057_v39 = vld [vmem:[%s10475_s19 + $0x20] sm:$0xff] }
 0x232   : > { %2292 = vmatpush.msra.mxu1 %v9058_v37  ;;  %v9064_v40 = vld [vmem:[%s10475_s19 + $0x40] sm:$0xff]  ;;  %v9099_v37 = vld [vmem:[%s13677_s2 + $0x28] sm:$0xff] }
 0x234   : > { %2293 = vmatpush.msra.mxu1 %v9057_v39 }
 0x236   : > { %2406 = vmatpush.msrb.mxu1 %v2388_v46  ;;  %v9108_v46 = vld [vmem:[%s13677_s2 + $0x58] sm:$0xff] }
 0x238   : > { %2407 = vmatpush.msrb.mxu1 %v2387_v58  ;;  %v11038_v58 = vld [vmem:[%s13680_s11 + $0xf0] sm:$0xff] }
 0x2a6   : > { %v1976_v41 = vpop.f32.mrf.mxu0  ;;  %v1999_v42 = vpop.f32.mrf.mxu1 }
 0x2a7   : > { %v2000_v48 = vadd.f32 %v1999_v42, %v1976_v41 }
 0x2a9   : > { %v2005_v54 = vadd.f32 %v10333_v47, %v2000_v48 }
 0x2ab   : > { %v10823_v59 = vmax.f32 %v2005_v54, 0.0 }
 0x2ae   : > { %v1979_v49 = vpop.f32.mrf.mxu0  ;;  %v2002_v50 = vpop.f32.mrf.mxu1 }
 0x2af   : > { %v2003_v52 = vadd.f32 %v2002_v50, %v1979_v49 }
 0x2b1   : > { %v2006_v55 = vadd.f32 %v10333_v47, %v2003_v52  ;;  %v10335_v47 = vld [vmem:[%s10480_s24] ss:$0 sm:$0xff] }
 0x2b3   : > { %v10820_v57 = vmax.f32 %v2006_v55, 0.0  ;;  %v10906_v55 = vld [vmem:[%s10485_s30] sm:$0xf] }
 0x2b5   : > { %2031 = vmatpush.msrb.mxu2 %v10820_v57 }
 0x2b7   : > { %2032 = vmatpush.msrb.mxu2 %v10823_v59 }
 0x2b8   : > { %9029 = vmatmul.msk.f32.vlgmr.msrb.gmra.mxu2 %vm1654_vm0, %v10827_v60 }
 0x2b9   : > { %2089 = vmatpush.msra.mxu2 %v10820_v57 }
 0x2bb   : > { %2090 = vmatpush.msra.mxu2 %v10823_v59 }
 0x2bd   : > { %2147 = vmatpush.msrb.mxu2 %v10820_v57 }
 0x2bf   : > { %2148 = vmatpush.msrb.mxu2 %v10823_v59 }
 0x2c0   : > { %9032 = vmatmul.msk.f32.vlgmr.msra.gmra.mxu2 %vm1654_vm0, %v10839_v0 }
 0x2c8   : > { %9043 = vmatmul.msk.f32.vlgmr.msrb.gmra.mxu2 %vm1654_vm0, %v10845_v1 }
 0x33b   : > { %v2034_v15 = vpop.f32.mrf.mxu2 }
 0x33c   : > { %9030 = vmatmul.msk.f32.vlgmr.msrb.gmra.mxu3 %vm2045_vm2, %v2034_v15  ;;  %v10972_v15 = vld [vmem:[%s13675_s28 + $0x8] sm:$0xff] }
 0x33d   : > { %2236 = vmatpush.msrb.mxu3 %v2219_v18  ;;  %v10983_v18 = vld [vmem:[%s13675_s28 + $0x40] sm:$0xff] }
 0x33f   : > { %2237 = vmatpush.msrb.mxu3 %v2218_v19  ;;  %v10336_v19 = vld [vmem:[%s13676_s1] ss:$0 sm:$0xff]  ;;  %s13702_s1 = sld [smem:[#allocation15_spill]] }
 0x341   : > { %2238 = vmatpush.msrb.mxu3 %v2217_v20 }
 0x343   : > { %v2092_v16 = vpop.f32.mrf.mxu2  ;;  %2239 = vmatpush.msrb.mxu3 %v2216_v32  ;;  %v10992_v32 = vld [vmem:[%s13678_s7] sm:$0xff] }
 0x344   : > { %9041 = vmatmul.msk.f32.vlgmr.msra.gmra.mxu3 %vm2045_vm2, %v2092_v16  ;;  %v10975_v16 = vld [vmem:[%s13675_s28 + $0x48] sm:$0xff] }
 0x345   : > { %2344 = vmatpush.msra.mxu3 %v9067_v34  ;;  %v10998_v34 = vld [vmem:[%s13678_s7 + $0x8] sm:$0xff] }
 0x347   : > { %2345 = vmatpush.msra.mxu3 %v9066_v36  ;;  %v9100_v36 = vld [vmem:[%s13677_s2 + $0x30] sm:$0xff] }
 0x349   : > { %2346 = vmatpush.msra.mxu3 %v9065_v38  ;;  %v9098_v38 = vld [vmem:[%s13677_s2 + $0x20] sm:$0xff] }
 0x34b   : > { %v2150_v17 = vpop.f32.mrf.mxu2  ;;  %2347 = vmatpush.msra.mxu3 %v9064_v40 }
 0x34c   : > { %9052 = vmatmul.msk.f32.vlgmr.msra.gmra.mxu0 %vm2045_vm2, %v2150_v17  ;;  %v10980_v17 = vld [vmem:[%s13675_s28] sm:$0xff] }
 0x3bf   : > { %v2066_v21 = vpop.f32.mrf.mxu3 }
 0x3c0   : > { %v2069_v23 = vadd.f32 %v10334_v22, %v2066_v21 }
 0x3c7   : > { %v2124_v24 = vpop.f32.mrf.mxu3 }
 0x3c8   : > { %v2127_v25 = vadd.f32 %v2124_v24, %v2069_v23 }
 0x3c9   : > { %v2182_v26 = vpop.f32.mrf.mxu0 }
 0x3ca   : > { %v2185_v27 = vadd.f32 %v2182_v26, %v2127_v25 }
 0x3cc   : > { %v10869_v28 = vmax.f32 %v2185_v27, 0.0  ;;  %v9101_v27 = vld [vmem:[%s13677_s2 + $0x38] sm:$0xff] }
 0x3ce   : > { %2211 = vmatpush.msra.mxu2 %v10869_v28  ;;  %2265 = vmatpush.msrb.mxu0 %v10869_v28 }
 0x3cf   : > { %9053 = vmatmul.msk.f32.vlgmr.msra.gmra.mxu2 %vm2192_vm3, %v10872_v29  ;;  %9056 = vmatmul.msk.f32.vlgmr.msrb.gmra.mxu0 %vm2192_vm3, %v10875_v30 }
 0x3d0   : > { %2319 = vmatpush.msrb.mxu2 %v10869_v28 }
 0x3d2   : > { %2432 = vmatpush.msra.mxu2 %v9073_v44  ;;  %v11011_v44 = vld [vmem:[%s13679_s10 + $0x10] sm:$0xff] }
 0x3d4   : > { %2433 = vmatpush.msra.mxu2 %v9072_v45  ;;  %v2639_v45 = vld [vmem:[%s13677_s2 + $0x18] sm:$0xff] }
 0x3d7   : > { %9063 = vmatmul.msk.f32.vlgmr.msrb.gmra.mxu2 %vm2192_vm3, %v10885_v31 }
 0x3d8   : > { %2543 = vmatpush.msrb.mxu2 %v10925_v2 }
 0x3da   : > { %2544 = vmatpush.msrb.mxu2 %v10933_v4 }
 0x3dc   : > { %2545 = vmatpush.msrb.mxu2 %v10943_v8 }
 0x3de   : > { %2546 = vmatpush.msrb.mxu2 %v10951_v10 }
 0x3e0   : > { %2547 = vmatpush.msrb.mxu2 %v10957_v12 }
 0x3e2   : > { %2548 = vmatpush.msrb.mxu2 %v10967_v14 }
 0x3e4   : > { %2549 = vmatpush.msrb.mxu2 %v10975_v16 }
 0x3e6   : > { %2550 = vmatpush.msrb.mxu2 %v10983_v18 }
 0x44c   : > { %v2267_v41 = vpop.f32.mrf.mxu0 }
 0x44d   : > { %9061 = vmatmul.msk.f32.vlgmr.msra.gmra.mxu1 %vm2220_vm4, %v2267_v41 }
 0x44e   : > { %2512 = vmatpush.msra.mxu1 %v10922_v63 }
 0x450   : > { %2513 = vmatpush.msra.mxu1 %v10928_v3 }
 0x452   : > { %v2213_v42 = vpop.f32.mrf.mxu2  ;;  %2514 = vmatpush.msra.mxu1 %v10940_v7 }
 0x453   : > { %9054 = vmatmul.msk.f32.vlgmr.msrb.gmra.mxu3 %vm2220_vm4, %v2213_v42 }
 0x454   : > { %2515 = vmatpush.msra.mxu1 %v10948_v9 }
 0x456   : > { %2516 = vmatpush.msra.mxu1 %v10954_v11 }
 0x458   : > { %2517 = vmatpush.msra.mxu1 %v10964_v13 }
 0x45a   : > { %v2321_v43 = vpop.f32.mrf.mxu2  ;;  %2518 = vmatpush.msra.mxu1 %v10972_v15 }
 0x45b   : > { %9068 = vmatmul.msk.f32.vlgmr.msra.gmra.mxu3 %vm2220_vm4, %v2321_v43  ;;  %v11008_v43 = vld [vmem:[%s13679_s10] sm:$0xff] }
 0x45c   : > { %2519 = vmatpush.msra.mxu1 %v10980_v17 }
 0x4ca   : > { %v2295_v50 = vpop.f32.mrf.mxu1 }
 0x4d6   : > { %v2241_v48 = vpop.f32.mrf.mxu3 }
 0x4d7   : > { %v2244_v49 = vadd.f32 %v10335_v47, %v2241_v48  ;;  %v9107_v47 = vld [vmem:[%s13677_s2 + $0x50] sm:$0xff]  ;;  %v2637_v48 = vld [vmem:[%s13677_s2 + $0x8] sm:$0xff] }
 0x4d9   : > { %v2298_v51 = vadd.f32 %v2295_v50, %v2244_v49  ;;  %v9106_v49 = vld [vmem:[%s13677_s2 + $0x48] sm:$0xff]  ;;  %v2636_v50 = vld [vmem:[%s13677_s2] sm:$0xff] }
 0x4de   : > { %v2349_v52 = vpop.f32.mrf.mxu3 }
 0x4df   : > { %v2352_v53 = vadd.f32 %v2349_v52, %v2298_v51  ;;  %v9105_v51 = vld [vmem:[%s13677_s2 + $0x40] sm:$0xff]  ;;  %v11027_v52 = vld [vmem:[%s13680_s11 + $0x78] sm:$0xff] }
 0x4e1   : > { %v2353_v54 = vmax.f32 %v2352_v53, 0.0  ;;  %v11030_v53 = vld [vmem:[%s13680_s11 + $0xf8] sm:$0xff] }
 0x4e3   : > { %9069 = vmatpush.msk.msra.mxu0 %vm2363_vm5, %v2353_v54  ;;  %9074 = vmatmul.msk.f32.vlgmr.msra.gmra.mxu2 %vm1654_vm0, %v2353_v54 }
 0x4e4   : > { %9076 = vmatpush.msk.msrb.mxu3 %vm2363_vm5, %v2353_v54  ;;  %9070 = vmatmul.msk.f32.vlgmr.msra.gmra.mxu0 %vm2359_vm6, %v10906_v55  ;;  %v11033_v54 = vld [vmem:[%s13680_s11 + $0x70] sm:$0xff] }
 0x4e5   : > { %9077 = vmatmul.msk.f32.vlgmr.msrb.gmra.mxu3 %vm2359_vm6, %v10909_v56  ;;  %2484 = vmatpush.msrb.mxu0 %v9079_v61  ;;  %v11041_v61 = vld [vmem:[%s13680_s11 + $0x68] sm:$0xff] }
 0x4e7   : > { %2485 = vmatpush.msrb.mxu0 %v9078_v62  ;;  %v11044_v62 = vld [vmem:[%s13680_s11 + $0xe8] sm:$0xff] }
 0x561   : > { %v2384_v5 = vpop.f32.mrf.mxu0 }
 0x562   : > { %9071 = vmatmul.msk.f32.vlgmr.msrb.gmra.mxu1 %vm1654_vm0, %v2384_v5  ;;  %v11049_v5 = vld [vmem:[%s13680_s11 + $0x60] sm:$0xff] }
 0x563   : > { %2684 = vmatpush.msrb.mxu1 %v9101_v27  ;;  %v11089_v27 = vld [vmem:[%s13680_s11 + $0x38] sm:$0xff] }
 0x564   : > { %13685 = vst [vmem:[#allocation45_spill] sm:$0xff] %v11089_v27 }
 0x565   : > { %2685 = vmatpush.msrb.mxu1 %v9100_v36  ;;  %v11100_v36 = vld [vmem:[%s13680_s11 + $0xb0] sm:$0xff] }
 0x566   : > { %v2435_v22 = vpop.f32.mrf.mxu2 }
 0x567   : > { %2686 = vmatpush.msrb.mxu1 %v9099_v37 }
 0x568   : > { %v2461_v6 = vpop.f32.mrf.mxu3 }
 0x569   : > { %9080 = vmatmul.msk.f32.vlgmr.msrb.gmra.mxu0 %vm1654_vm0, %v2461_v6  ;;  %2687 = vmatpush.msrb.mxu1 %v9098_v38  ;;  %v11052_v6 = vld [vmem:[%s13680_s11 + $0xe0] sm:$0xff] }
 0x5df   : > { %v2409_v20 = vpop.f32.mrf.mxu1 }
 0x5e0   : > { %v2412_v21 = vadd.f32 %v10336_v19, %v2409_v20  ;;  %v11057_v19 = vld [vmem:[%s13680_s11 + $0x58] sm:$0xff] }
 0x5e1   : > { %13681 = vst [vmem:[#allocation41_spill] sm:$0xff] %v11057_v19  ;;  %v11060_v20 = vld [vmem:[%s13680_s11 + $0xd8] sm:$0xff] }
 0x5e2   : > { %v2438_v23 = vadd.f32 %v2435_v22, %v2412_v21  ;;  %v11065_v21 = vld [vmem:[%s13680_s11 + $0x50] sm:$0xff] }
 0x5e3   : > { %13682 = vst [vmem:[#allocation42_spill] sm:$0xff] %v11065_v21  ;;  %v11068_v22 = vld [vmem:[%s13680_s11 + $0xd0] sm:$0xff] }
 0x5e6   : > { %v2487_v24 = vpop.f32.mrf.mxu0 }
 0x5e7   : > { %v2490_v25 = vadd.f32 %v2487_v24, %v2438_v23  ;;  %v11073_v23 = vld [vmem:[%s13680_s11 + $0x48] sm:$0xff] }
 0x5e8   : > { %13683 = vst [vmem:[#allocation43_spill] sm:$0xff] %v11073_v23  ;;  %v11076_v24 = vld [vmem:[%s13680_s11 + $0xc8] sm:$0xff] }
 0x5e9   : > { %v2491_v26 = vmax.f32 %v2490_v25, 0.0  ;;  %v11081_v25 = vld [vmem:[%s13680_s11 + $0x40] sm:$0xff] }
 0x5ea   : > { %13684 = vst [vmem:[#allocation44_spill] sm:$0xff] %v11081_v25 }
 0x5eb   : > { %9081 = vmatmul.msk.f32.vlgmr.msra.gmra.mxu1 %vm2045_vm2, %v2491_v26  ;;  %9091 = vmatmul.msk.f32.vlgmr.msrb.gmra.mxu2 %vm2045_vm2, %v2491_v26  ;;  %v11084_v26 = vld [vmem:[%s13680_s11 + $0xc0] sm:$0xff] }
 0x5ec   : > { %2806 = vmatpush.msra.mxu1 %v11030_v53 }
 0x5ee   : > { %2807 = vmatpush.msra.mxu1 %v11038_v58 }
 0x5f0   : > { %2808 = vmatpush.msra.mxu1 %v11044_v62 }
 0x5f2   : > { %2809 = vmatpush.msra.mxu1 %v11052_v6 }
 0x5f4   : > { %2810 = vmatpush.msra.mxu1 %v11060_v20 }
 0x5f6   : > { %2811 = vmatpush.msra.mxu1 %v11068_v22 }
 0x5f8   : > { %2812 = vmatpush.msra.mxu1 %v11076_v24 }
 0x5fa   : > { %2813 = vmatpush.msra.mxu1 %v11084_v26 }
 0x668   : > { %v2521_v33 = vpop.f32.mrf.mxu1 }
 0x669   : > { %9094 = vmatpush.msk.msra.mxu0 %vm2363_vm5, %v2521_v33  ;;  %v11092_v33 = vld [vmem:[%s13680_s11 + $0xb8] sm:$0xff] }
 0x66a   : > { %9095 = vmatmul.msk.f32.vlgmr.msra.gmra.mxu0 %vm2359_vm6, %v10992_v32  ;;  %2814 = vmatpush.msra.mxu1 %v11092_v33 }
 0x66b   : > { %2655 = vmatpush.msrb.mxu0 %v2639_v45  ;;  %v11123_v45 = vld [vmem:[%s13680_s11 + $0x18] sm:$0xff] }
 0x66c   : > { %2815 = vmatpush.msra.mxu1 %v11100_v36  ;;  %13689 = vst [vmem:[#allocation49_spill] sm:$0xff] %v11123_v45 }
 0x66e   : > { %v2552_v35 = vpop.f32.mrf.mxu2 }
 0x66f   : > { %9092 = vmatpush.msk.msra.mxu3 %vm2363_vm5, %v2552_v35  ;;  %v11097_v35 = vld [vmem:[%s13680_s11 + $0x30] sm:$0xff] }
 0x670   : > { %9093 = vmatmul.msk.f32.vlgmr.msra.gmra.mxu3 %vm2359_vm6, %v10998_v34  ;;  %13686 = vst [vmem:[#allocation46_spill] sm:$0xff] %v11097_v35 }
 0x6e7   : > { %v2604_v39 = vpop.f32.mrf.mxu0 }
 0x6f3   : > { %v2578_v40 = vpop.f32.mrf.mxu3 }
 0x6f4   : > { %v2605_v41 = vadd.f32 %v2604_v39, %v2578_v40  ;;  %v11109_v39 = vld [vmem:[%s13680_s11 + $0x28] sm:$0xff] }
 0x6f5   : > { %13687 = vst [vmem:[#allocation47_spill] sm:$0xff] %v11109_v39  ;;  %v11112_v40 = vld [vmem:[%s13680_s11 + $0xa8] sm:$0xff] }
 0x6f6   : > { %v2607_v42 = vadd.f32 %v2605_v41, %v10869_v28  ;;  %v2638_v28 = vld [vmem:[%s13677_s2 + $0x10] sm:$0xff]  ;;  %2816 = vmatpush.msra.mxu1 %v11112_v40  ;;  %v11117_v41 = vld [vmem:[%s13680_s11 + $0x20] sm:$0xff]  ;;  %s13728_s2 = sld [smem:[#allocation21_spill]] }
 0x6f7   : > { %2656 = vmatpush.msrb.mxu0 %v2638_v28  ;;  %13688 = vst [vmem:[#allocation48_spill] sm:$0xff] %v11117_v41  ;;  %v11133_v28 = vld [vmem:[%s13680_s11 + $0x10] sm:$0xff] }
 0x6f8   : > { %2631 = vmatpush.msrb.mxu3 %v2607_v42  ;;  %9102 = vmatmul.msk.f32.vlgmr.msrb.gmra.mxu1 %vm2220_vm4, %v2607_v42  ;;  %13691 = vst [vmem:[#allocation50_spill] sm:$0xff] %v11133_v28 }
 0x6f9   : > { %2713 = vmatpush.msra.mxu2 %v2607_v42  ;;  %9096 = vmatmul.msk.f32.vlgmr.msrb.gmra.mxu3 %vm2192_vm3, %v11008_v43  ;;  %v11120_v42 = vld [vmem:[%s13680_s11 + $0xa0] sm:$0xff] }
 0x6fa   : > { %9104 = vmatmul.msk.f32.vlgmr.msra.gmra.mxu2 %vm2192_vm3, %v11011_v44  ;;  %2738 = vmatpush.msra.mxu3 %v9108_v46  ;;  %v11126_v46 = vld [vmem:[%s13680_s11 + $0x98] sm:$0xff] }
 0x6fb   : > { %2657 = vmatpush.msrb.mxu0 %v2637_v48  ;;  %2817 = vmatpush.msra.mxu1 %v11120_v42  ;;  %v11141_v48 = vld [vmem:[%s13680_s11 + $0x8] sm:$0xff] }
 0x6fc   : > { %2739 = vmatpush.msra.mxu3 %v9107_v47  ;;  %v11136_v47 = vld [vmem:[%s13680_s11 + $0x90] sm:$0xff]  ;;  %13692 = vst [vmem:[#allocation51_spill] sm:$0xff] %v11141_v48 }
 0x6fd   : > { %2658 = vmatpush.msrb.mxu0 %v2636_v50  ;;  %2818 = vmatpush.msra.mxu1 %v11126_v46  ;;  %v11149_v50 = vld [vmem:[%s13680_s11] sm:$0xff] }
 0x6fe   : > { %2740 = vmatpush.msra.mxu3 %v9106_v49  ;;  %v11144_v49 = vld [vmem:[%s13680_s11 + $0x88] sm:$0xff]  ;;  %13694 = vst [vmem:[#allocation52_spill] sm:$0xff] %v11149_v50 }
 0x6ff   : > { %2766 = vmatpush.msra.mxu0 %v11027_v52  ;;  %2819 = vmatpush.msra.mxu1 %v11136_v47 }
 0x700   : > { %2741 = vmatpush.msra.mxu3 %v9105_v51  ;;  %v11152_v51 = vld [vmem:[%s13680_s11 + $0x80] sm:$0xff] }
 0x701   : > { %2767 = vmatpush.msra.mxu0 %v11033_v54  ;;  %2820 = vmatpush.msra.mxu1 %v11144_v49 }
 0x703   : > { %2768 = vmatpush.msra.mxu0 %v11041_v61  ;;  %2821 = vmatpush.msra.mxu1 %v11152_v51 }
 0x705   : > { %2769 = vmatpush.msra.mxu0 %v11049_v5 }
 0x707   : > { %2770 = vmatpush.msra.mxu0 %v11057_v19  ;;  %v9140_v19 = vld [vmem:[%s13695_s18 + $0x68] sm:$0xff] }
 0x709   : > { %2771 = vmatpush.msra.mxu0 %v11065_v21 }
 0x70b   : > { %2772 = vmatpush.msra.mxu0 %v11073_v23 }
 0x70d   : > { %2773 = vmatpush.msra.mxu0 %v11081_v25 }
 0x70f   : > { %2774 = vmatpush.msra.mxu0 %v11089_v27  ;;  %v11158_v27 = vld [vmem:[%s13693_s16 + $0x10] sm:$0xff] }
 0x710   : > { %13696 = vst [vmem:[#allocation53_spill] sm:$0xff] %v11158_v27 }
 0x711   : > { %2775 = vmatpush.msra.mxu0 %v11097_v35 }
 0x713   : > { %2776 = vmatpush.msra.mxu0 %v11109_v39 }
 0x715   : > { %2777 = vmatpush.msra.mxu0 %v11117_v41 }
 0x717   : > { %2778 = vmatpush.msra.mxu0 %v11123_v45 }
 0x719   : > { %2779 = vmatpush.msra.mxu0 %v11133_v28 }
 0x71b   : > { %2780 = vmatpush.msra.mxu0 %v11141_v48 }
 0x71d   : > { %2781 = vmatpush.msra.mxu0 %v11149_v50  ;;  %v11161_v50 = vld [vmem:[%s13693_s16] sm:$0xff] }
 0x71e   : > { %13697 = vst [vmem:[#allocation54_spill] sm:$0xff] %v11161_v50 }
 0x775   : > { %v2689_v45 = vpop.f32.mrf.mxu1 }
 0x77c   : > { %v2633_v37 = vpop.f32.mrf.mxu3 }
 0x77d   : > { %v2715_v38 = vpop.f32.mrf.mxu2  ;;  %9097 = vmatmul.msk.f32.vlgmr.msrb.gmra.mxu0 %vm2220_vm4, %v2633_v37  ;;  %v10337_v37 = vld [vmem:[%s13690_s15] ss:$0 sm:$0xff]  ;;  %s13703_s15 = sld [smem:[#allocation14_spill]] }
 0x77e   : > { %9109 = vmatmul.msk.f32.vlgmr.msra.gmra.mxu3 %vm2220_vm4, %v2715_v38 }
 0x7fa   : > { %v2660_v38 = vpop.f32.mrf.mxu0 }
 0x7fb   : > { %v2663_v28 = vadd.f32 %v10337_v37, %v2660_v38  ;;  %v2912_v38 = vld [vmem:[%s13695_s18 + $0x10] sm:$0xff] }
 0x7fd   : > { %v2692_v41 = vadd.f32 %v2689_v45, %v2663_v28  ;;  %v2914_v45 = vld [vmem:[%s13695_s18 + $0x20] sm:$0xff]  ;;  %v2913_v28 = vld [vmem:[%s13695_s18 + $0x18] sm:$0xff] }
 0x801   : > { %v2743_v48 = vpop.f32.mrf.mxu3 }
 0x802   : > { %v2746_v39 = vadd.f32 %v2743_v48, %v2692_v41  ;;  %v2915_v41 = vld [vmem:[%s13695_s18 + $0x28] sm:$0xff] }
 0x804   : > { %v2747_v35 = vmax.f32 %v2746_v39, 0.0  ;;  %v11168_v39 = vld [vmem:[%s13693_s16 + $0x18] sm:$0xff] }
 0x805   : > { %13698 = vst [vmem:[#allocation55_spill] sm:$0xff] %v11168_v39 }
 0x806   : > { %2782 = vmatmul.f32.vlgmr.msra.gmra.mxu0 %v2747_v35  ;;  %2822 = vmatmul.f32.vlgmr.msra.gmra.mxu1 %v2747_v35  ;;  %v11171_v35 = vld [vmem:[%s13693_s16 + $0x8] sm:$0xff] }
 0x807   : > { %13699 = vst [vmem:[#allocation56_spill] sm:$0xff] %v11171_v35 }
 0x883   : > { %v2783_v25 = vpop.f32.mrf.mxu0  ;;  %v2823_v23 = vpop.f32.mrf.mxu1 }
 0x884   : > { %2847 = vmatpush.msrb.mxu2 %v2823_v23  ;;  %2876 = vmatpush.msrb.mxu3 %v2783_v25  ;;  %v2917_v23 = vld [vmem:[%s13695_s18 + $0x38] sm:$0xff]  ;;  %v2916_v25 = vld [vmem:[%s13695_s18 + $0x30] sm:$0xff] }
 0x885   : > { %9128 = vmatmul.msk.f32.vlgmr.msrb.gmra.mxu2 %vm2192_vm3, %v11158_v27  ;;  %9130 = vmatmul.msk.f32.vlgmr.msrb.gmra.mxu3 %vm2192_vm3, %v11161_v50  ;;  %v9142_v50 = vld [vmem:[%s13695_s18 + $0x78] sm:$0xff]  ;;  %v9141_v27 = vld [vmem:[%s13695_s18 + $0x70] sm:$0xff] }
 0x886   : > { %2929 = vmatpush.msra.mxu3 %v2917_v23 }
 0x888   : > { %2930 = vmatpush.msra.mxu3 %v2916_v25 }
 0x88a   : > { %2931 = vmatpush.msra.mxu3 %v2915_v41 }
 0x88c   : > { %2932 = vmatpush.msra.mxu3 %v2914_v45 }
 0x88d   : > { %9129 = vmatmul.msk.f32.gmra.mxu2 %vm2192_vm3, %v11168_v39  ;;  %9131 = vmatmul.msk.f32.gmra.mxu3 %vm2192_vm3, %v11171_v35  ;;  %v2911_v39 = vld [vmem:[%s13695_s18 + $0x8] sm:$0xff]  ;;  %v2910_v35 = vld [vmem:[%s13695_s18] sm:$0xff] }
 0x88e   : > { %2933 = vmatpush.msra.mxu3 %v2913_v28  ;;  %v9147_v28 = vld [vmem:[%s13695_s18 + $0x90] sm:$0xff] }
 0x890   : > { %2934 = vmatpush.msra.mxu3 %v2912_v38 }
 0x892   : > { %2935 = vmatpush.msra.mxu3 %v2911_v39 }
 0x894   : > { %2936 = vmatpush.msra.mxu3 %v2910_v35  ;;  %v9148_v35 = vld [vmem:[%s13695_s18 + $0x98] sm:$0xff] }
 0x896   : > { %2982 = vmatpush.msrb.mxu3 %v9142_v50  ;;  %v9149_v50 = vld [vmem:[%s13695_s18 + $0xa0] sm:$0xff] }
 0x898   : > { %2983 = vmatpush.msrb.mxu3 %v9141_v27  ;;  %v9136_v27 = vld [vmem:[%s13695_s18 + $0x48] sm:$0xff] }
 0x89a   : > { %2984 = vmatpush.msrb.mxu3 %v9140_v19  ;;  %v9152_v19 = vld [vmem:[%s13695_s18 + $0xb8] sm:$0xff] }
 0x89b   : > { %3035 = vmatpush.msrb.mxu1 %v9152_v19  ;;  %v3073_v19 = vld [vmem:[%s13700_s0] sm:$0xff] }
 0x908   : > { %v2849_v48 = vpop.f32.mrf.mxu2  ;;  %v2878_v37 = vpop.f32.mrf.mxu3 }
 0x909   : > { %v2879_v25 = vadd.f32 %v2878_v37, %v2849_v48  ;;  %v9146_v48 = vld [vmem:[%s13695_s18 + $0x88] sm:$0xff]  ;;  %v9145_v37 = vld [vmem:[%s13695_s18 + $0x80] sm:$0xff] }
 0x90b   : > { %v11192_v39 = vadd.f32 %v2879_v25, %v10823_v59  ;;  %v9138_v59 = vld [vmem:[%s13695_s18 + $0x58] sm:$0xff] }
 0x910   : > { %v2852_v23 = vpop.f32.mrf.mxu2  ;;  %v2881_v21 = vpop.f32.mrf.mxu3 }
 0x911   : > { %v2882_v41 = vadd.f32 %v2881_v21, %v2852_v23  ;;  %v9151_v21 = vld [vmem:[%s13695_s18 + $0xb0] sm:$0xff] }
 0x912   : > { %3036 = vmatpush.msrb.mxu1 %v9151_v21  ;;  %v10338_v21 = vld [vmem:[%s13701_s26] ss:$0 sm:$0xff]  ;;  %s13704_s26 = sld [smem:[#allocation16_spill]] }
 0x913   : > { %v11189_v45 = vadd.f32 %v2882_v41, %v10820_v57  ;;  %v9139_v57 = vld [vmem:[%s13695_s18 + $0x60] sm:$0xff]  ;;  %v3076_v41 = vld [vmem:[%s13700_s0 + $0x18] sm:$0xff] }
 0x914   : > { %2985 = vmatpush.msrb.mxu3 %v9139_v57  ;;  %v3075_v57 = vld [vmem:[%s13700_s0 + $0x10] sm:$0xff] }
 0x915   : > { %2904 = vmatpush.msra.mxu2 %v11189_v45  ;;  %3009 = vmatpush.msrb.mxu0 %v11189_v45 }
 0x916   : > { %2986 = vmatpush.msrb.mxu3 %v9138_v59  ;;  %v3074_v59 = vld [vmem:[%s13700_s0 + $0x8] sm:$0xff] }
 0x917   : > { %2905 = vmatpush.msra.mxu2 %v11192_v39  ;;  %3010 = vmatpush.msrb.mxu0 %v11192_v39 }
 0x918   : > { %9132 = vmatmul.msk.f32.vlgmr.msra.gmra.mxu2 %vm1654_vm0, %v10827_v60  ;;  %9144 = vmatmul.msk.f32.vlgmr.msrb.gmra.mxu0 %vm1654_vm0, %v10845_v1  ;;  %v9137_v60 = vld [vmem:[%s13695_s18 + $0x50] sm:$0xff]  ;;  %v9150_v1 = vld [vmem:[%s13695_s18 + $0xa8] sm:$0xff] }
 0x919   : > { %2956 = vmatpush.msrb.mxu2 %v11189_v45  ;;  %2987 = vmatpush.msrb.mxu3 %v9137_v60 }
 0x91a   : > { %3037 = vmatpush.msrb.mxu1 %v9150_v1  ;;  %3092 = vmatpush.msra.mxu0 %v3076_v41  ;;  %v9165_v41 = vld [vmem:[%s13700_s0 + $0x50] sm:$0xff] }
 0x91b   : > { %2957 = vmatpush.msrb.mxu2 %v11192_v39  ;;  %2988 = vmatpush.msrb.mxu3 %v9136_v27 }
 0x91c   : > { %3038 = vmatpush.msrb.mxu1 %v9149_v50  ;;  %3093 = vmatpush.msra.mxu0 %v3075_v57  ;;  %v9164_v57 = vld [vmem:[%s13700_s0 + $0x48] sm:$0xff] }
 0x91e   : > { %3039 = vmatpush.msrb.mxu1 %v9148_v35  ;;  %3094 = vmatpush.msra.mxu0 %v3074_v59  ;;  %v9163_v59 = vld [vmem:[%s13700_s0 + $0x40] sm:$0xff] }
 0x920   : > { %9134 = vmatmul.msk.f32.vlgmr.msrb.gmra.mxu2 %vm1654_vm0, %v10839_v0  ;;  %v9135_v0 = vld [vmem:[%s13695_s18 + $0x40] sm:$0xff]  ;;  %3040 = vmatpush.msrb.mxu1 %v9147_v28 }
 0x921   : > { %2989 = vmatpush.msrb.mxu3 %v9135_v0  ;;  %3095 = vmatpush.msra.mxu0 %v3073_v19 }
 0x922   : > { %3041 = vmatpush.msrb.mxu1 %v9146_v48  ;;  %v9160_v48 = vld [vmem:[%s13700_s0 + $0x38] sm:$0xff] }
 0x924   : > { %3042 = vmatpush.msrb.mxu1 %v9145_v37  ;;  %v9159_v37 = vld [vmem:[%s13700_s0 + $0x30] sm:$0xff] }
 0x995   : > { %v3012_v38 = vpop.f32.mrf.mxu0 }
 0x996   : > { %9153 = vmatmul.msk.f32.vlgmr.msrb.gmra.mxu1 %vm2045_vm2, %v3012_v38  ;;  %v9158_v38 = vld [vmem:[%s13700_s0 + $0x28] sm:$0xff] }
 0x99b   : > { %v2907_v23 = vpop.f32.mrf.mxu2 }
 0x99c   : > { %9133 = vmatmul.msk.f32.vlgmr.msra.gmra.mxu3 %vm2045_vm2, %v2907_v23  ;;  %v9157_v23 = vld [vmem:[%s13700_s0 + $0x20] sm:$0xff] }
 0x99d   : > { %3141 = vmatpush.msra.mxu3 %v9160_v48 }
 0x99f   : > { %3142 = vmatpush.msra.mxu3 %v9159_v37 }
 0x9a1   : > { %3143 = vmatpush.msra.mxu3 %v9158_v38 }
 0x9a3   : > { %v2959_v25 = vpop.f32.mrf.mxu2  ;;  %3144 = vmatpush.msra.mxu3 %v9157_v23 }
 0x9a4   : > { %9143 = vmatmul.msk.f32.vlgmr.msrb.gmra.mxu3 %vm2045_vm2, %v2959_v25 }
 0xa13   : > { %v3044_v0 = vpop.f32.mrf.mxu1 }
 0xa1f   : > { %v2938_v60 = vpop.f32.mrf.mxu3 }
 0xa20   : > { %v2941_v1 = vadd.f32 %v10338_v21, %v2938_v60  ;;  %v9172_v21 = vld [vmem:[%s13702_s1 + $0x18] sm:$0xff] }
 0xa27   : > { %v2991_v27 = vpop.f32.mrf.mxu3 }
 0xa28   : > { %v2994_v50 = vadd.f32 %v2991_v27, %v2941_v1  ;;  %v9171_v1 = vld [vmem:[%s13702_s1 + $0x10] sm:$0xff] }
 0xa2a   : > { %v3047_v35 = vadd.f32 %v3044_v0, %v2994_v50 }
 0xa2c   : > { %v11227_v28 = vmax.f32 %v3047_v35, 0.0 }
 0xa2e   : > { %3068 = vmatpush.msra.mxu2 %v11227_v28  ;;  %3165 = vmatpush.msrb.mxu0 %v11227_v28 }
 0xa2f   : > { %9154 = vmatmul.msk.f32.vlgmr.msra.gmra.mxu2 %vm2192_vm3, %v10872_v29 }
 0xa30   : > { %3116 = vmatpush.msrb.mxu2 %v11227_v28 }
 0xa37   : > { %9156 = vmatmul.msk.f32.vlgmr.msrb.gmra.mxu2 %vm2192_vm3, %v10875_v30  ;;  %v9166_v30 = vld [vmem:[%s13700_s0 + $0x58] sm:$0xff]  ;;  %s13718_s0 = sld [smem:[#allocation35_spill]] }
 0xa38   : > { %3190 = vmatpush.msra.mxu1 %v9166_v30 }
 0xa3a   : > { %3191 = vmatpush.msra.mxu1 %v9165_v41 }
 0xa3c   : > { %3192 = vmatpush.msra.mxu1 %v9164_v57 }
 0xa3e   : > { %3193 = vmatpush.msra.mxu1 %v9163_v59 }
 0xab2   : > { %v3070_v25 = vpop.f32.mrf.mxu2 }
 0xab3   : > { %9155 = vmatmul.msk.f32.vlgmr.msra.gmra.mxu0 %vm2220_vm4, %v3070_v25 }
 0xab4   : > { %3272 = vmatpush.msra.mxu0 %v9172_v21 }
 0xab6   : > { %3273 = vmatpush.msra.mxu0 %v9171_v1  ;;  %v9223_v1 = vld [vmem:[%s13718_s0 + $0xf8] sm:$0xff] }
 0xaba   : > { %v3118_v29 = vpop.f32.mrf.mxu2 }
 0xabb   : > { %9161 = vmatmul.msk.f32.vlgmr.msra.gmra.mxu3 %vm2220_vm4, %v3118_v29  ;;  %9162 = vmatmul.msk.f32.vlgmr.msrb.gmra.mxu0 %vm2192_vm3, %v10885_v31  ;;  %v10339_v31 = vld [vmem:[%s13703_s15] ss:$0 sm:$0xff]  ;;  %s13705_s15 = sld [smem:[#allocation17_spill]] }
 0xabc   : > { %3358 = vmatpush.msrb.mxu0 %v10925_v2 }
 0xabe   : > { %3359 = vmatpush.msrb.mxu0 %v10933_v4 }
 0xac0   : > { %3360 = vmatpush.msrb.mxu0 %v10943_v8 }
 0xac1   : > { %v9189_v37 = vld [vmem:[%s13705_s15 + $0x30] sm:$0xff]  ;;  %v9188_v38 = vld [vmem:[%s13705_s15 + $0x28] sm:$0xff]  ;;  %v9187_v23 = vld [vmem:[%s13705_s15 + $0x20] sm:$0xff] }
 0xac2   : > { %3361 = vmatpush.msrb.mxu0 %v10951_v10  ;;  %v3228_v10 = vld [vmem:[%s13702_s1 + $0x8] sm:$0xff]  ;;  %v3444_v25 = vld [vmem:[%s13705_s15 + $0x18] sm:$0xff]  ;;  %v3443_v29 = vld [vmem:[%s13705_s15 + $0x10] sm:$0xff] }
 0xac3   : > { %3246 = vmatpush.msrb.mxu3 %v3228_v10  ;;  %v13721_v10 = vld [vmem:[#allocation54_spill] sm:$0xff] }
 0xac4   : > { %3362 = vmatpush.msrb.mxu0 %v10957_v12  ;;  %v3227_v12 = vld [vmem:[%s13702_s1] sm:$0xff] }
 0xac5   : > { %3247 = vmatpush.msrb.mxu3 %v3227_v12  ;;  %v13722_v12 = vld [vmem:[#allocation55_spill] sm:$0xff] }
 0xac6   : > { %3363 = vmatpush.msrb.mxu0 %v10967_v14  ;;  %v9177_v14 = vld [vmem:[%s13702_s1 + $0x28] sm:$0xff] }
 0xac7   : > { %3338 = vmatpush.msra.mxu3 %v10922_v63  ;;  %v10340_v63 = vld [vmem:[%s13704_s26] ss:$0 sm:$0xff]  ;;  %s13708_s26 = sld [smem:[#allocation18_spill]] }
 0xac8   : > { %3364 = vmatpush.msrb.mxu0 %v10975_v16  ;;  %v9176_v16 = vld [vmem:[%s13702_s1 + $0x20] sm:$0xff]  ;;  %s13727_s1 = sld [smem:[#allocation39_spill]] }
 0xac9   : > { %3339 = vmatpush.msra.mxu3 %v10928_v3 }
 0xaca   : > { %3365 = vmatpush.msrb.mxu0 %v10983_v18 }
 0xacb   : > { %3340 = vmatpush.msra.mxu3 %v10940_v7 }
 0xacd   : > { %3341 = vmatpush.msra.mxu3 %v10948_v9 }
 0xacf   : > { %3342 = vmatpush.msra.mxu3 %v10954_v11 }
 0xad1   : > { %3343 = vmatpush.msra.mxu3 %v10964_v13 }
 0xad3   : > { %3344 = vmatpush.msra.mxu3 %v10972_v15 }
 0xad5   : > { %3345 = vmatpush.msra.mxu3 %v10980_v17  ;;  %v9190_v17 = vld [vmem:[%s13705_s15 + $0x38] sm:$0xff] }
 0xb30   : > { %v3097_v19 = vpop.f32.mrf.mxu0 }
 0xb31   : > { %v3100_v2 = vadd.f32 %v10339_v31, %v3097_v19  ;;  %v9221_v31 = vld [vmem:[%s13718_s0 + $0xe8] sm:$0xff] }
 0xb38   : > { %v3167_v60 = vpop.f32.mrf.mxu0 }
 0xb39   : > { %9167 = vmatmul.msk.f32.vlgmr.msra.gmra.mxu1 %vm2220_vm4, %v3167_v60 }
 0xb3e   : > { %v3146_v27 = vpop.f32.mrf.mxu3 }
 0xb3f   : > { %v3149_v4 = vadd.f32 %v3146_v27, %v3100_v2  ;;  %v9219_v27 = vld [vmem:[%s13718_s0 + $0xd8] sm:$0xff]  ;;  %v9217_v2 = vld [vmem:[%s13718_s0 + $0xc8] sm:$0xff] }
 0xbb6   : > { %v3195_v0 = vpop.f32.mrf.mxu1 }
 0xbb7   : > { %v3198_v8 = vadd.f32 %v3195_v0, %v3149_v4  ;;  %v9215_v4 = vld [vmem:[%s13718_s0 + $0xb8] sm:$0xff] }
 0xbb9   : > { %v3199_v50 = vmax.f32 %v3198_v8, 0.0 }
 0xbbb   : > { %9168 = vmatpush.msk.msra.mxu2 %vm2363_vm5, %v3199_v50  ;;  %9173 = vmatmul.msk.f32.vlgmr.msra.gmra.mxu0 %vm1654_vm0, %v3199_v50 }
 0xbbc   : > { %9174 = vmatpush.msk.msrb.mxu1 %vm2363_vm5, %v3199_v50  ;;  %9169 = vmatmul.msk.f32.vlgmr.msra.gmra.mxu2 %vm2359_vm6, %v10906_v55  ;;  %v13720_v50 = vld [vmem:[#allocation53_spill] sm:$0xff] }
 0xbbd   : > { %9175 = vmatmul.msk.f32.vlgmr.msrb.gmra.mxu1 %vm2359_vm6, %v10909_v56  ;;  %3319 = vmatpush.msrb.mxu2 %v9177_v14  ;;  %v13723_v14 = vld [vmem:[#allocation56_spill] sm:$0xff] }
 0xbbf   : > { %3320 = vmatpush.msrb.mxu2 %v9176_v16  ;;  %v9213_v16 = vld [vmem:[%s13718_s0 + $0xa8] sm:$0xff] }
 0xc38   : > { %v3275_v9 = vpop.f32.mrf.mxu0 }
 0xc3a   : > { %v3296_v55 = vpop.f32.mrf.mxu1 }
 0xc3b   : > { %9178 = vmatmul.msk.f32.vlgmr.msrb.gmra.mxu2 %vm1654_vm0, %v3296_v55  ;;  %v9211_v55 = vld [vmem:[%s13718_s0 + $0x98] sm:$0xff] }
 0xc3f   : > { %v3224_v56 = vpop.f32.mrf.mxu2 }
 0xc40   : > { %9170 = vmatmul.msk.f32.vlgmr.msrb.gmra.mxu3 %vm1654_vm0, %v3224_v56  ;;  %v9209_v56 = vld [vmem:[%s13718_s0 + $0x88] sm:$0xff] }
 0xc41   : > { %3489 = vmatpush.msrb.mxu3 %v9190_v17  ;;  %v3669_v17 = vld [vmem:[%s13718_s0 + $0x20] sm:$0xff] }
 0xc43   : > { %3490 = vmatpush.msrb.mxu3 %v9189_v37  ;;  %v3665_v37 = vld [vmem:[%s13718_s0] sm:$0xff] }
 0xc45   : > { %3491 = vmatpush.msrb.mxu3 %v9188_v38  ;;  %v9222_v38 = vld [vmem:[%s13718_s0 + $0xf0] sm:$0xff] }
 0xc47   : > { %3492 = vmatpush.msrb.mxu3 %v9187_v23 }
 0xcbe   : > { %v3322_v18 = vpop.f32.mrf.mxu2 }
 0xcc3   : > { %v3249_v3 = vpop.f32.mrf.mxu3 }
 0xcc4   : > { %v3252_v7 = vadd.f32 %v10340_v63, %v3249_v3  ;;  %v3679_v63 = vld [vmem:[%s13718_s0 + $0x70] sm:$0xff]  ;;  %v3677_v3 = vld [vmem:[%s13718_s0 + $0x60] sm:$0xff] }
 0xcc6   : > { %v3278_v11 = vadd.f32 %v3275_v9, %v3252_v7  ;;  %v3675_v7 = vld [vmem:[%s13718_s0 + $0x50] sm:$0xff]  ;;  %v3673_v9 = vld [vmem:[%s13718_s0 + $0x40] sm:$0xff] }
 0xcc8   : > { %v3325_v13 = vadd.f32 %v3322_v18, %v3278_v11  ;;  %v3671_v18 = vld [vmem:[%s13718_s0 + $0x30] sm:$0xff] }
 0xcca   : > { %v3326_v15 = vmax.f32 %v3325_v13, 0.0 }
 0xccc   : > { %9179 = vmatmul.msk.f32.vlgmr.msra.gmra.mxu3 %vm2045_vm2, %v3326_v15  ;;  %9180 = vmatmul.msk.f32.vlgmr.msrb.gmra.mxu0 %vm2045_vm2, %v3326_v15 }
 0xccd   : > { %3568 = vmatpush.msra.mxu3 %v11030_v53 }
 0xccf   : > { %3569 = vmatpush.msra.mxu3 %v11038_v58 }
 0xcd1   : > { %3570 = vmatpush.msra.mxu3 %v11044_v62 }
 0xcd3   : > { %3571 = vmatpush.msra.mxu3 %v11052_v6  ;;  %v3441_v6 = vld [vmem:[%s13705_s15] sm:$0xff] }
 0xcd5   : > { %3572 = vmatpush.msra.mxu3 %v11060_v20  ;;  %v9196_v20 = vld [vmem:[%s13705_s15 + $0x58] sm:$0xff] }
 0xcd7   : > { %3573 = vmatpush.msra.mxu3 %v11068_v22  ;;  %v9195_v22 = vld [vmem:[%s13705_s15 + $0x50] sm:$0xff] }
 0xcd9   : > { %3574 = vmatpush.msra.mxu3 %v11076_v24  ;;  %v9194_v24 = vld [vmem:[%s13705_s15 + $0x48] sm:$0xff] }
 0xcdb   : > { %3575 = vmatpush.msra.mxu3 %v11084_v26  ;;  %v9193_v26 = vld [vmem:[%s13705_s15 + $0x40] sm:$0xff] }
 0xcdd   : > { %3576 = vmatpush.msra.mxu3 %v11092_v33  ;;  %v13709_v33 = vld [vmem:[#allocation43_spill] sm:$0xff] }
 0xcdf   : > { %3577 = vmatpush.msra.mxu3 %v11100_v36  ;;  %v13712_v36 = vld [vmem:[#allocation46_spill] sm:$0xff] }
 0xce1   : > { %3578 = vmatpush.msra.mxu3 %v11112_v40  ;;  %v13713_v40 = vld [vmem:[#allocation47_spill] sm:$0xff] }
 0xce3   : > { %3579 = vmatpush.msra.mxu3 %v11120_v42  ;;  %v13715_v42 = vld [vmem:[#allocation49_spill] sm:$0xff] }
 0xce5   : > { %3580 = vmatpush.msra.mxu3 %v11126_v46  ;;  %v13717_v46 = vld [vmem:[#allocation51_spill] sm:$0xff] }
 0xce7   : > { %3581 = vmatpush.msra.mxu3 %v11136_v47 }
 0xce9   : > { %3582 = vmatpush.msra.mxu3 %v11144_v49  ;;  %v13719_v49 = vld [vmem:[#allocation52_spill] sm:$0xff] }
 0xceb   : > { %3583 = vmatpush.msra.mxu3 %v11152_v51 }
 0xd49   : > { %v3367_v35 = vpop.f32.mrf.mxu0 }
 0xd4a   : > { %9181 = vmatpush.msk.msra.mxu1 %vm2363_vm5, %v3367_v35 }
 0xd4b   : > { %9182 = vmatmul.msk.f32.vlgmr.msra.gmra.mxu1 %vm2359_vm6, %v10998_v34  ;;  %v3442_v34 = vld [vmem:[%s13705_s15 + $0x8] sm:$0xff] }
 0xd4f   : > { %v3347_v48 = vpop.f32.mrf.mxu3 }
 0xd50   : > { %9183 = vmatpush.msk.msra.mxu2 %vm2363_vm5, %v3347_v48  ;;  %v3667_v48 = vld [vmem:[%s13718_s0 + $0x10] sm:$0xff] }
 0xd51   : > { %9184 = vmatmul.msk.f32.vlgmr.msra.gmra.mxu2 %vm2359_vm6, %v10992_v32 }
 0xd52   : > { %3460 = vmatpush.msrb.mxu2 %v3444_v25 }
 0xd54   : > { %3461 = vmatpush.msrb.mxu2 %v3443_v29  ;;  %v9220_v29 = vld [vmem:[%s13718_s0 + $0xe0] sm:$0xff] }
 0xd56   : > { %3462 = vmatpush.msrb.mxu2 %v3442_v34 }
 0xd58   : > { %3463 = vmatpush.msrb.mxu2 %v3441_v6  ;;  %v10351_v6 = vld [vmem:[%s10430_s9 + $0x20] sm:$0xff] }
 0xd5a   : > { %3548 = vmatpush.msra.mxu2 %v11027_v52  ;;  %v13710_v52 = vld [vmem:[#allocation44_spill] sm:$0xff] }
 0xd5c   : > { %3549 = vmatpush.msra.mxu2 %v11033_v54  ;;  %v13711_v54 = vld [vmem:[#allocation45_spill] sm:$0xff] }
 0xd5e   : > { %3550 = vmatpush.msra.mxu2 %v11041_v61  ;;  %v13714_v61 = vld [vmem:[#allocation48_spill] sm:$0xff] }
 0xd60   : > { %3551 = vmatpush.msra.mxu2 %v11049_v5  ;;  %v13716_v5 = vld [vmem:[#allocation50_spill] sm:$0xff] }
 0xdc8   : > { %v3390_v32 = vpop.f32.mrf.mxu1 }
 0xdd4   : > { %v3413_v53 = vpop.f32.mrf.mxu2 }
 0xdd5   : > { %v3414_v58 = vadd.f32 %v3413_v53, %v3390_v32  ;;  %v9218_v32 = vld [vmem:[%s13718_s0 + $0xd0] sm:$0xff]  ;;  %v3680_v53 = vld [vmem:[%s13718_s0 + $0x78] sm:$0xff] }
 0xdd7   : > { %v3416_v62 = vadd.f32 %v3414_v58, %v11227_v28  ;;  %v10341_v28 = vld [vmem:[%s13708_s26] ss:$0 sm:$0xff]  ;;  %s13724_s26 = sld [smem:[#allocation40_spill]] }
 0xdd8   : > { %v9216_v58 = vld [vmem:[%s13718_s0 + $0xc0] sm:$0xff] }
 0xdd9   : > { %3436 = vmatpush.msrb.mxu1 %v3416_v62  ;;  %9191 = vmatmul.msk.f32.vlgmr.msrb.gmra.mxu3 %vm2220_vm4, %v3416_v62 }
 0xdda   : > { %3513 = vmatpush.msra.mxu0 %v3416_v62  ;;  %9185 = vmatmul.msk.f32.vlgmr.msrb.gmra.mxu1 %vm2192_vm3, %v11008_v43  ;;  %v13706_v43 = vld [vmem:[#allocation41_spill] sm:$0xff]  ;;  %v3678_v62 = vld [vmem:[%s13718_s0 + $0x68] sm:$0xff] }
 0xddb   : > { %9192 = vmatmul.msk.f32.vlgmr.msra.gmra.mxu0 %vm2192_vm3, %v11011_v44  ;;  %3538 = vmatpush.msra.mxu1 %v9196_v20  ;;  %v13707_v44 = vld [vmem:[#allocation42_spill] sm:$0xff]  ;;  %v9214_v20 = vld [vmem:[%s13718_s0 + $0xb0] sm:$0xff] }
 0xddc   : > { %3552 = vmatpush.msra.mxu2 %v13706_v43  ;;  %v10352_v43 = vld [vmem:[%s10430_s9 + $0x8] sm:$0xff] }
 0xddd   : > { %3539 = vmatpush.msra.mxu1 %v9195_v22  ;;  %v3676_v22 = vld [vmem:[%s13718_s0 + $0x58] sm:$0xff] }
 0xdde   : > { %3553 = vmatpush.msra.mxu2 %v13707_v44  ;;  %v10353_v44 = vld [vmem:[%s10430_s9 + $0x28] sm:$0xff] }
 0xddf   : > { %3540 = vmatpush.msra.mxu1 %v9194_v24  ;;  %v3674_v24 = vld [vmem:[%s13718_s0 + $0x48] sm:$0xff] }
 0xde0   : > { %3554 = vmatpush.msra.mxu2 %v13709_v33  ;;  %v3670_v33 = vld [vmem:[%s13718_s0 + $0x28] sm:$0xff] }
 0xde1   : > { %3541 = vmatpush.msra.mxu1 %v9193_v26  ;;  %v3672_v26 = vld [vmem:[%s13718_s0 + $0x38] sm:$0xff] }
 0xde2   : > { %3555 = vmatpush.msra.mxu2 %v13710_v52  ;;  %v9212_v52 = vld [vmem:[%s13718_s0 + $0xa0] sm:$0xff] }
 0xde4   : > { %3556 = vmatpush.msra.mxu2 %v13711_v54  ;;  %v3668_v54 = vld [vmem:[%s13718_s0 + $0x18] sm:$0xff] }
 0xde6   : > { %3557 = vmatpush.msra.mxu2 %v13712_v36  ;;  %v9210_v36 = vld [vmem:[%s13718_s0 + $0x90] sm:$0xff] }
 0xde8   : > { %3558 = vmatpush.msra.mxu2 %v13713_v40  ;;  %v9244_v40 = vld [vmem:[%s13718_s0 + $0x170] sm:$0xff] }
 0xdea   : > { %3559 = vmatpush.msra.mxu2 %v13714_v61  ;;  %v3666_v61 = vld [vmem:[%s13718_s0 + $0x8] sm:$0xff] }
 0xdec   : > { %3560 = vmatpush.msra.mxu2 %v13715_v42  ;;  %v9208_v42 = vld [vmem:[%s13718_s0 + $0x80] sm:$0xff] }
 0xdee   : > { %3561 = vmatpush.msra.mxu2 %v13716_v5  ;;  %v9242_v5 = vld [vmem:[%s13718_s0 + $0x160] sm:$0xff] }
 0xdf0   : > { %3562 = vmatpush.msra.mxu2 %v13717_v46  ;;  %v9240_v46 = vld [vmem:[%s13718_s0 + $0x150] sm:$0xff] }
 0xdf2   : > { %3563 = vmatpush.msra.mxu2 %v13719_v49  ;;  %v9238_v49 = vld [vmem:[%s13718_s0 + $0x140] sm:$0xff] }
 0xe57   : > { %v3438_v47 = vpop.f32.mrf.mxu1 }
 0xe58   : > { %9186 = vmatmul.msk.f32.vlgmr.msrb.gmra.mxu2 %vm2220_vm4, %v3438_v47  ;;  %v3515_v51 = vpop.f32.mrf.mxu0  ;;  %v9245_v47 = vld [vmem:[%s13718_s0 + $0x178] sm:$0xff] }
 0xe59   : > { %9197 = vmatmul.msk.f32.vlgmr.msra.gmra.mxu1 %vm2220_vm4, %v3515_v51  ;;  %3791 = vmatpush.msrb.mxu2 %v9223_v1  ;;  %v9243_v51 = vld [vmem:[%s13718_s0 + $0x168] sm:$0xff]  ;;  %v9233_v1 = vld [vmem:[%s13718_s0 + $0x118] sm:$0xff] }
 0xe5b   : > { %3792 = vmatpush.msrb.mxu2 %v9221_v31  ;;  %v9231_v31 = vld [vmem:[%s13718_s0 + $0x108] sm:$0xff] }
 0xe5c   : > { %v3494_v57 = vpop.f32.mrf.mxu3 }
 0xe5d   : > { %3793 = vmatpush.msrb.mxu2 %v9219_v27  ;;  %v3925_v27 = vld [vmem:[%s13724_s26 + $0x78] sm:$0xff] }
 0xe5f   : > { %3794 = vmatpush.msrb.mxu2 %v9217_v2 }
 0xe61   : > { %3795 = vmatpush.msrb.mxu2 %v9215_v4  ;;  %v3924_v4 = vld [vmem:[%s13724_s26 + $0x70] sm:$0xff] }
 0xe63   : > { %3796 = vmatpush.msrb.mxu2 %v9213_v16  ;;  %v9269_v16 = vld [vmem:[%s13724_s26 + $0x128] sm:$0xff] }
 0xe65   : > { %3797 = vmatpush.msrb.mxu2 %v9211_v55 }
 0xe67   : > { %3798 = vmatpush.msrb.mxu2 %v9209_v56  ;;  %v3920_v56 = vld [vmem:[%s13724_s26 + $0x50] sm:$0xff] }
 0xed6   : > { %v3543_v59 = vpop.f32.mrf.mxu1 }
 0xedb   : > { %v3465_v30 = vpop.f32.mrf.mxu2 }
 0xedc   : > { %v3468_v41 = vadd.f32 %v10341_v28, %v3465_v30  ;;  %v9236_v28 = vld [vmem:[%s13718_s0 + $0x130] sm:$0xff]  ;;  %v9241_v30 = vld [vmem:[%s13718_s0 + $0x158] sm:$0xff] }
 0xede   : > { %v3497_v19 = vadd.f32 %v3494_v57, %v3468_v41  ;;  %v9234_v41 = vld [vmem:[%s13718_s0 + $0x120] sm:$0xff]  ;;  %v9239_v57 = vld [vmem:[%s13718_s0 + $0x148] sm:$0xff] }
 0xee0   : > { %v3546_v60 = vadd.f32 %v3543_v59, %v3497_v19  ;;  %v9232_v59 = vld [vmem:[%s13718_s0 + $0x110] sm:$0xff]  ;;  %v9237_v19 = vld [vmem:[%s13718_s0 + $0x138] sm:$0xff] }
 0xee2   : > { %v3547_v21 = vmax.f32 %v3546_v60, 0.0  ;;  %v9230_v60 = vld [vmem:[%s13718_s0 + $0x100] sm:$0xff] }
 0xee4   : > { %3564 = vmatmul.f32.vlgmr.msra.gmra.mxu2 %v3547_v21  ;;  %3584 = vmatmul.f32.vlgmr.msra.gmra.mxu3 %v3547_v21  ;;  %v9235_v21 = vld [vmem:[%s13718_s0 + $0x128] sm:$0xff]  ;;  %s13725_s0 = sld [smem:[#allocation36_spill]] }
 0xf67   : > { %v3565_v0 = vpop.f32.mrf.mxu2  ;;  %v3585_v8 = vpop.f32.mrf.mxu3 }
 0xf68   : > { %3603 = vmatpush.msrb.mxu0 %v3585_v8  ;;  %3626 = vmatpush.msrb.mxu1 %v3565_v0  ;;  %v3923_v0 = vld [vmem:[%s13724_s26 + $0x68] sm:$0xff]  ;;  %v9271_v8 = vld [vmem:[%s13724_s26 + $0x138] sm:$0xff] }
 0xf69   : > { %9198 = vmatmul.msk.f32.vlgmr.msrb.gmra.mxu0 %vm2192_vm3, %v13720_v50  ;;  %9200 = vmatmul.msk.f32.vlgmr.msrb.gmra.mxu1 %vm2192_vm3, %v13721_v10  ;;  %v9270_v50 = vld [vmem:[%s13724_s26 + $0x130] sm:$0xff]  ;;  %v3922_v10 = vld [vmem:[%s13724_s26 + $0x60] sm:$0xff] }
 0xf6a   : > { %3695 = vmatpush.msra.mxu1 %v3679_v63  ;;  %v9268_v63 = vld [vmem:[%s13724_s26 + $0x120] sm:$0xff] }
 0xf6c   : > { %3696 = vmatpush.msra.mxu1 %v3677_v3  ;;  %v3919_v3 = vld [vmem:[%s13724_s26 + $0x48] sm:$0xff] }
 0xf6e   : > { %3697 = vmatpush.msra.mxu1 %v3675_v7  ;;  %v9267_v7 = vld [vmem:[%s13724_s26 + $0x118] sm:$0xff] }
 0xf70   : > { %3698 = vmatpush.msra.mxu1 %v3673_v9  ;;  %v3918_v9 = vld [vmem:[%s13724_s26 + $0x40] sm:$0xff] }
 0xf71   : > { %9199 = vmatmul.msk.f32.gmra.mxu0 %vm2192_vm3, %v13722_v12  ;;  %9201 = vmatmul.msk.f32.gmra.mxu1 %vm2192_vm3, %v13723_v14  ;;  %v3921_v12 = vld [vmem:[%s13724_s26 + $0x58] sm:$0xff] }
 0xf72   : > { %3699 = vmatpush.msra.mxu1 %v3671_v18  ;;  %v3917_v18 = vld [vmem:[%s13724_s26 + $0x38] sm:$0xff] }
 0xf74   : > { %3700 = vmatpush.msra.mxu1 %v3669_v17  ;;  %v3914_v17 = vld [vmem:[%s13724_s26 + $0x20] sm:$0xff] }
 0xf76   : > { %3701 = vmatpush.msra.mxu1 %v3667_v48  ;;  %v3913_v48 = vld [vmem:[%s13724_s26 + $0x18] sm:$0xff] }
 0xf78   : > { %3702 = vmatpush.msra.mxu1 %v3665_v37  ;;  %v3912_v37 = vld [vmem:[%s13724_s26 + $0x10] sm:$0xff] }
 0xf7a   : > { %3768 = vmatpush.msrb.mxu1 %v9222_v38  ;;  %v3911_v38 = vld [vmem:[%s13724_s26 + $0x8] sm:$0xff] }
 0xf7c   : > { %3769 = vmatpush.msrb.mxu1 %v9220_v29  ;;  %v9265_v29 = vld [vmem:[%s13724_s26 + $0x108] sm:$0xff] }
 0xf7e   : > { %3770 = vmatpush.msrb.mxu1 %v9218_v32  ;;  %v9264_v32 = vld [vmem:[%s13724_s26 + $0x100] sm:$0xff] }
 0xf80   : > { %3771 = vmatpush.msrb.mxu1 %v9216_v58  ;;  %v3932_v58 = vld [vmem:[%s13724_s26 + $0xb0] sm:$0xff] }
 0xf82   : > { %3772 = vmatpush.msrb.mxu1 %v9214_v20  ;;  %v9262_v20 = vld [vmem:[%s13724_s26 + $0xf0] sm:$0xff] }
 0xf84   : > { %3773 = vmatpush.msrb.mxu1 %v9212_v52  ;;  %v9275_v52 = vld [vmem:[%s13724_s26 + $0x158] sm:$0xff] }
 0xf86   : > { %3774 = vmatpush.msrb.mxu1 %v9210_v36  ;;  %v9259_v36 = vld [vmem:[%s13724_s26 + $0xd8] sm:$0xff] }
 0xf88   : > { %3775 = vmatpush.msrb.mxu1 %v9208_v42  ;;  %v9258_v42 = vld [vmem:[%s13724_s26 + $0xd0] sm:$0xff] }
 0xfe6   : > { %v3605_v11 = vpop.f32.mrf.mxu0  ;;  %v3628_v13 = vpop.f32.mrf.mxu1 }
 0xfe7   : > { %v3629_v15 = vadd.f32 %v3628_v13, %v3605_v11  ;;  %v3916_v13 = vld [vmem:[%s13724_s26 + $0x30] sm:$0xff] }
 0xfe9   : > { %v11366_v35 = vadd.f32 %v3629_v15, %v11192_v39  ;;  %v3915_v15 = vld [vmem:[%s13724_s26 + $0x28] sm:$0xff] }
 0xfeb   : > { %9226 = vmatmul.msk.f32.vlgmr.msrb.gmra.mxu2 %vm2045_vm2, %v11366_v35 }
 0xfee   : > { %v3608_v23 = vpop.f32.mrf.mxu0  ;;  %v3631_v25 = vpop.f32.mrf.mxu1 }
 0xfef   : > { %v3632_v34 = vadd.f32 %v3631_v25, %v3608_v23  ;;  %v3910_v23 = vld [vmem:[%s13724_s26] sm:$0xff]  ;;  %v9266_v25 = vld [vmem:[%s13724_s26 + $0x110] sm:$0xff] }
 0xff1   : > { %v11375_v39 = vadd.f32 %v3632_v34, %v11189_v45  ;;  %v10350_v45 = vld [vmem:[%s10430_s9] sm:$0xff]  ;;  %v3933_v34 = vld [vmem:[%s13724_s26 + $0xb8] sm:$0xff] }
 0xff2   : > { %3971 = vmatpush.msra.mxu2 %v3933_v34 }
 0xff3   : > { %3656 = vmatpush.msra.mxu0 %v11375_v39  ;;  %9227 = vmatmul.msk.f32.gmra.mxu2 %vm2045_vm2, %v11375_v39 }
 0xff4   : > { %3824 = vmatpush.msrb.mxu3 %v11375_v39  ;;  %3972 = vmatpush.msra.mxu2 %v3932_v58 }
 0xff5   : > { %3657 = vmatpush.msra.mxu0 %v11366_v35 }
 0xff6   : > { %3825 = vmatpush.msrb.mxu3 %v11366_v35  ;;  %9202 = vmatmul.msk.f32.vlgmr.msra.gmra.mxu0 %vm1654_vm0, %v10350_v45  ;;  %v9278_v45 = vld [vmem:[%s13724_s26 + $0x170] sm:$0xff] }
 0xff7   : > { %9228 = vmatmul.msk.f32.vlgmr.msrb.gmra.mxu3 %vm1654_vm0, %v10351_v6  ;;  %3718 = vmatpush.msrb.mxu0 %v3680_v53  ;;  %v9279_v53 = vld [vmem:[%s13724_s26 + $0x178] sm:$0xff]  ;;  %v3931_v6 = vld [vmem:[%s13724_s26 + $0xa8] sm:$0xff] }
 0xff8   : > { %3864 = vmatpush.msra.mxu3 %v9244_v40  ;;  %3973 = vmatpush.msra.mxu2 %v3931_v6  ;;  %v9274_v40 = vld [vmem:[%s13724_s26 + $0x150] sm:$0xff] }
 0xff9   : > { %3719 = vmatpush.msrb.mxu0 %v3678_v62  ;;  %v9263_v62 = vld [vmem:[%s13724_s26 + $0xf8] sm:$0xff] }
 0xffa   : > { %3865 = vmatpush.msra.mxu3 %v9242_v5  ;;  %v9273_v5 = vld [vmem:[%s13724_s26 + $0x148] sm:$0xff] }
 0xffb   : > { %3720 = vmatpush.msrb.mxu0 %v3676_v22  ;;  %v9277_v22 = vld [vmem:[%s13724_s26 + $0x168] sm:$0xff] }
 0xffc   : > { %3866 = vmatpush.msra.mxu3 %v9240_v46  ;;  %v3926_v46 = vld [vmem:[%s13724_s26 + $0x80] sm:$0xff] }
 0xffd   : > { %3721 = vmatpush.msrb.mxu0 %v3674_v24  ;;  %v3930_v24 = vld [vmem:[%s13724_s26 + $0xa0] sm:$0xff] }
 0xffe   : > { %9203 = vmatmul.msk.f32.gmra.mxu0 %vm1654_vm0, %v10352_v43  ;;  %3867 = vmatpush.msra.mxu3 %v9238_v49  ;;  %v9276_v43 = vld [vmem:[%s13724_s26 + $0x160] sm:$0xff] }
 0xfff   : > { %9229 = vmatmul.msk.f32.gmra.mxu3 %vm1654_vm0, %v10353_v44  ;;  %3722 = vmatpush.msrb.mxu0 %v3672_v26  ;;  %v9261_v26 = vld [vmem:[%s13724_s26 + $0xe8] sm:$0xff]  ;;  %v3929_v44 = vld [vmem:[%s13724_s26 + $0x98] sm:$0xff]  ;;  %v9272_v49 = vld [vmem:[%s13724_s26 + $0x140] sm:$0xff] }
0x1000   : > { %3868 = vmatpush.msra.mxu3 %v9236_v28  ;;  %3974 = vmatpush.msra.mxu2 %v3930_v24 }
0x1001   : > { %3723 = vmatpush.msrb.mxu0 %v3670_v33  ;;  %v9260_v33 = vld [vmem:[%s13724_s26 + $0xe0] sm:$0xff] }
0x1002   : > { %3869 = vmatpush.msra.mxu3 %v9234_v41  ;;  %3975 = vmatpush.msra.mxu2 %v3929_v44  ;;  %v3636_v41 = vld [vmem:[%s13725_s0] sm:$0x3]  ;;  %s13726_s0 = sld [smem:[#allocation19_spill]] }
0x1003   : > { %3724 = vmatpush.msrb.mxu0 %v3668_v54  ;;  %v3928_v54 = vld [vmem:[%s13724_s26 + $0x90] sm:$0xff] }
0x1004   : > { %3870 = vmatpush.msra.mxu3 %v9232_v59  ;;  %3976 = vmatpush.msra.mxu2 %v3928_v54 }
0x1005   : > { %3725 = vmatpush.msrb.mxu0 %v3666_v61  ;;  %v3927_v61 = vld [vmem:[%s13724_s26 + $0x88] sm:$0xff] }
0x1006   : > { %3871 = vmatpush.msra.mxu3 %v9230_v60  ;;  %3977 = vmatpush.msra.mxu2 %v3927_v61  ;;  %v3638_v60 = vperm.slane %v3636_v41, 0 }
0x1007   : > { %3887 = vmatpush.msra.mxu0 %v9245_v47  ;;  %v9257_v47 = vld [vmem:[%s13724_s26 + $0xc8] sm:$0xff] }
0x1008   : > { %4016 = vmatpush.msrb.mxu3 %v9271_v8  ;;  %3978 = vmatpush.msra.mxu2 %v3926_v46  ;;  %v4178_v34 = vld [vmem:[%s13726_s0 + $0x8] sm:$0xff]  ;;  %v4177_v58 = vld [vmem:[%s13726_s0] sm:$0xff]  ;;  %v9308_v44 = vld [vmem:[%s13726_s0 + $0x98] sm:$0xff] }
0x1009   : > { %3888 = vmatpush.msra.mxu0 %v9243_v51  ;;  %v9256_v51 = vld [vmem:[%s13724_s26 + $0xc0] sm:$0xff] }
0x100a   : > { %4017 = vmatpush.msrb.mxu3 %v9270_v50  ;;  %v9252_v46 = vld [vmem:[%s13727_s1 + $0x20] sm:$0xff] }
0x100b   : > { %3889 = vmatpush.msra.mxu0 %v9241_v30 }
0x100c   : > { %4018 = vmatpush.msrb.mxu3 %v9269_v16 }
0x100d   : > { %3890 = vmatpush.msra.mxu0 %v9239_v57  ;;  %v3639_v57 = vperm.slane %v3636_v41, 1  ;;  %v3907_v41 = vld [vmem:[%s13727_s1 + $0x8] sm:$0xff] }
0x100e   : > { %4019 = vmatpush.msrb.mxu3 %v9268_v63 }
0x100f   : > { %3891 = vmatpush.msra.mxu0 %v9237_v19 }
0x1010   : > { %4020 = vmatpush.msrb.mxu3 %v9267_v7 }
0x1011   : > { %3892 = vmatpush.msra.mxu0 %v9235_v21 }
0x1012   : > { %4021 = vmatpush.msrb.mxu3 %v9266_v25  ;;  %v4179_v25 = vld [vmem:[%s13726_s0 + $0x10] sm:$0xff] }
0x1013   : > { %3893 = vmatpush.msra.mxu0 %v9233_v1 }
0x1014   : > { %4022 = vmatpush.msrb.mxu3 %v9265_v29 }
0x1015   : > { %3894 = vmatpush.msra.mxu0 %v9231_v31 }
0x1016   : > { %4023 = vmatpush.msrb.mxu3 %v9264_v32 }
0x1018   : > { %4024 = vmatpush.msrb.mxu3 %v9263_v62  ;;  %v9311_v62 = vld [vmem:[%s13726_s0 + $0xb0] sm:$0xff] }
0x101a   : > { %4025 = vmatpush.msrb.mxu3 %v9262_v20  ;;  %v9310_v20 = vld [vmem:[%s13726_s0 + $0xa8] sm:$0xff] }
0x101c   : > { %4026 = vmatpush.msrb.mxu3 %v9261_v26  ;;  %v9309_v26 = vld [vmem:[%s13726_s0 + $0xa0] sm:$0xff] }
0x101e   : > { %4027 = vmatpush.msrb.mxu3 %v9260_v33 }
0x1020   : > { %4028 = vmatpush.msrb.mxu3 %v9259_v36 }
0x1022   : > { %4029 = vmatpush.msrb.mxu3 %v9258_v42  ;;  %v9307_v42 = vld [vmem:[%s13726_s0 + $0x90] sm:$0xff] }
0x1024   : > { %4030 = vmatpush.msrb.mxu3 %v9257_v47  ;;  %v9301_v47 = vld [vmem:[%s13726_s0 + $0x78] sm:$0xff] }
0x1026   : > { %4031 = vmatpush.msrb.mxu3 %v9256_v51  ;;  %v9300_v51 = vld [vmem:[%s13726_s0 + $0x70] sm:$0xff] }
0x106e   : > { %v3800_v1 = vpop.f32.mrf.mxu2 }
0x1073   : > { %v3659_v2 = vpop.f32.mrf.mxu0 }
0x1074   : > { %9204 = vmatmul.msk.f32.vlgmr.msra.gmra.mxu1 %vm2045_vm2, %v3659_v2  ;;  %9206 = vmatmul.msk.f32.vlgmr.msrb.gmra.mxu0 %vm2045_vm2, %v3659_v2 }
0x1075   : > { %3940 = vmatpush.msra.mxu1 %v3925_v27  ;;  %4047 = vmatpush.msrb.mxu0 %v9279_v53 }
0x1077   : > { %3941 = vmatpush.msra.mxu1 %v3924_v4  ;;  %4048 = vmatpush.msrb.mxu0 %v9278_v45  ;;  %v9312_v45 = vld [vmem:[%s13726_s0 + $0xb8] sm:$0xff] }
0x1079   : > { %3942 = vmatpush.msra.mxu1 %v3923_v0  ;;  %4049 = vmatpush.msrb.mxu0 %v9277_v22 }
0x107a   : > { %v3827_v14 = vpop.f32.mrf.mxu3 }
0x107b   : > { %3943 = vmatpush.msra.mxu1 %v3922_v10  ;;  %v3662_v55 = vpop.f32.mrf.mxu0  ;;  %9246 = vmatmul.msk.f32.vlgmr.msra.gmra.mxu3 %vm2045_vm2, %v3827_v14 }
0x107c   : > { %9205 = vmatmul.msk.f32.gmra.mxu1 %vm2045_vm2, %v3662_v55  ;;  %9207 = vmatmul.msk.f32.gmra.mxu0 %vm2045_vm2, %v3662_v55 }
0x107d   : > { %3944 = vmatpush.msra.mxu1 %v3921_v12  ;;  %4050 = vmatpush.msrb.mxu0 %v9276_v43 }
0x107f   : > { %3945 = vmatpush.msra.mxu1 %v3920_v56  ;;  %4051 = vmatpush.msrb.mxu0 %v9275_v52 }
0x1081   : > { %3946 = vmatpush.msra.mxu1 %v3919_v3  ;;  %4052 = vmatpush.msrb.mxu0 %v9274_v40  ;;  %v3906_v40 = vld [vmem:[%s13727_s1] sm:$0xff] }
0x1082   : > { %v3830_v11 = vpop.f32.mrf.mxu3 }
0x1083   : > { %3947 = vmatpush.msra.mxu1 %v3918_v9  ;;  %9247 = vmatmul.msk.f32.gmra.mxu3 %vm2045_vm2, %v3830_v11 }
0x1084   : > { %9224 = vmatmul.msk.f32.vlgmr.msrb.gmra.mxu1 %vm2045_vm2, %v11366_v35  ;;  %9248 = vmatmul.msk.f32.vlgmr.msra.gmra.mxu0 %vm2045_vm2, %v3827_v14  ;;  %v3803_v14 = vpop.f32.mrf.mxu2 }
0x1085   : > { %3948 = vmatpush.msra.mxu1 %v3917_v18  ;;  %4053 = vmatpush.msrb.mxu0 %v9273_v5 }
0x1087   : > { %3949 = vmatpush.msra.mxu1 %v3916_v13  ;;  %4054 = vmatpush.msrb.mxu0 %v9272_v49  ;;  %v11498_v13 = vld [vmem:[%s10455_s29 + $0x8] sm:$0xff] }
0x1088   : > { %v9306_v49 = vld [vmem:[%s13726_s0 + $0x88] sm:$0xff] }
0x1089   : > { %3950 = vmatpush.msra.mxu1 %v3915_v15  ;;  %v11503_v15 = vld [vmem:[%s10455_s29 + $0x10] sm:$0xff] }
0x108b   : > { %3951 = vmatpush.msra.mxu1 %v3914_v17  ;;  %v4184_v17 = vld [vmem:[%s13726_s0 + $0x38] sm:$0xff] }
0x108c   : > { %9225 = vmatmul.msk.f32.gmra.mxu1 %vm2045_vm2, %v11375_v39  ;;  %9249 = vmatmul.msk.f32.gmra.mxu0 %vm2045_vm2, %v3830_v11  ;;  %v11491_v11 = vld [vmem:[%s10455_s29] sm:$0xff] }
0x108d   : > { %3952 = vmatpush.msra.mxu1 %v3913_v48  ;;  %v4183_v48 = vld [vmem:[%s13726_s0 + $0x30] sm:$0xff]  ;;  %4196 = vmatpush.msra.mxu3 %v4184_v17 }
0x108f   : > { %3953 = vmatpush.msra.mxu1 %v3912_v37  ;;  %v4182_v37 = vld [vmem:[%s13726_s0 + $0x28] sm:$0xff]  ;;  %4197 = vmatpush.msra.mxu3 %v4183_v48 }
0x1091   : > { %3954 = vmatpush.msra.mxu1 %v3911_v38  ;;  %4198 = vmatpush.msra.mxu3 %v4182_v37  ;;  %v4181_v38 = vld [vmem:[%s13726_s0 + $0x20] sm:$0xff] }
0x1093   : > { %3955 = vmatpush.msra.mxu1 %v3910_v23  ;;  %v4180_v23 = vld [vmem:[%s13726_s0 + $0x18] sm:$0xff]  ;;  %4199 = vmatpush.msra.mxu3 %v4181_v38 }
0x1095   : > { %4171 = vmatpush.msrb.mxu1 %v11375_v39  ;;  %4200 = vmatpush.msra.mxu3 %v4180_v23 }
0x1097   : > { %4172 = vmatpush.msrb.mxu1 %v11366_v35  ;;  %4201 = vmatpush.msra.mxu3 %v4179_v25 }
0x1099   : > { %4202 = vmatpush.msra.mxu3 %v4178_v34 }
0x109b   : > { %4203 = vmatpush.msra.mxu3 %v4177_v58 }
0x10f1   : > { %v3704_v28 = vpop.f32.mrf.mxu1  ;;  %v3727_v30 = vpop.f32.mrf.mxu0 }
0x10f2   : > { %v3734_v21 = vadd.f32 %v3727_v30, %v3639_v57  ;;  %v3733_v27 = vadd.f32 %v3704_v28, %v3638_v60  ;;  %v9305_v28 = vld [vmem:[%s13726_s0 + $0x80] sm:$0xff]  ;;  %v9299_v30 = vld [vmem:[%s13726_s0 + $0x68] sm:$0xff] }
0x10f4   : > { %v3807_v2 = vadd.f32 %v3800_v1, %v3734_v21  ;;  %v9296_v21 = vld [vmem:[%s13726_s0 + $0x50] sm:$0xff]  ;;  %v9295_v1 = vld [vmem:[%s13726_s0 + $0x48] sm:$0xff] }
0x10f9   : > { %v3707_v59 = vpop.f32.mrf.mxu1  ;;  %v3730_v19 = vpop.f32.mrf.mxu0 }
0x10fa   : > { %v3736_v10 = vadd.f32 %v3730_v19, %v3639_v57  ;;  %v3735_v16 = vadd.f32 %v3707_v59, %v3638_v60  ;;  %v9298_v57 = vld [vmem:[%s13726_s0 + $0x60] sm:$0xff]  ;;  %v9253_v19 = vld [vmem:[%s13727_s1 + $0x28] sm:$0xff]  ;;  %v9297_v60 = vld [vmem:[%s13726_s0 + $0x58] sm:$0xff] }
0x10fc   : > { %v3809_v55 = vadd.f32 %v3803_v14, %v3736_v10 }
0x10fe   : > { %v3873_v31 = vpop.f32.mrf.mxu3 }
0x1101   : > { %v3777_v4 = vpop.f32.mrf.mxu1  ;;  %v3896_v0 = vpop.f32.mrf.mxu0 }
0x1102   : > { %v3806_v8 = vadd.f32 %v3777_v4, %v3733_v27  ;;  %v3903_v50 = vadd.f32 %v3896_v0, %v3807_v2  ;;  %v9294_v27 = vld [vmem:[%s13726_s0 + $0x40] sm:$0xff]  ;;  %v9254_v4 = vld [vmem:[%s13727_s1 + $0x30] sm:$0xff]  ;;  %v3909_v0 = vld [vmem:[%s13727_s1 + $0x18] sm:$0xff]  ;;  %s10268_s0 = sshll.u32 %s13802_s23, 5 }
0x1103   : > { %s1638_s3 = scalar_lea.vmem %s10695_s12, %s10268_s0  ;;  %s13732_s0 = sld [smem:[#allocation24_spill]] }
0x1104   : > { %v3902_v12 = vadd.f32 %v3873_v31, %v3806_v8  ;;  %9250 = vmatmul.msk.f32.vlgmr.msra.gmra.mxu2 %vm2045_vm2, %v3903_v50  ;;  %9280 = vmatmul.msk.f32.vlgmr.msrb.gmra.mxu0 %vm2045_vm2, %v3903_v50  ;;  %v3908_v31 = vld [vmem:[%s13727_s1 + $0x10] sm:$0xff]  ;;  %v9255_v8 = vld [vmem:[%s13727_s1 + $0x38] sm:$0xff]  ;;  %s13729_s1 = sld [smem:[#allocation20_spill]] }
0x1106   : > { %3956 = vmatmul.f32.vlgmr.msra.gmra.mxu1 %v3902_v12  ;;  %4032 = vmatmul.f32.vlgmr.msrb.gmra.mxu3 %v3902_v12  ;;  %v3876_v56 = vpop.f32.mrf.mxu3  ;;  %v4355_v12 = vld [vmem:[%s13728_s2 + $0x18] sm:$0xff] }
0x1107   : > { %4227 = vmatpush.msra.mxu1 %v11375_v39  ;;  %4310 = vmatpush.msrb.mxu3 %v9312_v45 }
0x1109   : > { %4228 = vmatpush.msra.mxu1 %v11366_v35  ;;  %v3780_v63 = vpop.f32.mrf.mxu1  ;;  %v3899_v3 = vpop.f32.mrf.mxu0  ;;  %4311 = vmatpush.msrb.mxu3 %v9311_v62  ;;  %v11564_v62 = vld [vmem:[%s10470_s14] sm:$0xf] }
0x110a   : > { %v3808_v7 = vadd.f32 %v3780_v63, %v3735_v16  ;;  %v3905_v9 = vadd.f32 %v3899_v3, %v3809_v55  ;;  %v4354_v55 = vld [vmem:[%s13728_s2 + $0x10] sm:$0xff]  ;;  %v4352_v63 = vld [vmem:[%s13728_s2] sm:$0xff] }
0x110b   : > { %4312 = vmatpush.msrb.mxu3 %v9310_v20  ;;  %v10342_v25 = vld [vmem:[%s13729_s1] ss:$0 sm:$0xff]  ;;  %v9321_v20 = vld [vmem:[%s13728_s2 + $0x38] sm:$0xff]  ;;  %s13731_s1 = sld [smem:[#allocation22_spill]] }
0x110c   : > { %v3904_v18 = vadd.f32 %v3876_v56, %v3808_v7  ;;  %9251 = vmatmul.msk.f32.gmra.mxu2 %vm2045_vm2, %v3905_v9  ;;  %9281 = vmatmul.msk.f32.gmra.mxu0 %vm2045_vm2, %v3905_v9  ;;  %v4353_v56 = vld [vmem:[%s13728_s2 + $0x8] sm:$0xff] }
0x110d   : > { %4313 = vmatpush.msrb.mxu3 %v9309_v26  ;;  %v9318_v26 = vld [vmem:[%s13728_s2 + $0x20] sm:$0xff] }
0x110e   : > { %3959 = vmatmul.f32.gmra.mxu1 %v3904_v18  ;;  %4035 = vmatmul.f32.gmra.mxu3 %v3904_v18 }
0x110f   : > { %4314 = vmatpush.msrb.mxu3 %v9308_v44 }
0x1111   : > { %4315 = vmatpush.msrb.mxu3 %v9307_v42 }
0x1113   : > { %4316 = vmatpush.msrb.mxu3 %v9306_v49  ;;  %v10343_v49 = vld [vmem:[%s13731_s1] ss:$0 sm:$0xff]  ;;  %s13733_s1 = sld [smem:[#allocation25_spill]] }
0x1115   : > { %4317 = vmatpush.msrb.mxu3 %v9305_v28 }
0x1116   : > { %9290 = vmatmul.msk.f32.vlgmr.msrb.gmra.mxu1 %vm1654_vm0, %v11491_v11 }
0x1117   : > { %4284 = vmatpush.msrb.mxu1 %v11375_v39 }
0x1119   : > { %4285 = vmatpush.msrb.mxu1 %v11366_v35 }
0x111e   : > { %9293 = vmatmul.msk.f32.vlgmr.msra.gmra.mxu1 %vm1654_vm0, %v11498_v13 }
0x1126   : > { %9304 = vmatmul.msk.f32.vlgmr.msrb.gmra.mxu1 %vm1654_vm0, %v11503_v15 }
0x1181   : > { %v4056_v32 = vpop.f32.mrf.mxu0 }
0x1183   : > { %v3957_v29 = vpop.f32.mrf.mxu1 }
0x1187   : > { %v3980_v53 = vpop.f32.mrf.mxu2 }
0x1188   : > { %v3981_v54 = vadd.f32 %v3980_v53, %v3957_v29 }
0x1189   : > { %v4033_v6 = vpop.f32.mrf.mxu3  ;;  %v4059_v33 = vpop.f32.mrf.mxu0 }
0x118a   : > { %v4057_v5 = vadd.f32 %v4056_v32, %v4033_v6  ;;  %v11567_v6 = vld [vmem:[%s10470_s14 + $0x4] sm:$0xf] }
0x118b   : > { %v3960_v22 = vpop.f32.mrf.mxu1 }
0x118f   : > { %v3983_v24 = vpop.f32.mrf.mxu2 }
0x1190   : > { %v3984_v43 = vadd.f32 %v3983_v24, %v3960_v22  ;;  %v9320_v22 = vld [vmem:[%s13728_s2 + $0x30] sm:$0xff]  ;;  %v9319_v24 = vld [vmem:[%s13728_s2 + $0x28] sm:$0xff] }
0x1191   : > { %v4036_v52 = vpop.f32.mrf.mxu3 }
0x1192   : > { %v4060_v36 = vadd.f32 %v4059_v33, %v4036_v52  ;;  %4129 = vmatpush.msra.mxu0 %v3984_v43  ;;  %v11583_v33 = vld [vmem:[%s10470_s14 + $0x8] sm:$0xf]  ;;  %v9328_v52 = vld [vmem:[%s13728_s2 + $0x58] sm:$0xff] }
0x1193   : > { %v4174_v61 = vpop.f32.mrf.mxu1 }
0x1194   : > { %4088 = vmatpush.msrb.mxu2 %v4060_v36  ;;  %4130 = vmatpush.msra.mxu0 %v3981_v54  ;;  %v9327_v54 = vld [vmem:[%s13728_s2 + $0x50] sm:$0xff]  ;;  %v9326_v36 = vld [vmem:[%s13728_s2 + $0x48] sm:$0xff] }
0x1195   : > { %9286 = vmatmul.msk.f32.vlgmr.msra.gmra.mxu0 %vm1654_vm0, %v3906_v40  ;;  %9291 = vmatmul.msk.f32.vlgmr.msra.gmra.mxu3 %vm2045_vm2, %v4174_v61  ;;  %v9325_v40 = vld [vmem:[%s13728_s2 + $0x40] sm:$0xff]  ;;  %s13753_s2 = sld [smem:[#allocation28_spill]] }
0x1196   : > { %4089 = vmatpush.msrb.mxu2 %v4057_v5  ;;  %4477 = vmatpush.msra.mxu3 %v9328_v52 }
0x1197   : > { %9282 = vmatmul.msk.f32.vlgmr.msrb.gmra.mxu2 %vm1654_vm0, %v9252_v46 }
0x1198   : > { %4253 = vmatpush.msra.mxu2 %v9301_v47  ;;  %4478 = vmatpush.msra.mxu3 %v9327_v54 }
0x119a   : > { %4254 = vmatpush.msra.mxu2 %v9300_v51  ;;  %4479 = vmatpush.msra.mxu3 %v9326_v36 }
0x119b   : > { %v4230_v59 = vpop.f32.mrf.mxu1 }
0x119c   : > { %4255 = vmatpush.msra.mxu2 %v9299_v30  ;;  %4480 = vmatpush.msra.mxu3 %v9325_v40 }
0x119d   : > { %9287 = vmatmul.msk.f32.gmra.mxu0 %vm1654_vm0, %v3907_v41 }
0x119e   : > { %4256 = vmatpush.msra.mxu2 %v9298_v57 }
0x119f   : > { %9283 = vmatmul.msk.f32.gmra.mxu2 %vm1654_vm0, %v9253_v19  ;;  %v11597_v19 = vld [vmem:[%s10485_s30] sm:$0xf] }
0x11a0   : > { %4257 = vmatpush.msra.mxu2 %v9297_v60  ;;  %v11600_v60 = vld [vmem:[%s10485_s30 + $0x8] sm:$0xf] }
0x11a2   : > { %4258 = vmatpush.msra.mxu2 %v9296_v21 }
0x11a3   : > { %v4287_v2 = vpop.f32.mrf.mxu1 }
0x11a4   : > { %4259 = vmatpush.msra.mxu2 %v9295_v1  ;;  %9313 = vmatmul.msk.f32.vlgmr.msrb.gmra.mxu3 %vm2045_vm2, %v4287_v2  ;;  %v11616_v2 = vld [vmem:[%s13675_s28 + $0x78] sm:$0xff] }
0x11a5   : > { %9288 = vmatmul.msk.f32.gmra.mxu0 %vm1654_vm0, %v3908_v31 }
0x11a6   : > { %4260 = vmatpush.msra.mxu2 %v9294_v27  ;;  %v11613_v27 = vld [vmem:[%s13675_s28 + $0x38] sm:$0xff] }
0x11a7   : > { %9284 = vmatmul.msk.f32.gmra.mxu2 %vm1654_vm0, %v9254_v4  ;;  %v11619_v4 = vld [vmem:[%s13675_s28 + $0x30] sm:$0xff] }
0x11a8   : > { %4371 = vmatpush.msrb.mxu2 %v4355_v12  ;;  %v11634_v12 = vld [vmem:[%s13675_s28 + $0x68] sm:$0xff] }
0x11aa   : > { %4372 = vmatpush.msrb.mxu2 %v4354_v55  ;;  %v11645_v55 = vld [vmem:[%s13675_s28 + $0x18] sm:$0xff] }
0x11ac   : > { %4373 = vmatpush.msrb.mxu2 %v4353_v56  ;;  %v11648_v56 = vld [vmem:[%s13675_s28 + $0x58] sm:$0xff] }
0x11ad   : > { %9289 = vmatmul.msk.f32.gmra.mxu0 %vm1654_vm0, %v3909_v0  ;;  %v11624_v0 = vld [vmem:[%s13675_s28 + $0x70] sm:$0xff] }
0x11ae   : > { %4374 = vmatpush.msrb.mxu2 %v4352_v63  ;;  %v11655_v63 = vld [vmem:[%s13675_s28 + $0x10] sm:$0xff] }
0x11af   : > { %9285 = vmatmul.msk.f32.gmra.mxu2 %vm1654_vm0, %v9255_v8 }
0x11b7   : > { %9302 = vmatmul.msk.f32.vlgmr.msra.gmra.mxu2 %vm2045_vm2, %v4230_v59 }
0x1212   : > { %v4132_v50 = vpop.f32.mrf.mxu0 }
0x1218   : > { %v4205_v37 = vpop.f32.mrf.mxu3 }
0x1219   : > { %v4208_v29 = vadd.f32 %v10342_v25, %v4205_v37 }
0x121a   : > { %v4091_v10 = vpop.f32.mrf.mxu2  ;;  %v4135_v16 = vpop.f32.mrf.mxu0 }
0x121b   : > { %v4133_v14 = vadd.f32 %v4132_v50, %v4091_v10  ;;  %v11631_v10 = vld [vmem:[%s13675_s28 + $0x28] sm:$0xff] }
0x121d   : > { %4145 = vst.msk [vmem:[%s1638_s3] sm:$0xff] %vm4144_vm7, %v4133_v14  ;;  %v11639_v14 = vld [vmem:[%s13675_s28 + $0x20] sm:$0xff] }
0x1222   : > { %v4094_v3 = vpop.f32.mrf.mxu2  ;;  %v4138_v9 = vpop.f32.mrf.mxu0 }
0x1223   : > { %v4136_v7 = vadd.f32 %v4135_v16, %v4094_v3  ;;  %v11642_v16 = vld [vmem:[%s13675_s28 + $0x60] sm:$0xff]  ;;  %v11658_v3 = vld [vmem:[%s13675_s28 + $0x50] sm:$0xff] }
0x1225   : > { %4146 = vst.msk [vmem:[%s1638_s3 + $0x8] sm:$0xff] %vm4144_vm7, %v4136_v7  ;;  %v11663_v7 = vld [vmem:[%s13675_s28 + $0x8] sm:$0xff] }
0x1227   : > { %v4319_v32 = vpop.f32.mrf.mxu3 }
0x122a   : > { %v4097_v18 = vpop.f32.mrf.mxu2  ;;  %v4141_v48 = vpop.f32.mrf.mxu0 }
0x122b   : > { %v4139_v17 = vadd.f32 %v4138_v9, %v4097_v18  ;;  %v11666_v9 = vld [vmem:[%s13675_s28 + $0x48] sm:$0xff]  ;;  %v11671_v18 = vld [vmem:[%s13675_s28] sm:$0xff] }
0x122d   : > { %4147 = vst.msk [vmem:[%s1638_s3 + $0x10] sm:$0xff] %vm4144_vm7, %v4139_v17  ;;  %v11674_v17 = vld [vmem:[%s13675_s28 + $0x40] sm:$0xff] }
0x1232   : > { %v4100_v38 = vpop.f32.mrf.mxu2 }
0x1233   : > { %v4142_v23 = vadd.f32 %v4141_v48, %v4100_v38  ;;  %v10344_v48 = vld [vmem:[%s13732_s0] ss:$0 sm:$0xff]  ;;  %s13743_s0 = sld [smem:[#allocation26_spill]] }
0x1235   : > { %4148 = vst.msk [vmem:[%s1638_s3 + $0x18] sm:$0xff] %vm4144_vm7, %v4142_v23  ;;  %s13730_s3 = sld [smem:[#allocation23_spill]] }
0x123a   : > { %v4262_v34 = vpop.f32.mrf.mxu2 }
0x123b   : > { %v4265_v53 = vadd.f32 %v4262_v34, %v4208_v29  ;;  %v9334_v5 = vld [vmem:[%s13730_s3 + $0x18] sm:$0xff]  ;;  %v9333_v46 = vld [vmem:[%s13730_s3 + $0x10] sm:$0xff]  ;;  %v4519_v47 = vld [vmem:[%s13730_s3 + $0x8] sm:$0xff] }
0x123c   : > { %v4518_v21 = vld [vmem:[%s13730_s3] sm:$0xff]  ;;  %v9340_v1 = vld [vmem:[%s13730_s3 + $0x28] sm:$0xff] }
0x123d   : > { %v4322_v58 = vadd.f32 %v4319_v32, %v4265_v53  ;;  %v9339_v31 = vld [vmem:[%s13730_s3 + $0x20] sm:$0xff]  ;;  %v9362_v53 = vld [vmem:[%s13733_s1 + $0x38] sm:$0xff] }
0x123f   : > { %v11561_v45 = vmax.f32 %v4322_v58, 0.0  ;;  %v11683_v58 = vld [vmem:[%s13678_s7] sm:$0xff] }
0x1241   : > { %4347 = vmatpush.msra.mxu1 %v11561_v45  ;;  %4399 = vmatpush.msrb.mxu0 %v11561_v45 }
0x1242   : > { %4452 = vmatpush.msra.mxu2 %v11561_v45  ;;  %9314 = vmatmul.msk.f32.vlgmr.msra.gmra.mxu1 %vm2192_vm3, %v11564_v62 }
0x1243   : > { %9317 = vmatmul.msk.f32.vlgmr.msrb.gmra.mxu0 %vm2192_vm3, %v11567_v6  ;;  %4424 = vmatpush.msrb.mxu1 %v9321_v20 }
0x1245   : > { %4425 = vmatpush.msrb.mxu1 %v9320_v22  ;;  %v11689_v22 = vld [vmem:[%s13678_s7 + $0x8] sm:$0xff] }
0x1247   : > { %4426 = vmatpush.msrb.mxu1 %v9319_v24 }
0x1249   : > { %4427 = vmatpush.msrb.mxu1 %v9318_v26  ;;  %v9361_v26 = vld [vmem:[%s13733_s1 + $0x30] sm:$0xff] }
0x124b   : > { %4537 = vmatpush.msra.mxu1 %v4519_v47  ;;  %v9368_v47 = vld [vmem:[%s13733_s1 + $0x50] sm:$0xff] }
0x124d   : > { %4538 = vmatpush.msra.mxu1 %v4518_v21  ;;  %v11729_v21 = vld [vmem:[%s13680_s11 + $0xf0] sm:$0xff] }
0x12bf   : > { %v4349_v43 = vpop.f32.mrf.mxu1 }
0x12c0   : > { %9315 = vmatmul.msk.f32.vlgmr.msrb.gmra.mxu2 %vm2220_vm4, %v4349_v43  ;;  %v4401_v44 = vpop.f32.mrf.mxu0  ;;  %v9360_v43 = vld [vmem:[%s13733_s1 + $0x28] sm:$0xff] }
0x12c1   : > { %9322 = vmatmul.msk.f32.vlgmr.msrb.gmra.mxu1 %vm2220_vm4, %v4401_v44  ;;  %4563 = vmatpush.msrb.mxu2 %v9334_v5  ;;  %v9359_v44 = vld [vmem:[%s13733_s1 + $0x20] sm:$0xff]  ;;  %v4767_v5 = vld [vmem:[%s13733_s1 + $0x18] sm:$0xff] }
0x12c2   : > { %4642 = vmatpush.msrb.mxu1 %v11613_v27 }
0x12c3   : > { %4564 = vmatpush.msrb.mxu2 %v9333_v46  ;;  %v9369_v46 = vld [vmem:[%s13733_s1 + $0x58] sm:$0xff] }
0x12c4   : > { %4643 = vmatpush.msrb.mxu1 %v11619_v4 }
0x12c6   : > { %4644 = vmatpush.msrb.mxu1 %v11631_v10 }
0x12c8   : > { %9324 = vmatmul.msk.f32.vlgmr.msra.gmra.mxu2 %vm2192_vm3, %v11583_v33  ;;  %4645 = vmatpush.msrb.mxu1 %v11639_v14 }
0x12c9   : > { %4671 = vmatpush.msra.mxu2 %v11616_v2 }
0x12ca   : > { %4646 = vmatpush.msrb.mxu1 %v11645_v55 }
0x12cb   : > { %4672 = vmatpush.msra.mxu2 %v11624_v0 }
0x12cc   : > { %4647 = vmatpush.msrb.mxu1 %v11655_v63 }
0x12cd   : > { %4673 = vmatpush.msra.mxu2 %v11634_v12 }
0x12ce   : > { %4648 = vmatpush.msrb.mxu1 %v11663_v7 }
0x12cf   : > { %4674 = vmatpush.msra.mxu2 %v11642_v16 }
0x12d0   : > { %4649 = vmatpush.msrb.mxu1 %v11671_v18 }
0x12d1   : > { %4675 = vmatpush.msra.mxu2 %v11648_v56 }
0x12d3   : > { %4676 = vmatpush.msra.mxu2 %v11658_v3 }
0x12d5   : > { %4677 = vmatpush.msra.mxu2 %v11666_v9 }
0x12d7   : > { %4678 = vmatpush.msra.mxu2 %v11674_v17 }
0x133e   : > { %v4429_v28 = vpop.f32.mrf.mxu1 }
0x1343   : > { %v4376_v61 = vpop.f32.mrf.mxu2 }
0x1344   : > { %v4379_v51 = vadd.f32 %v10343_v49, %v4376_v61  ;;  %v11699_v61 = vld [vmem:[%s13679_s10] sm:$0xff]  ;;  %v4765_v49 = vld [vmem:[%s13733_s1 + $0x8] sm:$0xff] }
0x1346   : > { %v4432_v30 = vadd.f32 %v4429_v28, %v4379_v51  ;;  %v9367_v51 = vld [vmem:[%s13733_s1 + $0x48] sm:$0xff]  ;;  %v4764_v28 = vld [vmem:[%s13733_s1] sm:$0xff] }
0x134b   : > { %v4454_v42 = vpop.f32.mrf.mxu2 }
0x134c   : > { %9329 = vmatmul.msk.f32.vlgmr.msra.gmra.mxu3 %vm2220_vm4, %v4454_v42  ;;  %v11702_v42 = vld [vmem:[%s13679_s10 + $0x10] sm:$0xff] }
0x13cf   : > { %v4482_v41 = vpop.f32.mrf.mxu3 }
0x13d0   : > { %v4485_v57 = vadd.f32 %v4482_v41, %v4432_v30  ;;  %v9366_v30 = vld [vmem:[%s13733_s1 + $0x40] sm:$0xff]  ;;  %v11718_v41 = vld [vmem:[%s13680_s11 + $0x78] sm:$0xff] }
0x13d2   : > { %v4486_v59 = vmax.f32 %v4485_v57, 0.0  ;;  %v11721_v57 = vld [vmem:[%s13680_s11 + $0xf8] sm:$0xff] }
0x13d4   : > { %9330 = vmatpush.msk.msra.mxu0 %vm2363_vm5, %v4486_v59  ;;  %9335 = vmatmul.msk.f32.vlgmr.msrb.gmra.mxu2 %vm1654_vm0, %v4486_v59 }
0x13d5   : > { %9337 = vmatpush.msk.msrb.mxu3 %vm2363_vm5, %v4486_v59  ;;  %9331 = vmatmul.msk.f32.vlgmr.msra.gmra.mxu0 %vm2359_vm6, %v11597_v19  ;;  %v11724_v59 = vld [vmem:[%s13680_s11 + $0x70] sm:$0xff] }
0x13d6   : > { %9338 = vmatmul.msk.f32.vlgmr.msrb.gmra.mxu3 %vm2359_vm6, %v11600_v60  ;;  %4614 = vmatpush.msrb.mxu0 %v9340_v1  ;;  %v11732_v1 = vld [vmem:[%s13680_s11 + $0x68] sm:$0xff] }
0x13d8   : > { %4615 = vmatpush.msrb.mxu0 %v9339_v31  ;;  %v11735_v31 = vld [vmem:[%s13680_s11 + $0xe8] sm:$0xff] }
0x1452   : > { %v4515_v8 = vpop.f32.mrf.mxu0 }
0x1453   : > { %9332 = vmatmul.msk.f32.vlgmr.msra.gmra.mxu1 %vm1654_vm0, %v4515_v8  ;;  %v11740_v8 = vld [vmem:[%s13680_s11 + $0x60] sm:$0xff] }
0x1454   : > { %4812 = vmatpush.msra.mxu1 %v9362_v53  ;;  %v11780_v53 = vld [vmem:[%s13680_s11 + $0x38] sm:$0xff] }
0x1455   : > { %13738 = vst [vmem:[#allocation45_spill] sm:$0xff] %v11780_v53 }
0x1456   : > { %4813 = vmatpush.msra.mxu1 %v9361_v26  ;;  %v11791_v26 = vld [vmem:[%s13680_s11 + $0xb0] sm:$0xff] }
0x1457   : > { %v4566_v23 = vpop.f32.mrf.mxu2 }
0x1458   : > { %4814 = vmatpush.msra.mxu1 %v9360_v43 }
0x1459   : > { %v4591_v50 = vpop.f32.mrf.mxu3 }
0x145a   : > { %9341 = vmatmul.msk.f32.vlgmr.msrb.gmra.mxu0 %vm1654_vm0, %v4591_v50  ;;  %4815 = vmatpush.msra.mxu1 %v9359_v44  ;;  %v11743_v50 = vld [vmem:[%s13680_s11 + $0xe0] sm:$0xff] }
0x14d0   : > { %v4540_v37 = vpop.f32.mrf.mxu1 }
0x14d1   : > { %v4543_v38 = vadd.f32 %v10344_v48, %v4540_v37  ;;  %v11748_v48 = vld [vmem:[%s13680_s11 + $0x58] sm:$0xff] }
0x14d2   : > { %13734 = vst [vmem:[#allocation41_spill] sm:$0xff] %v11748_v48  ;;  %v11751_v37 = vld [vmem:[%s13680_s11 + $0xd8] sm:$0xff] }
0x14d3   : > { %v4569_v25 = vadd.f32 %v4566_v23, %v4543_v38  ;;  %v11756_v38 = vld [vmem:[%s13680_s11 + $0x50] sm:$0xff] }
0x14d4   : > { %13735 = vst [vmem:[#allocation42_spill] sm:$0xff] %v11756_v38  ;;  %v11759_v23 = vld [vmem:[%s13680_s11 + $0xd0] sm:$0xff] }
0x14d7   : > { %v4617_v29 = vpop.f32.mrf.mxu0 }
0x14d8   : > { %v4620_v34 = vadd.f32 %v4617_v29, %v4569_v25  ;;  %v11764_v25 = vld [vmem:[%s13680_s11 + $0x48] sm:$0xff] }
0x14d9   : > { %13736 = vst [vmem:[#allocation43_spill] sm:$0xff] %v11764_v25  ;;  %v11767_v29 = vld [vmem:[%s13680_s11 + $0xc8] sm:$0xff] }
0x14da   : > { %v4621_v32 = vmax.f32 %v4620_v34, 0.0  ;;  %v11772_v34 = vld [vmem:[%s13680_s11 + $0x40] sm:$0xff] }
0x14db   : > { %13737 = vst [vmem:[#allocation44_spill] sm:$0xff] %v11772_v34 }
0x14dc   : > { %9342 = vmatmul.msk.f32.vlgmr.msrb.gmra.mxu1 %vm2045_vm2, %v4621_v32  ;;  %9352 = vmatmul.msk.f32.vlgmr.msra.gmra.mxu2 %vm2045_vm2, %v4621_v32  ;;  %v11775_v32 = vld [vmem:[%s13680_s11 + $0xc0] sm:$0xff] }
0x14dd   : > { %4931 = vmatpush.msrb.mxu1 %v11721_v57 }
0x14df   : > { %4932 = vmatpush.msrb.mxu1 %v11729_v21 }
0x14e1   : > { %4933 = vmatpush.msrb.mxu1 %v11735_v31 }
0x14e3   : > { %4934 = vmatpush.msrb.mxu1 %v11743_v50 }
0x14e5   : > { %4935 = vmatpush.msrb.mxu1 %v11751_v37 }
0x14e7   : > { %4936 = vmatpush.msrb.mxu1 %v11759_v23 }
0x14e9   : > { %4937 = vmatpush.msrb.mxu1 %v11767_v29 }
0x14eb   : > { %4938 = vmatpush.msrb.mxu1 %v11775_v32 }
0x1559   : > { %v4651_v20 = vpop.f32.mrf.mxu1 }
0x155a   : > { %9355 = vmatpush.msk.msra.mxu0 %vm2363_vm5, %v4651_v20  ;;  %v11783_v20 = vld [vmem:[%s13680_s11 + $0xb8] sm:$0xff] }
0x155b   : > { %9356 = vmatmul.msk.f32.vlgmr.msra.gmra.mxu0 %vm2359_vm6, %v11683_v58  ;;  %4939 = vmatpush.msrb.mxu1 %v11783_v20 }
0x155c   : > { %4783 = vmatpush.msrb.mxu0 %v4767_v5  ;;  %v11814_v5 = vld [vmem:[%s13680_s11 + $0x18] sm:$0xff] }
0x155d   : > { %4940 = vmatpush.msrb.mxu1 %v11791_v26  ;;  %13742 = vst [vmem:[#allocation49_spill] sm:$0xff] %v11814_v5 }
0x155f   : > { %v4680_v24 = vpop.f32.mrf.mxu2 }
0x1560   : > { %9353 = vmatpush.msk.msra.mxu3 %vm2363_vm5, %v4680_v24  ;;  %v11788_v24 = vld [vmem:[%s13680_s11 + $0x30] sm:$0xff] }
0x1561   : > { %9354 = vmatmul.msk.f32.vlgmr.msra.gmra.mxu3 %vm2359_vm6, %v11689_v22  ;;  %13739 = vst [vmem:[#allocation46_spill] sm:$0xff] %v11788_v24 }
0x15d8   : > { %v4732_v52 = vpop.f32.mrf.mxu0 }
0x15e4   : > { %v4706_v54 = vpop.f32.mrf.mxu3 }
0x15e5   : > { %v4733_v36 = vadd.f32 %v4732_v52, %v4706_v54  ;;  %v11800_v52 = vld [vmem:[%s13680_s11 + $0x28] sm:$0xff] }
0x15e6   : > { %13740 = vst [vmem:[#allocation47_spill] sm:$0xff] %v11800_v52  ;;  %v11803_v54 = vld [vmem:[%s13680_s11 + $0xa8] sm:$0xff] }
0x15e7   : > { %v4735_v40 = vadd.f32 %v4733_v36, %v11561_v45  ;;  %v4766_v45 = vld [vmem:[%s13733_s1 + $0x10] sm:$0xff]  ;;  %4941 = vmatpush.msrb.mxu1 %v11803_v54  ;;  %v11808_v36 = vld [vmem:[%s13680_s11 + $0x20] sm:$0xff]  ;;  %s13747_s1 = sld [smem:[#allocation27_spill]] }
0x15e8   : > { %4784 = vmatpush.msrb.mxu0 %v4766_v45  ;;  %13741 = vst [vmem:[#allocation48_spill] sm:$0xff] %v11808_v36  ;;  %v11824_v45 = vld [vmem:[%s13680_s11 + $0x10] sm:$0xff] }
0x15e9   : > { %4759 = vmatpush.msrb.mxu3 %v4735_v40  ;;  %9363 = vmatmul.msk.f32.vlgmr.msra.gmra.mxu1 %vm2220_vm4, %v4735_v40  ;;  %13744 = vst [vmem:[#allocation50_spill] sm:$0xff] %v11824_v45 }
0x15ea   : > { %4840 = vmatpush.msrb.mxu2 %v4735_v40  ;;  %9357 = vmatmul.msk.f32.vlgmr.msrb.gmra.mxu3 %vm2192_vm3, %v11699_v61  ;;  %v11811_v40 = vld [vmem:[%s13680_s11 + $0xa0] sm:$0xff] }
0x15eb   : > { %9365 = vmatmul.msk.f32.vlgmr.msrb.gmra.mxu2 %vm2192_vm3, %v11702_v42  ;;  %4865 = vmatpush.msra.mxu3 %v9369_v46  ;;  %v11817_v46 = vld [vmem:[%s13680_s11 + $0x98] sm:$0xff] }
0x15ec   : > { %4785 = vmatpush.msrb.mxu0 %v4765_v49  ;;  %4942 = vmatpush.msrb.mxu1 %v11811_v40  ;;  %v11832_v49 = vld [vmem:[%s13680_s11 + $0x8] sm:$0xff] }
0x15ed   : > { %4866 = vmatpush.msra.mxu3 %v9368_v47  ;;  %v11827_v47 = vld [vmem:[%s13680_s11 + $0x90] sm:$0xff]  ;;  %13745 = vst [vmem:[#allocation51_spill] sm:$0xff] %v11832_v49 }
0x15ee   : > { %4786 = vmatpush.msrb.mxu0 %v4764_v28  ;;  %4943 = vmatpush.msrb.mxu1 %v11817_v46  ;;  %v11840_v28 = vld [vmem:[%s13680_s11] sm:$0xff] }
0x15ef   : > { %4867 = vmatpush.msra.mxu3 %v9367_v51  ;;  %v11835_v51 = vld [vmem:[%s13680_s11 + $0x88] sm:$0xff]  ;;  %13746 = vst [vmem:[#allocation52_spill] sm:$0xff] %v11840_v28 }
0x15f0   : > { %4893 = vmatpush.msra.mxu0 %v11718_v41  ;;  %4944 = vmatpush.msrb.mxu1 %v11827_v47 }
0x15f1   : > { %4868 = vmatpush.msra.mxu3 %v9366_v30  ;;  %v11843_v30 = vld [vmem:[%s13680_s11 + $0x80] sm:$0xff] }
0x15f2   : > { %4894 = vmatpush.msra.mxu0 %v11724_v59  ;;  %4945 = vmatpush.msrb.mxu1 %v11835_v51 }
0x15f4   : > { %4895 = vmatpush.msra.mxu0 %v11732_v1  ;;  %4946 = vmatpush.msrb.mxu1 %v11843_v30 }
0x15f6   : > { %4896 = vmatpush.msra.mxu0 %v11740_v8 }
0x15f8   : > { %4897 = vmatpush.msra.mxu0 %v11748_v48  ;;  %v9401_v48 = vld [vmem:[%s13747_s1 + $0x68] sm:$0xff] }
0x15fa   : > { %4898 = vmatpush.msra.mxu0 %v11756_v38 }
0x15fc   : > { %4899 = vmatpush.msra.mxu0 %v11764_v25 }
0x15fe   : > { %4900 = vmatpush.msra.mxu0 %v11772_v34 }
0x1600   : > { %4901 = vmatpush.msra.mxu0 %v11780_v53  ;;  %v11849_v53 = vld [vmem:[%s13693_s16 + $0x10] sm:$0xff] }
0x1601   : > { %13748 = vst [vmem:[#allocation53_spill] sm:$0xff] %v11849_v53 }
0x1602   : > { %4902 = vmatpush.msra.mxu0 %v11788_v24 }
0x1604   : > { %4903 = vmatpush.msra.mxu0 %v11800_v52 }
0x1606   : > { %4904 = vmatpush.msra.mxu0 %v11808_v36 }
0x1608   : > { %4905 = vmatpush.msra.mxu0 %v11814_v5 }
0x160a   : > { %4906 = vmatpush.msra.mxu0 %v11824_v45 }
0x160c   : > { %4907 = vmatpush.msra.mxu0 %v11832_v49 }
0x160e   : > { %4908 = vmatpush.msra.mxu0 %v11840_v28  ;;  %v11852_v28 = vld [vmem:[%s13693_s16] sm:$0xff] }
0x160f   : > { %13749 = vst [vmem:[#allocation54_spill] sm:$0xff] %v11852_v28 }
0x1666   : > { %v4817_v5 = vpop.f32.mrf.mxu1 }
0x166d   : > { %v4761_v43 = vpop.f32.mrf.mxu3 }
0x166e   : > { %v4842_v44 = vpop.f32.mrf.mxu2  ;;  %9358 = vmatmul.msk.f32.vlgmr.msrb.gmra.mxu0 %vm2220_vm4, %v4761_v43  ;;  %v10345_v43 = vld [vmem:[%s13743_s0] ss:$0 sm:$0xff]  ;;  %s13752_s0 = sld [smem:[#allocation29_spill]] }
0x166f   : > { %9370 = vmatmul.msk.f32.vlgmr.msra.gmra.mxu3 %vm2220_vm4, %v4842_v44 }
0x16eb   : > { %v4788_v44 = vpop.f32.mrf.mxu0 }
0x16ec   : > { %v4791_v45 = vadd.f32 %v10345_v43, %v4788_v44  ;;  %v5037_v44 = vld [vmem:[%s13747_s1 + $0x10] sm:$0xff] }
0x16ee   : > { %v4820_v36 = vadd.f32 %v4817_v5, %v4791_v45  ;;  %v5039_v5 = vld [vmem:[%s13747_s1 + $0x20] sm:$0xff]  ;;  %v5038_v45 = vld [vmem:[%s13747_s1 + $0x18] sm:$0xff] }
0x16f2   : > { %v4870_v49 = vpop.f32.mrf.mxu3 }
0x16f3   : > { %v4873_v52 = vadd.f32 %v4870_v49, %v4820_v36  ;;  %v5040_v36 = vld [vmem:[%s13747_s1 + $0x28] sm:$0xff] }
0x16f5   : > { %v4874_v24 = vmax.f32 %v4873_v52, 0.0  ;;  %v11859_v52 = vld [vmem:[%s13693_s16 + $0x18] sm:$0xff] }
0x16f6   : > { %13750 = vst [vmem:[#allocation55_spill] sm:$0xff] %v11859_v52 }
0x16f7   : > { %4909 = vmatmul.f32.vlgmr.msra.gmra.mxu0 %v4874_v24  ;;  %4947 = vmatmul.f32.vlgmr.msrb.gmra.mxu1 %v4874_v24  ;;  %v11862_v24 = vld [vmem:[%s13693_s16 + $0x8] sm:$0xff] }
0x16f8   : > { %13751 = vst [vmem:[#allocation56_spill] sm:$0xff] %v11862_v24 }
0x1774   : > { %v4910_v34 = vpop.f32.mrf.mxu0  ;;  %v4948_v25 = vpop.f32.mrf.mxu1 }
0x1775   : > { %4972 = vmatpush.msra.mxu2 %v4948_v25  ;;  %5001 = vmatpush.msrb.mxu3 %v4910_v34  ;;  %v5042_v25 = vld [vmem:[%s13747_s1 + $0x38] sm:$0xff]  ;;  %v5041_v34 = vld [vmem:[%s13747_s1 + $0x30] sm:$0xff] }
0x1776   : > { %9389 = vmatmul.msk.f32.vlgmr.msra.gmra.mxu2 %vm2192_vm3, %v11849_v53  ;;  %9391 = vmatmul.msk.f32.vlgmr.msrb.gmra.mxu3 %vm2192_vm3, %v11852_v28  ;;  %v9403_v28 = vld [vmem:[%s13747_s1 + $0x78] sm:$0xff]  ;;  %v9402_v53 = vld [vmem:[%s13747_s1 + $0x70] sm:$0xff] }
0x1777   : > { %5054 = vmatpush.msra.mxu3 %v5042_v25 }
0x1779   : > { %5055 = vmatpush.msra.mxu3 %v5041_v34 }
0x177b   : > { %5056 = vmatpush.msra.mxu3 %v5040_v36 }
0x177d   : > { %5057 = vmatpush.msra.mxu3 %v5039_v5 }
0x177e   : > { %9390 = vmatmul.msk.f32.gmra.mxu2 %vm2192_vm3, %v11859_v52  ;;  %9392 = vmatmul.msk.f32.gmra.mxu3 %vm2192_vm3, %v11862_v24  ;;  %v5036_v52 = vld [vmem:[%s13747_s1 + $0x8] sm:$0xff]  ;;  %v5035_v24 = vld [vmem:[%s13747_s1] sm:$0xff] }
0x177f   : > { %5058 = vmatpush.msra.mxu3 %v5038_v45  ;;  %v9408_v45 = vld [vmem:[%s13747_s1 + $0x90] sm:$0xff] }
0x1781   : > { %5059 = vmatpush.msra.mxu3 %v5037_v44 }
0x1783   : > { %5060 = vmatpush.msra.mxu3 %v5036_v52 }
0x1785   : > { %5061 = vmatpush.msra.mxu3 %v5035_v24  ;;  %v9409_v24 = vld [vmem:[%s13747_s1 + $0x98] sm:$0xff] }
0x1787   : > { %5107 = vmatpush.msrb.mxu3 %v9403_v28  ;;  %v9410_v28 = vld [vmem:[%s13747_s1 + $0xa0] sm:$0xff] }
0x1789   : > { %5108 = vmatpush.msrb.mxu3 %v9402_v53  ;;  %v9397_v53 = vld [vmem:[%s13747_s1 + $0x48] sm:$0xff] }
0x178b   : > { %5109 = vmatpush.msrb.mxu3 %v9401_v48  ;;  %v9413_v48 = vld [vmem:[%s13747_s1 + $0xb8] sm:$0xff] }
0x178c   : > { %5160 = vmatpush.msra.mxu1 %v9413_v48  ;;  %v5198_v48 = vld [vmem:[%s13752_s0] sm:$0xff] }
0x17f9   : > { %v4974_v49 = vpop.f32.mrf.mxu2  ;;  %v5003_v43 = vpop.f32.mrf.mxu3 }
0x17fa   : > { %v5004_v34 = vadd.f32 %v5003_v43, %v4974_v49  ;;  %v9407_v49 = vld [vmem:[%s13747_s1 + $0x88] sm:$0xff]  ;;  %v9406_v43 = vld [vmem:[%s13747_s1 + $0x80] sm:$0xff] }
0x17fc   : > { %v11883_v52 = vadd.f32 %v5004_v34, %v11366_v35  ;;  %v9400_v35 = vld [vmem:[%s13747_s1 + $0x60] sm:$0xff] }
0x17fd   : > { %5110 = vmatpush.msrb.mxu3 %v9400_v35  ;;  %v5200_v35 = vld [vmem:[%s13752_s0 + $0x10] sm:$0xff] }
0x1801   : > { %v4977_v25 = vpop.f32.mrf.mxu2  ;;  %v5006_v38 = vpop.f32.mrf.mxu3 }
0x1802   : > { %v5007_v36 = vadd.f32 %v5006_v38, %v4977_v25  ;;  %v9412_v38 = vld [vmem:[%s13747_s1 + $0xb0] sm:$0xff] }
0x1803   : > { %5161 = vmatpush.msra.mxu1 %v9412_v38  ;;  %v10346_v38 = vld [vmem:[%s13753_s2] ss:$0 sm:$0xff]  ;;  %s13754_s2 = sld [smem:[#allocation31_spill]] }
0x1804   : > { %v11880_v5 = vadd.f32 %v5007_v36, %v11375_v39  ;;  %v9399_v39 = vld [vmem:[%s13747_s1 + $0x58] sm:$0xff] }
0x1805   : > { %5111 = vmatpush.msrb.mxu3 %v9399_v39  ;;  %v5201_v36 = vld [vmem:[%s13752_s0 + $0x18] sm:$0xff]  ;;  %v5199_v39 = vld [vmem:[%s13752_s0 + $0x8] sm:$0xff] }
0x1806   : > { %5029 = vmatpush.msrb.mxu2 %v11880_v5  ;;  %5134 = vmatpush.msrb.mxu0 %v11880_v5 }
0x1808   : > { %5030 = vmatpush.msrb.mxu2 %v11883_v52  ;;  %5135 = vmatpush.msrb.mxu0 %v11883_v52 }
0x1809   : > { %9393 = vmatmul.msk.f32.vlgmr.msrb.gmra.mxu2 %vm1654_vm0, %v11491_v11  ;;  %9405 = vmatmul.msk.f32.vlgmr.msrb.gmra.mxu0 %vm1654_vm0, %v11503_v15  ;;  %v9398_v11 = vld [vmem:[%s13747_s1 + $0x50] sm:$0xff]  ;;  %v9411_v15 = vld [vmem:[%s13747_s1 + $0xa8] sm:$0xff] }
0x180a   : > { %5081 = vmatpush.msra.mxu2 %v11880_v5  ;;  %5112 = vmatpush.msrb.mxu3 %v9398_v11 }
0x180b   : > { %5162 = vmatpush.msra.mxu1 %v9411_v15  ;;  %5217 = vmatpush.msra.mxu0 %v5201_v36  ;;  %v9426_v36 = vld [vmem:[%s13752_s0 + $0x50] sm:$0xff] }
0x180c   : > { %5082 = vmatpush.msra.mxu2 %v11883_v52  ;;  %5113 = vmatpush.msrb.mxu3 %v9397_v53 }
0x180d   : > { %5163 = vmatpush.msra.mxu1 %v9410_v28  ;;  %5218 = vmatpush.msra.mxu0 %v5200_v35  ;;  %v9425_v35 = vld [vmem:[%s13752_s0 + $0x48] sm:$0xff] }
0x180f   : > { %5164 = vmatpush.msra.mxu1 %v9409_v24  ;;  %5219 = vmatpush.msra.mxu0 %v5199_v39  ;;  %v9424_v39 = vld [vmem:[%s13752_s0 + $0x40] sm:$0xff] }
0x1811   : > { %9395 = vmatmul.msk.f32.vlgmr.msra.gmra.mxu2 %vm1654_vm0, %v11498_v13  ;;  %v9396_v13 = vld [vmem:[%s13747_s1 + $0x40] sm:$0xff]  ;;  %5165 = vmatpush.msra.mxu1 %v9408_v45  ;;  %s13755_s1 = sld [smem:[#allocation30_spill]] }
0x1812   : > { %5114 = vmatpush.msrb.mxu3 %v9396_v13  ;;  %5220 = vmatpush.msra.mxu0 %v5198_v48 }
0x1813   : > { %5166 = vmatpush.msra.mxu1 %v9407_v49  ;;  %v9421_v49 = vld [vmem:[%s13752_s0 + $0x38] sm:$0xff] }
0x1815   : > { %5167 = vmatpush.msra.mxu1 %v9406_v43  ;;  %v9420_v43 = vld [vmem:[%s13752_s0 + $0x30] sm:$0xff] }
0x1886   : > { %v5137_v44 = vpop.f32.mrf.mxu0 }
0x1887   : > { %9414 = vmatmul.msk.f32.vlgmr.msra.gmra.mxu1 %vm2045_vm2, %v5137_v44  ;;  %v9419_v44 = vld [vmem:[%s13752_s0 + $0x28] sm:$0xff] }
0x188c   : > { %v5032_v25 = vpop.f32.mrf.mxu2 }
0x188d   : > { %9394 = vmatmul.msk.f32.vlgmr.msra.gmra.mxu3 %vm2045_vm2, %v5032_v25  ;;  %v9418_v25 = vld [vmem:[%s13752_s0 + $0x20] sm:$0xff] }
0x188e   : > { %5266 = vmatpush.msra.mxu3 %v9421_v49 }
0x1890   : > { %5267 = vmatpush.msra.mxu3 %v9420_v43 }
0x1892   : > { %5268 = vmatpush.msra.mxu3 %v9419_v44 }
0x1894   : > { %v5084_v34 = vpop.f32.mrf.mxu2  ;;  %5269 = vmatpush.msra.mxu3 %v9418_v25 }
0x1895   : > { %9404 = vmatmul.msk.f32.vlgmr.msrb.gmra.mxu3 %vm2045_vm2, %v5084_v34 }
0x1904   : > { %v5169_v13 = vpop.f32.mrf.mxu1 }
0x1910   : > { %v5063_v11 = vpop.f32.mrf.mxu3 }
0x1911   : > { %v5066_v15 = vadd.f32 %v10346_v38, %v5063_v11  ;;  %v9433_v38 = vld [vmem:[%s13754_s2 + $0x18] sm:$0xff] }
0x1918   : > { %v5116_v53 = vpop.f32.mrf.mxu3 }
0x1919   : > { %v5119_v28 = vadd.f32 %v5116_v53, %v5066_v15  ;;  %v9432_v15 = vld [vmem:[%s13754_s2 + $0x10] sm:$0xff] }
0x191b   : > { %v5172_v24 = vadd.f32 %v5169_v13, %v5119_v28 }
0x191d   : > { %v11918_v45 = vmax.f32 %v5172_v24, 0.0 }
0x191f   : > { %5193 = vmatpush.msrb.mxu2 %v11918_v45  ;;  %5290 = vmatpush.msrb.mxu0 %v11918_v45 }
0x1920   : > { %9415 = vmatmul.msk.f32.vlgmr.msrb.gmra.mxu2 %vm2192_vm3, %v11564_v62 }
0x1921   : > { %5241 = vmatpush.msra.mxu2 %v11918_v45 }
0x1928   : > { %9417 = vmatmul.msk.f32.vlgmr.msra.gmra.mxu2 %vm2192_vm3, %v11567_v6  ;;  %v9427_v6 = vld [vmem:[%s13752_s0 + $0x58] sm:$0xff]  ;;  %s13757_s0 = sld [smem:[#allocation33_spill]] }
0x1929   : > { %5315 = vmatpush.msrb.mxu1 %v9427_v6 }
0x192b   : > { %5316 = vmatpush.msrb.mxu1 %v9426_v36 }
0x192d   : > { %5317 = vmatpush.msrb.mxu1 %v9425_v35 }
0x192e   : > { %v9450_v43 = vld [vmem:[%s13757_s0 + $0x30] sm:$0xff]  ;;  %v9449_v44 = vld [vmem:[%s13757_s0 + $0x28] sm:$0xff]  ;;  %v9448_v25 = vld [vmem:[%s13757_s0 + $0x20] sm:$0xff] }
0x192f   : > { %5318 = vmatpush.msrb.mxu1 %v9424_v39 }
0x19a3   : > { %v5195_v34 = vpop.f32.mrf.mxu2 }
0x19a4   : > { %9416 = vmatmul.msk.f32.vlgmr.msra.gmra.mxu0 %vm2220_vm4, %v5195_v34  ;;  %v5569_v34 = vld [vmem:[%s13757_s0 + $0x18] sm:$0xff] }
0x19a5   : > { %5397 = vmatpush.msra.mxu0 %v9433_v38 }
0x19a7   : > { %5398 = vmatpush.msra.mxu0 %v9432_v15 }
0x19ab   : > { %v5243_v62 = vpop.f32.mrf.mxu2 }
0x19ac   : > { %9422 = vmatmul.msk.f32.vlgmr.msra.gmra.mxu3 %vm2220_vm4, %v5243_v62  ;;  %9423 = vmatmul.msk.f32.vlgmr.msrb.gmra.mxu0 %vm2192_vm3, %v11583_v33  ;;  %v10347_v33 = vld [vmem:[%s13755_s1] ss:$0 sm:$0xff]  ;;  %s13756_s1 = sld [smem:[#allocation32_spill]]  ;;  %v5568_v62 = vld [vmem:[%s13757_s0 + $0x10] sm:$0xff] }
0x19ad   : > { %5483 = vmatpush.msrb.mxu0 %v11616_v2 }
0x19af   : > { %5484 = vmatpush.msrb.mxu0 %v11624_v0 }
0x19b1   : > { %5485 = vmatpush.msrb.mxu0 %v11634_v12 }
0x19b3   : > { %5486 = vmatpush.msrb.mxu0 %v11642_v16  ;;  %v5353_v16 = vld [vmem:[%s13754_s2 + $0x8] sm:$0xff] }
0x19b4   : > { %5371 = vmatpush.msrb.mxu3 %v5353_v16 }
0x19b5   : > { %5487 = vmatpush.msrb.mxu0 %v11648_v56  ;;  %v5352_v56 = vld [vmem:[%s13754_s2] sm:$0xff] }
0x19b6   : > { %5372 = vmatpush.msrb.mxu3 %v5352_v56 }
0x19b7   : > { %5488 = vmatpush.msrb.mxu0 %v11658_v3  ;;  %v9438_v3 = vld [vmem:[%s13754_s2 + $0x28] sm:$0xff] }
0x19b8   : > { %5463 = vmatpush.msra.mxu3 %v11613_v27  ;;  %v10348_v27 = vld [vmem:[%s13756_s1] ss:$0 sm:$0xff]  ;;  %s13760_s1 = sld [smem:[#allocation34_spill]] }
0x19b9   : > { %5489 = vmatpush.msrb.mxu0 %v11666_v9  ;;  %v9437_v9 = vld [vmem:[%s13754_s2 + $0x20] sm:$0xff] }
0x19ba   : > { %5464 = vmatpush.msra.mxu3 %v11619_v4 }
0x19bb   : > { %5490 = vmatpush.msrb.mxu0 %v11674_v17 }
0x19bc   : > { %5465 = vmatpush.msra.mxu3 %v11631_v10 }
0x19be   : > { %5466 = vmatpush.msra.mxu3 %v11639_v14 }
0x19c0   : > { %5467 = vmatpush.msra.mxu3 %v11645_v55 }
0x19c2   : > { %5468 = vmatpush.msra.mxu3 %v11655_v63 }
0x19c4   : > { %5469 = vmatpush.msra.mxu3 %v11663_v7 }
0x19c6   : > { %5470 = vmatpush.msra.mxu3 %v11671_v18  ;;  %v9451_v18 = vld [vmem:[%s13757_s0 + $0x38] sm:$0xff] }
0x1a21   : > { %v5222_v48 = vpop.f32.mrf.mxu0 }
0x1a22   : > { %v5225_v2 = vadd.f32 %v10347_v33, %v5222_v48 }
0x1a29   : > { %v5292_v11 = vpop.f32.mrf.mxu0 }
0x1a2a   : > { %9428 = vmatmul.msk.f32.vlgmr.msrb.gmra.mxu1 %vm2220_vm4, %v5292_v11 }
0x1a2f   : > { %v5271_v53 = vpop.f32.mrf.mxu3 }
0x1a30   : > { %v5274_v0 = vadd.f32 %v5271_v53, %v5225_v2  ;;  %v13772_v53 = vld [vmem:[#allocation53_spill] sm:$0xff]  ;;  %v13773_v2 = vld [vmem:[#allocation54_spill] sm:$0xff] }
0x1aa7   : > { %v5320_v13 = vpop.f32.mrf.mxu1 }
0x1aa8   : > { %v5323_v12 = vadd.f32 %v5320_v13, %v5274_v0  ;;  %v13774_v0 = vld [vmem:[#allocation55_spill] sm:$0xff]  ;;  %v13775_v13 = vld [vmem:[#allocation56_spill] sm:$0xff] }
0x1aaa   : > { %v5324_v28 = vmax.f32 %v5323_v12, 0.0 }
0x1aac   : > { %9429 = vmatpush.msk.msrb.mxu2 %vm2363_vm5, %v5324_v28  ;;  %9434 = vmatmul.msk.f32.vlgmr.msra.gmra.mxu0 %vm1654_vm0, %v5324_v28 }
0x1aad   : > { %9435 = vmatpush.msk.msra.mxu1 %vm2363_vm5, %v5324_v28  ;;  %9430 = vmatmul.msk.f32.vlgmr.msrb.gmra.mxu2 %vm2359_vm6, %v11597_v19 }
0x1aae   : > { %9436 = vmatmul.msk.f32.vlgmr.msra.gmra.mxu1 %vm2359_vm6, %v11600_v60  ;;  %5444 = vmatpush.msra.mxu2 %v9438_v3 }
0x1ab0   : > { %5445 = vmatpush.msra.mxu2 %v9437_v9 }
0x1b29   : > { %v5400_v14 = vpop.f32.mrf.mxu0 }
0x1b2b   : > { %v5421_v19 = vpop.f32.mrf.mxu1 }
0x1b2c   : > { %9439 = vmatmul.msk.f32.vlgmr.msra.gmra.mxu2 %vm1654_vm0, %v5421_v19 }
0x1b30   : > { %v5349_v60 = vpop.f32.mrf.mxu2 }
0x1b31   : > { %9431 = vmatmul.msk.f32.vlgmr.msrb.gmra.mxu3 %vm1654_vm0, %v5349_v60 }
0x1b32   : > { %5614 = vmatpush.msrb.mxu3 %v9451_v18 }
0x1b34   : > { %5615 = vmatpush.msrb.mxu3 %v9450_v43 }
0x1b36   : > { %5616 = vmatpush.msrb.mxu3 %v9449_v44 }
0x1b38   : > { %5617 = vmatpush.msrb.mxu3 %v9448_v25 }
0x1baf   : > { %v5447_v17 = vpop.f32.mrf.mxu2 }
0x1bb4   : > { %v5374_v4 = vpop.f32.mrf.mxu3 }
0x1bb5   : > { %v5377_v10 = vadd.f32 %v10348_v27, %v5374_v4 }
0x1bb7   : > { %v5403_v55 = vadd.f32 %v5400_v14, %v5377_v10 }
0x1bb9   : > { %v5450_v63 = vadd.f32 %v5447_v17, %v5403_v55 }
0x1bbb   : > { %v5451_v7 = vmax.f32 %v5450_v63, 0.0 }
0x1bbd   : > { %9440 = vmatmul.msk.f32.vlgmr.msra.gmra.mxu3 %vm2045_vm2, %v5451_v7  ;;  %9441 = vmatmul.msk.f32.vlgmr.msrb.gmra.mxu0 %vm2045_vm2, %v5451_v7 }
0x1bbe   : > { %5693 = vmatpush.msra.mxu3 %v11721_v57 }
0x1bc0   : > { %5694 = vmatpush.msra.mxu3 %v11729_v21 }
0x1bc2   : > { %5695 = vmatpush.msra.mxu3 %v11735_v31 }
0x1bc4   : > { %5696 = vmatpush.msra.mxu3 %v11743_v50  ;;  %v5566_v50 = vld [vmem:[%s13757_s0] sm:$0xff] }
0x1bc6   : > { %5697 = vmatpush.msra.mxu3 %v11751_v37  ;;  %v9457_v37 = vld [vmem:[%s13757_s0 + $0x58] sm:$0xff] }
0x1bc8   : > { %5698 = vmatpush.msra.mxu3 %v11759_v23  ;;  %v9456_v23 = vld [vmem:[%s13757_s0 + $0x50] sm:$0xff] }
0x1bca   : > { %5699 = vmatpush.msra.mxu3 %v11767_v29  ;;  %v9455_v29 = vld [vmem:[%s13757_s0 + $0x48] sm:$0xff] }
0x1bcc   : > { %5700 = vmatpush.msra.mxu3 %v11775_v32  ;;  %v9454_v32 = vld [vmem:[%s13757_s0 + $0x40] sm:$0xff] }
0x1bce   : > { %5701 = vmatpush.msra.mxu3 %v11783_v20  ;;  %v13761_v20 = vld [vmem:[#allocation43_spill] sm:$0xff] }
0x1bd0   : > { %5702 = vmatpush.msra.mxu3 %v11791_v26  ;;  %v13764_v26 = vld [vmem:[#allocation46_spill] sm:$0xff] }
0x1bd2   : > { %5703 = vmatpush.msra.mxu3 %v11803_v54  ;;  %v13765_v54 = vld [vmem:[#allocation47_spill] sm:$0xff] }
0x1bd4   : > { %5704 = vmatpush.msra.mxu3 %v11811_v40  ;;  %v13767_v40 = vld [vmem:[#allocation49_spill] sm:$0xff] }
0x1bd6   : > { %5705 = vmatpush.msra.mxu3 %v11817_v46  ;;  %v13769_v46 = vld [vmem:[#allocation51_spill] sm:$0xff] }
0x1bd8   : > { %5706 = vmatpush.msra.mxu3 %v11827_v47 }
0x1bda   : > { %5707 = vmatpush.msra.mxu3 %v11835_v51  ;;  %v13770_v51 = vld [vmem:[#allocation52_spill] sm:$0xff] }
0x1bdc   : > { %5708 = vmatpush.msra.mxu3 %v11843_v30 }
0x1c3a   : > { %v5492_v24 = vpop.f32.mrf.mxu0 }
0x1c3b   : > { %9442 = vmatpush.msk.msrb.mxu1 %vm2363_vm5, %v5492_v24 }
0x1c3c   : > { %9443 = vmatmul.msk.f32.vlgmr.msrb.gmra.mxu1 %vm2359_vm6, %v11689_v22  ;;  %v5567_v22 = vld [vmem:[%s13757_s0 + $0x8] sm:$0xff]  ;;  %s13771_s0 = sld [smem:[#allocation37_spill]] }
0x1c40   : > { %v5472_v49 = vpop.f32.mrf.mxu3 }
0x1c41   : > { %9444 = vmatpush.msk.msrb.mxu2 %vm2363_vm5, %v5472_v49 }
0x1c42   : > { %9445 = vmatmul.msk.f32.vlgmr.msrb.gmra.mxu2 %vm2359_vm6, %v11683_v58  ;;  %v5852_v12 = vld [vmem:[%s13771_s0 + $0x170] sm:$0xff]  ;;  %v5846_v28 = vld [vmem:[%s13771_s0 + $0x140] sm:$0xff]  ;;  %v5851_v3 = vld [vmem:[%s13771_s0 + $0x168] sm:$0xff] }
0x1c43   : > { %5585 = vmatpush.msra.mxu2 %v5569_v34  ;;  %v5840_v16 = vld [vmem:[%s13771_s0 + $0x110] sm:$0xff]  ;;  %v5834_v9 = vld [vmem:[%s13771_s0 + $0xe0] sm:$0xff]  ;;  %v5845_v60 = vld [vmem:[%s13771_s0 + $0x138] sm:$0xff] }
0x1c44   : > { %v5848_v56 = vld [vmem:[%s13771_s0 + $0x150] sm:$0xff]  ;;  %v5842_v19 = vld [vmem:[%s13771_s0 + $0x120] sm:$0xff]  ;;  %v5839_v10 = vld [vmem:[%s13771_s0 + $0x108] sm:$0xff] }
0x1c45   : > { %5586 = vmatpush.msra.mxu2 %v5568_v62  ;;  %v5836_v27 = vld [vmem:[%s13771_s0 + $0xf0] sm:$0xff]  ;;  %v5830_v14 = vld [vmem:[%s13771_s0 + $0xc0] sm:$0xff]  ;;  %v5833_v17 = vld [vmem:[%s13771_s0 + $0xd8] sm:$0xff] }
0x1c46   : > { %v5828_v4 = vld [vmem:[%s13771_s0 + $0xb0] sm:$0xff]  ;;  %v5822_v7 = vld [vmem:[%s13771_s0 + $0x80] sm:$0xff]  ;;  %v5827_v24 = vld [vmem:[%s13771_s0 + $0xa8] sm:$0xff] }
0x1c47   : > { %5587 = vmatpush.msra.mxu2 %v5567_v22  ;;  %v5824_v18 = vld [vmem:[%s13771_s0 + $0x90] sm:$0xff]  ;;  %v5818_v43 = vld [vmem:[%s13771_s0 + $0x60] sm:$0xff]  ;;  %v5821_v44 = vld [vmem:[%s13771_s0 + $0x78] sm:$0xff] }
0x1c48   : > { %v5816_v49 = vld [vmem:[%s13771_s0 + $0x50] sm:$0xff]  ;;  %v5810_v25 = vld [vmem:[%s13771_s0 + $0x20] sm:$0xff]  ;;  %v5815_v22 = vld [vmem:[%s13771_s0 + $0x48] sm:$0xff] }
0x1c49   : > { %5588 = vmatpush.msra.mxu2 %v5566_v50  ;;  %v5812_v34 = vld [vmem:[%s13771_s0 + $0x30] sm:$0xff]  ;;  %v9521_v62 = vld [vmem:[%s13771_s0 + $0x2e0] sm:$0xff] }
0x1c4b   : > { %5673 = vmatpush.msrb.mxu2 %v11718_v41  ;;  %v13762_v41 = vld [vmem:[#allocation44_spill] sm:$0xff] }
0x1c4d   : > { %5674 = vmatpush.msrb.mxu2 %v11724_v59  ;;  %v13763_v59 = vld [vmem:[#allocation45_spill] sm:$0xff] }
0x1c4f   : > { %5675 = vmatpush.msrb.mxu2 %v11732_v1  ;;  %v13766_v1 = vld [vmem:[#allocation48_spill] sm:$0xff] }
0x1c51   : > { %5676 = vmatpush.msrb.mxu2 %v11740_v8  ;;  %v13768_v8 = vld [vmem:[#allocation50_spill] sm:$0xff] }
0x1cb9   : > { %v5515_v58 = vpop.f32.mrf.mxu1 }
0x1cc5   : > { %v5538_v57 = vpop.f32.mrf.mxu2 }
0x1cc6   : > { %v5539_v21 = vadd.f32 %v5538_v57, %v5515_v58  ;;  %v9515_v58 = vld [vmem:[%s13771_s0 + $0x2b0] sm:$0xff] }
0x1cc8   : > { %v5541_v31 = vadd.f32 %v5539_v21, %v11918_v45  ;;  %v10349_v45 = vld [vmem:[%s13760_s1] ss:$0 sm:$0xff]  ;;  %s13776_s1 = sld [smem:[#allocation38_spill]] }
0x1cca   : > { %5561 = vmatpush.msra.mxu1 %v5541_v31  ;;  %9452 = vmatmul.msk.f32.vlgmr.msrb.gmra.mxu3 %vm2220_vm4, %v5541_v31 }
0x1ccb   : > { %5638 = vmatpush.msra.mxu0 %v5541_v31  ;;  %9446 = vmatmul.msk.f32.vlgmr.msra.gmra.mxu1 %vm2192_vm3, %v11699_v61  ;;  %v13758_v61 = vld [vmem:[#allocation41_spill] sm:$0xff] }
0x1ccc   : > { %9453 = vmatmul.msk.f32.vlgmr.msra.gmra.mxu0 %vm2192_vm3, %v11702_v42  ;;  %5663 = vmatpush.msrb.mxu1 %v9457_v37  ;;  %v13759_v42 = vld [vmem:[#allocation42_spill] sm:$0xff]  ;;  %v9509_v37 = vld [vmem:[%s13771_s0 + $0x280] sm:$0xff] }
0x1ccd   : > { %5677 = vmatpush.msrb.mxu2 %v13758_v61  ;;  %5960 = vmatpush.msrb.mxu3 %v5852_v12  ;;  %v5775_v61 = vld [vmem:[%s10430_s9] sm:$0xff]  ;;  %v9496_v12 = vld [vmem:[%s13771_s0 + $0x218] sm:$0xff] }
0x1cce   : > { %5664 = vmatpush.msrb.mxu1 %v9456_v23 }
0x1ccf   : > { %5678 = vmatpush.msrb.mxu2 %v13759_v42  ;;  %5961 = vmatpush.msrb.mxu3 %v5846_v28  ;;  %v9497_v42 = vld [vmem:[%s13771_s0 + $0x220] sm:$0xff]  ;;  %v5820_v28 = vld [vmem:[%s13771_s0 + $0x70] sm:$0xff] }
0x1cd0   : > { %5665 = vmatpush.msrb.mxu1 %v9455_v29  ;;  %v9503_v29 = vld [vmem:[%s13771_s0 + $0x250] sm:$0xff] }
0x1cd1   : > { %5679 = vmatpush.msrb.mxu2 %v13761_v20  ;;  %5962 = vmatpush.msrb.mxu3 %v5840_v16  ;;  %v5849_v20 = vld [vmem:[%s13771_s0 + $0x158] sm:$0xff]  ;;  %v5823_v16 = vld [vmem:[%s13771_s0 + $0x88] sm:$0xff] }
0x1cd2   : > { %5666 = vmatpush.msrb.mxu1 %v9454_v32 }
0x1cd3   : > { %5680 = vmatpush.msrb.mxu2 %v13762_v41  ;;  %5963 = vmatpush.msrb.mxu3 %v5834_v9  ;;  %v9491_v41 = vld [vmem:[%s13771_s0 + $0x1f0] sm:$0xff]  ;;  %v5817_v9 = vld [vmem:[%s13771_s0 + $0x58] sm:$0xff] }
0x1cd5   : > { %5681 = vmatpush.msrb.mxu2 %v13763_v59  ;;  %5964 = vmatpush.msrb.mxu3 %v5828_v4  ;;  %v5837_v59 = vld [vmem:[%s13771_s0 + $0xf8] sm:$0xff]  ;;  %v9478_v4 = vld [vmem:[%s13771_s0 + $0x188] sm:$0xff] }
0x1cd7   : > { %5682 = vmatpush.msrb.mxu2 %v13764_v26  ;;  %5965 = vmatpush.msrb.mxu3 %v5822_v7  ;;  %v5831_v26 = vld [vmem:[%s13771_s0 + $0xc8] sm:$0xff]  ;;  %v9516_v7 = vld [vmem:[%s13771_s0 + $0x2b8] sm:$0xff] }
0x1cd9   : > { %5683 = vmatpush.msrb.mxu2 %v13765_v54  ;;  %5966 = vmatpush.msrb.mxu3 %v5816_v49  ;;  %v5776_v54 = vld [vmem:[%s10430_s9 + $0x8] sm:$0xff] }
0x1cda   : > { %v9510_v49 = vld [vmem:[%s13771_s0 + $0x288] sm:$0xff] }
0x1cdb   : > { %5684 = vmatpush.msrb.mxu2 %v13766_v1  ;;  %5967 = vmatpush.msrb.mxu3 %v5810_v25  ;;  %v5825_v1 = vld [vmem:[%s13771_s0 + $0x98] sm:$0xff]  ;;  %v9501_v25 = vld [vmem:[%s13771_s0 + $0x240] sm:$0xff] }
0x1cdd   : > { %5685 = vmatpush.msrb.mxu2 %v13767_v40  ;;  %v5819_v40 = vld [vmem:[%s13771_s0 + $0x68] sm:$0xff] }
0x1cdf   : > { %5686 = vmatpush.msrb.mxu2 %v13768_v8  ;;  %v5813_v8 = vld [vmem:[%s13771_s0 + $0x38] sm:$0xff] }
0x1ce1   : > { %5687 = vmatpush.msrb.mxu2 %v13769_v46  ;;  %v5806_v46 = vld [vmem:[%s13771_s0] sm:$0xff] }
0x1ce3   : > { %5688 = vmatpush.msrb.mxu2 %v13770_v51  ;;  %v5809_v51 = vld [vmem:[%s13771_s0 + $0x18] sm:$0xff] }
0x1d48   : > { %v5563_v47 = vpop.f32.mrf.mxu1 }
0x1d49   : > { %9447 = vmatmul.msk.f32.vlgmr.msra.gmra.mxu2 %vm2220_vm4, %v5563_v47  ;;  %v5640_v30 = vpop.f32.mrf.mxu0  ;;  %v5807_v47 = vld [vmem:[%s13771_s0 + $0x8] sm:$0xff] }
0x1d4a   : > { %9458 = vmatmul.msk.f32.vlgmr.msrb.gmra.mxu1 %vm2220_vm4, %v5640_v30  ;;  %5937 = vmatpush.msra.mxu2 %v5851_v3  ;;  %v9479_v30 = vld [vmem:[%s13771_s0 + $0x190] sm:$0xff]  ;;  %v5814_v3 = vld [vmem:[%s13771_s0 + $0x40] sm:$0xff] }
0x1d4c   : > { %5938 = vmatpush.msra.mxu2 %v5845_v60  ;;  %v5808_v60 = vld [vmem:[%s13771_s0 + $0x10] sm:$0xff] }
0x1d4d   : > { %v5619_v35 = vpop.f32.mrf.mxu3 }
0x1d4e   : > { %5939 = vmatpush.msra.mxu2 %v5839_v10 }
0x1d50   : > { %5940 = vmatpush.msra.mxu2 %v5833_v17  ;;  %v9522_v17 = vld [vmem:[%s13771_s0 + $0x2e8] sm:$0xff] }
0x1d52   : > { %5941 = vmatpush.msra.mxu2 %v5827_v24  ;;  %v9507_v24 = vld [vmem:[%s13771_s0 + $0x270] sm:$0xff] }
0x1d54   : > { %5942 = vmatpush.msra.mxu2 %v5821_v44 }
0x1d56   : > { %5943 = vmatpush.msra.mxu2 %v5815_v22  ;;  %v9495_v22 = vld [vmem:[%s13771_s0 + $0x210] sm:$0xff] }
0x1d58   : > { %5944 = vmatpush.msra.mxu2 %v5809_v51  ;;  %v9583_v51 = vld [vmem:[%s13771_s0 + $0x450] sm:$0xff] }
0x1dc7   : > { %v5668_v39 = vpop.f32.mrf.mxu1 }
0x1dcc   : > { %v5590_v6 = vpop.f32.mrf.mxu2 }
0x1dcd   : > { %v5593_v36 = vadd.f32 %v10349_v45, %v5590_v6  ;;  %v5850_v45 = vld [vmem:[%s13771_s0 + $0x160] sm:$0xff]  ;;  %v5853_v6 = vld [vmem:[%s13771_s0 + $0x178] sm:$0xff] }
0x1dcf   : > { %v5622_v48 = vadd.f32 %v5619_v35, %v5593_v36  ;;  %v9520_v36 = vld [vmem:[%s13771_s0 + $0x2d8] sm:$0xff]  ;;  %v5844_v35 = vld [vmem:[%s13771_s0 + $0x130] sm:$0xff] }
0x1dd1   : > { %v5671_v11 = vadd.f32 %v5668_v39, %v5622_v48  ;;  %v5847_v39 = vld [vmem:[%s13771_s0 + $0x148] sm:$0xff] }
0x1dd2   : > { %v9514_v48 = vld [vmem:[%s13771_s0 + $0x2a8] sm:$0xff] }
0x1dd3   : > { %v5672_v38 = vmax.f32 %v5671_v11, 0.0  ;;  %v5838_v11 = vld [vmem:[%s13771_s0 + $0x100] sm:$0xff] }
0x1dd5   : > { %5689 = vmatmul.f32.vlgmr.msrb.gmra.mxu2 %v5672_v38  ;;  %5709 = vmatmul.f32.vlgmr.msra.gmra.mxu3 %v5672_v38  ;;  %v5841_v38 = vld [vmem:[%s13771_s0 + $0x118] sm:$0xff] }
0x1dd6   : > { %6119 = vmatpush.msra.mxu3 %v9521_v62  ;;  %6096 = vmatpush.msrb.mxu2 %v9520_v36  ;;  %v9506_v62 = vld [vmem:[%s13771_s0 + $0x268] sm:$0xff]  ;;  %v9577_v36 = vld [vmem:[%s13771_s0 + $0x420] sm:$0xff] }
0x1dd8   : > { %6120 = vmatpush.msra.mxu3 %v9515_v58  ;;  %6097 = vmatpush.msrb.mxu2 %v9514_v48  ;;  %v9498_v58 = vld [vmem:[%s13771_s0 + $0x228] sm:$0xff]  ;;  %v9571_v48 = vld [vmem:[%s13771_s0 + $0x3f0] sm:$0xff] }
0x1dda   : > { %6121 = vmatpush.msra.mxu3 %v9509_v37  ;;  %v9483_v37 = vld [vmem:[%s13771_s0 + $0x1b0] sm:$0xff] }
0x1ddc   : > { %6122 = vmatpush.msra.mxu3 %v9503_v29  ;;  %v9486_v29 = vld [vmem:[%s13771_s0 + $0x1c8] sm:$0xff] }
0x1dde   : > { %6123 = vmatpush.msra.mxu3 %v9497_v42  ;;  %v9477_v42 = vld [vmem:[%s13771_s0 + $0x180] sm:$0xff] }
0x1de0   : > { %6124 = vmatpush.msra.mxu3 %v9491_v41  ;;  %v9482_v41 = vld [vmem:[%s13771_s0 + $0x1a8] sm:$0xff] }
0x1e58   : > { %v5690_v15 = vpop.f32.mrf.mxu2  ;;  %v5710_v33 = vpop.f32.mrf.mxu3 }
0x1e59   : > { %5728 = vmatpush.msrb.mxu0 %v5710_v33  ;;  %5751 = vmatpush.msra.mxu1 %v5690_v15  ;;  %v9508_v15 = vld [vmem:[%s13771_s0 + $0x278] sm:$0xff]  ;;  %v5832_v33 = vld [vmem:[%s13771_s0 + $0xd0] sm:$0xff] }
0x1e5a   : > { %9459 = vmatmul.msk.f32.vlgmr.msrb.gmra.mxu0 %vm2192_vm3, %v13772_v53  ;;  %9461 = vmatmul.msk.f32.vlgmr.msra.gmra.mxu1 %vm2192_vm3, %v13773_v2  ;;  %v5835_v53 = vld [vmem:[%s13771_s0 + $0xe8] sm:$0xff] }
0x1e5b   : > { %5868 = vmatpush.msrb.mxu1 %v5848_v56  ;;  %v9502_v2 = vld [vmem:[%s13771_s0 + $0x248] sm:$0xff]  ;;  %6098 = vmatpush.msrb.mxu2 %v9508_v15  ;;  %v9565_v15 = vld [vmem:[%s13771_s0 + $0x3c0] sm:$0xff] }
0x1e5c   : > { %v9490_v56 = vld [vmem:[%s13771_s0 + $0x1e8] sm:$0xff] }
0x1e5d   : > { %5869 = vmatpush.msrb.mxu1 %v5842_v19  ;;  %6099 = vmatpush.msrb.mxu2 %v9502_v2  ;;  %v9484_v19 = vld [vmem:[%s13771_s0 + $0x1b8] sm:$0xff] }
0x1e5e   : > { %v9568_v2 = vld [vmem:[%s13771_s0 + $0x3d8] sm:$0xff] }
0x1e5f   : > { %5870 = vmatpush.msrb.mxu1 %v5836_v27  ;;  %6100 = vmatpush.msrb.mxu2 %v9496_v12  ;;  %v5811_v27 = vld [vmem:[%s13771_s0 + $0x28] sm:$0xff]  ;;  %v9561_v12 = vld [vmem:[%s13771_s0 + $0x3a0] sm:$0xff] }
0x1e61   : > { %5871 = vmatpush.msrb.mxu1 %v5830_v14  ;;  %6101 = vmatpush.msrb.mxu2 %v9490_v56  ;;  %v9519_v14 = vld [vmem:[%s13771_s0 + $0x2d0] sm:$0xff]  ;;  %v9554_v56 = vld [vmem:[%s13771_s0 + $0x368] sm:$0xff] }
0x1e62   : > { %9460 = vmatmul.msk.f32.gmra.mxu0 %vm2192_vm3, %v13774_v0  ;;  %9462 = vmatmul.msk.f32.gmra.mxu1 %vm2192_vm3, %v13775_v13  ;;  %v5826_v0 = vld [vmem:[%s13771_s0 + $0xa0] sm:$0xff]  ;;  %v5829_v13 = vld [vmem:[%s13771_s0 + $0xb8] sm:$0xff] }
0x1e63   : > { %5872 = vmatpush.msrb.mxu1 %v5824_v18  ;;  %6102 = vmatpush.msrb.mxu2 %v9484_v19  ;;  %v9518_v18 = vld [vmem:[%s13771_s0 + $0x2c8] sm:$0xff]  ;;  %v9547_v19 = vld [vmem:[%s13771_s0 + $0x330] sm:$0xff] }
0x1e65   : > { %5873 = vmatpush.msrb.mxu1 %v5818_v43  ;;  %6103 = vmatpush.msrb.mxu2 %v9478_v4  ;;  %v9512_v43 = vld [vmem:[%s13771_s0 + $0x298] sm:$0xff]  ;;  %v9550_v4 = vld [vmem:[%s13771_s0 + $0x348] sm:$0xff] }
0x1e67   : > { %5874 = vmatpush.msrb.mxu1 %v5812_v34  ;;  %v9504_v34 = vld [vmem:[%s13771_s0 + $0x258] sm:$0xff] }
0x1e69   : > { %5875 = vmatpush.msrb.mxu1 %v5806_v46  ;;  %v9481_v46 = vld [vmem:[%s13771_s0 + $0x1a0] sm:$0xff] }
0x1e6b   : > { %5914 = vmatpush.msra.mxu1 %v5850_v45  ;;  %v9585_v45 = vld [vmem:[%s13771_s0 + $0x460] sm:$0xff] }
0x1e6d   : > { %5915 = vmatpush.msra.mxu1 %v5844_v35  ;;  %v9578_v35 = vld [vmem:[%s13771_s0 + $0x428] sm:$0xff] }
0x1e6f   : > { %5916 = vmatpush.msra.mxu1 %v5838_v11  ;;  %v9573_v11 = vld [vmem:[%s13771_s0 + $0x400] sm:$0xff] }
0x1e71   : > { %5917 = vmatpush.msra.mxu1 %v5832_v33  ;;  %v9566_v33 = vld [vmem:[%s13771_s0 + $0x3c8] sm:$0xff] }
0x1e73   : > { %5918 = vmatpush.msra.mxu1 %v5826_v0  ;;  %v9559_v0 = vld [vmem:[%s13771_s0 + $0x390] sm:$0xff] }
0x1e75   : > { %5919 = vmatpush.msra.mxu1 %v5820_v28  ;;  %v9562_v28 = vld [vmem:[%s13771_s0 + $0x3a8] sm:$0xff] }
0x1e77   : > { %5920 = vmatpush.msra.mxu1 %v5814_v3  ;;  %v9555_v3 = vld [vmem:[%s13771_s0 + $0x370] sm:$0xff] }
0x1e79   : > { %5921 = vmatpush.msra.mxu1 %v5808_v60  ;;  %v9548_v60 = vld [vmem:[%s13771_s0 + $0x338] sm:$0xff] }
0x1ed7   : > { %v5730_v55 = vpop.f32.mrf.mxu0  ;;  %v5753_v63 = vpop.f32.mrf.mxu1 }
0x1ed8   : > { %v5754_v31 = vadd.f32 %v5753_v63, %v5730_v55  ;;  %v9524_v55 = vld [vmem:[%s13771_s0 + $0x2f8] sm:$0xff]  ;;  %v9513_v63 = vld [vmem:[%s13771_s0 + $0x2a0] sm:$0xff] }
0x1eda   : > { %v12072_v32 = vadd.f32 %v5754_v31, %v11883_v52  ;;  %v9485_v52 = vld [vmem:[%s13771_s0 + $0x1c0] sm:$0xff]  ;;  %v9492_v31 = vld [vmem:[%s13771_s0 + $0x1f8] sm:$0xff] }
0x1edb   : > { %6125 = vmatpush.msra.mxu3 %v9485_v52  ;;  %v9517_v52 = vld [vmem:[%s13771_s0 + $0x2c0] sm:$0xff] }
0x1edd   : > { %6126 = vmatpush.msra.mxu3 %v9479_v30  ;;  %v9584_v30 = vld [vmem:[%s13771_s0 + $0x458] sm:$0xff] }
0x1edf   : > { %v5733_v57 = vpop.f32.mrf.mxu0  ;;  %v5756_v21 = vpop.f32.mrf.mxu1 }
0x1ee0   : > { %v5757_v50 = vadd.f32 %v5756_v21, %v5733_v57  ;;  %v9500_v57 = vld [vmem:[%s13771_s0 + $0x238] sm:$0xff]  ;;  %v9489_v21 = vld [vmem:[%s13771_s0 + $0x1e0] sm:$0xff] }
0x1ee2   : > { %v12068_v23 = vadd.f32 %v5757_v50, %v11880_v5  ;;  %v5843_v5 = vld [vmem:[%s13771_s0 + $0x128] sm:$0xff] }
0x1ee3   : > { %v9494_v50 = vld [vmem:[%s13771_s0 + $0x208] sm:$0xff] }
0x1ee4   : > { %5797 = vmatpush.msra.mxu0 %v12068_v23 }
0x1ee6   : > { %5798 = vmatpush.msra.mxu0 %v12072_v32 }
0x1ee7   : > { %9463 = vmatmul.msk.f32.vlgmr.msra.gmra.mxu0 %vm1654_vm0, %v5775_v61  ;;  %v9488_v61 = vld [vmem:[%s13771_s0 + $0x1d8] sm:$0xff] }
0x1ee8   : > { %5891 = vmatpush.msrb.mxu0 %v5849_v20  ;;  %v9480_v20 = vld [vmem:[%s13771_s0 + $0x198] sm:$0xff] }
0x1eea   : > { %5892 = vmatpush.msrb.mxu0 %v5843_v5  ;;  %v9523_v5 = vld [vmem:[%s13771_s0 + $0x2f0] sm:$0xff] }
0x1eec   : > { %5893 = vmatpush.msrb.mxu0 %v5837_v59  ;;  %v9511_v59 = vld [vmem:[%s13771_s0 + $0x290] sm:$0xff] }
0x1eee   : > { %5894 = vmatpush.msrb.mxu0 %v5831_v26  ;;  %v9505_v26 = vld [vmem:[%s13771_s0 + $0x260] sm:$0xff] }
0x1eef   : > { %9464 = vmatmul.msk.f32.gmra.mxu0 %vm1654_vm0, %v5776_v54  ;;  %v9499_v54 = vld [vmem:[%s13771_s0 + $0x230] sm:$0xff] }
0x1ef0   : > { %5895 = vmatpush.msrb.mxu0 %v5825_v1  ;;  %v9537_v1 = vld [vmem:[%s10430_s9 + $0x20] sm:$0xff] }
0x1ef2   : > { %5896 = vmatpush.msrb.mxu0 %v5819_v40  ;;  %v9493_v40 = vld [vmem:[%s13771_s0 + $0x200] sm:$0xff] }
0x1ef4   : > { %5897 = vmatpush.msrb.mxu0 %v5813_v8  ;;  %v9487_v8 = vld [vmem:[%s13771_s0 + $0x1d0] sm:$0xff] }
0x1ef6   : > { %5898 = vmatpush.msrb.mxu0 %v5807_v47  ;;  %v9538_v47 = vld [vmem:[%s10430_s9 + $0x28] sm:$0xff] }
0x1ef8   : > { %5983 = vmatpush.msra.mxu0 %v5853_v6  ;;  %v9586_v6 = vld [vmem:[%s13771_s0 + $0x468] sm:$0xff] }
0x1efa   : > { %5984 = vmatpush.msra.mxu0 %v5847_v39  ;;  %v9579_v39 = vld [vmem:[%s13771_s0 + $0x430] sm:$0xff] }
0x1efc   : > { %5985 = vmatpush.msra.mxu0 %v5841_v38  ;;  %v9574_v38 = vld [vmem:[%s13771_s0 + $0x408] sm:$0xff] }
0x1efe   : > { %5986 = vmatpush.msra.mxu0 %v5835_v53  ;;  %v9567_v53 = vld [vmem:[%s13771_s0 + $0x3d0] sm:$0xff] }
0x1f00   : > { %5987 = vmatpush.msra.mxu0 %v5829_v13  ;;  %v9560_v13 = vld [vmem:[%s13771_s0 + $0x398] sm:$0xff] }
0x1f02   : > { %5988 = vmatpush.msra.mxu0 %v5823_v16  ;;  %v9553_v16 = vld [vmem:[%s13771_s0 + $0x360] sm:$0xff] }
0x1f04   : > { %5989 = vmatpush.msra.mxu0 %v5817_v9  ;;  %v9556_v9 = vld [vmem:[%s13771_s0 + $0x378] sm:$0xff] }
0x1f06   : > { %5990 = vmatpush.msra.mxu0 %v5811_v27  ;;  %v9549_v27 = vld [vmem:[%s13771_s0 + $0x340] sm:$0xff] }
0x1f64   : > { %v5800_v10 = vpop.f32.mrf.mxu0 }
0x1f65   : > { %9465 = vmatmul.msk.f32.vlgmr.msrb.gmra.mxu1 %vm2045_vm2, %v5800_v10  ;;  %9467 = vmatmul.msk.f32.vlgmr.msrb.gmra.mxu0 %vm2045_vm2, %v5800_v10 }
0x1f66   : > { %9471 = vmatmul.msk.f32.vlgmr.msra.gmra.mxu2 %vm2045_vm2, %v5800_v10  ;;  %9473 = vmatmul.msk.f32.vlgmr.msrb.gmra.mxu3 %vm2045_vm2, %v5800_v10 }
0x1f67   : > { %6237 = vmatpush.msrb.mxu3 %v12068_v23  ;;  %6073 = vmatpush.msrb.mxu1 %v9519_v14  ;;  %v9541_v14 = vld [vmem:[%s13771_s0 + $0x300] sm:$0xff] }
0x1f68   : > { %6142 = vmatpush.msrb.mxu0 %v9522_v17  ;;  %6188 = vmatpush.msra.mxu2 %v9524_v55  ;;  %v9542_v17 = vld [vmem:[%s13771_s0 + $0x308] sm:$0xff]  ;;  %v9543_v55 = vld [vmem:[%s13771_s0 + $0x310] sm:$0xff] }
0x1f69   : > { %6238 = vmatpush.msrb.mxu3 %v12072_v32  ;;  %6074 = vmatpush.msrb.mxu1 %v9513_v63  ;;  %v9544_v63 = vld [vmem:[%s13771_s0 + $0x318] sm:$0xff] }
0x1f6a   : > { %6143 = vmatpush.msrb.mxu0 %v9516_v7  ;;  %6189 = vmatpush.msra.mxu2 %v9518_v18  ;;  %v9587_v7 = vld [vmem:[%s13771_s0 + $0x470] sm:$0xff]  ;;  %v9588_v18 = vld [vmem:[%s13771_s0 + $0x478] sm:$0xff] }
0x1f6b   : > { %6075 = vmatpush.msrb.mxu1 %v9507_v24  ;;  %v9581_v24 = vld [vmem:[%s13771_s0 + $0x440] sm:$0xff] }
0x1f6c   : > { %v5803_v44 = vpop.f32.mrf.mxu0  ;;  %6144 = vmatpush.msrb.mxu0 %v9510_v49  ;;  %6190 = vmatpush.msra.mxu2 %v9512_v43  ;;  %v9582_v49 = vld [vmem:[%s13771_s0 + $0x448] sm:$0xff]  ;;  %v9575_v43 = vld [vmem:[%s13771_s0 + $0x410] sm:$0xff] }
0x1f6d   : > { %9466 = vmatmul.msk.f32.gmra.mxu1 %vm2045_vm2, %v5803_v44  ;;  %9468 = vmatmul.msk.f32.gmra.mxu0 %vm2045_vm2, %v5803_v44 }
0x1f6e   : > { %9472 = vmatmul.msk.f32.gmra.mxu2 %vm2045_vm2, %v5803_v44  ;;  %9474 = vmatmul.msk.f32.gmra.mxu3 %vm2045_vm2, %v5803_v44 }
0x1f6f   : > { %6076 = vmatpush.msrb.mxu1 %v9501_v25  ;;  %6145 = vmatpush.msrb.mxu0 %v9504_v34  ;;  %v9569_v34 = vld [vmem:[%s13771_s0 + $0x3e0] sm:$0xff] }
0x1f70   : > { %6191 = vmatpush.msra.mxu2 %v9506_v62  ;;  %v9570_v62 = vld [vmem:[%s13771_s0 + $0x3e8] sm:$0xff] }
0x1f71   : > { %6077 = vmatpush.msrb.mxu1 %v9495_v22  ;;  %6146 = vmatpush.msrb.mxu0 %v9498_v58  ;;  %v9563_v22 = vld [vmem:[%s13771_s0 + $0x3b0] sm:$0xff]  ;;  %v9564_v58 = vld [vmem:[%s13771_s0 + $0x3b8] sm:$0xff] }
0x1f72   : > { %6192 = vmatpush.msra.mxu2 %v9500_v57  ;;  %v9557_v57 = vld [vmem:[%s13771_s0 + $0x380] sm:$0xff] }
0x1f73   : > { %6078 = vmatpush.msrb.mxu1 %v9489_v21  ;;  %6147 = vmatpush.msrb.mxu0 %v9492_v31  ;;  %v9558_v21 = vld [vmem:[%s13771_s0 + $0x388] sm:$0xff]  ;;  %v9551_v31 = vld [vmem:[%s13771_s0 + $0x350] sm:$0xff] }
0x1f74   : > { %6193 = vmatpush.msra.mxu2 %v9494_v50  ;;  %v9552_v50 = vld [vmem:[%s13771_s0 + $0x358] sm:$0xff] }
0x1f75   : > { %9469 = vmatmul.msk.f32.vlgmr.msra.gmra.mxu1 %vm2045_vm2, %v5800_v10  ;;  %9475 = vmatmul.msk.f32.vlgmr.msra.gmra.mxu0 %vm2045_vm2, %v5800_v10 }
0x1f76   : > { %9527 = vmatmul.msk.f32.vlgmr.msrb.gmra.mxu2 %vm2045_vm2, %v12072_v32  ;;  %9529 = vmatmul.msk.f32.vlgmr.msra.gmra.mxu3 %vm2045_vm2, %v12072_v32 }
0x1f77   : > { %6079 = vmatpush.msrb.mxu1 %v9483_v37  ;;  %6148 = vmatpush.msrb.mxu0 %v9486_v29  ;;  %v9545_v37 = vld [vmem:[%s13771_s0 + $0x320] sm:$0xff]  ;;  %v9546_v29 = vld [vmem:[%s13771_s0 + $0x328] sm:$0xff] }
0x1f78   : > { %6194 = vmatpush.msra.mxu2 %v9488_v61  ;;  %6378 = vmatpush.msra.mxu3 %v9586_v6  ;;  %v6479_v6 = vld [vmem:[%s10690_s4 + $0xa0] sm:$0xff] }
0x1f79   : > { %6080 = vmatpush.msrb.mxu1 %v9477_v42  ;;  %6149 = vmatpush.msrb.mxu0 %v9480_v20  ;;  %v6489_v20 = vld [vmem:[%s10690_s4 + $0xf0] sm:$0xff] }
0x1f7a   : > { %6195 = vmatpush.msra.mxu2 %v9482_v41  ;;  %v6521_v41 = vld [vmem:[%s10690_s4 + $0x1f0] sm:$0xff] }
0x1f7b   : > { %6165 = vmatpush.msra.mxu1 %v9523_v5  ;;  %6309 = vmatpush.msra.mxu0 %v9583_v51  ;;  %v6487_v5 = vld [vmem:[%s10690_s4 + $0xe0] sm:$0xff]  ;;  %v6513_v51 = vld [vmem:[%s10690_s4 + $0x1b0] sm:$0xff] }
0x1f7c   : > { %6355 = vmatpush.msrb.mxu2 %v9585_v45  ;;  %v6583_v45 = vld [vmem:[%s10690_s4 + $0x3e0] sm:$0xff] }
0x1f7d   : > { %6166 = vmatpush.msra.mxu1 %v9517_v52  ;;  %9476 = vmatmul.msk.f32.gmra.mxu0 %vm2045_vm2, %v5803_v44  ;;  %v6519_v52 = vld [vmem:[%s10690_s4 + $0x1e0] sm:$0xff] }
0x1f7e   : > { %9470 = vmatmul.msk.f32.gmra.mxu1 %vm2045_vm2, %v5803_v44  ;;  %9528 = vmatmul.msk.f32.gmra.mxu2 %vm2045_vm2, %v12068_v23  ;;  %v9576_v44 = vld [vmem:[%s13771_s0 + $0x418] sm:$0xff] }
0x1f7f   : > { %9530 = vmatmul.msk.f32.gmra.mxu3 %vm2045_vm2, %v12068_v23  ;;  %6167 = vmatpush.msra.mxu1 %v9511_v59  ;;  %v6485_v59 = vld [vmem:[%s10690_s4 + $0xd0] sm:$0xff] }
0x1f80   : > { %6310 = vmatpush.msra.mxu0 %v9577_v36  ;;  %6356 = vmatpush.msrb.mxu2 %v9579_v39  ;;  %v6511_v36 = vld [vmem:[%s10690_s4 + $0x1a0] sm:$0xff]  ;;  %v6581_v39 = vld [vmem:[%s10690_s4 + $0x3d0] sm:$0xff] }
0x1f81   : > { %6168 = vmatpush.msra.mxu1 %v9505_v26  ;;  %v6517_v26 = vld [vmem:[%s10690_s4 + $0x1d0] sm:$0xff] }
0x1f82   : > { %6311 = vmatpush.msra.mxu0 %v9571_v48  ;;  %6357 = vmatpush.msrb.mxu2 %v9573_v11  ;;  %v6509_v48 = vld [vmem:[%s10690_s4 + $0x190] sm:$0xff]  ;;  %v6547_v11 = vld [vmem:[%s10690_s4 + $0x2c0] sm:$0xff] }
0x1f83   : > { %6169 = vmatpush.msra.mxu1 %v9499_v54  ;;  %v6483_v54 = vld [vmem:[%s10690_s4 + $0xc0] sm:$0xff] }
0x1f84   : > { %6312 = vmatpush.msra.mxu0 %v9565_v15  ;;  %6358 = vmatpush.msrb.mxu2 %v9567_v53  ;;  %v6475_v15 = vld [vmem:[%s10690_s4 + $0x80] sm:$0xff]  ;;  %v6545_v53 = vld [vmem:[%s10690_s4 + $0x2b0] sm:$0xff] }
0x1f85   : > { %9531 = vmatmul.msk.f32.vlgmr.msrb.gmra.mxu0 %vm2045_vm2, %v12072_v32  ;;  %6170 = vmatpush.msra.mxu1 %v9493_v40 }
0x1f86   : > { %9525 = vmatmul.msk.f32.vlgmr.msrb.gmra.mxu1 %vm2045_vm2, %v12072_v32  ;;  %9535 = vmatmul.msk.f32.vlgmr.msra.gmra.mxu2 %vm2045_vm2, %v12072_v32 }
0x1f87   : > { %9539 = vmatmul.msk.f32.vlgmr.msrb.gmra.mxu3 %vm1654_vm0, %v9537_v1  ;;  %6171 = vmatpush.msra.mxu1 %v9487_v8  ;;  %v6515_v1 = vld [vmem:[%s10690_s4 + $0x1c0] sm:$0xff]  ;;  %v6553_v8 = vld [vmem:[%s10690_s4 + $0x2f0] sm:$0xff] }
0x1f88   : > { %6313 = vmatpush.msra.mxu0 %v9559_v0  ;;  %6359 = vmatpush.msrb.mxu2 %v9561_v12  ;;  %v6473_v0 = vld [vmem:[%s10690_s4 + $0x70] sm:$0xff]  ;;  %v6543_v12 = vld [vmem:[%s10690_s4 + $0x2a0] sm:$0xff] }
0x1f89   : > { %6172 = vmatpush.msra.mxu1 %v9481_v46  ;;  %v6585_v46 = vld [vmem:[%s10690_s4 + $0x3f0] sm:$0xff] }
0x1f8a   : > { %6314 = vmatpush.msra.mxu0 %v9553_v16  ;;  %6360 = vmatpush.msrb.mxu2 %v9555_v3  ;;  %v6471_v16 = vld [vmem:[%s10690_s4 + $0x60] sm:$0xff]  ;;  %v6541_v3 = vld [vmem:[%s10690_s4 + $0x290] sm:$0xff] }
0x1f8b   : > { %6332 = vmatpush.msrb.mxu1 %v9584_v30  ;;  %v6551_v30 = vld [vmem:[%s10690_s4 + $0x2e0] sm:$0xff] }
0x1f8c   : > { %6315 = vmatpush.msra.mxu0 %v9547_v19  ;;  %6361 = vmatpush.msrb.mxu2 %v9549_v27  ;;  %v6469_v19 = vld [vmem:[%s10690_s4 + $0x50] sm:$0xff]  ;;  %v6539_v27 = vld [vmem:[%s10690_s4 + $0x280] sm:$0xff] }
0x1f8d   : > { %9532 = vmatmul.msk.f32.gmra.mxu0 %vm2045_vm2, %v12068_v23  ;;  %6333 = vmatpush.msrb.mxu1 %v9578_v35  ;;  %v6549_v35 = vld [vmem:[%s10690_s4 + $0x2d0] sm:$0xff] }
0x1f8e   : > { %9526 = vmatmul.msk.f32.gmra.mxu1 %vm2045_vm2, %v12068_v23  ;;  %9536 = vmatmul.msk.f32.gmra.mxu2 %vm2045_vm2, %v12068_v23 }
0x1f8f   : > { %9540 = vmatmul.msk.f32.gmra.mxu3 %vm1654_vm0, %v9538_v47  ;;  %6316 = vmatpush.msra.mxu0 %v9541_v14  ;;  %v6481_v47 = vld [vmem:[%s10690_s4 + $0xb0] sm:$0xff]  ;;  %v6467_v14 = vld [vmem:[%s10690_s4 + $0x40] sm:$0xff] }
0x1f90   : > { %6362 = vmatpush.msrb.mxu2 %v9543_v55  ;;  %v6537_v55 = vld [vmem:[%s10690_s4 + $0x270] sm:$0xff] }
0x1f91   : > { %6401 = vmatpush.msrb.mxu0 %v9587_v7  ;;  %v6465_v7 = vld [vmem:[%s10690_s4 + $0x30] sm:$0xff] }
0x1f92   : > { %6651 = vmatpush.msra.mxu2 %v6489_v20  ;;  %v6617_v20 = vld [vmem:[%s10690_s4 + $0x4f0] sm:$0xff] }
0x1f93   : > { %6402 = vmatpush.msrb.mxu0 %v9581_v24  ;;  %v6535_v24 = vld [vmem:[%s10690_s4 + $0x260] sm:$0xff] }
0x1f94   : > { %6652 = vmatpush.msra.mxu2 %v6487_v5  ;;  %v6527_v5 = vld [vmem:[%s10690_s4 + $0x220] sm:$0xff] }
0x1f95   : > { %6403 = vmatpush.msrb.mxu0 %v9575_v43  ;;  %v6463_v43 = vld [vmem:[%s10690_s4 + $0x20] sm:$0xff] }
0x1f96   : > { %9533 = vmatmul.msk.f32.vlgmr.msra.gmra.mxu1 %vm2045_vm2, %v12072_v32  ;;  %v9580_v32 = vld [vmem:[%s13771_s0 + $0x438] sm:$0xff]  ;;  %6653 = vmatpush.msra.mxu2 %v6485_v59  ;;  %v6615_v59 = vld [vmem:[%s10690_s4 + $0x4e0] sm:$0xff] }
0x1f97   : > { %6379 = vmatpush.msra.mxu3 %v9580_v32  ;;  %6404 = vmatpush.msrb.mxu0 %v9569_v34  ;;  %v6477_v32 = vld [vmem:[%s10690_s4 + $0x90] sm:$0xff] }
0x1f98   : > { %6654 = vmatpush.msra.mxu2 %v6483_v54  ;;  %v6533_v34 = vld [vmem:[%s10690_s4 + $0x250] sm:$0xff] }
0x1f99   : > { %6380 = vmatpush.msra.mxu3 %v9574_v38  ;;  %6405 = vmatpush.msrb.mxu0 %v9563_v22  ;;  %v6579_v38 = vld [vmem:[%s10690_s4 + $0x3c0] sm:$0xff]  ;;  %v6461_v22 = vld [vmem:[%s10690_s4 + $0x10] sm:$0xff] }
0x1f9a   : > { %6655 = vmatpush.msra.mxu2 %v6481_v47  ;;  %v6525_v54 = vld [vmem:[%s10690_s4 + $0x210] sm:$0xff]  ;;  %v6555_v47 = vld [vmem:[%s10690_s4 + $0x300] sm:$0xff] }
0x1f9b   : > { %6381 = vmatpush.msra.mxu3 %v9568_v2  ;;  %6406 = vmatpush.msrb.mxu0 %v9557_v57  ;;  %v6577_v2 = vld [vmem:[%s10690_s4 + $0x3b0] sm:$0xff]  ;;  %v6531_v57 = vld [vmem:[%s10690_s4 + $0x240] sm:$0xff] }
0x1f9c   : > { %6656 = vmatpush.msra.mxu2 %v6479_v6  ;;  %v6522_v6 = vld [vmem:[%s10690_s4 + $0x1f8] sm:$0xff] }
0x1f9d   : > { %6382 = vmatpush.msra.mxu3 %v9562_v28  ;;  %6407 = vmatpush.msrb.mxu0 %v9551_v31  ;;  %v6575_v28 = vld [vmem:[%s10690_s4 + $0x3a0] sm:$0xff] }
0x1f9e   : > { %9534 = vmatmul.msk.f32.gmra.mxu1 %vm2045_vm2, %v12068_v23  ;;  %v9572_v23 = vld [vmem:[%s13771_s0 + $0x3f8] sm:$0xff]  ;;  %6657 = vmatpush.msra.mxu2 %v6477_v32  ;;  %v6459_v31 = vld [vmem:[%s10690_s4] sm:$0xff]  ;;  %v6520_v32 = vld [vmem:[%s10690_s4 + $0x1e8] sm:$0xff] }
0x1f9f   : > { %6334 = vmatpush.msrb.mxu1 %v9572_v23  ;;  %6383 = vmatpush.msra.mxu3 %v9556_v9  ;;  %v6573_v9 = vld [vmem:[%s10690_s4 + $0x390] sm:$0xff] }
0x1fa0   : > { %6408 = vmatpush.msrb.mxu0 %v9545_v37  ;;  %6658 = vmatpush.msra.mxu2 %v6475_v15  ;;  %v6529_v37 = vld [vmem:[%s10690_s4 + $0x230] sm:$0xff] }
0x1fa1   : > { %6335 = vmatpush.msrb.mxu1 %v9566_v33  ;;  %6384 = vmatpush.msra.mxu3 %v9550_v4  ;;  %v6507_v33 = vld [vmem:[%s10690_s4 + $0x180] sm:$0xff]  ;;  %v6605_v15 = vld [vmem:[%s10690_s4 + $0x490] sm:$0xff] }
0x1fa2   : > { %6659 = vmatpush.msra.mxu2 %v6473_v0  ;;  %v6571_v4 = vld [vmem:[%s10690_s4 + $0x380] sm:$0xff] }
0x1fa3   : > { %6336 = vmatpush.msrb.mxu1 %v9560_v13  ;;  %6385 = vmatpush.msra.mxu3 %v9544_v63  ;;  %v6505_v13 = vld [vmem:[%s10690_s4 + $0x170] sm:$0xff]  ;;  %v6603_v0 = vld [vmem:[%s10690_s4 + $0x480] sm:$0xff] }
0x1fa4   : > { %6660 = vmatpush.msra.mxu2 %v6471_v16  ;;  %v6569_v63 = vld [vmem:[%s10690_s4 + $0x370] sm:$0xff] }
0x1fa5   : > { %6337 = vmatpush.msrb.mxu1 %v9554_v56  ;;  %6674 = vmatpush.msrb.mxu3 %v6521_v41  ;;  %v6503_v56 = vld [vmem:[%s10690_s4 + $0x160] sm:$0xff]  ;;  %v6649_v41 = vld [vmem:[%s10690_s4 + $0x5f0] sm:$0xff] }
0x1fa6   : > { %6661 = vmatpush.msra.mxu2 %v6469_v19  ;;  %v6601_v16 = vld [vmem:[%s10690_s4 + $0x470] sm:$0xff]  ;;  %v6599_v19 = vld [vmem:[%s10690_s4 + $0x460] sm:$0xff] }
0x1fa7   : > { %6338 = vmatpush.msrb.mxu1 %v9548_v60  ;;  %6675 = vmatpush.msrb.mxu3 %v6519_v52  ;;  %v6501_v60 = vld [vmem:[%s10690_s4 + $0x150] sm:$0xff]  ;;  %v6559_v52 = vld [vmem:[%s10690_s4 + $0x320] sm:$0xff] }
0x1fa8   : > { %6662 = vmatpush.msra.mxu2 %v6467_v14  ;;  %v6510_v14 = vld [vmem:[%s10690_s4 + $0x198] sm:$0xff] }
0x1fa9   : > { %6339 = vmatpush.msrb.mxu1 %v9542_v17  ;;  %6676 = vmatpush.msrb.mxu3 %v6517_v26  ;;  %v6499_v17 = vld [vmem:[%s10690_s4 + $0x140] sm:$0xff] }
0x1faa   : > { %6663 = vmatpush.msra.mxu2 %v6465_v7  ;;  %v6647_v26 = vld [vmem:[%s10690_s4 + $0x5e0] sm:$0xff]  ;;  %v6508_v7 = vld [vmem:[%s10690_s4 + $0x188] sm:$0xff] }
0x1fab   : > { %6424 = vmatpush.msra.mxu1 %v9588_v18  ;;  %6677 = vmatpush.msrb.mxu3 %v6515_v1  ;;  %v6497_v18 = vld [vmem:[%s10690_s4 + $0x130] sm:$0xff] }
0x1fac   : > { %6664 = vmatpush.msra.mxu2 %v6463_v43  ;;  %v6557_v1 = vld [vmem:[%s10690_s4 + $0x310] sm:$0xff]  ;;  %v6506_v43 = vld [vmem:[%s10690_s4 + $0x178] sm:$0xff] }
0x1fad   : > { %6425 = vmatpush.msra.mxu1 %v9582_v49  ;;  %6678 = vmatpush.msrb.mxu3 %v6513_v51  ;;  %v6567_v49 = vld [vmem:[%s10690_s4 + $0x360] sm:$0xff] }
0x1fae   : > { %6665 = vmatpush.msra.mxu2 %v6461_v22  ;;  %v6611_v51 = vld [vmem:[%s10690_s4 + $0x4c0] sm:$0xff]  ;;  %v6504_v22 = vld [vmem:[%s10690_s4 + $0x168] sm:$0xff] }
0x1faf   : > { %6426 = vmatpush.msra.mxu1 %v9576_v44  ;;  %6679 = vmatpush.msrb.mxu3 %v6511_v36  ;;  %v6495_v44 = vld [vmem:[%s10690_s4 + $0x120] sm:$0xff]  ;;  %v6609_v36 = vld [vmem:[%s10690_s4 + $0x4b0] sm:$0xff] }
0x1fb0   : > { %6666 = vmatpush.msra.mxu2 %v6459_v31  ;;  %v6502_v31 = vld [vmem:[%s10690_s4 + $0x158] sm:$0xff] }
0x1fb1   : > { %6427 = vmatpush.msra.mxu1 %v9570_v62  ;;  %6680 = vmatpush.msrb.mxu3 %v6509_v48  ;;  %v6565_v62 = vld [vmem:[%s10690_s4 + $0x350] sm:$0xff]  ;;  %v6607_v48 = vld [vmem:[%s10690_s4 + $0x4a0] sm:$0xff] }
0x1fb3   : > { %6428 = vmatpush.msra.mxu1 %v9564_v58  ;;  %6681 = vmatpush.msrb.mxu3 %v6507_v33  ;;  %v6493_v58 = vld [vmem:[%s10690_s4 + $0x110] sm:$0xff] }
0x1fb4   : > { %v6637_v33 = vld [vmem:[%s10690_s4 + $0x590] sm:$0xff] }
0x1fb5   : > { %6429 = vmatpush.msra.mxu1 %v9558_v21  ;;  %6682 = vmatpush.msrb.mxu3 %v6505_v13  ;;  %v6563_v21 = vld [vmem:[%s10690_s4 + $0x340] sm:$0xff] }
0x1fb6   : > { %v6635_v13 = vld [vmem:[%s10690_s4 + $0x580] sm:$0xff] }
0x1fb7   : > { %6430 = vmatpush.msra.mxu1 %v9552_v50  ;;  %6683 = vmatpush.msrb.mxu3 %v6503_v56  ;;  %v6491_v50 = vld [vmem:[%s10690_s4 + $0x100] sm:$0xff]  ;;  %v6633_v56 = vld [vmem:[%s10690_s4 + $0x570] sm:$0xff] }
0x1fb9   : > { %6431 = vmatpush.msra.mxu1 %v9546_v29  ;;  %6684 = vmatpush.msrb.mxu3 %v6501_v60  ;;  %v6561_v29 = vld [vmem:[%s10690_s4 + $0x330] sm:$0xff]  ;;  %v6631_v60 = vld [vmem:[%s10690_s4 + $0x560] sm:$0xff] }
0x1fbb   : > { %6685 = vmatpush.msrb.mxu3 %v6499_v17  ;;  %v6597_v17 = vld [vmem:[%s10690_s4 + $0x450] sm:$0xff] }
0x1fbd   : > { %6686 = vmatpush.msrb.mxu3 %v6497_v18  ;;  %v6595_v18 = vld [vmem:[%s10690_s4 + $0x440] sm:$0xff] }
0x1fbf   : > { %6687 = vmatpush.msrb.mxu3 %v6495_v44  ;;  %v6593_v44 = vld [vmem:[%s10690_s4 + $0x430] sm:$0xff] }
0x1fc1   : > { %6688 = vmatpush.msrb.mxu3 %v6493_v58  ;;  %v6591_v58 = vld [vmem:[%s10690_s4 + $0x420] sm:$0xff] }
0x1fc3   : > { %6689 = vmatpush.msrb.mxu3 %v6491_v50 }
0x1fe9   : > { %v12220_v10 = vpop.f32.mrf.mxu3 }
0x1ff1   : > { %v12232_v25 = vpop.f32.mrf.mxu3 }
0x1ff9   : > { %v12244_v61 = vpop.f32.mrf.mxu3 }
0x2002   : > { %v12246_v42 = vpop.f32.mrf.mxu3 }
0x200a   : > { %v12256_v40 = vpop.f32.mrf.mxu3 }
0x200b   : > { %9589 = vmatmul.msk.f32.vlgmr.msra.gmra.mxu0 %vm2045_vm2, %v12256_v40  ;;  %9591 = vmatmul.msk.f32.vlgmr.msrb.gmra.mxu1 %vm2045_vm2, %v12256_v40 }
0x200c   : > { %9593 = vmatmul.msk.f32.vlgmr.msrb.gmra.mxu2 %vm2045_vm2, %v12256_v40  ;;  %9595 = vmatmul.msk.f32.vlgmr.msra.gmra.mxu3 %vm2045_vm2, %v12256_v40 }
0x200d   : > { %6697 = vmatpush.msra.mxu0 %v6553_v8  ;;  %6720 = vmatpush.msrb.mxu1 %v6585_v46  ;;  %v6645_v8 = vld [vmem:[%s10690_s4 + $0x5d0] sm:$0xff]  ;;  %v6523_v46 = vld [vmem:[%s10690_s4 + $0x200] sm:$0xff] }
0x200e   : > { %6743 = vmatpush.msrb.mxu2 %v6617_v20  ;;  %6766 = vmatpush.msra.mxu3 %v6649_v41  ;;  %v12396_v20 = vpop.f32.mrf.mxu2 }
0x200f   : > { %6698 = vmatpush.msra.mxu0 %v6551_v30  ;;  %6721 = vmatpush.msrb.mxu1 %v6583_v45  ;;  %v6643_v30 = vld [vmem:[%s10690_s4 + $0x5c0] sm:$0xff]  ;;  %v6490_v45 = vld [vmem:[%s10690_s4 + $0xf8] sm:$0xff] }
0x2010   : > { %6744 = vmatpush.msrb.mxu2 %v6615_v59  ;;  %6767 = vmatpush.msra.mxu3 %v6647_v26 }
0x2011   : > { %6699 = vmatpush.msra.mxu0 %v6549_v35  ;;  %6722 = vmatpush.msrb.mxu1 %v6581_v39  ;;  %v6641_v35 = vld [vmem:[%s10690_s4 + $0x5b0] sm:$0xff]  ;;  %v6488_v39 = vld [vmem:[%s10690_s4 + $0xe8] sm:$0xff] }
0x2012   : > { %v12278_v23 = vpop.f32.mrf.mxu3  ;;  %6768 = vmatpush.msra.mxu3 %v6645_v8 }
0x2013   : > { %9590 = vmatmul.msk.f32.gmra.mxu0 %vm2045_vm2, %v12278_v23  ;;  %9592 = vmatmul.msk.f32.gmra.mxu1 %vm2045_vm2, %v12278_v23 }
0x2014   : > { %9594 = vmatmul.msk.f32.gmra.mxu2 %vm2045_vm2, %v12278_v23  ;;  %9596 = vmatmul.msk.f32.gmra.mxu3 %vm2045_vm2, %v12278_v23 }
0x2015   : > { %6700 = vmatpush.msra.mxu0 %v6547_v11  ;;  %6723 = vmatpush.msrb.mxu1 %v6579_v38  ;;  %v6486_v11 = vld [vmem:[%s10690_s4 + $0xd8] sm:$0xff] }
0x2016   : > { %6769 = vmatpush.msra.mxu3 %v6643_v30  ;;  %v6518_v38 = vld [vmem:[%s10690_s4 + $0x1d8] sm:$0xff] }
0x2017   : > { %6701 = vmatpush.msra.mxu0 %v6545_v53  ;;  %6724 = vmatpush.msrb.mxu1 %v6577_v2  ;;  %v6484_v53 = vld [vmem:[%s10690_s4 + $0xc8] sm:$0xff]  ;;  %v6466_v30 = vld [vmem:[%s10690_s4 + $0x38] sm:$0xff] }
0x2018   : > { %6770 = vmatpush.msra.mxu3 %v6641_v35  ;;  %v6516_v2 = vld [vmem:[%s10690_s4 + $0x1c8] sm:$0xff] }
0x2019   : > { %6702 = vmatpush.msra.mxu0 %v6543_v12  ;;  %6725 = vmatpush.msrb.mxu1 %v6575_v28  ;;  %v6482_v12 = vld [vmem:[%s10690_s4 + $0xb8] sm:$0xff]  ;;  %v6464_v35 = vld [vmem:[%s10690_s4 + $0x28] sm:$0xff] }
0x201a   : > { %v6514_v28 = vld [vmem:[%s10690_s4 + $0x1b8] sm:$0xff] }
0x201b   : > { %9597 = vmatmul.msk.f32.vlgmr.msrb.gmra.mxu0 %vm2045_vm2, %v12256_v40  ;;  %9599 = vmatmul.msk.f32.vlgmr.msra.gmra.mxu1 %vm2045_vm2, %v12256_v40  ;;  %v6613_v40 = vld [vmem:[%s10690_s4 + $0x4d0] sm:$0xff] }
0x201c   : > { %6703 = vmatpush.msra.mxu0 %v6541_v3  ;;  %6726 = vmatpush.msrb.mxu1 %v6573_v9  ;;  %v6480_v3 = vld [vmem:[%s10690_s4 + $0xa8] sm:$0xff] }
0x201d   : > { %6745 = vmatpush.msrb.mxu2 %v6613_v40  ;;  %v6512_v9 = vld [vmem:[%s10690_s4 + $0x1a8] sm:$0xff] }
0x201e   : > { %6704 = vmatpush.msra.mxu0 %v6539_v27  ;;  %6727 = vmatpush.msrb.mxu1 %v6571_v4  ;;  %v12372_v27 = vpop.f32.mrf.mxu1  ;;  %v6478_v4 = vld [vmem:[%s10690_s4 + $0x98] sm:$0xff]  ;;  %v6468_v40 = vld [vmem:[%s10690_s4 + $0x48] sm:$0xff] }
0x201f   : > { %6746 = vmatpush.msrb.mxu2 %v6611_v51  ;;  %v6619_v51 = vld [vmem:[%s10690_s4 + $0x500] sm:$0xff] }
0x2020   : > { %6705 = vmatpush.msra.mxu0 %v6537_v55  ;;  %6728 = vmatpush.msrb.mxu1 %v6569_v63  ;;  %v6629_v55 = vld [vmem:[%s10690_s4 + $0x550] sm:$0xff]  ;;  %v6476_v63 = vld [vmem:[%s10690_s4 + $0x88] sm:$0xff] }
0x2021   : > { %6747 = vmatpush.msrb.mxu2 %v6609_v36 }
0x2022   : > { %6706 = vmatpush.msra.mxu0 %v6535_v24  ;;  %6729 = vmatpush.msrb.mxu1 %v6567_v49  ;;  %v6627_v24 = vld [vmem:[%s10690_s4 + $0x540] sm:$0xff]  ;;  %v6474_v49 = vld [vmem:[%s10690_s4 + $0x78] sm:$0xff] }
0x2023   : > { %9598 = vmatmul.msk.f32.gmra.mxu0 %vm2045_vm2, %v12278_v23  ;;  %9600 = vmatmul.msk.f32.gmra.mxu1 %vm2045_vm2, %v12278_v23  ;;  %v6639_v23 = vld [vmem:[%s10690_s4 + $0x5a0] sm:$0xff] }
0x2024   : > { %6707 = vmatpush.msra.mxu0 %v6533_v34  ;;  %6730 = vmatpush.msrb.mxu1 %v6565_v62  ;;  %v6625_v34 = vld [vmem:[%s10690_s4 + $0x530] sm:$0xff]  ;;  %v6472_v62 = vld [vmem:[%s10690_s4 + $0x68] sm:$0xff] }
0x2025   : > { %6748 = vmatpush.msrb.mxu2 %v6607_v48  ;;  %6771 = vmatpush.msra.mxu3 %v6639_v23  ;;  %v6494_v48 = vld [vmem:[%s10690_s4 + $0x118] sm:$0xff]  ;;  %v6460_v23 = vld [vmem:[%s10690_s4 + $0x8] sm:$0xff] }
0x2026   : > { %6708 = vmatpush.msra.mxu0 %v6531_v57  ;;  %6731 = vmatpush.msrb.mxu1 %v6563_v21  ;;  %v6623_v57 = vld [vmem:[%s10690_s4 + $0x520] sm:$0xff]  ;;  %v6470_v21 = vld [vmem:[%s10690_s4 + $0x58] sm:$0xff]  ;;  %v12392_v50 = vpop.f32.mrf.mxu1 }
0x2027   : > { %6749 = vmatpush.msrb.mxu2 %v6605_v15  ;;  %6772 = vmatpush.msra.mxu3 %v6637_v33 }
0x2028   : > { %6709 = vmatpush.msra.mxu0 %v6529_v37  ;;  %6732 = vmatpush.msrb.mxu1 %v6561_v29  ;;  %v5900_v37 = vpop.f32.mrf.mxu0 }
0x2029   : > { %6750 = vmatpush.msrb.mxu2 %v6603_v0  ;;  %6773 = vmatpush.msra.mxu3 %v6635_v13 }
0x202a   : > { %6710 = vmatpush.msra.mxu0 %v6527_v5  ;;  %6733 = vmatpush.msrb.mxu1 %v6559_v52  ;;  %v12402_v52 = vpop.f32.mrf.mxu2 }
0x202b   : > { %6751 = vmatpush.msrb.mxu2 %v6601_v16  ;;  %6774 = vmatpush.msra.mxu3 %v6633_v56 }
0x202c   : > { %6711 = vmatpush.msra.mxu0 %v6525_v54  ;;  %6734 = vmatpush.msrb.mxu1 %v6557_v1  ;;  %v6589_v54 = vld [vmem:[%s10690_s4 + $0x410] sm:$0xff] }
0x202d   : > { %6752 = vmatpush.msrb.mxu2 %v6599_v19  ;;  %6775 = vmatpush.msra.mxu3 %v6631_v60  ;;  %v6621_v1 = vld [vmem:[%s10690_s4 + $0x510] sm:$0xff] }
0x202e   : > { %6712 = vmatpush.msra.mxu0 %v6523_v46  ;;  %6735 = vmatpush.msrb.mxu1 %v6555_v47  ;;  %v12394_v29 = vpop.f32.mrf.mxu1  ;;  %v6500_v46 = vld [vmem:[%s10690_s4 + $0x148] sm:$0xff]  ;;  %v6587_v47 = vld [vmem:[%s10690_s4 + $0x400] sm:$0xff] }
0x202f   : > { %6753 = vmatpush.msrb.mxu2 %v6597_v17  ;;  %6776 = vmatpush.msra.mxu3 %v6629_v55 }
0x2030   : > { %6789 = vmatpush.msrb.mxu0 %v6490_v45  ;;  %6812 = vmatpush.msra.mxu1 %v6522_v6  ;;  %v12398_v41 = vpop.f32.mrf.mxu0  ;;  %v6498_v45 = vld [vmem:[%s10690_s4 + $0x138] sm:$0xff] }
0x2031   : > { %6754 = vmatpush.msrb.mxu2 %v6595_v18  ;;  %6777 = vmatpush.msra.mxu3 %v6627_v24  ;;  %v6552_v18 = vld [vmem:[%s10690_s4 + $0x2e8] sm:$0xff] }
0x2032   : > { %6790 = vmatpush.msrb.mxu0 %v6488_v39  ;;  %6813 = vmatpush.msra.mxu1 %v6520_v32  ;;  %v6105_v8 = vpop.f32.mrf.mxu2  ;;  %v6496_v39 = vld [vmem:[%s10690_s4 + $0x128] sm:$0xff]  ;;  %v6462_v32 = vld [vmem:[%s10690_s4 + $0x18] sm:$0xff] }
0x2033   : > { %6755 = vmatpush.msrb.mxu2 %v6593_v44  ;;  %6778 = vmatpush.msra.mxu3 %v6625_v34  ;;  %v6584_v24 = vld [vmem:[%s10690_s4 + $0x3e8] sm:$0xff] }
0x2034   : > { %6791 = vmatpush.msrb.mxu0 %v6486_v11  ;;  %6814 = vmatpush.msra.mxu1 %v6518_v38  ;;  %v6492_v11 = vld [vmem:[%s10690_s4 + $0x108] sm:$0xff] }
0x2035   : > { %6756 = vmatpush.msrb.mxu2 %v6591_v58  ;;  %6779 = vmatpush.msra.mxu3 %v6623_v57 }
0x2036   : > { %6792 = vmatpush.msrb.mxu0 %v6484_v53  ;;  %6815 = vmatpush.msra.mxu1 %v6516_v2  ;;  %v12400_v5 = vpop.f32.mrf.mxu1  ;;  %v12427_v2 = vld [vmem:[%s13776_s1] sm:$0x3f]  ;;  %s10269_s1 = sshll.u32 %s13802_s23, 7 }
0x2037   : > { %6757 = vmatpush.msrb.mxu2 %v6589_v54  ;;  %6780 = vmatpush.msra.mxu3 %v6621_v1  ;;  %v5766_v60 = vperm.slane %v12427_v2, 3  ;;  %v6580_v54 = vld [vmem:[%s10690_s4 + $0x3c8] sm:$0xff]  ;;  %s13493_s0 = scalar_lea.vmem %s10700_s20, %s10269_s1 }
0x2038   : > { %6793 = vmatpush.msrb.mxu0 %v6482_v12  ;;  %6816 = vmatpush.msra.mxu1 %v6514_v28  ;;  %v12404_v59 = vpop.f32.mrf.mxu0  ;;  %v5763_v12 = vperm.slane %v12427_v2, 0  ;;  %v5764_v28 = vperm.slane %v12427_v2, 1 }
0x2039   : > { %6758 = vmatpush.msrb.mxu2 %v6587_v47  ;;  %6781 = vmatpush.msra.mxu3 %v6619_v51  ;;  %v5767_v47 = vperm.slane %v12427_v2, 4  ;;  %v5768_v51 = vperm.slane %v12427_v2, 5 }
0x203a   : > { %6794 = vmatpush.msrb.mxu0 %v6480_v3  ;;  %6817 = vmatpush.msra.mxu1 %v6512_v9  ;;  %v6108_v38 = vpop.f32.mrf.mxu2  ;;  %v5998_v16 = vadd.f32 %v12372_v27, %v5763_v12  ;;  %v5999_v56 = vadd.f32 %v5900_v37, %v5764_v28  ;;  %v6586_v27 = vld [vmem:[%s10690_s4 + $0x3f8] sm:$0xff]  ;;  %v6004_v44 = vadd.f32 %v12392_v50, %v5763_v12 }
0x203b   : > { %v6005_v34 = vadd.f32 %v12398_v41, %v5764_v28  ;;  %v6003_v12 = vadd.f32 %v12404_v59, %v5768_v51 }
0x203c   : > { %6795 = vmatpush.msrb.mxu0 %v6478_v4  ;;  %6818 = vmatpush.msra.mxu1 %v6510_v14  ;;  %v6204_v3 = vadd.f32 %v6105_v8, %v5999_v56  ;;  %v5765_v4 = vperm.slane %v12427_v2, 2  ;;  %v6618_v8 = vld [vmem:[%s10690_s4 + $0x4f8] sm:$0xff] }
0x203e   : > { %6796 = vmatpush.msrb.mxu0 %v6476_v63  ;;  %6819 = vmatpush.msra.mxu1 %v6508_v7  ;;  %v6082_v26 = vpop.f32.mrf.mxu1  ;;  %v6554_v7 = vld [vmem:[%s10690_s4 + $0x2f8] sm:$0xff] }
0x203f   : > { %v6203_v9 = vadd.f32 %v6082_v26, %v5998_v16  ;;  %v6542_v16 = vld [vmem:[%s10690_s4 + $0x298] sm:$0xff] }
0x2040   : > { %6797 = vmatpush.msrb.mxu0 %v6474_v49  ;;  %6820 = vmatpush.msra.mxu1 %v6506_v43  ;;  %v12414_v6 = vpop.f32.mrf.mxu0  ;;  %v6001_v49 = vadd.f32 %v12396_v20, %v5766_v60  ;;  %v6000_v43 = vadd.f32 %v12394_v29, %v5765_v4 }
0x2042   : > { %6798 = vmatpush.msrb.mxu0 %v6472_v62  ;;  %6821 = vmatpush.msra.mxu1 %v6504_v22  ;;  %v12424_v53 = vpop.f32.mrf.mxu2  ;;  %v6550_v62 = vld [vmem:[%s10690_s4 + $0x2d8] sm:$0xff]  ;;  %v6205_v58 = vadd.f32 %v12244_v61, %v6000_v43  ;;  %v6548_v61 = vld [vmem:[%s10690_s4 + $0x2c8] sm:$0xff] }
0x2043   : > { %v6582_v22 = vld [vmem:[%s10690_s4 + $0x3d8] sm:$0xff]  ;;  %v6608_v43 = vld [vmem:[%s10690_s4 + $0x4a8] sm:$0xff] }
0x2044   : > { %6799 = vmatpush.msrb.mxu0 %v6470_v21  ;;  %6822 = vmatpush.msra.mxu1 %v6502_v31  ;;  %v6210_v21 = vadd.f32 %v6108_v38, %v6005_v34  ;;  %v6536_v34 = vld [vmem:[%s10690_s4 + $0x268] sm:$0xff] }
0x2046   : > { %6800 = vmatpush.msrb.mxu0 %v6468_v40  ;;  %6823 = vmatpush.msra.mxu1 %v6500_v46  ;;  %v6085_v36 = vpop.f32.mrf.mxu1  ;;  %v6650_v46 = vld [vmem:[%s10690_s4 + $0x5f8] sm:$0xff] }
0x2047   : > { %v6209_v31 = vadd.f32 %v6085_v36, %v6004_v44  ;;  %v6007_v36 = vadd.f32 %v12402_v52, %v5766_v60  ;;  %v6646_v52 = vld [vmem:[%s10690_s4 + $0x5d8] sm:$0xff]  ;;  %v6640_v44 = vld [vmem:[%s10690_s4 + $0x5a8] sm:$0xff] }
0x2048   : > { %6801 = vmatpush.msrb.mxu0 %v6466_v30  ;;  %6824 = vmatpush.msra.mxu1 %v6498_v45  ;;  %v6151_v15 = vpop.f32.mrf.mxu0  ;;  %v6546_v30 = vld [vmem:[%s10690_s4 + $0x2b8] sm:$0xff] }
0x2049   : > { %v6206_v57 = vadd.f32 %v6151_v15, %v6001_v49  ;;  %v6578_v45 = vld [vmem:[%s10690_s4 + $0x3b8] sm:$0xff]  ;;  %v6002_v15 = vadd.f32 %v12220_v10, %v5767_v47  ;;  %v6644_v10 = vld [vmem:[%s10690_s4 + $0x5c8] sm:$0xff] }
0x204a   : > { %6802 = vmatpush.msrb.mxu0 %v6464_v35  ;;  %6825 = vmatpush.msra.mxu1 %v6496_v39  ;;  %v12436_v19 = vpop.f32.mrf.mxu2  ;;  %v6006_v35 = vadd.f32 %v12400_v5, %v5765_v4  ;;  %v6616_v39 = vld [vmem:[%s10690_s4 + $0x4e8] sm:$0xff]  ;;  %v6614_v5 = vld [vmem:[%s10690_s4 + $0x4d8] sm:$0xff]  ;;  %v6208_v4 = vadd.f32 %v12424_v53, %v6003_v12 }
0x204b   : > { %v6610_v53 = vld [vmem:[%s10690_s4 + $0x4b8] sm:$0xff] }
0x204c   : > { %6803 = vmatpush.msrb.mxu0 %v6462_v32  ;;  %6826 = vmatpush.msra.mxu1 %v6494_v48  ;;  %v6648_v32 = vld [vmem:[%s10690_s4 + $0x5e8] sm:$0xff]  ;;  %v6570_v49 = vld [vmem:[%s10690_s4 + $0x378] sm:$0xff] }
0x204d   : > { %v6544_v48 = vld [vmem:[%s10690_s4 + $0x2a8] sm:$0xff]  ;;  %v6626_v12 = vld [vmem:[%s10690_s4 + $0x538] sm:$0xff] }
0x204e   : > { %6804 = vmatpush.msrb.mxu0 %v6460_v23  ;;  %6827 = vmatpush.msra.mxu1 %v6492_v11  ;;  %v12422_v33 = vpop.f32.mrf.mxu1  ;;  %v6576_v23 = vld [vmem:[%s10690_s4 + $0x3a8] sm:$0xff]  ;;  %v6211_v11 = vadd.f32 %v12246_v42, %v6006_v35 }
0x204f   : > { %v6560_v35 = vld [vmem:[%s10690_s4 + $0x328] sm:$0xff] }
0x2050   : > { %v12429_v0 = vpop.f32.mrf.mxu0 }
0x2051   : > { %v6212_v38 = vadd.f32 %v12429_v0, %v6007_v36  ;;  %v6574_v0 = vld [vmem:[%s10690_s4 + $0x398] sm:$0xff]  ;;  %v6528_v36 = vld [vmem:[%s10690_s4 + $0x228] sm:$0xff] }
0x2056   : > { %v12431_v13 = vpop.f32.mrf.mxu1 }
0x2088   : > { %v6318_v14 = vpop.f32.mrf.mxu0  ;;  %v6341_v17 = vpop.f32.mrf.mxu1 }
0x2089   : > { %v12440_v55 = vadd.f32 %v6318_v14, %v6203_v9  ;;  %v12442_v63 = vadd.f32 %v6341_v17, %v6204_v3  ;;  %v6612_v9 = vld [vmem:[%s10690_s4 + $0x4c8] sm:$0xff]  ;;  %v6207_v14 = vadd.f32 %v12422_v33, %v6002_v15  ;;  %v6642_v33 = vld [vmem:[%s10690_s4 + $0x5b8] sm:$0xff] }
0x208a   : > { %v6540_v17 = vld [vmem:[%s10690_s4 + $0x288] sm:$0xff]  ;;  %v6594_v15 = vld [vmem:[%s10690_s4 + $0x438] sm:$0xff] }
0x208b   : > { %6667 = vmatmul.f32.vlgmr.msra.gmra.mxu2 %v12440_v55  ;;  %6690 = vmatmul.f32.vlgmr.msrb.gmra.mxu3 %v12442_v63 }
0x208c   : > { %6835 = vmatpush.msra.mxu2 %v6554_v7  ;;  %6858 = vmatpush.msrb.mxu3 %v6586_v27  ;;  %v6572_v7 = vld [vmem:[%s10690_s4 + $0x388] sm:$0xff] }
0x208e   : > { %6836 = vmatpush.msra.mxu2 %v6552_v18  ;;  %6859 = vmatpush.msrb.mxu3 %v6584_v24  ;;  %v6538_v24 = vld [vmem:[%s10690_s4 + $0x278] sm:$0xff] }
0x208f   : > { %v6364_v37 = vpop.f32.mrf.mxu2  ;;  %v6387_v29 = vpop.f32.mrf.mxu3 }
0x2090   : > { %v12457_v20 = vadd.f32 %v6364_v37, %v6205_v58  ;;  %v12459_v50 = vadd.f32 %v6387_v29, %v6206_v57  ;;  %6837 = vmatpush.msra.mxu2 %v6550_v62  ;;  %6860 = vmatpush.msrb.mxu3 %v6582_v22  ;;  %v6321_v41 = vpop.f32.mrf.mxu0  ;;  %v6344_v26 = vpop.f32.mrf.mxu1  ;;  %v6568_v62 = vld [vmem:[%s10690_s4 + $0x368] sm:$0xff]  ;;  %v6606_v22 = vld [vmem:[%s10690_s4 + $0x498] sm:$0xff]  ;;  %v6008_v57 = vadd.f32 %v12232_v25, %v5767_v47 }
0x2091   : > { %v12463_v1 = vadd.f32 %v6321_v41, %v6209_v31  ;;  %v12465_v40 = vadd.f32 %v6344_v26, %v6210_v21  ;;  %v6638_v58 = vld [vmem:[%s10690_s4 + $0x598] sm:$0xff]  ;;  %v6009_v21 = vadd.f32 %v12414_v6, %v5768_v51  ;;  %v6604_v29 = vld [vmem:[%s10690_s4 + $0x488] sm:$0xff] }
0x2092   : > { %6713 = vmatmul.f32.vlgmr.msra.gmra.mxu0 %v12457_v20  ;;  %6736 = vmatmul.f32.vlgmr.msrb.gmra.mxu1 %v12459_v50  ;;  %v6534_v31 = vld [vmem:[%s10690_s4 + $0x258] sm:$0xff]  ;;  %v6636_v41 = vld [vmem:[%s10690_s4 + $0x588] sm:$0xff]  ;;  %v6213_v2 = vadd.f32 %v12431_v13, %v6008_v57  ;;  %v9699_v57 = vld [vmem:[%s10690_s4 + $0x8d0] sm:$0xff] }
0x2093   : > { %6838 = vmatpush.msra.mxu2 %v6548_v61  ;;  %6861 = vmatpush.msrb.mxu3 %v6580_v54  ;;  %v6566_v37 = vld [vmem:[%s10690_s4 + $0x358] sm:$0xff]  ;;  %v6214_v25 = vadd.f32 %v12436_v19, %v6009_v21  ;;  %v6532_v6 = vld [vmem:[%s10690_s4 + $0x248] sm:$0xff]  ;;  %v9731_v21 = vld [vmem:[%s10690_s4 + $0x9d0] sm:$0xff] }
0x2094   : > { %6881 = vmatpush.msra.mxu0 %v6618_v8  ;;  %6904 = vmatpush.msrb.mxu1 %v6650_v46  ;;  %v6564_v54 = vld [vmem:[%s10690_s4 + $0x348] sm:$0xff]  ;;  %v6602_v19 = vld [vmem:[%s10690_s4 + $0x478] sm:$0xff] }
0x2095   : > { %6670 = vmatmul.f32.gmra.mxu2 %v12463_v1  ;;  %6693 = vmatmul.f32.gmra.mxu3 %v12465_v40  ;;  %v6634_v13 = vld [vmem:[%s10690_s4 + $0x578] sm:$0xff] }
0x2096   : > { %6839 = vmatpush.msra.mxu2 %v6546_v30  ;;  %6862 = vmatpush.msrb.mxu3 %v6578_v45  ;;  %v6530_v47 = vld [vmem:[%s10690_s4 + $0x238] sm:$0xff]  ;;  %v6600_v30 = vld [vmem:[%s10690_s4 + $0x468] sm:$0xff] }
0x2097   : > { %6882 = vmatpush.msra.mxu0 %v6616_v39  ;;  %6905 = vmatpush.msrb.mxu1 %v6648_v32  ;;  %v6367_v28 = vpop.f32.mrf.mxu2  ;;  %v6390_v42 = vpop.f32.mrf.mxu3  ;;  %v6562_v51 = vld [vmem:[%s10690_s4 + $0x338] sm:$0xff]  ;;  %v6632_v45 = vld [vmem:[%s10690_s4 + $0x568] sm:$0xff] }
0x2098   : > { %6840 = vmatpush.msra.mxu2 %v6544_v48  ;;  %6863 = vmatpush.msrb.mxu3 %v6576_v23  ;;  %v12495_v56 = vadd.f32 %v6367_v28, %v6211_v11  ;;  %v12497_v3 = vadd.f32 %v6390_v42, %v6212_v38  ;;  %v6410_v60 = vpop.f32.mrf.mxu0  ;;  %v6433_v59 = vpop.f32.mrf.mxu1  ;;  %v6598_v39 = vld [vmem:[%s10690_s4 + $0x458] sm:$0xff]  ;;  %v6596_v11 = vld [vmem:[%s10690_s4 + $0x448] sm:$0xff]  ;;  %v9639_v28 = vld [vmem:[%s10690_s4 + $0x6f0] sm:$0xff] }
0x2099   : > { %6883 = vmatpush.msra.mxu0 %v6614_v5  ;;  %6906 = vmatpush.msrb.mxu1 %v6646_v52  ;;  %v12505_v27 = vadd.f32 %v6410_v60, %v6207_v14  ;;  %v12507_v18 = vadd.f32 %v6433_v59, %v6208_v4  ;;  %v6630_v32 = vld [vmem:[%s10690_s4 + $0x558] sm:$0xff]  ;;  %v6628_v38 = vld [vmem:[%s10690_s4 + $0x548] sm:$0xff]  ;;  %v9671_v42 = vld [vmem:[%s10690_s4 + $0x7f0] sm:$0xff] }
0x209a   : > { %6841 = vmatpush.msra.mxu2 %v6542_v16  ;;  %6864 = vmatpush.msrb.mxu3 %v6574_v0  ;;  %v6526_v48 = vld [vmem:[%s10690_s4 + $0x218] sm:$0xff]  ;;  %v6524_v5 = vld [vmem:[%s10690_s4 + $0x208] sm:$0xff]  ;;  %v9635_v4 = vld [vmem:[%s10690_s4 + $0x6d0] sm:$0xff] }
0x209b   : > { %6884 = vmatpush.msra.mxu0 %v6612_v9  ;;  %6907 = vmatpush.msrb.mxu1 %v6644_v10  ;;  %v6558_v23 = vld [vmem:[%s10690_s4 + $0x318] sm:$0xff]  ;;  %v6556_v52 = vld [vmem:[%s10690_s4 + $0x308] sm:$0xff]  ;;  %v9637_v9 = vld [vmem:[%s10690_s4 + $0x6e0] sm:$0xff] }
0x209c   : > { %6716 = vmatmul.f32.gmra.mxu0 %v12495_v56  ;;  %6739 = vmatmul.f32.gmra.mxu1 %v12497_v3  ;;  %v6592_v16 = vld [vmem:[%s10690_s4 + $0x428] sm:$0xff]  ;;  %v9669_v10 = vld [vmem:[%s10690_s4 + $0x7e0] sm:$0xff]  ;;  %v6590_v60 = vld [vmem:[%s10690_s4 + $0x418] sm:$0xff] }
0x209d   : > { %6842 = vmatpush.msra.mxu2 %v6540_v17  ;;  %6865 = vmatpush.msrb.mxu3 %v6572_v7  ;;  %v6624_v0 = vld [vmem:[%s10690_s4 + $0x528] sm:$0xff]  ;;  %v6622_v59 = vld [vmem:[%s10690_s4 + $0x518] sm:$0xff]  ;;  %v9667_v14 = vld [vmem:[%s10690_s4 + $0x7d0] sm:$0xff] }
0x209e   : > { %6885 = vmatpush.msra.mxu0 %v6610_v53  ;;  %6908 = vmatpush.msrb.mxu1 %v6642_v33  ;;  %v6588_v17 = vld [vmem:[%s10690_s4 + $0x408] sm:$0xff]  ;;  %v9633_v53 = vld [vmem:[%s10690_s4 + $0x6c0] sm:$0xff] }
0x209f   : > { %6759 = vmatmul.f32.vlgmr.msrb.gmra.mxu2 %v12505_v27  ;;  %6782 = vmatmul.f32.vlgmr.msra.gmra.mxu3 %v12507_v18  ;;  %v6620_v7 = vld [vmem:[%s10690_s4 + $0x508] sm:$0xff]  ;;  %v9665_v33 = vld [vmem:[%s10690_s4 + $0x7c0] sm:$0xff] }
0x20a0   : > { %6843 = vmatpush.msra.mxu2 %v6538_v24  ;;  %6866 = vmatpush.msrb.mxu3 %v6570_v49  ;;  %v6413_v26 = vpop.f32.mrf.mxu0  ;;  %v6436_v61 = vpop.f32.mrf.mxu1  ;;  %v9703_v24 = vld [vmem:[%s10690_s4 + $0x8f0] sm:$0xff] }
0x20a1   : > { %6886 = vmatpush.msra.mxu0 %v6608_v43  ;;  %6909 = vmatpush.msrb.mxu1 %v6640_v44  ;;  %v12537_v8 = vadd.f32 %v6413_v26, %v6213_v2  ;;  %v12539_v46 = vadd.f32 %v6436_v61, %v6214_v25  ;;  %v9735_v49 = vld [vmem:[%s10690_s4 + $0x9f0] sm:$0xff]  ;;  %v9625_v26 = vld [vmem:[%s10690_s4 + $0x680] sm:$0xff] }
0x20a2   : > { %6844 = vmatpush.msra.mxu2 %v6536_v34  ;;  %6867 = vmatpush.msrb.mxu3 %v6568_v62  ;;  %v9631_v43 = vld [vmem:[%s10690_s4 + $0x6b0] sm:$0xff]  ;;  %v9701_v34 = vld [vmem:[%s10690_s4 + $0x8e0] sm:$0xff] }
0x20a3   : > { %6887 = vmatpush.msra.mxu0 %v6606_v22  ;;  %6910 = vmatpush.msrb.mxu1 %v6638_v58  ;;  %v9663_v44 = vld [vmem:[%s10690_s4 + $0x7b0] sm:$0xff]  ;;  %v9733_v62 = vld [vmem:[%s10690_s4 + $0x9e0] sm:$0xff] }
0x20a4   : > { %6845 = vmatpush.msra.mxu2 %v6534_v31  ;;  %6868 = vmatpush.msrb.mxu3 %v6566_v37  ;;  %v9629_v22 = vld [vmem:[%s10690_s4 + $0x6a0] sm:$0xff]  ;;  %v9627_v31 = vld [vmem:[%s10690_s4 + $0x690] sm:$0xff] }
0x20a5   : > { %6888 = vmatpush.msra.mxu0 %v6604_v29  ;;  %6911 = vmatpush.msrb.mxu1 %v6636_v41  ;;  %v9661_v58 = vld [vmem:[%s10690_s4 + $0x7a0] sm:$0xff]  ;;  %v9659_v37 = vld [vmem:[%s10690_s4 + $0x790] sm:$0xff] }
0x20a6   : > { %6805 = vmatmul.f32.vlgmr.msrb.gmra.mxu0 %v12440_v55  ;;  %6828 = vmatmul.f32.vlgmr.msra.gmra.mxu1 %v12442_v63  ;;  %v9697_v29 = vld [vmem:[%s10690_s4 + $0x8c0] sm:$0xff]  ;;  %v9695_v25 = vld [vmem:[%s10690_s4 + $0x8b0] sm:$0xff] }
0x20a7   : > { %6846 = vmatpush.msra.mxu2 %v6532_v6  ;;  %6869 = vmatpush.msrb.mxu3 %v6564_v54  ;;  %v9729_v41 = vld [vmem:[%s10690_s4 + $0x9c0] sm:$0xff]  ;;  %v9727_v2 = vld [vmem:[%s10690_s4 + $0x9b0] sm:$0xff] }
0x20a8   : > { %6889 = vmatpush.msra.mxu0 %v6602_v19  ;;  %6912 = vmatpush.msrb.mxu1 %v6634_v13  ;;  %v9657_v61 = vld [vmem:[%s10690_s4 + $0x780] sm:$0xff]  ;;  %v9623_v6 = vld [vmem:[%s10690_s4 + $0x670] sm:$0xff] }
0x20a9   : > { %6762 = vmatmul.f32.gmra.mxu2 %v12537_v8  ;;  %6785 = vmatmul.f32.gmra.mxu3 %v12539_v46  ;;  %v9655_v54 = vld [vmem:[%s10690_s4 + $0x770] sm:$0xff]  ;;  %v9693_v19 = vld [vmem:[%s10690_s4 + $0x8a0] sm:$0xff] }
0x20aa   : > { %6847 = vmatpush.msra.mxu2 %v6530_v47  ;;  %6870 = vmatpush.msrb.mxu3 %v6562_v51  ;;  %v9725_v13 = vld [vmem:[%s10690_s4 + $0x9a0] sm:$0xff] }
0x20ab   : > { %6890 = vmatpush.msra.mxu0 %v6600_v30  ;;  %6913 = vmatpush.msrb.mxu1 %v6632_v45  ;;  %v9621_v47 = vld [vmem:[%s10690_s4 + $0x660] sm:$0xff]  ;;  %v9691_v30 = vld [vmem:[%s10690_s4 + $0x890] sm:$0xff] }
0x20ac   : > { %6848 = vmatpush.msra.mxu2 %v6528_v36  ;;  %6871 = vmatpush.msrb.mxu3 %v6560_v35  ;;  %v9653_v51 = vld [vmem:[%s10690_s4 + $0x760] sm:$0xff]  ;;  %v9723_v45 = vld [vmem:[%s10690_s4 + $0x990] sm:$0xff] }
0x20ad   : > { %6891 = vmatpush.msra.mxu0 %v6598_v39  ;;  %6914 = vmatpush.msrb.mxu1 %v6630_v32  ;;  %v9619_v36 = vld [vmem:[%s10690_s4 + $0x650] sm:$0xff]  ;;  %v9689_v39 = vld [vmem:[%s10690_s4 + $0x880] sm:$0xff] }
0x20ae   : > { %6849 = vmatpush.msra.mxu2 %v6526_v48  ;;  %6872 = vmatpush.msrb.mxu3 %v6558_v23  ;;  %v9651_v35 = vld [vmem:[%s10690_s4 + $0x750] sm:$0xff]  ;;  %v9721_v32 = vld [vmem:[%s10690_s4 + $0x980] sm:$0xff] }
0x20af   : > { %6892 = vmatpush.msra.mxu0 %v6596_v11  ;;  %6915 = vmatpush.msrb.mxu1 %v6628_v38  ;;  %v9617_v48 = vld [vmem:[%s10690_s4 + $0x640] sm:$0xff]  ;;  %v9687_v11 = vld [vmem:[%s10690_s4 + $0x870] sm:$0xff] }
0x20b0   : > { %6808 = vmatmul.f32.gmra.mxu0 %v12463_v1  ;;  %6831 = vmatmul.f32.gmra.mxu1 %v12465_v40  ;;  %v9649_v23 = vld [vmem:[%s10690_s4 + $0x740] sm:$0xff]  ;;  %v9719_v38 = vld [vmem:[%s10690_s4 + $0x970] sm:$0xff] }
0x20b1   : > { %6850 = vmatpush.msra.mxu2 %v6524_v5  ;;  %6873 = vmatpush.msrb.mxu3 %v6556_v52  ;;  %v9615_v5 = vld [vmem:[%s10690_s4 + $0x630] sm:$0xff] }
0x20b2   : > { %6893 = vmatpush.msra.mxu0 %v6594_v15  ;;  %6916 = vmatpush.msrb.mxu1 %v6626_v12  ;;  %v9647_v52 = vld [vmem:[%s10690_s4 + $0x730] sm:$0xff]  ;;  %v9685_v15 = vld [vmem:[%s10690_s4 + $0x860] sm:$0xff] }
0x20b3   : > { %7129 = vmatpush.msrb.mxu2 %v9639_v28  ;;  %7152 = vmatpush.msra.mxu3 %v9671_v42  ;;  %v9717_v12 = vld [vmem:[%s10690_s4 + $0x960] sm:$0xff] }
0x20b4   : > { %6851 = vmatmul.f32.vlgmr.msra.gmra.mxu2 %v12457_v20  ;;  %6874 = vmatmul.f32.vlgmr.msrb.gmra.mxu3 %v12459_v50  ;;  %v9613_v28 = vld [vmem:[%s10690_s4 + $0x620] sm:$0xff] }
0x20b5   : > { %6894 = vmatpush.msra.mxu0 %v6592_v16  ;;  %6917 = vmatpush.msrb.mxu1 %v6624_v0  ;;  %v9645_v42 = vld [vmem:[%s10690_s4 + $0x720] sm:$0xff]  ;;  %v9683_v16 = vld [vmem:[%s10690_s4 + $0x850] sm:$0xff] }
0x20b6   : > { %7130 = vmatpush.msrb.mxu2 %v9637_v9  ;;  %7153 = vmatpush.msra.mxu3 %v9669_v10  ;;  %v9715_v0 = vld [vmem:[%s10690_s4 + $0x950] sm:$0xff] }
0x20b7   : > { %6895 = vmatpush.msra.mxu0 %v6590_v60  ;;  %6918 = vmatpush.msrb.mxu1 %v6622_v59  ;;  %v9611_v9 = vld [vmem:[%s10690_s4 + $0x610] sm:$0xff]  ;;  %v9681_v60 = vld [vmem:[%s10690_s4 + $0x840] sm:$0xff] }
0x20b8   : > { %7131 = vmatpush.msrb.mxu2 %v9635_v4  ;;  %7154 = vmatpush.msra.mxu3 %v9667_v14  ;;  %v9643_v10 = vld [vmem:[%s10690_s4 + $0x710] sm:$0xff]  ;;  %v9713_v59 = vld [vmem:[%s10690_s4 + $0x940] sm:$0xff] }
0x20b9   : > { %6896 = vmatpush.msra.mxu0 %v6588_v17  ;;  %6919 = vmatpush.msrb.mxu1 %v6620_v7  ;;  %v9609_v4 = vld [vmem:[%s10690_s4 + $0x600] sm:$0xff]  ;;  %v9679_v17 = vld [vmem:[%s10690_s4 + $0x830] sm:$0xff] }
0x20ba   : > { %7132 = vmatpush.msrb.mxu2 %v9633_v53  ;;  %7155 = vmatpush.msra.mxu3 %v9665_v33  ;;  %v9641_v14 = vld [vmem:[%s10690_s4 + $0x700] sm:$0xff]  ;;  %v9711_v7 = vld [vmem:[%s10690_s4 + $0x930] sm:$0xff] }
0x20bb   : > { %7175 = vmatpush.msrb.mxu0 %v9703_v24  ;;  %7198 = vmatpush.msra.mxu1 %v9735_v49  ;;  %v9767_v53 = vld [vmem:[%s10690_s4 + $0xaf0] sm:$0xff]  ;;  %v9677_v24 = vld [vmem:[%s10690_s4 + $0x820] sm:$0xff] }
0x20bc   : > { %6897 = vmatmul.f32.vlgmr.msra.gmra.mxu0 %v12505_v27  ;;  %6920 = vmatmul.f32.vlgmr.msrb.gmra.mxu1 %v12507_v18  ;;  %v9799_v33 = vld [vmem:[%s10690_s4 + $0xbf0] sm:$0xff]  ;;  %v9709_v49 = vld [vmem:[%s10690_s4 + $0x920] sm:$0xff] }
0x20bd   : > { %7133 = vmatpush.msrb.mxu2 %v9631_v43  ;;  %7156 = vmatpush.msra.mxu3 %v9663_v44  ;;  %v9765_v43 = vld [vmem:[%s10690_s4 + $0xae0] sm:$0xff] }
0x20be   : > { %7176 = vmatpush.msrb.mxu0 %v9701_v34  ;;  %7199 = vmatpush.msra.mxu1 %v9733_v62  ;;  %v9797_v44 = vld [vmem:[%s10690_s4 + $0xbe0] sm:$0xff]  ;;  %v9675_v34 = vld [vmem:[%s10690_s4 + $0x810] sm:$0xff] }
0x20bf   : > { %6854 = vmatmul.f32.gmra.mxu2 %v12495_v56  ;;  %6877 = vmatmul.f32.gmra.mxu3 %v12497_v3  ;;  %v9707_v62 = vld [vmem:[%s10690_s4 + $0x910] sm:$0xff] }
0x20c0   : > { %7134 = vmatpush.msrb.mxu2 %v9629_v22  ;;  %7157 = vmatpush.msra.mxu3 %v9661_v58  ;;  %v9763_v22 = vld [vmem:[%s10690_s4 + $0xad0] sm:$0xff] }
0x20c1   : > { %7177 = vmatpush.msrb.mxu0 %v9699_v57  ;;  %7200 = vmatpush.msra.mxu1 %v9731_v21  ;;  %v9795_v58 = vld [vmem:[%s10690_s4 + $0xbd0] sm:$0xff]  ;;  %v9673_v57 = vld [vmem:[%s10690_s4 + $0x800] sm:$0xff] }
0x20c2   : > { %7135 = vmatpush.msrb.mxu2 %v9627_v31  ;;  %7158 = vmatpush.msra.mxu3 %v9659_v37  ;;  %v9705_v21 = vld [vmem:[%s10690_s4 + $0x900] sm:$0xff] }
0x20c3   : > { %7178 = vmatpush.msrb.mxu0 %v9697_v29  ;;  %7201 = vmatpush.msra.mxu1 %v9729_v41  ;;  %v9761_v31 = vld [vmem:[%s10690_s4 + $0xac0] sm:$0xff]  ;;  %v9640_v29 = vld [vmem:[%s10690_s4 + $0x6f8] sm:$0xff] }
0x20c4   : > { %7136 = vmatpush.msrb.mxu2 %v9625_v26  ;;  %7159 = vmatpush.msra.mxu3 %v9657_v61  ;;  %v9793_v37 = vld [vmem:[%s10690_s4 + $0xbc0] sm:$0xff]  ;;  %v9672_v41 = vld [vmem:[%s10690_s4 + $0x7f8] sm:$0xff]  ;;  %v9759_v26 = vld [vmem:[%s10690_s4 + $0xab0] sm:$0xff] }
0x20c5   : > { %7179 = vmatpush.msrb.mxu0 %v9695_v25  ;;  %7202 = vmatpush.msra.mxu1 %v9727_v2  ;;  %v9791_v61 = vld [vmem:[%s10690_s4 + $0xbb0] sm:$0xff]  ;;  %v9638_v25 = vld [vmem:[%s10690_s4 + $0x6e8] sm:$0xff] }
0x20c6   : > { %6900 = vmatmul.f32.gmra.mxu0 %v12537_v8  ;;  %6923 = vmatmul.f32.gmra.mxu1 %v12539_v46  ;;  %v9670_v2 = vld [vmem:[%s10690_s4 + $0x7e8] sm:$0xff] }
0x20c7   : > { %7137 = vmatpush.msrb.mxu2 %v9623_v6  ;;  %7160 = vmatpush.msra.mxu3 %v9655_v54  ;;  %v9757_v6 = vld [vmem:[%s10690_s4 + $0xaa0] sm:$0xff] }
0x20c8   : > { %7180 = vmatpush.msrb.mxu0 %v9693_v19  ;;  %7203 = vmatpush.msra.mxu1 %v9725_v13  ;;  %v9789_v54 = vld [vmem:[%s10690_s4 + $0xba0] sm:$0xff]  ;;  %v9636_v19 = vld [vmem:[%s10690_s4 + $0x6d8] sm:$0xff] }
0x20c9   : > { %7138 = vmatpush.msrb.mxu2 %v9621_v47  ;;  %7161 = vmatpush.msra.mxu3 %v9653_v51  ;;  %v9668_v13 = vld [vmem:[%s10690_s4 + $0x7d8] sm:$0xff]  ;;  %v9755_v47 = vld [vmem:[%s10690_s4 + $0xa90] sm:$0xff] }
0x20ca   : > { %7181 = vmatpush.msrb.mxu0 %v9691_v30  ;;  %7204 = vmatpush.msra.mxu1 %v9723_v45  ;;  %v9787_v51 = vld [vmem:[%s10690_s4 + $0xb90] sm:$0xff]  ;;  %v9634_v30 = vld [vmem:[%s10690_s4 + $0x6c8] sm:$0xff] }
0x20cb   : > { %7139 = vmatpush.msrb.mxu2 %v9619_v36  ;;  %7162 = vmatpush.msra.mxu3 %v9651_v35  ;;  %v9666_v45 = vld [vmem:[%s10690_s4 + $0x7c8] sm:$0xff]  ;;  %v9753_v36 = vld [vmem:[%s10690_s4 + $0xa80] sm:$0xff] }
0x20cc   : > { %7182 = vmatpush.msrb.mxu0 %v9689_v39  ;;  %7205 = vmatpush.msra.mxu1 %v9721_v32  ;;  %v9785_v35 = vld [vmem:[%s10690_s4 + $0xb80] sm:$0xff]  ;;  %v9632_v39 = vld [vmem:[%s10690_s4 + $0x6b8] sm:$0xff] }
0x20cd   : > { %7140 = vmatpush.msrb.mxu2 %v9617_v48  ;;  %7163 = vmatpush.msra.mxu3 %v9649_v23  ;;  %v9664_v32 = vld [vmem:[%s10690_s4 + $0x7b8] sm:$0xff]  ;;  %v9751_v48 = vld [vmem:[%s10690_s4 + $0xa70] sm:$0xff] }
0x20ce   : > { %7183 = vmatpush.msrb.mxu0 %v9687_v11  ;;  %7206 = vmatpush.msra.mxu1 %v9719_v38  ;;  %v9783_v23 = vld [vmem:[%s10690_s4 + $0xb70] sm:$0xff]  ;;  %v9630_v11 = vld [vmem:[%s10690_s4 + $0x6a8] sm:$0xff] }
0x20cf   : > { %7141 = vmatpush.msrb.mxu2 %v9615_v5  ;;  %7164 = vmatpush.msra.mxu3 %v9647_v52  ;;  %v9662_v38 = vld [vmem:[%s10690_s4 + $0x7a8] sm:$0xff]  ;;  %v9749_v5 = vld [vmem:[%s10690_s4 + $0xa60] sm:$0xff] }
0x20d0   : > { %7184 = vmatpush.msrb.mxu0 %v9685_v15  ;;  %7207 = vmatpush.msra.mxu1 %v9717_v12  ;;  %v9781_v52 = vld [vmem:[%s10690_s4 + $0xb60] sm:$0xff]  ;;  %v9628_v15 = vld [vmem:[%s10690_s4 + $0x698] sm:$0xff] }
0x20d1   : > { %7142 = vmatpush.msrb.mxu2 %v9613_v28  ;;  %7165 = vmatpush.msra.mxu3 %v9645_v42  ;;  %v9660_v12 = vld [vmem:[%s10690_s4 + $0x798] sm:$0xff]  ;;  %v9747_v28 = vld [vmem:[%s10690_s4 + $0xa50] sm:$0xff] }
0x20d2   : > { %7185 = vmatpush.msrb.mxu0 %v9683_v16  ;;  %7208 = vmatpush.msra.mxu1 %v9715_v0  ;;  %v9779_v42 = vld [vmem:[%s10690_s4 + $0xb50] sm:$0xff]  ;;  %v9626_v16 = vld [vmem:[%s10690_s4 + $0x688] sm:$0xff] }
0x20d3   : > { %7143 = vmatpush.msrb.mxu2 %v9611_v9  ;;  %7166 = vmatpush.msra.mxu3 %v9643_v10  ;;  %v9658_v0 = vld [vmem:[%s10690_s4 + $0x788] sm:$0xff]  ;;  %v9745_v9 = vld [vmem:[%s10690_s4 + $0xa40] sm:$0xff] }
0x20d4   : > { %7186 = vmatpush.msrb.mxu0 %v9681_v60  ;;  %7209 = vmatpush.msra.mxu1 %v9713_v59  ;;  %v9777_v10 = vld [vmem:[%s10690_s4 + $0xb40] sm:$0xff]  ;;  %v9624_v60 = vld [vmem:[%s10690_s4 + $0x678] sm:$0xff] }
0x20d5   : > { %7144 = vmatpush.msrb.mxu2 %v9609_v4  ;;  %7167 = vmatpush.msra.mxu3 %v9641_v14  ;;  %v9656_v59 = vld [vmem:[%s10690_s4 + $0x778] sm:$0xff]  ;;  %v9743_v4 = vld [vmem:[%s10690_s4 + $0xa30] sm:$0xff] }
0x20d6   : > { %7187 = vmatpush.msrb.mxu0 %v9679_v17  ;;  %7210 = vmatpush.msra.mxu1 %v9711_v7  ;;  %v9775_v14 = vld [vmem:[%s10690_s4 + $0xb30] sm:$0xff]  ;;  %v9622_v17 = vld [vmem:[%s10690_s4 + $0x668] sm:$0xff] }
0x20d7   : > { %7145 = vmatmul.f32.vlgmr.msrb.gmra.mxu2 %v12440_v55  ;;  %7168 = vmatmul.f32.vlgmr.msra.gmra.mxu3 %v12442_v63  ;;  %v9654_v7 = vld [vmem:[%s10690_s4 + $0x768] sm:$0xff] }
0x20d8   : > { %7221 = vmatpush.msra.mxu2 %v9767_v53  ;;  %7244 = vmatpush.msrb.mxu3 %v9799_v33  ;;  %v9741_v53 = vld [vmem:[%s10690_s4 + $0xa20] sm:$0xff] }
0x20d9   : > { %7188 = vmatpush.msrb.mxu0 %v9677_v24  ;;  %7211 = vmatpush.msra.mxu1 %v9709_v49  ;;  %v9773_v33 = vld [vmem:[%s10690_s4 + $0xb20] sm:$0xff]  ;;  %v9620_v24 = vld [vmem:[%s10690_s4 + $0x658] sm:$0xff] }
0x20da   : > { %7222 = vmatpush.msra.mxu2 %v9765_v43  ;;  %7245 = vmatpush.msrb.mxu3 %v9797_v44  ;;  %v9652_v49 = vld [vmem:[%s10690_s4 + $0x758] sm:$0xff]  ;;  %v9739_v43 = vld [vmem:[%s10690_s4 + $0xa10] sm:$0xff] }
0x20db   : > { %7189 = vmatpush.msrb.mxu0 %v9675_v34  ;;  %7212 = vmatpush.msra.mxu1 %v9707_v62  ;;  %v9771_v44 = vld [vmem:[%s10690_s4 + $0xb10] sm:$0xff]  ;;  %v9618_v34 = vld [vmem:[%s10690_s4 + $0x648] sm:$0xff] }
0x20dc   : > { %7223 = vmatpush.msra.mxu2 %v9763_v22  ;;  %7246 = vmatpush.msrb.mxu3 %v9795_v58  ;;  %v9650_v62 = vld [vmem:[%s10690_s4 + $0x748] sm:$0xff]  ;;  %v9737_v22 = vld [vmem:[%s10690_s4 + $0xa00] sm:$0xff] }
0x20dd   : > { %7190 = vmatpush.msrb.mxu0 %v9673_v57  ;;  %7213 = vmatpush.msra.mxu1 %v9705_v21  ;;  %v9769_v58 = vld [vmem:[%s10690_s4 + $0xb00] sm:$0xff]  ;;  %v9616_v57 = vld [vmem:[%s10690_s4 + $0x638] sm:$0xff] }
0x20de   : > { %7191 = vmatmul.f32.vlgmr.msrb.gmra.mxu0 %v12457_v20  ;;  %7214 = vmatmul.f32.vlgmr.msra.gmra.mxu1 %v12459_v50  ;;  %v9648_v21 = vld [vmem:[%s10690_s4 + $0x738] sm:$0xff] }
0x20df   : > { %7224 = vmatpush.msra.mxu2 %v9761_v31  ;;  %7247 = vmatpush.msrb.mxu3 %v9793_v37  ;;  %v9704_v31 = vld [vmem:[%s10690_s4 + $0x8f8] sm:$0xff] }
0x20e0   : > { %7267 = vmatpush.msra.mxu0 %v9640_v29  ;;  %7290 = vmatpush.msrb.mxu1 %v9672_v41  ;;  %v9736_v37 = vld [vmem:[%s10690_s4 + $0x9f8] sm:$0xff]  ;;  %v9614_v29 = vld [vmem:[%s10690_s4 + $0x628] sm:$0xff] }
0x20e1   : > { %7148 = vmatmul.f32.gmra.mxu2 %v12463_v1  ;;  %7171 = vmatmul.f32.gmra.mxu3 %v12465_v40  ;;  %v9646_v41 = vld [vmem:[%s10690_s4 + $0x728] sm:$0xff] }
0x20e2   : > { %7225 = vmatpush.msra.mxu2 %v9759_v26  ;;  %7248 = vmatpush.msrb.mxu3 %v9791_v61  ;;  %v9702_v26 = vld [vmem:[%s10690_s4 + $0x8e8] sm:$0xff] }
0x20e3   : > { %7268 = vmatpush.msra.mxu0 %v9638_v25  ;;  %7291 = vmatpush.msrb.mxu1 %v9670_v2  ;;  %v9734_v61 = vld [vmem:[%s10690_s4 + $0x9e8] sm:$0xff]  ;;  %v9612_v25 = vld [vmem:[%s10690_s4 + $0x618] sm:$0xff] }
0x20e4   : > { %7226 = vmatpush.msra.mxu2 %v9757_v6  ;;  %7249 = vmatpush.msrb.mxu3 %v9789_v54  ;;  %v9644_v2 = vld [vmem:[%s10690_s4 + $0x718] sm:$0xff] }
0x20e5   : > { %7269 = vmatpush.msra.mxu0 %v9636_v19  ;;  %7292 = vmatpush.msrb.mxu1 %v9668_v13  ;;  %v9700_v6 = vld [vmem:[%s10690_s4 + $0x8d8] sm:$0xff]  ;;  %v9610_v19 = vld [vmem:[%s10690_s4 + $0x608] sm:$0xff] }
0x20e6   : > { %7227 = vmatpush.msra.mxu2 %v9755_v47  ;;  %7250 = vmatpush.msrb.mxu3 %v9787_v51  ;;  %v9732_v54 = vld [vmem:[%s10690_s4 + $0x9d8] sm:$0xff]  ;;  %v9642_v13 = vld [vmem:[%s10690_s4 + $0x708] sm:$0xff] }
0x20e7   : > { %7270 = vmatpush.msra.mxu0 %v9634_v30  ;;  %7293 = vmatpush.msrb.mxu1 %v9666_v45  ;;  %v9698_v47 = vld [vmem:[%s10690_s4 + $0x8c8] sm:$0xff]  ;;  %v9768_v30 = vld [vmem:[%s10690_s4 + $0xaf8] sm:$0xff] }
0x20e8   : > { %7194 = vmatmul.f32.gmra.mxu0 %v12495_v56  ;;  %7217 = vmatmul.f32.gmra.mxu1 %v12497_v3  ;;  %v9730_v51 = vld [vmem:[%s10690_s4 + $0x9c8] sm:$0xff]  ;;  %v9800_v45 = vld [vmem:[%s10690_s4 + $0xbf8] sm:$0xff] }
0x20e9   : > { %7228 = vmatpush.msra.mxu2 %v9753_v36  ;;  %7251 = vmatpush.msrb.mxu3 %v9785_v35  ;;  %v9696_v36 = vld [vmem:[%s10690_s4 + $0x8b8] sm:$0xff] }
0x20ea   : > { %7271 = vmatpush.msra.mxu0 %v9632_v39  ;;  %7294 = vmatpush.msrb.mxu1 %v9664_v32  ;;  %v9728_v35 = vld [vmem:[%s10690_s4 + $0x9b8] sm:$0xff]  ;;  %v9766_v39 = vld [vmem:[%s10690_s4 + $0xae8] sm:$0xff] }
0x20eb   : > { %7229 = vmatpush.msra.mxu2 %v9751_v48  ;;  %7252 = vmatpush.msrb.mxu3 %v9783_v23  ;;  %v9798_v32 = vld [vmem:[%s10690_s4 + $0xbe8] sm:$0xff] }
0x20ec   : > { %7272 = vmatpush.msra.mxu0 %v9630_v11  ;;  %7295 = vmatpush.msrb.mxu1 %v9662_v38  ;;  %v9694_v48 = vld [vmem:[%s10690_s4 + $0x8a8] sm:$0xff]  ;;  %v9764_v11 = vld [vmem:[%s10690_s4 + $0xad8] sm:$0xff] }
0x20ed   : > { %7230 = vmatpush.msra.mxu2 %v9749_v5  ;;  %7253 = vmatpush.msrb.mxu3 %v9781_v52  ;;  %v9726_v23 = vld [vmem:[%s10690_s4 + $0x9a8] sm:$0xff]  ;;  %v9796_v38 = vld [vmem:[%s10690_s4 + $0xbd8] sm:$0xff] }
0x20ee   : > { %7273 = vmatpush.msra.mxu0 %v9628_v15  ;;  %7296 = vmatpush.msrb.mxu1 %v9660_v12  ;;  %v9692_v5 = vld [vmem:[%s10690_s4 + $0x898] sm:$0xff]  ;;  %v9762_v15 = vld [vmem:[%s10690_s4 + $0xac8] sm:$0xff] }
0x20ef   : > { %7231 = vmatpush.msra.mxu2 %v9747_v28  ;;  %7254 = vmatpush.msrb.mxu3 %v9779_v42  ;;  %v9724_v52 = vld [vmem:[%s10690_s4 + $0x998] sm:$0xff]  ;;  %v9794_v12 = vld [vmem:[%s10690_s4 + $0xbc8] sm:$0xff] }
0x20f0   : > { %7274 = vmatpush.msra.mxu0 %v9626_v16  ;;  %7297 = vmatpush.msrb.mxu1 %v9658_v0  ;;  %v9690_v28 = vld [vmem:[%s10690_s4 + $0x888] sm:$0xff]  ;;  %v9760_v16 = vld [vmem:[%s10690_s4 + $0xab8] sm:$0xff] }
0x20f1   : > { %7232 = vmatpush.msra.mxu2 %v9745_v9  ;;  %7255 = vmatpush.msrb.mxu3 %v9777_v10  ;;  %v9722_v42 = vld [vmem:[%s10690_s4 + $0x988] sm:$0xff]  ;;  %v9792_v0 = vld [vmem:[%s10690_s4 + $0xbb8] sm:$0xff] }
0x20f2   : > { %7275 = vmatpush.msra.mxu0 %v9624_v60  ;;  %7298 = vmatpush.msrb.mxu1 %v9656_v59  ;;  %v9688_v9 = vld [vmem:[%s10690_s4 + $0x878] sm:$0xff]  ;;  %v9758_v60 = vld [vmem:[%s10690_s4 + $0xaa8] sm:$0xff] }
0x20f3   : > { %7233 = vmatpush.msra.mxu2 %v9743_v4  ;;  %7256 = vmatpush.msrb.mxu3 %v9775_v14  ;;  %v9720_v10 = vld [vmem:[%s10690_s4 + $0x978] sm:$0xff]  ;;  %v9790_v59 = vld [vmem:[%s10690_s4 + $0xba8] sm:$0xff] }
0x20f4   : > { %7276 = vmatpush.msra.mxu0 %v9622_v17  ;;  %7299 = vmatpush.msrb.mxu1 %v9654_v7  ;;  %v9686_v4 = vld [vmem:[%s10690_s4 + $0x868] sm:$0xff]  ;;  %v9756_v7 = vld [vmem:[%s10690_s4 + $0xa98] sm:$0xff] }
0x20f5   : > { %7234 = vmatpush.msra.mxu2 %v9741_v53  ;;  %7257 = vmatpush.msrb.mxu3 %v9773_v33  ;;  %v9718_v14 = vld [vmem:[%s10690_s4 + $0x968] sm:$0xff]  ;;  %v9788_v53 = vld [vmem:[%s10690_s4 + $0xb98] sm:$0xff] }
0x20f6   : > { %7277 = vmatpush.msra.mxu0 %v9620_v24  ;;  %7300 = vmatpush.msrb.mxu1 %v9652_v49  ;;  %v9684_v33 = vld [vmem:[%s10690_s4 + $0x858] sm:$0xff] }
0x20f7   : > { %7235 = vmatpush.msra.mxu2 %v9739_v43  ;;  %7258 = vmatpush.msrb.mxu3 %v9771_v44  ;;  %v9716_v24 = vld [vmem:[%s10690_s4 + $0x958] sm:$0xff]  ;;  %v9754_v43 = vld [vmem:[%s10690_s4 + $0xa88] sm:$0xff] }
0x20f8   : > { %7278 = vmatpush.msra.mxu0 %v9618_v34  ;;  %7301 = vmatpush.msrb.mxu1 %v9650_v62  ;;  %v9786_v44 = vld [vmem:[%s10690_s4 + $0xb88] sm:$0xff] }
0x20f9   : > { %7236 = vmatpush.msra.mxu2 %v9737_v22  ;;  %7259 = vmatpush.msrb.mxu3 %v9769_v58  ;;  %v9682_v34 = vld [vmem:[%s10690_s4 + $0x848] sm:$0xff]  ;;  %v9752_v22 = vld [vmem:[%s10690_s4 + $0xa78] sm:$0xff] }
0x20fa   : > { %7279 = vmatpush.msra.mxu0 %v9616_v57  ;;  %7302 = vmatpush.msrb.mxu1 %v9648_v21  ;;  %v9714_v62 = vld [vmem:[%s10690_s4 + $0x948] sm:$0xff]  ;;  %v9784_v58 = vld [vmem:[%s10690_s4 + $0xb78] sm:$0xff] }
0x20fb   : > { %7237 = vmatmul.f32.vlgmr.msra.gmra.mxu2 %v12505_v27  ;;  %7260 = vmatmul.f32.vlgmr.msrb.gmra.mxu3 %v12507_v18  ;;  %v9680_v57 = vld [vmem:[%s10690_s4 + $0x838] sm:$0xff] }
0x20fc   : > { %7313 = vmatpush.msrb.mxu2 %v9704_v31  ;;  %7336 = vmatpush.msra.mxu3 %v9736_v37  ;;  %v9712_v21 = vld [vmem:[%s10690_s4 + $0x938] sm:$0xff]  ;;  %v9750_v37 = vld [vmem:[%s10690_s4 + $0xa68] sm:$0xff] }
0x20fd   : > { %7280 = vmatpush.msra.mxu0 %v9614_v29  ;;  %7303 = vmatpush.msrb.mxu1 %v9646_v41  ;;  %v9782_v29 = vld [vmem:[%s10690_s4 + $0xb68] sm:$0xff] }
0x20fe   : > { %7314 = vmatpush.msrb.mxu2 %v9702_v26  ;;  %7337 = vmatpush.msra.mxu3 %v9734_v61  ;;  %v9678_v41 = vld [vmem:[%s10690_s4 + $0x828] sm:$0xff] }
0x20ff   : > { %7281 = vmatpush.msra.mxu0 %v9612_v25  ;;  %7304 = vmatpush.msrb.mxu1 %v9644_v2  ;;  %v9710_v26 = vld [vmem:[%s10690_s4 + $0x928] sm:$0xff]  ;;  %v9748_v25 = vld [vmem:[%s10690_s4 + $0xa58] sm:$0xff] }
0x2100   : > { %7315 = vmatpush.msrb.mxu2 %v9700_v6  ;;  %7338 = vmatpush.msra.mxu3 %v9732_v54  ;;  %v9780_v2 = vld [vmem:[%s10690_s4 + $0xb58] sm:$0xff] }
0x2101   : > { %7282 = vmatpush.msra.mxu0 %v9610_v19  ;;  %7305 = vmatpush.msrb.mxu1 %v9642_v13  ;;  %v9676_v6 = vld [vmem:[%s10690_s4 + $0x818] sm:$0xff]  ;;  %v9746_v13 = vld [vmem:[%s10690_s4 + $0xa48] sm:$0xff] }
0x2102   : > { %7283 = vmatmul.f32.vlgmr.msra.gmra.mxu0 %v12440_v55  ;;  %7306 = vmatmul.f32.vlgmr.msrb.gmra.mxu1 %v12442_v63  ;;  %v9708_v54 = vld [vmem:[%s10690_s4 + $0x918] sm:$0xff] }
0x2103   : > { %7316 = vmatpush.msrb.mxu2 %v9698_v47  ;;  %7339 = vmatpush.msra.mxu3 %v9730_v51  ;;  %v9778_v47 = vld [vmem:[%s10690_s4 + $0xb48] sm:$0xff] }
0x2104   : > { %7359 = vmatpush.msrb.mxu0 %v9768_v30  ;;  %7382 = vmatpush.msra.mxu1 %v9800_v45  ;;  %v9674_v51 = vld [vmem:[%s10690_s4 + $0x808] sm:$0xff] }
0x2105   : > { %7240 = vmatmul.f32.gmra.mxu2 %v12537_v8  ;;  %7263 = vmatmul.f32.gmra.mxu3 %v12539_v46  ;;  %v9706_v30 = vld [vmem:[%s10690_s4 + $0x908] sm:$0xff] }
0x2106   : > { %7317 = vmatpush.msrb.mxu2 %v9696_v36  ;;  %7340 = vmatpush.msra.mxu3 %v9728_v35  ;;  %v9744_v36 = vld [vmem:[%s10690_s4 + $0xa38] sm:$0xff] }
0x2107   : > { %7360 = vmatpush.msrb.mxu0 %v9766_v39  ;;  %7383 = vmatpush.msra.mxu1 %v9798_v32  ;;  %v9776_v35 = vld [vmem:[%s10690_s4 + $0xb38] sm:$0xff]  ;;  %v9742_v39 = vld [vmem:[%s10690_s4 + $0xa28] sm:$0xff] }
0x2108   : > { %7318 = vmatpush.msrb.mxu2 %v9694_v48  ;;  %7341 = vmatpush.msra.mxu3 %v9726_v23  ;;  %v9774_v32 = vld [vmem:[%s10690_s4 + $0xb28] sm:$0xff]  ;;  %v9740_v23 = vld [vmem:[%s10690_s4 + $0xa18] sm:$0xff] }
0x2109   : > { %7361 = vmatpush.msrb.mxu0 %v9764_v11  ;;  %7384 = vmatpush.msra.mxu1 %v9796_v38  ;;  %v9772_v11 = vld [vmem:[%s10690_s4 + $0xb18] sm:$0xff] }
0x210a   : > { %7319 = vmatpush.msrb.mxu2 %v9692_v5  ;;  %7342 = vmatpush.msra.mxu3 %v9724_v52  ;;  %v9738_v5 = vld [vmem:[%s10690_s4 + $0xa08] sm:$0xff] }
0x210b   : > { %7362 = vmatpush.msrb.mxu0 %v9762_v15  ;;  %7385 = vmatpush.msra.mxu1 %v9794_v12  ;;  %v9770_v52 = vld [vmem:[%s10690_s4 + $0xb08] sm:$0xff] }
0x210c   : > { %7286 = vmatmul.f32.gmra.mxu0 %v12463_v1  ;;  %7309 = vmatmul.f32.gmra.mxu1 %v12465_v40 }
0x210d   : > { %7320 = vmatpush.msrb.mxu2 %v9690_v28  ;;  %7343 = vmatpush.msra.mxu3 %v9722_v42 }
0x210e   : > { %7363 = vmatpush.msrb.mxu0 %v9760_v16  ;;  %7386 = vmatpush.msra.mxu1 %v9792_v0  ;;  %v12755_v17 = vpop.f32.mrf.mxu2  ;;  %v12761_v49 = vpop.f32.mrf.mxu3 }
0x210f   : > { %7321 = vmatpush.msrb.mxu2 %v9688_v9  ;;  %7344 = vmatpush.msra.mxu3 %v9720_v10  ;;  %v6714_v31 = vpop.f32.mrf.mxu0  ;;  %v6737_v61 = vpop.f32.mrf.mxu1  ;;  %v6692_v12 = vadd.f32 %v12761_v49, %v12755_v17 }
0x2110   : > { %7364 = vmatpush.msrb.mxu0 %v9758_v60  ;;  %7387 = vmatpush.msra.mxu1 %v9790_v59 }
0x2111   : > { %7322 = vmatpush.msrb.mxu2 %v9686_v4  ;;  %7345 = vmatpush.msra.mxu3 %v9718_v14  ;;  %v6715_v16 = vadd.f32 %v6714_v31, %v6692_v12  ;;  %v12809_v31 = vld [vmem:[%s10685_s27 + $0x8] sm:$0xff]  ;;  %v9909_v12 = vld [vmem:[%s10690_s4 + $0xe20] sm:$0xff] }
0x2112   : > { %7365 = vmatpush.msrb.mxu0 %v9756_v7  ;;  %7388 = vmatpush.msra.mxu1 %v9788_v53 }
0x2113   : > { %7323 = vmatpush.msrb.mxu2 %v9684_v33  ;;  %7346 = vmatpush.msra.mxu3 %v9716_v24  ;;  %v6738_v60 = vadd.f32 %v6737_v61, %v6715_v16  ;;  %v9935_v24 = vld [vmem:[%s10690_s4 + $0xef0] sm:$0xff]  ;;  %v9965_v16 = vld [vmem:[%s10690_s4 + $0xfe0] sm:$0xff] }
0x2114   : > { %7366 = vmatpush.msrb.mxu0 %v9754_v43  ;;  %7389 = vmatpush.msra.mxu1 %v9786_v44  ;;  %v6451_v43 = vld [vmem:[%s10685_s27] sm:$0xff] }
0x2115   : > { %7324 = vmatpush.msrb.mxu2 %v9682_v34  ;;  %7347 = vmatpush.msra.mxu3 %v9714_v62  ;;  %v9933_v44 = vld [vmem:[%s10690_s4 + $0xee0] sm:$0xff]  ;;  %v9931_v62 = vld [vmem:[%s10690_s4 + $0xed0] sm:$0xff] }
0x2116   : > { %7367 = vmatpush.msrb.mxu0 %v9752_v22  ;;  %7390 = vmatpush.msra.mxu1 %v9784_v58  ;;  %v9929_v22 = vld [vmem:[%s10690_s4 + $0xec0] sm:$0xff] }
0x2117   : > { %7325 = vmatpush.msrb.mxu2 %v9680_v57  ;;  %7348 = vmatpush.msra.mxu3 %v9712_v21  ;;  %v9927_v57 = vld [vmem:[%s10690_s4 + $0xeb0] sm:$0xff] }
0x2118   : > { %7368 = vmatpush.msrb.mxu0 %v9750_v37  ;;  %7391 = vmatpush.msra.mxu1 %v9782_v29  ;;  %v6671_v19 = vpop.f32.mrf.mxu2  ;;  %v6694_v45 = vpop.f32.mrf.mxu3  ;;  %v9925_v37 = vld [vmem:[%s10690_s4 + $0xea0] sm:$0xff] }
0x2119   : > { %7326 = vmatpush.msrb.mxu2 %v9678_v41  ;;  %7349 = vmatpush.msra.mxu3 %v9710_v26  ;;  %v6717_v48 = vpop.f32.mrf.mxu0  ;;  %v6740_v38 = vpop.f32.mrf.mxu1  ;;  %v6695_v28 = vadd.f32 %v6694_v45, %v6671_v19  ;;  %v9923_v26 = vld [vmem:[%s10690_s4 + $0xe90] sm:$0xff] }
0x211a   : > { %7369 = vmatpush.msrb.mxu0 %v9748_v25  ;;  %7392 = vmatpush.msra.mxu1 %v9780_v2  ;;  %v9921_v2 = vld [vmem:[%s10690_s4 + $0xe80] sm:$0xff] }
0x211b   : > { %7327 = vmatpush.msrb.mxu2 %v9676_v6  ;;  %7350 = vmatpush.msra.mxu3 %v9708_v54  ;;  %v6718_v0 = vadd.f32 %v6717_v48, %v6695_v28  ;;  %v9919_v54 = vld [vmem:[%s10690_s4 + $0xe70] sm:$0xff] }
0x211c   : > { %7370 = vmatpush.msrb.mxu0 %v9746_v13  ;;  %7393 = vmatpush.msra.mxu1 %v9778_v47  ;;  %v12818_v13 = vld [vmem:[%s10685_s27 + $0x10] sm:$0xff] }
0x211d   : > { %7328 = vmatpush.msrb.mxu2 %v9674_v51  ;;  %7351 = vmatpush.msra.mxu3 %v9706_v30  ;;  %v6741_v59 = vadd.f32 %v6740_v38, %v6718_v0  ;;  %v9917_v30 = vld [vmem:[%s10690_s4 + $0xe60] sm:$0xff]  ;;  %v9967_v28 = vld [vmem:[%s10690_s4 + $0xff0] sm:$0xff] }
0x211e   : > { %7371 = vmatpush.msrb.mxu0 %v9744_v36  ;;  %7394 = vmatpush.msra.mxu1 %v9776_v35  ;;  %v9915_v35 = vld [vmem:[%s10690_s4 + $0xe50] sm:$0xff]  ;;  %v9905_v0 = vld [vmem:[%s10690_s4 + $0xe00] sm:$0xff] }
0x211f   : > { %7329 = vmatmul.f32.vlgmr.msrb.gmra.mxu2 %v12457_v20  ;;  %7352 = vmatmul.f32.vlgmr.msra.gmra.mxu3 %v12459_v50 }
0x2120   : > { %7372 = vmatpush.msrb.mxu0 %v9742_v39  ;;  %7395 = vmatpush.msra.mxu1 %v9774_v32 }
0x2122   : > { %7373 = vmatpush.msrb.mxu0 %v9740_v23  ;;  %7396 = vmatpush.msra.mxu1 %v9772_v11  ;;  %v6760_v15 = vpop.f32.mrf.mxu2  ;;  %v6783_v42 = vpop.f32.mrf.mxu3  ;;  %v9913_v23 = vld [vmem:[%s10690_s4 + $0xe40] sm:$0xff] }
0x2123   : > { %v6806_v9 = vpop.f32.mrf.mxu0  ;;  %v6829_v10 = vpop.f32.mrf.mxu1  ;;  %v6761_v14 = vadd.f32 %v6760_v15, %v6738_v60  ;;  %v9961_v60 = vld [vmem:[%s10690_s4 + $0xfc0] sm:$0xff] }
0x2124   : > { %7374 = vmatpush.msrb.mxu0 %v9738_v5  ;;  %7397 = vmatpush.msra.mxu1 %v9770_v52  ;;  %v6830_v41 = vadd.f32 %v6829_v10, %v6806_v9  ;;  %v9911_v5 = vld [vmem:[%s10690_s4 + $0xe30] sm:$0xff]  ;;  %v12827_v52 = vld [vmem:[%s10685_s27 + $0x18] sm:$0xff] }
0x2125   : > { %7375 = vmatmul.f32.vlgmr.msrb.gmra.mxu0 %v12505_v27  ;;  %7398 = vmatmul.f32.vlgmr.msra.gmra.mxu1 %v12507_v18  ;;  %v6784_v33 = vadd.f32 %v6783_v42, %v6761_v14  ;;  %v9907_v42 = vld [vmem:[%s10690_s4 + $0xe10] sm:$0xff]  ;;  %v9872_v10 = vld [vmem:[%s10690_s4 + $0xcf8] sm:$0xff] }
0x2126   : > { %v9963_v9 = vld [vmem:[%s10690_s4 + $0xfd0] sm:$0xff] }
0x2127   : > { %7332 = vmatmul.f32.gmra.mxu2 %v12495_v56  ;;  %7355 = vmatmul.f32.gmra.mxu3 %v12497_v3  ;;  %v9959_v14 = vld [vmem:[%s10690_s4 + $0xfb0] sm:$0xff] }
0x212c   : > { %v6763_v4 = vpop.f32.mrf.mxu2  ;;  %v6786_v7 = vpop.f32.mrf.mxu3 }
0x212d   : > { %7378 = vmatmul.f32.gmra.mxu0 %v12537_v8  ;;  %7401 = vmatmul.f32.gmra.mxu1 %v12539_v46  ;;  %v6764_v17 = vadd.f32 %v6763_v4, %v6741_v59  ;;  %v6809_v49 = vpop.f32.mrf.mxu0  ;;  %v6832_v34 = vpop.f32.mrf.mxu1  ;;  %v12841_v59 = vld [vmem:[%s10685_s27 + $0x20] sm:$0xff]  ;;  %v9870_v4 = vld [vmem:[%s10690_s4 + $0xce8] sm:$0xff] }
0x212e   : > { %v6833_v6 = vadd.f32 %v6832_v34, %v6809_v49  ;;  %v9953_v49 = vld [vmem:[%s10690_s4 + $0xf80] sm:$0xff]  ;;  %v9951_v34 = vld [vmem:[%s10690_s4 + $0xf70] sm:$0xff] }
0x212f   : > { %v6787_v53 = vadd.f32 %v6786_v7, %v6764_v17  ;;  %v9868_v17 = vld [vmem:[%s10690_s4 + $0xcd8] sm:$0xff]  ;;  %v9957_v7 = vld [vmem:[%s10690_s4 + $0xfa0] sm:$0xff] }
0x2131   : > { %7549 = vmatpush.msra.mxu0 %v6787_v53  ;;  %v9866_v53 = vld [vmem:[%s10690_s4 + $0xcc8] sm:$0xff] }
0x2133   : > { %7550 = vmatpush.msra.mxu0 %v6784_v33  ;;  %v9955_v33 = vld [vmem:[%s10690_s4 + $0xf90] sm:$0xff] }
0x2135   : > { %7865 = vmatpush.msrb.mxu0 %v9935_v24  ;;  %v9864_v24 = vld [vmem:[%s10690_s4 + $0xcb8] sm:$0xff] }
0x2136   : > { %9817 = vmatmul.msk.f32.vlgmr.msra.gmra.mxu0 %vm1654_vm0, %v6451_v43 }
0x2137   : > { %7866 = vmatpush.msrb.mxu0 %v9933_v44  ;;  %v6852_v58 = vpop.f32.mrf.mxu2  ;;  %v6875_v21 = vpop.f32.mrf.mxu3  ;;  %v9862_v44 = vld [vmem:[%s10690_s4 + $0xca8] sm:$0xff] }
0x2138   : > { %v6853_v25 = vadd.f32 %v6852_v58, %v6830_v41  ;;  %v9858_v58 = vld [vmem:[%s10690_s4 + $0xc88] sm:$0xff]  ;;  %v9943_v41 = vld [vmem:[%s10690_s4 + $0xf30] sm:$0xff] }
0x2139   : > { %7867 = vmatpush.msrb.mxu0 %v9931_v62  ;;  %v6898_v29 = vpop.f32.mrf.mxu0  ;;  %v6921_v61 = vpop.f32.mrf.mxu1  ;;  %v9860_v62 = vld [vmem:[%s10690_s4 + $0xc98] sm:$0xff] }
0x213a   : > { %v6876_v47 = vadd.f32 %v6875_v21, %v6853_v25  ;;  %v9856_v21 = vld [vmem:[%s10690_s4 + $0xc78] sm:$0xff]  ;;  %v9850_v25 = vld [vmem:[%s10690_s4 + $0xc48] sm:$0xff] }
0x213b   : > { %7868 = vmatpush.msrb.mxu0 %v9929_v22  ;;  %v9949_v22 = vld [vmem:[%s10690_s4 + $0xf60] sm:$0xff] }
0x213c   : > { %v6899_v32 = vadd.f32 %v6898_v29, %v6876_v47  ;;  %v9854_v29 = vld [vmem:[%s10690_s4 + $0xc68] sm:$0xff] }
0x213d   : > { %7869 = vmatpush.msrb.mxu0 %v9927_v57  ;;  %v9947_v57 = vld [vmem:[%s10690_s4 + $0xf50] sm:$0xff] }
0x213e   : > { %9818 = vmatmul.msk.f32.gmra.mxu0 %vm1654_vm0, %v12809_v31  ;;  %v6922_v15 = vadd.f32 %v6921_v61, %v6899_v32  ;;  %v9941_v61 = vld [vmem:[%s10690_s4 + $0xf20] sm:$0xff]  ;;  %v9898_v32 = vld [vmem:[%s10690_s4 + $0xdc8] sm:$0xff] }
0x213f   : > { %7870 = vmatpush.msrb.mxu0 %v9925_v37  ;;  %v12871_v37 = vld [vmem:[%s10685_s27 + $0x30] sm:$0xff] }
0x2141   : > { %7871 = vmatpush.msrb.mxu0 %v9923_v26  ;;  %v9852_v26 = vld [vmem:[%s10690_s4 + $0xc58] sm:$0xff] }
0x2142   : > { %v6855_v19 = vpop.f32.mrf.mxu2  ;;  %v6878_v45 = vpop.f32.mrf.mxu3 }
0x2143   : > { %7872 = vmatpush.msrb.mxu0 %v9921_v2  ;;  %v6856_v51 = vadd.f32 %v6855_v19, %v6833_v6  ;;  %v6901_v39 = vpop.f32.mrf.mxu0  ;;  %v6924_v11 = vpop.f32.mrf.mxu1  ;;  %v9939_v2 = vld [vmem:[%s10690_s4 + $0xf10] sm:$0xff]  ;;  %v9848_v6 = vld [vmem:[%s10690_s4 + $0xc38] sm:$0xff] }
0x2144   : > { %v12886_v19 = vld [vmem:[%s10685_s27 + $0x38] sm:$0xff] }
0x2145   : > { %7873 = vmatpush.msrb.mxu0 %v9919_v54  ;;  %v6879_v36 = vadd.f32 %v6878_v45, %v6856_v51  ;;  %v9937_v54 = vld [vmem:[%s10690_s4 + $0xf00] sm:$0xff]  ;;  %v9904_v51 = vld [vmem:[%s10690_s4 + $0xdf8] sm:$0xff] }
0x2146   : > { %9819 = vmatmul.msk.f32.gmra.mxu0 %vm1654_vm0, %v12818_v13 }
0x2147   : > { %7874 = vmatpush.msrb.mxu0 %v9917_v30  ;;  %v6902_v48 = vadd.f32 %v6901_v39, %v6879_v36  ;;  %v9844_v30 = vld [vmem:[%s10690_s4 + $0xc18] sm:$0xff]  ;;  %v9902_v36 = vld [vmem:[%s10690_s4 + $0xde8] sm:$0xff] }
0x2148   : > { %v9900_v39 = vld [vmem:[%s10690_s4 + $0xdd8] sm:$0xff] }
0x2149   : > { %7875 = vmatpush.msrb.mxu0 %v9915_v35  ;;  %v6925_v38 = vadd.f32 %v6924_v11, %v6902_v48  ;;  %v9842_v35 = vld [vmem:[%s10690_s4 + $0xc08] sm:$0xff]  ;;  %v10000_v48 = vld [vmem:[%s10690_s4 + $0x10f8] sm:$0xff] }
0x214a   : > { %v9998_v11 = vld [vmem:[%s10690_s4 + $0x10e8] sm:$0xff] }
0x214b   : > { %7876 = vmatpush.msrb.mxu0 %v9913_v23  ;;  %7590 = vmatpush.msrb.mxu1 %v6925_v38  ;;  %v9896_v23 = vld [vmem:[%s10690_s4 + $0xdb8] sm:$0xff] }
0x214d   : > { %7877 = vmatpush.msrb.mxu0 %v9911_v5  ;;  %7591 = vmatpush.msrb.mxu1 %v6922_v15  ;;  %v9894_v5 = vld [vmem:[%s10690_s4 + $0xda8] sm:$0xff] }
0x214e   : > { %9820 = vmatmul.msk.f32.gmra.mxu0 %vm1654_vm0, %v12827_v52  ;;  %9825 = vmatmul.msk.f32.vlgmr.msrb.gmra.mxu1 %vm1654_vm0, %v6451_v43  ;;  %v12856_v43 = vld [vmem:[%s10685_s27 + $0x28] sm:$0xff] }
0x214f   : > { %7878 = vmatpush.msrb.mxu0 %v9909_v12  ;;  %7888 = vmatpush.msra.mxu1 %v9967_v28  ;;  %v9892_v28 = vld [vmem:[%s10690_s4 + $0xd98] sm:$0xff] }
0x2151   : > { %7879 = vmatpush.msrb.mxu0 %v9907_v42  ;;  %7889 = vmatpush.msra.mxu1 %v9965_v16  ;;  %v9994_v42 = vld [vmem:[%s10690_s4 + $0x10c8] sm:$0xff] }
0x2152   : > { %v9890_v16 = vld [vmem:[%s10690_s4 + $0xd88] sm:$0xff] }
0x2153   : > { %7880 = vmatpush.msrb.mxu0 %v9905_v0  ;;  %7890 = vmatpush.msra.mxu1 %v9963_v9  ;;  %v9992_v0 = vld [vmem:[%s10690_s4 + $0x10b8] sm:$0xff] }
0x2155   : > { %7957 = vmatpush.msra.mxu0 %v9872_v10  ;;  %7891 = vmatpush.msra.mxu1 %v9961_v60  ;;  %v9888_v10 = vld [vmem:[%s10690_s4 + $0xd78] sm:$0xff]  ;;  %v9990_v60 = vld [vmem:[%s10690_s4 + $0x10a8] sm:$0xff] }
0x2156   : > { %9821 = vmatmul.msk.f32.gmra.mxu0 %vm1654_vm0, %v12841_v59  ;;  %9826 = vmatmul.msk.f32.gmra.mxu1 %vm1654_vm0, %v12809_v31  ;;  %v9945_v31 = vld [vmem:[%s10690_s4 + $0xf40] sm:$0xff] }
0x2157   : > { %7958 = vmatpush.msra.mxu0 %v9870_v4  ;;  %7892 = vmatpush.msra.mxu1 %v9959_v14  ;;  %v9886_v4 = vld [vmem:[%s10690_s4 + $0xd68] sm:$0xff] }
0x2159   : > { %7959 = vmatpush.msra.mxu0 %v9868_v17  ;;  %7893 = vmatpush.msra.mxu1 %v9957_v7  ;;  %v9988_v7 = vld [vmem:[%s10690_s4 + $0x1098] sm:$0xff] }
0x215a   : > { %v7146_v47 = vpop.f32.mrf.mxu2  ;;  %v7169_v45 = vpop.f32.mrf.mxu3 }
0x215b   : > { %7960 = vmatpush.msra.mxu0 %v9866_v53  ;;  %7894 = vmatpush.msra.mxu1 %v9955_v33  ;;  %v7192_v15 = vpop.f32.mrf.mxu0  ;;  %v7215_v9 = vpop.f32.mrf.mxu1  ;;  %v7170_v14 = vadd.f32 %v7169_v45, %v7146_v47  ;;  %v9884_v33 = vld [vmem:[%s10690_s4 + $0xd58] sm:$0xff]  ;;  %v9871_v45 = vld [vmem:[%s10690_s4 + $0xcf0] sm:$0xff] }
0x215d   : > { %7961 = vmatpush.msra.mxu0 %v9864_v24  ;;  %7895 = vmatpush.msra.mxu1 %v9953_v49  ;;  %v9986_v24 = vld [vmem:[%s10690_s4 + $0x1088] sm:$0xff] }
0x215e   : > { %9822 = vmatmul.msk.f32.gmra.mxu0 %vm1654_vm0, %v12856_v43  ;;  %9827 = vmatmul.msk.f32.gmra.mxu1 %vm1654_vm0, %v12818_v13  ;;  %v9846_v13 = vld [vmem:[%s10690_s4 + $0xc28] sm:$0xff] }
0x215f   : > { %7962 = vmatpush.msra.mxu0 %v9862_v44  ;;  %7896 = vmatpush.msra.mxu1 %v9951_v34  ;;  %v7193_v44 = vadd.f32 %v7192_v15, %v7170_v14  ;;  %v9865_v15 = vld [vmem:[%s10690_s4 + $0xcc0] sm:$0xff]  ;;  %v10083_v14 = vld [vmem:[%s10690_s4 + $0x12d0] sm:$0xff] }
0x2161   : > { %7963 = vmatpush.msra.mxu0 %v9860_v62  ;;  %7897 = vmatpush.msra.mxu1 %v9949_v22  ;;  %v9984_v62 = vld [vmem:[%s10690_s4 + $0x1078] sm:$0xff] }
0x2162   : > { %v9880_v22 = vld [vmem:[%s10690_s4 + $0xd38] sm:$0xff] }
0x2163   : > { %7964 = vmatpush.msra.mxu0 %v9858_v58  ;;  %7898 = vmatpush.msra.mxu1 %v9947_v57  ;;  %v9982_v58 = vld [vmem:[%s10690_s4 + $0x1068] sm:$0xff] }
0x2164   : > { %v7149_v38 = vpop.f32.mrf.mxu2  ;;  %v7172_v12 = vpop.f32.mrf.mxu3 }
0x2165   : > { %7965 = vmatpush.msra.mxu0 %v9856_v21  ;;  %7899 = vmatpush.msra.mxu1 %v9945_v31  ;;  %v7173_v17 = vadd.f32 %v7172_v12, %v7149_v38  ;;  %v7195_v49 = vpop.f32.mrf.mxu0  ;;  %v7218_v57 = vpop.f32.mrf.mxu1  ;;  %v9878_v21 = vld [vmem:[%s10690_s4 + $0xd28] sm:$0xff]  ;;  %v7216_v31 = vadd.f32 %v7215_v9, %v7193_v44  ;;  %v10024_v12 = vld [vmem:[%s10690_s4 + $0x11b8] sm:$0xff]  ;;  %v9861_v9 = vld [vmem:[%s10690_s4 + $0xca0] sm:$0xff] }
0x2166   : > { %9823 = vmatmul.msk.f32.gmra.mxu0 %vm1654_vm0, %v12871_v37  ;;  %9828 = vmatmul.msk.f32.gmra.mxu1 %vm1654_vm0, %v12827_v52  ;;  %v9996_v52 = vld [vmem:[%s10690_s4 + $0x10d8] sm:$0xff]  ;;  %v10026_v38 = vld [vmem:[%s10690_s4 + $0x11c8] sm:$0xff] }
0x2167   : > { %7966 = vmatpush.msra.mxu0 %v9854_v29  ;;  %7900 = vmatpush.msra.mxu1 %v9943_v41  ;;  %v7196_v34 = vadd.f32 %v7195_v49, %v7173_v17  ;;  %v9980_v29 = vld [vmem:[%s10690_s4 + $0x1058] sm:$0xff]  ;;  %v10014_v44 = vld [vmem:[%s10690_s4 + $0x1168] sm:$0xff] }
0x2169   : > { %7967 = vmatpush.msra.mxu0 %v9852_v26  ;;  %7901 = vmatpush.msra.mxu1 %v9941_v61  ;;  %v9876_v26 = vld [vmem:[%s10690_s4 + $0xd18] sm:$0xff] }
0x216b   : > { %7968 = vmatpush.msra.mxu0 %v9850_v25  ;;  %7902 = vmatpush.msra.mxu1 %v9939_v2  ;;  %v9978_v2 = vld [vmem:[%s10690_s4 + $0x1048] sm:$0xff] }
0x216d   : > { %7969 = vmatpush.msra.mxu0 %v9848_v6  ;;  %7903 = vmatpush.msra.mxu1 %v9937_v54  ;;  %v9874_v54 = vld [vmem:[%s10690_s4 + $0xd08] sm:$0xff] }
0x216e   : > { %9824 = vmatmul.msk.f32.gmra.mxu0 %vm1654_vm0, %v12886_v19  ;;  %9829 = vmatmul.msk.f32.gmra.mxu1 %vm1654_vm0, %v12841_v59 }
0x216f   : > { %7970 = vmatpush.msra.mxu0 %v9846_v13  ;;  %7980 = vmatpush.msrb.mxu1 %v9904_v51  ;;  %v10032_v13 = vld [vmem:[%s10690_s4 + $0x11f8] sm:$0xff]  ;;  %v12934_v51 = vld [vmem:[%s10685_s27 + $0x40] sm:$0xff] }
0x2171   : > { %7971 = vmatpush.msra.mxu0 %v9844_v30  ;;  %7981 = vmatpush.msrb.mxu1 %v9902_v36  ;;  %v9976_v30 = vld [vmem:[%s10690_s4 + $0x1038] sm:$0xff]  ;;  %v10030_v36 = vld [vmem:[%s10690_s4 + $0x11e8] sm:$0xff] }
0x2173   : > { %7972 = vmatpush.msra.mxu0 %v9842_v35  ;;  %7982 = vmatpush.msrb.mxu1 %v9900_v39  ;;  %v9974_v35 = vld [vmem:[%s10690_s4 + $0x1028] sm:$0xff]  ;;  %v9869_v39 = vld [vmem:[%s10690_s4 + $0xce0] sm:$0xff] }
0x2175   : > { %7983 = vmatpush.msrb.mxu1 %v9898_v32  ;;  %v10028_v32 = vld [vmem:[%s10690_s4 + $0x11d8] sm:$0xff] }
0x2176   : > { %7881 = vmatmul.f32.vlgmr.msrb.gmra.mxu0 %v12457_v20  ;;  %9830 = vmatmul.msk.f32.gmra.mxu1 %vm1654_vm0, %v12856_v43  ;;  %v9882_v43 = vld [vmem:[%s10690_s4 + $0xd48] sm:$0xff] }
0x2177   : > { %8049 = vmatpush.msrb.mxu0 %v10000_v48  ;;  %7984 = vmatpush.msrb.mxu1 %v9896_v23  ;;  %v9972_v48 = vld [vmem:[%s10690_s4 + $0x1018] sm:$0xff] }
0x2179   : > { %8050 = vmatpush.msrb.mxu0 %v9998_v11  ;;  %7985 = vmatpush.msrb.mxu1 %v9894_v5  ;;  %v9867_v11 = vld [vmem:[%s10690_s4 + $0xcd0] sm:$0xff]  ;;  %v9970_v5 = vld [vmem:[%s10690_s4 + $0x1008] sm:$0xff] }
0x217b   : > { %8051 = vmatpush.msrb.mxu0 %v9996_v52  ;;  %7986 = vmatpush.msrb.mxu1 %v9892_v28  ;;  %v12955_v28 = vld [vmem:[%s10685_s27 + $0x48] sm:$0xff] }
0x217d   : > { %8052 = vmatpush.msrb.mxu0 %v9994_v42  ;;  %7987 = vmatpush.msrb.mxu1 %v9890_v16  ;;  %v10087_v42 = vld [vmem:[%s10690_s4 + $0x12f0] sm:$0xff] }
0x217e   : > { %7884 = vmatmul.f32.gmra.mxu0 %v12495_v56  ;;  %v7238_v59 = vpop.f32.mrf.mxu2  ;;  %9831 = vmatmul.msk.f32.gmra.mxu1 %vm1654_vm0, %v12871_v37  ;;  %v7261_v53 = vpop.f32.mrf.mxu3  ;;  %v7219_v37 = vadd.f32 %v7218_v57, %v7196_v34  ;;  %v9863_v16 = vld [vmem:[%s10690_s4 + $0xcb0] sm:$0xff] }
0x217f   : > { %8053 = vmatpush.msrb.mxu0 %v9992_v0  ;;  %7988 = vmatpush.msrb.mxu1 %v9888_v10  ;;  %v7239_v61 = vadd.f32 %v7238_v59, %v7216_v31  ;;  %v12947_v23 = vpop.f32.mrf.mxu0  ;;  %v7307_v52 = vpop.f32.mrf.mxu1  ;;  %v10022_v0 = vld [vmem:[%s10690_s4 + $0x11a8] sm:$0xff]  ;;  %v10020_v10 = vld [vmem:[%s10690_s4 + $0x1198] sm:$0xff]  ;;  %v9859_v59 = vld [vmem:[%s10690_s4 + $0xc90] sm:$0xff] }
0x2180   : > { %v10079_v34 = vld [vmem:[%s10690_s4 + $0x12b0] sm:$0xff] }
0x2181   : > { %8054 = vmatpush.msrb.mxu0 %v9990_v60  ;;  %7989 = vmatpush.msrb.mxu1 %v9886_v4  ;;  %v7262_v47 = vadd.f32 %v7261_v53, %v7239_v61  ;;  %v10085_v60 = vld [vmem:[%s10690_s4 + $0x12e0] sm:$0xff]  ;;  %v10018_v4 = vld [vmem:[%s10690_s4 + $0x1188] sm:$0xff]  ;;  %v10016_v53 = vld [vmem:[%s10690_s4 + $0x1178] sm:$0xff]  ;;  %v7308_v61 = vadd.f32 %v7307_v52, %v12947_v23 }
0x2182   : > { %v9851_v31 = vld [vmem:[%s10690_s4 + $0xc50] sm:$0xff]  ;;  %v9841_v52 = vld [vmem:[%s10690_s4 + $0xc00] sm:$0xff] }
0x2183   : > { %8055 = vmatpush.msrb.mxu0 %v9988_v7  ;;  %7990 = vmatpush.msrb.mxu1 %v9884_v33  ;;  %v9857_v7 = vld [vmem:[%s10690_s4 + $0xc80] sm:$0xff]  ;;  %v12973_v33 = vld [vmem:[%s10685_s27 + $0x50] sm:$0xff] }
0x2185   : > { %8056 = vmatpush.msrb.mxu0 %v9986_v24  ;;  %7991 = vmatpush.msrb.mxu1 %v9882_v43  ;;  %v10081_v24 = vld [vmem:[%s10690_s4 + $0x12c0] sm:$0xff]  ;;  %v9855_v43 = vld [vmem:[%s10690_s4 + $0xc70] sm:$0xff] }
0x2186   : > { %7973 = vmatmul.f32.vlgmr.msra.gmra.mxu0 %v12440_v55  ;;  %9832 = vmatmul.msk.f32.gmra.mxu1 %vm1654_vm0, %v12886_v19 }
0x2187   : > { %8057 = vmatpush.msrb.mxu0 %v9984_v62  ;;  %7992 = vmatpush.msrb.mxu1 %v9880_v22  ;;  %v9853_v62 = vld [vmem:[%s10690_s4 + $0xc60] sm:$0xff]  ;;  %v10012_v22 = vld [vmem:[%s10690_s4 + $0x1158] sm:$0xff] }
0x2188   : > { %v7241_v41 = vpop.f32.mrf.mxu2  ;;  %v7264_v6 = vpop.f32.mrf.mxu3 }
0x2189   : > { %8058 = vmatpush.msrb.mxu0 %v9982_v58  ;;  %v7242_v25 = vadd.f32 %v7241_v41, %v7219_v37  ;;  %7993 = vmatpush.msrb.mxu1 %v9878_v21  ;;  %v7287_v17 = vpop.f32.mrf.mxu0  ;;  %v7310_v49 = vpop.f32.mrf.mxu1  ;;  %v10077_v58 = vld [vmem:[%s10690_s4 + $0x12a0] sm:$0xff]  ;;  %v10010_v37 = vld [vmem:[%s10690_s4 + $0x1148] sm:$0xff] }
0x218b   : > { %8059 = vmatpush.msrb.mxu0 %v9980_v29  ;;  %v7265_v19 = vadd.f32 %v7264_v6, %v7242_v25  ;;  %7994 = vmatpush.msrb.mxu1 %v9876_v26  ;;  %v10075_v29 = vld [vmem:[%s10690_s4 + $0x1290] sm:$0xff]  ;;  %v9849_v26 = vld [vmem:[%s10690_s4 + $0xc40] sm:$0xff]  ;;  %v12992_v25 = vld [vmem:[%s10685_s27 + $0x58] sm:$0xff] }
0x218d   : > { %8060 = vmatpush.msrb.mxu0 %v9978_v2  ;;  %7443 = vmatpush.msra.mxu2 %v7265_v19  ;;  %v10008_v2 = vld [vmem:[%s10690_s4 + $0x1138] sm:$0xff]  ;;  %v10073_v19 = vld [vmem:[%s10690_s4 + $0x1280] sm:$0xff] }
0x218e   : > { %7995 = vmatpush.msrb.mxu1 %v9874_v54  ;;  %7976 = vmatmul.f32.gmra.mxu0 %v12463_v1  ;;  %v9847_v54 = vld [vmem:[%s10690_s4 + $0xc30] sm:$0xff] }
0x218f   : > { %7904 = vmatmul.f32.vlgmr.msra.gmra.mxu1 %v12459_v50  ;;  %7444 = vmatpush.msra.mxu2 %v7262_v47  ;;  %v10006_v47 = vld [vmem:[%s10690_s4 + $0x1128] sm:$0xff] }
0x2190   : > { %8072 = vmatpush.msra.mxu1 %v10032_v13  ;;  %9801 = vmatmul.msk.f32.vlgmr.msra.gmra.mxu2 %vm1654_vm0, %v12934_v51 }
0x2191   : > { %8061 = vmatpush.msrb.mxu0 %v9976_v30  ;;  %7819 = vmatpush.msrb.mxu2 %v9871_v45  ;;  %v9845_v30 = vld [vmem:[%s10690_s4 + $0xc20] sm:$0xff]  ;;  %v10071_v45 = vld [vmem:[%s10690_s4 + $0x1270] sm:$0xff] }
0x2192   : > { %8073 = vmatpush.msra.mxu1 %v10030_v36  ;;  %v7311_v36 = vadd.f32 %v7310_v49, %v7287_v17  ;;  %v9997_v17 = vld [vmem:[%s10690_s4 + $0x10e0] sm:$0xff]  ;;  %v9995_v49 = vld [vmem:[%s10690_s4 + $0x10d0] sm:$0xff] }
0x2193   : > { %8062 = vmatpush.msrb.mxu0 %v9974_v35  ;;  %7820 = vmatpush.msrb.mxu2 %v9869_v39  ;;  %v10004_v35 = vld [vmem:[%s10690_s4 + $0x1118] sm:$0xff] }
0x2194   : > { %8074 = vmatpush.msra.mxu1 %v10028_v32  ;;  %v9843_v32 = vld [vmem:[%s10690_s4 + $0xc10] sm:$0xff] }
0x2195   : > { %8063 = vmatpush.msrb.mxu0 %v9972_v48  ;;  %7821 = vmatpush.msrb.mxu2 %v9867_v11  ;;  %v10069_v48 = vld [vmem:[%s10690_s4 + $0x1260] sm:$0xff] }
0x2196   : > { %8075 = vmatpush.msra.mxu1 %v10026_v38  ;;  %v10002_v38 = vld [vmem:[%s10690_s4 + $0x1108] sm:$0xff] }
0x2197   : > { %7907 = vmatmul.f32.gmra.mxu1 %v12497_v3  ;;  %8064 = vmatpush.msrb.mxu0 %v9970_v5 }
0x2198   : > { %7822 = vmatpush.msrb.mxu2 %v9865_v15  ;;  %8076 = vmatpush.msra.mxu1 %v10024_v12  ;;  %v10067_v15 = vld [vmem:[%s10690_s4 + $0x1250] sm:$0xff] }
0x2199   : > { %9802 = vmatmul.msk.f32.gmra.mxu2 %vm1654_vm0, %v12955_v28  ;;  %8419 = vmatpush.msra.mxu0 %v10087_v42  ;;  %v13010_v42 = vld [vmem:[%s10685_s27 + $0x60] sm:$0xff] }
0x219a   : > { %7823 = vmatpush.msrb.mxu2 %v9863_v16  ;;  %8077 = vmatpush.msra.mxu1 %v10022_v0  ;;  %v10119_v16 = vld [vmem:[%s10690_s4 + $0x13f0] sm:$0xff] }
0x219b   : > { %8065 = vmatmul.f32.vlgmr.msrb.gmra.mxu0 %v12505_v27 }
0x219c   : > { %7824 = vmatpush.msrb.mxu2 %v9861_v9  ;;  %8078 = vmatpush.msra.mxu1 %v10020_v10  ;;  %v9999_v9 = vld [vmem:[%s10690_s4 + $0x10f0] sm:$0xff] }
0x219d   : > { %8420 = vmatpush.msra.mxu0 %v10085_v60 }
0x219e   : > { %7825 = vmatpush.msrb.mxu2 %v9859_v59  ;;  %8079 = vmatpush.msra.mxu1 %v10018_v4  ;;  %v10065_v59 = vld [vmem:[%s10690_s4 + $0x1240] sm:$0xff] }
0x219f   : > { %8421 = vmatpush.msra.mxu0 %v10083_v14  ;;  %7996 = vmatmul.f32.vlgmr.msrb.gmra.mxu1 %v12442_v63  ;;  %v10117_v4 = vld [vmem:[%s10690_s4 + $0x13e0] sm:$0xff] }
0x21a0   : > { %7826 = vmatpush.msrb.mxu2 %v9857_v7  ;;  %8080 = vmatpush.msra.mxu1 %v10016_v53  ;;  %v10063_v53 = vld [vmem:[%s10690_s4 + $0x1230] sm:$0xff] }
0x21a1   : > { %9803 = vmatmul.msk.f32.gmra.mxu2 %vm1654_vm0, %v12973_v33  ;;  %8422 = vmatpush.msra.mxu0 %v10081_v24  ;;  %v10115_v24 = vld [vmem:[%s10690_s4 + $0x13d0] sm:$0xff] }
0x21a2   : > { %7827 = vmatpush.msrb.mxu2 %v9855_v43  ;;  %8081 = vmatpush.msra.mxu1 %v10014_v44  ;;  %v7330_v57 = vpop.f32.mrf.mxu2  ;;  %v7353_v21 = vpop.f32.mrf.mxu3  ;;  %v10061_v44 = vld [vmem:[%s10690_s4 + $0x1220] sm:$0xff] }
0x21a3   : > { %8423 = vmatpush.msra.mxu0 %v10079_v34  ;;  %v7376_v41 = vpop.f32.mrf.mxu0  ;;  %v7399_v6 = vpop.f32.mrf.mxu1  ;;  %v7331_v13 = vadd.f32 %v7330_v57, %v7308_v61  ;;  %v9903_v34 = vld [vmem:[%s10690_s4 + $0xdf0] sm:$0xff]  ;;  %v9901_v57 = vld [vmem:[%s10690_s4 + $0xde0] sm:$0xff] }
0x21a4   : > { %7828 = vmatpush.msrb.mxu2 %v9853_v62  ;;  %8068 = vmatmul.f32.gmra.mxu0 %v12537_v8  ;;  %v9993_v62 = vld [vmem:[%s10690_s4 + $0x10c0] sm:$0xff]  ;;  %v9987_v61 = vld [vmem:[%s10690_s4 + $0x1090] sm:$0xff] }
0x21a5   : > { %8082 = vmatpush.msra.mxu1 %v10012_v22  ;;  %8424 = vmatpush.msra.mxu0 %v10077_v58  ;;  %v7354_v23 = vadd.f32 %v7353_v21, %v7331_v13  ;;  %v13027_v22 = vld [vmem:[%s10685_s27 + $0x68] sm:$0xff]  ;;  %v10113_v58 = vld [vmem:[%s10690_s4 + $0x13c0] sm:$0xff]  ;;  %v9991_v21 = vld [vmem:[%s10690_s4 + $0x10b0] sm:$0xff] }
0x21a6   : > { %7829 = vmatpush.msrb.mxu2 %v9851_v31  ;;  %v10059_v31 = vld [vmem:[%s10690_s4 + $0x1210] sm:$0xff]  ;;  %v9893_v13 = vld [vmem:[%s10690_s4 + $0xda0] sm:$0xff] }
0x21a7   : > { %8083 = vmatpush.msra.mxu1 %v10010_v37  ;;  %8425 = vmatpush.msra.mxu0 %v10075_v29  ;;  %v7377_v10 = vadd.f32 %v7376_v41, %v7354_v23  ;;  %v10111_v37 = vld [vmem:[%s10690_s4 + $0x13b0] sm:$0xff]  ;;  %v9989_v41 = vld [vmem:[%s10690_s4 + $0x10a0] sm:$0xff] }
0x21a8   : > { %7830 = vmatpush.msrb.mxu2 %v9849_v26  ;;  %7999 = vmatmul.f32.gmra.mxu1 %v12465_v40  ;;  %v9899_v29 = vld [vmem:[%s10690_s4 + $0xdd0] sm:$0xff]  ;;  %v9897_v26 = vld [vmem:[%s10690_s4 + $0xdc0] sm:$0xff] }
0x21a9   : > { %9804 = vmatmul.msk.f32.gmra.mxu2 %vm1654_vm0, %v12992_v25  ;;  %8084 = vmatpush.msra.mxu1 %v10008_v2  ;;  %v7400_v43 = vadd.f32 %v7399_v6, %v7377_v10  ;;  %v10109_v2 = vld [vmem:[%s10690_s4 + $0x13a0] sm:$0xff]  ;;  %v9895_v6 = vld [vmem:[%s10690_s4 + $0xdb0] sm:$0xff] }
0x21aa   : > { %7831 = vmatpush.msrb.mxu2 %v9847_v54  ;;  %8426 = vmatpush.msra.mxu0 %v10073_v19  ;;  %v7333_v39 = vpop.f32.mrf.mxu2  ;;  %v7356_v5 = vpop.f32.mrf.mxu3  ;;  %v9985_v54 = vld [vmem:[%s10690_s4 + $0x1080] sm:$0xff]  ;;  %v13048_v19 = vld [vmem:[%s10685_s27 + $0x70] sm:$0xff] }
0x21ab   : > { %8085 = vmatpush.msra.mxu1 %v10006_v47  ;;  %v7334_v11 = vadd.f32 %v7333_v39, %v7311_v36  ;;  %v7379_v0 = vpop.f32.mrf.mxu0  ;;  %v7402_v14 = vpop.f32.mrf.mxu1  ;;  %v10151_v47 = vld [vmem:[%s10690_s4 + $0x14f0] sm:$0xff]  ;;  %v10105_v39 = vld [vmem:[%s10690_s4 + $0x1380] sm:$0xff] }
0x21ac   : > { %7832 = vmatpush.msrb.mxu2 %v9845_v30  ;;  %8427 = vmatpush.msra.mxu0 %v10071_v45  ;;  %v9983_v30 = vld [vmem:[%s10690_s4 + $0x1070] sm:$0xff] }
0x21ad   : > { %8086 = vmatpush.msra.mxu1 %v10004_v35  ;;  %v7357_v12 = vadd.f32 %v7356_v5, %v7334_v11  ;;  %v10107_v45 = vld [vmem:[%s10690_s4 + $0x1390] sm:$0xff]  ;;  %v10149_v35 = vld [vmem:[%s10690_s4 + $0x14e0] sm:$0xff] }
0x21ae   : > { %7833 = vmatpush.msrb.mxu2 %v9843_v32  ;;  %8428 = vmatpush.msra.mxu0 %v10069_v48  ;;  %v9891_v36 = vld [vmem:[%s10690_s4 + $0xd90] sm:$0xff]  ;;  %v9889_v32 = vld [vmem:[%s10690_s4 + $0xd80] sm:$0xff] }
0x21af   : > { %8087 = vmatpush.msra.mxu1 %v10002_v38  ;;  %v7380_v60 = vadd.f32 %v7379_v0, %v7357_v12  ;;  %v10147_v48 = vld [vmem:[%s10690_s4 + $0x14d0] sm:$0xff]  ;;  %v10145_v5 = vld [vmem:[%s10690_s4 + $0x14c0] sm:$0xff] }
0x21b0   : > { %7834 = vmatpush.msrb.mxu2 %v9841_v52  ;;  %8429 = vmatpush.msra.mxu0 %v10067_v15  ;;  %v9979_v23 = vld [vmem:[%s10690_s4 + $0x1050] sm:$0xff]  ;;  %v13070_v52 = vld [vmem:[%s10685_s27 + $0x78] sm:$0xff]  ;;  %v9885_v15 = vld [vmem:[%s10690_s4 + $0xd60] sm:$0xff] }
0x21b1   : > { %9805 = vmatmul.msk.f32.gmra.mxu2 %vm1654_vm0, %v13010_v42  ;;  %8442 = vmatpush.msrb.mxu1 %v10119_v16  ;;  %v7403_v7 = vadd.f32 %v7402_v14, %v7380_v60  ;;  %v9887_v11 = vld [vmem:[%s10690_s4 + $0xd70] sm:$0xff]  ;;  %v9977_v12 = vld [vmem:[%s10690_s4 + $0x1040] sm:$0xff] }
0x21b2   : > { %7911 = vmatpush.msra.mxu2 %v9999_v9  ;;  %8088 = vmatmul.f32.vlgmr.msra.gmra.mxu1 %v12507_v18  ;;  %v10103_v38 = vld [vmem:[%s10690_s4 + $0x1370] sm:$0xff]  ;;  %v10101_v16 = vld [vmem:[%s10690_s4 + $0x1360] sm:$0xff] }
0x21b3   : > { %8430 = vmatpush.msra.mxu0 %v10065_v59  ;;  %8443 = vmatpush.msrb.mxu1 %v10117_v4  ;;  %v10143_v0 = vld [vmem:[%s10690_s4 + $0x14b0] sm:$0xff]  ;;  %v10141_v60 = vld [vmem:[%s10690_s4 + $0x14a0] sm:$0xff] }
0x21b4   : > { %7484 = vmatpush.msrb.mxu3 %v7403_v7  ;;  %7912 = vmatpush.msra.mxu2 %v9997_v17  ;;  %v9883_v9 = vld [vmem:[%s10690_s4 + $0xd50] sm:$0xff]  ;;  %v9881_v59 = vld [vmem:[%s10690_s4 + $0xd40] sm:$0xff] }
0x21b5   : > { %8431 = vmatpush.msra.mxu0 %v10063_v53  ;;  %8444 = vmatpush.msrb.mxu1 %v10115_v24  ;;  %v10099_v10 = vld [vmem:[%s10690_s4 + $0x1350] sm:$0xff]  ;;  %v9973_v4 = vld [vmem:[%s10690_s4 + $0x1020] sm:$0xff] }
0x21b6   : > { %7485 = vmatpush.msrb.mxu3 %v7400_v43  ;;  %7913 = vmatpush.msra.mxu2 %v9995_v49  ;;  %v10097_v14 = vld [vmem:[%s10690_s4 + $0x1340] sm:$0xff]  ;;  %v10139_v17 = vld [vmem:[%s10690_s4 + $0x1490] sm:$0xff] }
0x21b7   : > { %9809 = vmatmul.msk.f32.vlgmr.msrb.gmra.mxu3 %vm1654_vm0, %v12934_v51  ;;  %8432 = vmatpush.msra.mxu0 %v10061_v44  ;;  %v10057_v51 = vld [vmem:[%s10690_s4 + $0x1200] sm:$0xff]  ;;  %v9879_v7 = vld [vmem:[%s10690_s4 + $0xd30] sm:$0xff] }
0x21b8   : > { %7842 = vmatpush.msra.mxu3 %v9903_v34  ;;  %7914 = vmatpush.msra.mxu2 %v9993_v62  ;;  %v9971_v53 = vld [vmem:[%s10690_s4 + $0x1010] sm:$0xff]  ;;  %v10137_v49 = vld [vmem:[%s10690_s4 + $0x1480] sm:$0xff]  ;;  %v9936_v62 = vld [vmem:[%s10690_s4 + $0xef8] sm:$0xff] }
0x21b9   : > { %9806 = vmatmul.msk.f32.gmra.mxu2 %vm1654_vm0, %v13027_v22  ;;  %8445 = vmatpush.msrb.mxu1 %v10113_v58  ;;  %v10095_v24 = vld [vmem:[%s10690_s4 + $0x1330] sm:$0xff]  ;;  %v9877_v43 = vld [vmem:[%s10690_s4 + $0xd20] sm:$0xff] }
0x21ba   : > { %7843 = vmatpush.msra.mxu3 %v9901_v57  ;;  %7915 = vmatpush.msra.mxu2 %v9991_v21  ;;  %v9969_v44 = vld [vmem:[%s10690_s4 + $0x1000] sm:$0xff]  ;;  %v9875_v58 = vld [vmem:[%s10690_s4 + $0xd10] sm:$0xff]  ;;  %v9934_v21 = vld [vmem:[%s10690_s4 + $0xee8] sm:$0xff] }
0x21bb   : > { %8433 = vmatpush.msra.mxu0 %v10059_v31  ;;  %8446 = vmatpush.msrb.mxu1 %v10111_v37  ;;  %v10093_v34 = vld [vmem:[%s10690_s4 + $0x1320] sm:$0xff]  ;;  %v10091_v57 = vld [vmem:[%s10690_s4 + $0x1310] sm:$0xff] }
0x21bc   : > { %7844 = vmatpush.msra.mxu3 %v9899_v29  ;;  %7916 = vmatpush.msra.mxu2 %v9989_v41  ;;  %v10133_v31 = vld [vmem:[%s10690_s4 + $0x1460] sm:$0xff]  ;;  %v10031_v41 = vld [vmem:[%s10690_s4 + $0x11f0] sm:$0xff] }
0x21bd   : > { %8091 = vmatmul.f32.gmra.mxu1 %v12539_v46  ;;  %8434 = vmatpush.msra.mxu0 %v10057_v51  ;;  %v9873_v37 = vld [vmem:[%s10690_s4 + $0xd00] sm:$0xff]  ;;  %v9932_v51 = vld [vmem:[%s10690_s4 + $0xed8] sm:$0xff] }
0x21be   : > { %7845 = vmatpush.msra.mxu3 %v9897_v26  ;;  %7917 = vmatpush.msra.mxu2 %v9987_v61  ;;  %v10089_v29 = vld [vmem:[%s10690_s4 + $0x1300] sm:$0xff]  ;;  %v10131_v26 = vld [vmem:[%s10690_s4 + $0x1450] sm:$0xff] }
0x21bf   : > { %9810 = vmatmul.msk.f32.gmra.mxu3 %vm1654_vm0, %v12955_v28  ;;  %8447 = vmatpush.msrb.mxu1 %v10109_v2  ;;  %v9981_v28 = vld [vmem:[%s10690_s4 + $0x1060] sm:$0xff]  ;;  %v10183_v61 = vld [vmem:[%s10690_s4 + $0x15f0] sm:$0xff] }
0x21c0   : > { %7846 = vmatpush.msra.mxu3 %v9895_v6  ;;  %7918 = vmatpush.msra.mxu2 %v9985_v54  ;;  %v10029_v2 = vld [vmem:[%s10690_s4 + $0x11e0] sm:$0xff]  ;;  %v9930_v6 = vld [vmem:[%s10690_s4 + $0xec8] sm:$0xff] }
0x21c1   : > { %9807 = vmatmul.msk.f32.gmra.mxu2 %vm1654_vm0, %v13048_v19  ;;  %8435 = vmatmul.f32.vlgmr.msra.gmra.mxu0 %v12440_v55  ;;  %v10181_v54 = vld [vmem:[%s10690_s4 + $0x15e0] sm:$0xff] }
0x21c2   : > { %7847 = vmatpush.msra.mxu3 %v9893_v13  ;;  %8465 = vmatpush.msrb.mxu0 %v10151_v47  ;;  %v10027_v13 = vld [vmem:[%s10690_s4 + $0x11d0] sm:$0xff]  ;;  %v9928_v47 = vld [vmem:[%s10690_s4 + $0xeb8] sm:$0xff] }
0x21c3   : > { %7919 = vmatpush.msra.mxu2 %v9983_v30  ;;  %8448 = vmatpush.msrb.mxu1 %v10107_v45  ;;  %v10127_v30 = vld [vmem:[%s10690_s4 + $0x1430] sm:$0xff] }
0x21c4   : > { %7848 = vmatpush.msra.mxu3 %v9891_v36  ;;  %8466 = vmatpush.msrb.mxu0 %v10149_v35  ;;  %v10179_v45 = vld [vmem:[%s10690_s4 + $0x15d0] sm:$0xff]  ;;  %v10025_v36 = vld [vmem:[%s10690_s4 + $0x11c0] sm:$0xff]  ;;  %v9926_v35 = vld [vmem:[%s10690_s4 + $0xea8] sm:$0xff] }
0x21c5   : > { %7920 = vmatpush.msra.mxu2 %v9981_v28  ;;  %8449 = vmatpush.msrb.mxu1 %v10105_v39  ;;  %v10125_v28 = vld [vmem:[%s10690_s4 + $0x1420] sm:$0xff] }
0x21c6   : > { %7849 = vmatpush.msra.mxu3 %v9889_v32  ;;  %8467 = vmatpush.msrb.mxu0 %v10147_v48  ;;  %v10177_v39 = vld [vmem:[%s10690_s4 + $0x15c0] sm:$0xff]  ;;  %v10023_v32 = vld [vmem:[%s10690_s4 + $0x11b0] sm:$0xff]  ;;  %v9924_v48 = vld [vmem:[%s10690_s4 + $0xe98] sm:$0xff] }
0x21c7   : > { %9811 = vmatmul.msk.f32.gmra.mxu3 %vm1654_vm0, %v12973_v33  ;;  %7921 = vmatpush.msra.mxu2 %v9979_v23  ;;  %v9975_v33 = vld [vmem:[%s10690_s4 + $0x1030] sm:$0xff] }
0x21c8   : > { %7850 = vmatpush.msra.mxu3 %v9887_v11  ;;  %8450 = vmatpush.msrb.mxu1 %v10103_v38  ;;  %v10123_v23 = vld [vmem:[%s10690_s4 + $0x1410] sm:$0xff]  ;;  %v10021_v38 = vld [vmem:[%s10690_s4 + $0x11a0] sm:$0xff] }
0x21c9   : > { %8468 = vmatpush.msrb.mxu0 %v10145_v5  ;;  %9808 = vmatmul.msk.f32.gmra.mxu2 %vm1654_vm0, %v13070_v52  ;;  %v10175_v11 = vld [vmem:[%s10690_s4 + $0x15b0] sm:$0xff]  ;;  %v9922_v5 = vld [vmem:[%s10690_s4 + $0xe88] sm:$0xff] }
0x21ca   : > { %7851 = vmatpush.msra.mxu3 %v9885_v15  ;;  %7922 = vmatpush.msra.mxu2 %v9977_v12  ;;  %v10121_v15 = vld [vmem:[%s10690_s4 + $0x1400] sm:$0xff]  ;;  %v10019_v12 = vld [vmem:[%s10690_s4 + $0x1190] sm:$0xff] }
0x21cb   : > { %8451 = vmatpush.msrb.mxu1 %v10101_v16  ;;  %8438 = vmatmul.f32.gmra.mxu0 %v12463_v1  ;;  %v10088_v16 = vld [vmem:[%s10690_s4 + $0x12f8] sm:$0xff] }
0x21cc   : > { %8469 = vmatpush.msrb.mxu0 %v10143_v0  ;;  %7852 = vmatpush.msra.mxu3 %v9883_v9  ;;  %v9920_v0 = vld [vmem:[%s10690_s4 + $0xe78] sm:$0xff]  ;;  %v10171_v9 = vld [vmem:[%s10690_s4 + $0x1590] sm:$0xff] }
0x21cd   : > { %7923 = vmatpush.msra.mxu2 %v9975_v33  ;;  %8452 = vmatpush.msrb.mxu1 %v10099_v10  ;;  %v10086_v33 = vld [vmem:[%s10690_s4 + $0x12e8] sm:$0xff]  ;;  %v10017_v10 = vld [vmem:[%s10690_s4 + $0x1180] sm:$0xff] }
0x21ce   : > { %8470 = vmatpush.msrb.mxu0 %v10141_v60  ;;  %7853 = vmatpush.msra.mxu3 %v9881_v59  ;;  %v9918_v60 = vld [vmem:[%s10690_s4 + $0xe68] sm:$0xff]  ;;  %v10169_v59 = vld [vmem:[%s10690_s4 + $0x1580] sm:$0xff] }
0x21cf   : > { %9812 = vmatmul.msk.f32.gmra.mxu3 %vm1654_vm0, %v12992_v25  ;;  %7924 = vmatpush.msra.mxu2 %v9973_v4  ;;  %v10135_v25 = vld [vmem:[%s10690_s4 + $0x1470] sm:$0xff]  ;;  %v10084_v4 = vld [vmem:[%s10690_s4 + $0x12d8] sm:$0xff] }
0x21d0   : > { %8453 = vmatpush.msrb.mxu1 %v10097_v14  ;;  %8471 = vmatpush.msrb.mxu0 %v10139_v17  ;;  %v10015_v14 = vld [vmem:[%s10690_s4 + $0x1170] sm:$0xff]  ;;  %v9916_v17 = vld [vmem:[%s10690_s4 + $0xe58] sm:$0xff] }
0x21d1   : > { %7854 = vmatpush.msra.mxu3 %v9879_v7  ;;  %7925 = vmatpush.msra.mxu2 %v9971_v53  ;;  %v10167_v7 = vld [vmem:[%s10690_s4 + $0x1570] sm:$0xff]  ;;  %v10082_v53 = vld [vmem:[%s10690_s4 + $0x12c8] sm:$0xff] }
0x21d2   : > { %8454 = vmatpush.msrb.mxu1 %v10095_v24  ;;  %8472 = vmatpush.msrb.mxu0 %v10137_v49  ;;  %v10013_v24 = vld [vmem:[%s10690_s4 + $0x1160] sm:$0xff]  ;;  %v9914_v49 = vld [vmem:[%s10690_s4 + $0xe48] sm:$0xff] }
0x21d3   : > { %7835 = vmatmul.f32.vlgmr.msrb.gmra.mxu2 %v12440_v55  ;;  %7855 = vmatpush.msra.mxu3 %v9877_v43  ;;  %v10165_v43 = vld [vmem:[%s10690_s4 + $0x1560] sm:$0xff] }
0x21d4   : > { %7926 = vmatpush.msra.mxu2 %v9969_v44  ;;  %8455 = vmatpush.msrb.mxu1 %v10093_v34  ;;  %v10011_v44 = vld [vmem:[%s10690_s4 + $0x1150] sm:$0xff]  ;;  %v9912_v34 = vld [vmem:[%s10690_s4 + $0xe38] sm:$0xff] }
0x21d5   : > { %8473 = vmatpush.msrb.mxu0 %v10135_v25  ;;  %7856 = vmatpush.msra.mxu3 %v9875_v58  ;;  %v10078_v25 = vld [vmem:[%s10690_s4 + $0x12a8] sm:$0xff]  ;;  %v10009_v58 = vld [vmem:[%s10690_s4 + $0x1140] sm:$0xff] }
0x21d6   : > { %8003 = vmatpush.msrb.mxu2 %v9936_v62  ;;  %8456 = vmatpush.msrb.mxu1 %v10091_v57  ;;  %v10163_v62 = vld [vmem:[%s10690_s4 + $0x1550] sm:$0xff]  ;;  %v9910_v57 = vld [vmem:[%s10690_s4 + $0xe28] sm:$0xff] }
0x21d7   : > { %9813 = vmatmul.msk.f32.gmra.mxu3 %vm1654_vm0, %v13010_v42  ;;  %8474 = vmatpush.msrb.mxu0 %v10133_v31  ;;  %v10129_v42 = vld [vmem:[%s10690_s4 + $0x1440] sm:$0xff]  ;;  %v10076_v31 = vld [vmem:[%s10690_s4 + $0x1298] sm:$0xff] }
0x21d8   : > { %8004 = vmatpush.msrb.mxu2 %v9934_v21  ;;  %7857 = vmatpush.msra.mxu3 %v9873_v37  ;;  %v10161_v21 = vld [vmem:[%s10690_s4 + $0x1540] sm:$0xff]  ;;  %v10007_v37 = vld [vmem:[%s10690_s4 + $0x1130] sm:$0xff] }
0x21d9   : > { %8457 = vmatpush.msrb.mxu1 %v10089_v29  ;;  %8475 = vmatpush.msrb.mxu0 %v10131_v26  ;;  %v9908_v29 = vld [vmem:[%s10690_s4 + $0xe18] sm:$0xff]  ;;  %v10005_v26 = vld [vmem:[%s10690_s4 + $0x1120] sm:$0xff] }
0x21da   : > { %7934 = vmatpush.msrb.mxu3 %v10031_v41  ;;  %8005 = vmatpush.msrb.mxu2 %v9932_v51  ;;  %v10159_v41 = vld [vmem:[%s10690_s4 + $0x1530] sm:$0xff]  ;;  %v10074_v51 = vld [vmem:[%s10690_s4 + $0x1288] sm:$0xff] }
0x21db   : > { %8458 = vmatmul.f32.vlgmr.msrb.gmra.mxu1 %v12442_v63  ;;  %8476 = vmatpush.msrb.mxu0 %v10129_v42  ;;  %v10155_v42 = vld [vmem:[%s10690_s4 + $0x1510] sm:$0xff] }
0x21dc   : > { %8488 = vmatpush.msra.mxu1 %v10183_v61  ;;  %7935 = vmatpush.msrb.mxu3 %v10029_v2  ;;  %v9906_v61 = vld [vmem:[%s10690_s4 + $0xe08] sm:$0xff]  ;;  %v10072_v2 = vld [vmem:[%s10690_s4 + $0x1278] sm:$0xff] }
0x21dd   : > { %8006 = vmatpush.msrb.mxu2 %v9930_v6  ;;  %8477 = vmatpush.msrb.mxu0 %v10127_v30  ;;  %v10003_v6 = vld [vmem:[%s10690_s4 + $0x1110] sm:$0xff]  ;;  %v9968_v30 = vld [vmem:[%s10690_s4 + $0xff8] sm:$0xff] }
0x21de   : > { %8489 = vmatpush.msra.mxu1 %v10181_v54  ;;  %7838 = vmatmul.f32.gmra.mxu2 %v12463_v1  ;;  %v10070_v54 = vld [vmem:[%s10690_s4 + $0x1268] sm:$0xff] }
0x21df   : > { %7936 = vmatpush.msrb.mxu3 %v10027_v13  ;;  %8007 = vmatpush.msrb.mxu2 %v9928_v47  ;;  %v10001_v13 = vld [vmem:[%s10690_s4 + $0x1100] sm:$0xff] }
0x21e0   : > { %8490 = vmatpush.msra.mxu1 %v10179_v45  ;;  %9814 = vmatmul.msk.f32.gmra.mxu3 %vm1654_vm0, %v13027_v22  ;;  %v10173_v22 = vld [vmem:[%s10690_s4 + $0x15a0] sm:$0xff]  ;;  %v10068_v45 = vld [vmem:[%s10690_s4 + $0x1258] sm:$0xff] }
0x21e1   : > { %7937 = vmatpush.msrb.mxu3 %v10025_v36  ;;  %8008 = vmatpush.msrb.mxu2 %v9926_v35  ;;  %v10153_v47 = vld [vmem:[%s10690_s4 + $0x1500] sm:$0xff]  ;;  %v10120_v36 = vld [vmem:[%s10690_s4 + $0x13f8] sm:$0xff]  ;;  %v9966_v35 = vld [vmem:[%s10690_s4 + $0xfe8] sm:$0xff] }
0x21e2   : > { %8478 = vmatpush.msrb.mxu0 %v10125_v28  ;;  %8491 = vmatpush.msra.mxu1 %v10177_v39  ;;  %v10066_v28 = vld [vmem:[%s10690_s4 + $0x1248] sm:$0xff] }
0x21e3   : > { %7938 = vmatpush.msrb.mxu3 %v10023_v32  ;;  %8009 = vmatpush.msrb.mxu2 %v9924_v48  ;;  %v10118_v39 = vld [vmem:[%s10690_s4 + $0x13e8] sm:$0xff]  ;;  %v9964_v32 = vld [vmem:[%s10690_s4 + $0xfd8] sm:$0xff] }
0x21e4   : > { %8461 = vmatmul.f32.gmra.mxu1 %v12465_v40  ;;  %8479 = vmatpush.msrb.mxu0 %v10123_v23  ;;  %v10064_v48 = vld [vmem:[%s10690_s4 + $0x1238] sm:$0xff] }
0x21e5   : > { %8492 = vmatpush.msra.mxu1 %v10175_v11  ;;  %7939 = vmatpush.msrb.mxu3 %v10021_v38  ;;  %v10116_v23 = vld [vmem:[%s10690_s4 + $0x13d8] sm:$0xff]  ;;  %v9962_v11 = vld [vmem:[%s10690_s4 + $0xfc8] sm:$0xff] }
0x21e6   : > { %8010 = vmatpush.msrb.mxu2 %v9922_v5  ;;  %8480 = vmatpush.msrb.mxu0 %v10121_v15  ;;  %v10062_v38 = vld [vmem:[%s10690_s4 + $0x1228] sm:$0xff]  ;;  %v9960_v15 = vld [vmem:[%s10690_s4 + $0xfb8] sm:$0xff] }
0x21e7   : > { %8493 = vmatpush.msra.mxu1 %v10173_v22  ;;  %7927 = vmatmul.f32.vlgmr.msra.gmra.mxu2 %v12505_v27  ;;  %v10114_v5 = vld [vmem:[%s10690_s4 + $0x13c8] sm:$0xff]  ;;  %v10060_v22 = vld [vmem:[%s10690_s4 + $0x1218] sm:$0xff] }
0x21e8   : > { %8481 = vmatmul.f32.vlgmr.msrb.gmra.mxu0 %v12457_v20  ;;  %7940 = vmatpush.msrb.mxu3 %v10019_v12  ;;  %v10112_v12 = vld [vmem:[%s10690_s4 + $0x13b8] sm:$0xff] }
0x21e9   : > { %8557 = vmatpush.msra.mxu0 %v10088_v16  ;;  %8011 = vmatpush.msrb.mxu2 %v9920_v0  ;;  %v9958_v16 = vld [vmem:[%s10690_s4 + $0xfa8] sm:$0xff] }
0x21ea   : > { %8494 = vmatpush.msra.mxu1 %v10171_v9  ;;  %9815 = vmatmul.msk.f32.gmra.mxu3 %vm1654_vm0, %v13048_v19  ;;  %v10080_v19 = vld [vmem:[%s10690_s4 + $0x12b8] sm:$0xff]  ;;  %v10058_v0 = vld [vmem:[%s10690_s4 + $0x1208] sm:$0xff] }
0x21eb   : > { %8558 = vmatpush.msra.mxu0 %v10086_v33  ;;  %7941 = vmatpush.msrb.mxu3 %v10017_v10  ;;  %v10110_v9 = vld [vmem:[%s10690_s4 + $0x13a8] sm:$0xff]  ;;  %v9956_v33 = vld [vmem:[%s10690_s4 + $0xf98] sm:$0xff] }
0x21ec   : > { %8012 = vmatpush.msrb.mxu2 %v9918_v60  ;;  %8495 = vmatpush.msra.mxu1 %v10169_v59  ;;  %v10216_v10 = vld [vmem:[%s10690_s4 + $0x16f8] sm:$0xff]  ;;  %v9954_v59 = vld [vmem:[%s10690_s4 + $0xf88] sm:$0xff] }
0x21ed   : > { %8559 = vmatpush.msra.mxu0 %v10084_v4  ;;  %7942 = vmatpush.msrb.mxu3 %v10015_v14  ;;  %v10108_v60 = vld [vmem:[%s10690_s4 + $0x1398] sm:$0xff]  ;;  %v10214_v4 = vld [vmem:[%s10690_s4 + $0x16e8] sm:$0xff] }
0x21ee   : > { %8013 = vmatpush.msrb.mxu2 %v9916_v17  ;;  %8496 = vmatpush.msra.mxu1 %v10167_v7  ;;  %v10106_v14 = vld [vmem:[%s10690_s4 + $0x1388] sm:$0xff]  ;;  %v10212_v17 = vld [vmem:[%s10690_s4 + $0x16d8] sm:$0xff] }
0x21ef   : > { %8560 = vmatpush.msra.mxu0 %v10082_v53  ;;  %7943 = vmatpush.msrb.mxu3 %v10013_v24  ;;  %v9952_v7 = vld [vmem:[%s10690_s4 + $0xf78] sm:$0xff]  ;;  %v9950_v24 = vld [vmem:[%s10690_s4 + $0xf68] sm:$0xff] }
0x21f0   : > { %8014 = vmatpush.msrb.mxu2 %v9914_v49  ;;  %8497 = vmatpush.msra.mxu1 %v10165_v43  ;;  %v10104_v53 = vld [vmem:[%s10690_s4 + $0x1378] sm:$0xff]  ;;  %v10102_v49 = vld [vmem:[%s10690_s4 + $0x1368] sm:$0xff] }
0x21f1   : > { %7930 = vmatmul.f32.gmra.mxu2 %v12537_v8  ;;  %8484 = vmatmul.f32.gmra.mxu0 %v12495_v56  ;;  %v10208_v43 = vld [vmem:[%s10690_s4 + $0x16b8] sm:$0xff] }
0x21f2   : > { %8561 = vmatpush.msra.mxu0 %v10080_v19  ;;  %7944 = vmatpush.msrb.mxu3 %v10011_v44  ;;  %v9948_v19 = vld [vmem:[%s10690_s4 + $0xf58] sm:$0xff] }
0x21f3   : > { %8015 = vmatpush.msrb.mxu2 %v9912_v34  ;;  %8498 = vmatpush.msra.mxu1 %v10163_v62  ;;  %v10100_v44 = vld [vmem:[%s10690_s4 + $0x1358] sm:$0xff]  ;;  %v10206_v34 = vld [vmem:[%s10690_s4 + $0x16a8] sm:$0xff] }
0x21f4   : > { %8562 = vmatpush.msra.mxu0 %v10078_v25  ;;  %9816 = vmatmul.msk.f32.gmra.mxu3 %vm1654_vm0, %v13070_v52  ;;  %v10157_v52 = vld [vmem:[%s10690_s4 + $0x1520] sm:$0xff]  ;;  %v9946_v62 = vld [vmem:[%s10690_s4 + $0xf48] sm:$0xff] }
0x21f5   : > { %7945 = vmatpush.msrb.mxu3 %v10009_v58  ;;  %8016 = vmatpush.msrb.mxu2 %v9910_v57  ;;  %v10098_v25 = vld [vmem:[%s10690_s4 + $0x1348] sm:$0xff]  ;;  %v10204_v58 = vld [vmem:[%s10690_s4 + $0x1698] sm:$0xff] }
0x21f6   : > { %8499 = vmatpush.msra.mxu1 %v10161_v21  ;;  %8563 = vmatpush.msra.mxu0 %v10076_v31  ;;  %v9944_v57 = vld [vmem:[%s10690_s4 + $0xf38] sm:$0xff]  ;;  %v9942_v31 = vld [vmem:[%s10690_s4 + $0xf28] sm:$0xff] }
0x21f7   : > { %7946 = vmatpush.msrb.mxu3 %v10007_v37  ;;  %8017 = vmatpush.msrb.mxu2 %v9908_v29  ;;  %v10096_v21 = vld [vmem:[%s10690_s4 + $0x1338] sm:$0xff]  ;;  %v10094_v37 = vld [vmem:[%s10690_s4 + $0x1328] sm:$0xff] }
0x21f8   : > { %8500 = vmatpush.msra.mxu1 %v10159_v41  ;;  %8564 = vmatpush.msra.mxu0 %v10074_v51  ;;  %v10200_v29 = vld [vmem:[%s10690_s4 + $0x1678] sm:$0xff] }
0x21f9   : > { %7947 = vmatpush.msrb.mxu3 %v10005_v26  ;;  %8018 = vmatpush.msrb.mxu2 %v9906_v61  ;;  %v9940_v41 = vld [vmem:[%s10690_s4 + $0xf18] sm:$0xff]  ;;  %v10198_v26 = vld [vmem:[%s10690_s4 + $0x1668] sm:$0xff] }
0x21fa   : > { %8501 = vmatpush.msra.mxu1 %v10157_v52  ;;  %8019 = vmatmul.f32.vlgmr.msrb.gmra.mxu2 %v12457_v20  ;;  %v10092_v51 = vld [vmem:[%s10690_s4 + $0x1318] sm:$0xff]  ;;  %v9938_v61 = vld [vmem:[%s10690_s4 + $0xf08] sm:$0xff] }
0x21fb   : > { %8565 = vmatpush.msra.mxu0 %v10072_v2  ;;  %7948 = vmatpush.msrb.mxu3 %v10003_v6  ;;  %v10090_v52 = vld [vmem:[%s10690_s4 + $0x1308] sm:$0xff]  ;;  %v10196_v2 = vld [vmem:[%s10690_s4 + $0x1658] sm:$0xff] }
0x21fc   : > { %8502 = vmatpush.msra.mxu1 %v10155_v42  ;;  %7858 = vmatmul.f32.vlgmr.msra.gmra.mxu3 %v12442_v63  ;;  %v10248_v6 = vld [vmem:[%s10690_s4 + $0x17f8] sm:$0xff]  ;;  %v10194_v42 = vld [vmem:[%s10690_s4 + $0x1648] sm:$0xff] }
0x21fd   : > { %8566 = vmatpush.msra.mxu0 %v10070_v54  ;;  %7949 = vmatpush.msrb.mxu3 %v10001_v13  ;;  %v10246_v54 = vld [vmem:[%s10690_s4 + $0x17e8] sm:$0xff]  ;;  %v10192_v13 = vld [vmem:[%s10690_s4 + $0x1638] sm:$0xff] }
0x21fe   : > { %8503 = vmatpush.msra.mxu1 %v10153_v47  ;;  %v10244_v47 = vld [vmem:[%s10690_s4 + $0x17d8] sm:$0xff] }
0x21ff   : > { %8026 = vmatpush.msra.mxu3 %v9968_v30  ;;  %8504 = vmatmul.f32.vlgmr.msra.gmra.mxu1 %v12459_v50  ;;  %v10190_v30 = vld [vmem:[%s10690_s4 + $0x1628] sm:$0xff] }
0x2200   : > { %8567 = vmatpush.msra.mxu0 %v10068_v45  ;;  %8580 = vmatpush.msrb.mxu1 %v10120_v36  ;;  %v10242_v36 = vld [vmem:[%s10690_s4 + $0x17c8] sm:$0xff] }
0x2201   : > { %8027 = vmatpush.msra.mxu3 %v9966_v35  ;;  %v10188_v35 = vld [vmem:[%s10690_s4 + $0x1618] sm:$0xff] }
0x2202   : > { %8568 = vmatpush.msra.mxu0 %v10066_v28  ;;  %8581 = vmatpush.msrb.mxu1 %v10118_v39  ;;  %v10186_v28 = vld [vmem:[%s10690_s4 + $0x1608] sm:$0xff] }
0x2203   : > { %8022 = vmatmul.f32.gmra.mxu2 %v12495_v56  ;;  %8028 = vmatpush.msra.mxu3 %v9964_v32  ;;  %v10238_v39 = vld [vmem:[%s10690_s4 + $0x17a8] sm:$0xff]  ;;  %v13260_v32 = vpop.f32.mrf.mxu0 }
0x2204   : > { %8569 = vmatpush.msra.mxu0 %v10064_v48  ;;  %8582 = vmatpush.msrb.mxu1 %v10116_v23  ;;  %v10236_v48 = vld [vmem:[%s10690_s4 + $0x1798] sm:$0xff]  ;;  %v13264_v23 = vpop.f32.mrf.mxu1 }
0x2205   : > { %7861 = vmatmul.f32.gmra.mxu3 %v12465_v40 }
0x2206   : > { %8029 = vmatpush.msra.mxu3 %v9962_v11  ;;  %8570 = vmatpush.msra.mxu0 %v10062_v38  ;;  %v10234_v11 = vld [vmem:[%s10690_s4 + $0x1788] sm:$0xff] }
0x2207   : > { %8583 = vmatpush.msrb.mxu1 %v10114_v5  ;;  %v10230_v5 = vld [vmem:[%s10690_s4 + $0x1768] sm:$0xff] }
0x2208   : > { %8030 = vmatpush.msra.mxu3 %v9960_v15  ;;  %8507 = vmatmul.f32.gmra.mxu1 %v12497_v3  ;;  %v10228_v15 = vld [vmem:[%s10690_s4 + $0x1758] sm:$0xff] }
0x2209   : > { %8571 = vmatpush.msra.mxu0 %v10060_v22  ;;  %8584 = vmatpush.msrb.mxu1 %v10112_v12  ;;  %v10226_v12 = vld [vmem:[%s10690_s4 + $0x1748] sm:$0xff] }
0x220a   : > { %8031 = vmatpush.msra.mxu3 %v9958_v16 }
0x220b   : > { %8572 = vmatpush.msra.mxu0 %v10058_v0  ;;  %8585 = vmatpush.msrb.mxu1 %v10110_v9  ;;  %v13273_v22 = vpop.f32.mrf.mxu0  ;;  %v10224_v0 = vld [vmem:[%s10690_s4 + $0x1738] sm:$0xff] }
0x220c   : > { %8573 = vmatmul.f32.vlgmr.msra.gmra.mxu0 %v12440_v55  ;;  %8032 = vmatpush.msra.mxu3 %v9956_v33  ;;  %v10210_v55 = vld [vmem:[%s10690_s4 + $0x16c8] sm:$0xff]  ;;  %v13276_v16 = vpop.f32.mrf.mxu1 }
0x220d   : > { %8649 = vmatpush.msrb.mxu0 %v10216_v10  ;;  %8586 = vmatpush.msrb.mxu1 %v10108_v60  ;;  %v10222_v33 = vld [vmem:[%s10690_s4 + $0x1728] sm:$0xff]  ;;  %v10220_v10 = vld [vmem:[%s10690_s4 + $0x1718] sm:$0xff] }
0x220e   : > { %8033 = vmatpush.msra.mxu3 %v9954_v59  ;;  %v10218_v59 = vld [vmem:[%s10690_s4 + $0x1708] sm:$0xff] }
0x220f   : > { %8650 = vmatpush.msrb.mxu0 %v10214_v4  ;;  %8587 = vmatpush.msrb.mxu1 %v10106_v14 }
0x2210   : > { %7950 = vmatmul.f32.vlgmr.msrb.gmra.mxu3 %v12507_v18 }
0x2211   : > { %8651 = vmatpush.msrb.mxu0 %v10212_v17  ;;  %8034 = vmatpush.msra.mxu3 %v9952_v7 }
0x2212   : > { %8588 = vmatpush.msrb.mxu1 %v10104_v53 }
0x2213   : > { %8652 = vmatpush.msrb.mxu0 %v10210_v55  ;;  %8035 = vmatpush.msra.mxu3 %v9950_v24  ;;  %v13251_v45 = vpop.f32.mrf.mxu2  ;;  %v13286_v4 = vpop.f32.mrf.mxu0 }
0x2214   : > { %8589 = vmatpush.msrb.mxu1 %v10102_v49  ;;  %8576 = vmatmul.f32.gmra.mxu0 %v12463_v1  ;;  %v10202_v1 = vld [vmem:[%s10690_s4 + $0x1688] sm:$0xff]  ;;  %v13288_v14 = vpop.f32.mrf.mxu1 }
0x2215   : > { %8653 = vmatpush.msrb.mxu0 %v10208_v43  ;;  %8036 = vmatpush.msra.mxu3 %v9948_v19 }
0x2216   : > { %8590 = vmatpush.msrb.mxu1 %v10100_v44 }
0x2217   : > { %8654 = vmatpush.msrb.mxu0 %v10206_v34  ;;  %8037 = vmatpush.msra.mxu3 %v9946_v62 }
0x2218   : > { %8591 = vmatpush.msrb.mxu1 %v10098_v25  ;;  %7953 = vmatmul.f32.gmra.mxu3 %v12539_v46 }
0x2219   : > { %8655 = vmatpush.msrb.mxu0 %v10204_v58  ;;  %8038 = vmatpush.msra.mxu3 %v9944_v57 }
0x221a   : > { %8592 = vmatpush.msrb.mxu1 %v10096_v21 }
0x221b   : > { %8656 = vmatpush.msrb.mxu0 %v10202_v1  ;;  %8039 = vmatpush.msra.mxu3 %v9942_v31  ;;  %v13295_v53 = vpop.f32.mrf.mxu0 }
0x221c   : > { %8593 = vmatpush.msrb.mxu1 %v10094_v37  ;;  %v13267_v38 = vpop.f32.mrf.mxu2  ;;  %v13298_v55 = vpop.f32.mrf.mxu1 }
0x221d   : > { %8657 = vmatpush.msrb.mxu0 %v10200_v29  ;;  %8040 = vmatpush.msra.mxu3 %v9940_v41 }
0x221e   : > { %8594 = vmatpush.msrb.mxu1 %v10092_v51 }
0x221f   : > { %8658 = vmatpush.msrb.mxu0 %v10198_v26  ;;  %8041 = vmatpush.msra.mxu3 %v9938_v61 }
0x2220   : > { %8595 = vmatpush.msrb.mxu1 %v10090_v52  ;;  %8042 = vmatmul.f32.vlgmr.msra.gmra.mxu3 %v12459_v50 }
0x2221   : > { %8596 = vmatmul.f32.vlgmr.msrb.gmra.mxu1 %v12442_v63  ;;  %8659 = vmatpush.msrb.mxu0 %v10196_v2  ;;  %v10240_v63 = vld [vmem:[%s10690_s4 + $0x17b8] sm:$0xff] }
0x2222   : > { %8672 = vmatpush.msra.mxu1 %v10248_v6 }
0x2223   : > { %8660 = vmatpush.msrb.mxu0 %v10194_v42  ;;  %v13304_v43 = vpop.f32.mrf.mxu0 }
0x2224   : > { %8673 = vmatpush.msra.mxu1 %v10246_v54  ;;  %v13279_v9 = vpop.f32.mrf.mxu2  ;;  %v13308_v44 = vpop.f32.mrf.mxu1 }
0x2225   : > { %8661 = vmatpush.msrb.mxu0 %v10192_v13 }
0x2226   : > { %8674 = vmatpush.msra.mxu1 %v10244_v47 }
0x2227   : > { %8662 = vmatpush.msrb.mxu0 %v10190_v30 }
0x2228   : > { %8675 = vmatpush.msra.mxu1 %v10242_v36  ;;  %8045 = vmatmul.f32.gmra.mxu3 %v12497_v3 }
0x2229   : > { %8599 = vmatmul.f32.gmra.mxu1 %v12465_v40  ;;  %8663 = vmatpush.msrb.mxu0 %v10188_v35  ;;  %v10232_v40 = vld [vmem:[%s10690_s4 + $0x1778] sm:$0xff] }
0x222a   : > { %8676 = vmatpush.msra.mxu1 %v10240_v63 }
0x222b   : > { %8664 = vmatpush.msrb.mxu0 %v10186_v28  ;;  %v13314_v25 = vpop.f32.mrf.mxu0 }
0x222c   : > { %8677 = vmatpush.msra.mxu1 %v10238_v39  ;;  %8665 = vmatmul.f32.vlgmr.msrb.gmra.mxu0 %v12505_v27  ;;  %v13291_v17 = vpop.f32.mrf.mxu2  ;;  %v13316_v58 = vpop.f32.mrf.mxu1 }
0x222d   : > { %13777 = vst [vmem:[#allocation41_spill] sm:$0xff] %v13316_v58 }
0x222e   : > { %8678 = vmatpush.msra.mxu1 %v10236_v48 }
0x2230   : > { %8679 = vmatpush.msra.mxu1 %v10234_v11 }
0x2232   : > { %8680 = vmatpush.msra.mxu1 %v10232_v40 }
0x2233   : > { %v13322_v1 = vpop.f32.mrf.mxu0 }
0x2234   : > { %8681 = vmatpush.msra.mxu1 %v10230_v5  ;;  %8668 = vmatmul.f32.gmra.mxu0 %v12537_v8  ;;  %v13302_v49 = vpop.f32.mrf.mxu2  ;;  %v13324_v31 = vpop.f32.mrf.mxu1 }
0x2235   : > { %13779 = vst [vmem:[#allocation43_spill] sm:$0xff] %v13324_v31 }
0x2236   : > { %8682 = vmatpush.msra.mxu1 %v10228_v15 }
0x2238   : > { %8683 = vmatpush.msra.mxu1 %v10226_v12 }
0x223a   : > { %8684 = vmatpush.msra.mxu1 %v10224_v0  ;;  %v13283_v60 = vpop.f32.mrf.mxu3 }
0x223b   : > { %v13330_v41 = vpop.f32.mrf.mxu0 }
0x223c   : > { %8685 = vmatpush.msra.mxu1 %v10222_v33  ;;  %v13310_v34 = vpop.f32.mrf.mxu2  ;;  %13782 = vst [vmem:[#allocation46_spill] sm:$0xff] %v13330_v41  ;;  %v13332_v51 = vpop.f32.mrf.mxu1 }
0x223d   : > { %13783 = vst [vmem:[#allocation47_spill] sm:$0xff] %v13332_v51 }
0x223e   : > { %8686 = vmatpush.msra.mxu1 %v10220_v10 }
0x2240   : > { %8687 = vmatpush.msra.mxu1 %v10218_v59 }
0x2241   : > { %8688 = vmatmul.f32.vlgmr.msra.gmra.mxu1 %v12507_v18 }
0x2242   : > { %v13293_v7 = vpop.f32.mrf.mxu3 }
0x2243   : > { %v7882_v52 = vpop.f32.mrf.mxu0 }
0x2244   : > { %v13318_v57 = vpop.f32.mrf.mxu2  ;;  %v7905_v2 = vpop.f32.mrf.mxu1 }
0x2249   : > { %8691 = vmatmul.f32.gmra.mxu1 %v12539_v46 }
0x224a   : > { %v13300_v24 = vpop.f32.mrf.mxu3 }
0x224b   : > { %v7885_v54 = vpop.f32.mrf.mxu0 }
0x224c   : > { %v13326_v37 = vpop.f32.mrf.mxu2  ;;  %v7908_v13 = vpop.f32.mrf.mxu1 }
0x224d   : > { %13780 = vst [vmem:[#allocation44_spill] sm:$0xff] %v13326_v37  ;;  %v10049_v37 = vld [vmem:[%s10685_s27 + $0xc0] sm:$0xff] }
0x2252   : > { %v13306_v19 = vpop.f32.mrf.mxu3 }
0x2253   : > { %v7974_v35 = vpop.f32.mrf.mxu0 }
0x2254   : > { %v7997_v28 = vpop.f32.mrf.mxu1 }
0x2256   : > { %v7836_v26 = vpop.f32.mrf.mxu2 }
0x225a   : > { %v13312_v62 = vpop.f32.mrf.mxu3 }
0x225b   : > { %v7977_v12 = vpop.f32.mrf.mxu0 }
0x225c   : > { %v8000_v33 = vpop.f32.mrf.mxu1 }
0x2261   : > { %v7839_v6 = vpop.f32.mrf.mxu2 }
0x2263   : > { %v13320_v21 = vpop.f32.mrf.mxu3 }
0x2264   : > { %13778 = vst [vmem:[#allocation42_spill] sm:$0xff] %v13320_v21 }
0x226a   : > { %v7928_v47 = vpop.f32.mrf.mxu2 }
0x226d   : > { %v13328_v29 = vpop.f32.mrf.mxu3 }
0x226e   : > { %13781 = vst [vmem:[#allocation45_spill] sm:$0xff] %v13328_v29 }
0x2274   : > { %v7931_v48 = vpop.f32.mrf.mxu2 }
0x2277   : > { %v13334_v61 = vpop.f32.mrf.mxu3 }
0x2278   : > { %13784 = vst [vmem:[#allocation48_spill] sm:$0xff] %v13334_v61 }
0x227f   : > { %v7859_v42 = vpop.f32.mrf.mxu3 }
0x2280   : > { %v7860_v63 = vadd.f32 %v7859_v42, %v7836_v26  ;;  %v9833_v42 = vld [vmem:[%s10685_s27 + $0x80] sm:$0xff] }
0x2282   : > { %v7883_v40 = vadd.f32 %v7882_v52, %v7860_v63  ;;  %v10213_v52 = vld [vmem:[%s10690_s4 + $0x16e0] sm:$0xff] }
0x2283   : > { %v10209_v63 = vld [vmem:[%s10690_s4 + $0x16c0] sm:$0xff] }
0x2284   : > { %v7906_v15 = vadd.f32 %v7905_v2, %v7883_v40  ;;  %v8066_v2 = vpop.f32.mrf.mxu0  ;;  %v10207_v40 = vld [vmem:[%s10690_s4 + $0x16b0] sm:$0xff] }
0x2286   : > { %v7929_v59 = vadd.f32 %v7928_v47, %v7906_v15  ;;  %v8089_v47 = vpop.f32.mrf.mxu1 }
0x2288   : > { %v7862_v30 = vpop.f32.mrf.mxu3 }
0x2289   : > { %v7863_v36 = vadd.f32 %v7862_v30, %v7839_v6  ;;  %v8020_v30 = vpop.f32.mrf.mxu2 }
0x228b   : > { %v7886_v39 = vadd.f32 %v7885_v54, %v7863_v36  ;;  %v10215_v54 = vld [vmem:[%s10690_s4 + $0x16f0] sm:$0xff] }
0x228c   : > { %v10211_v36 = vld [vmem:[%s10690_s4 + $0x16d0] sm:$0xff] }
0x228d   : > { %v7909_v5 = vadd.f32 %v7908_v13, %v7886_v39  ;;  %v7998_v39 = vadd.f32 %v7997_v28, %v7974_v35  ;;  %v8069_v28 = vpop.f32.mrf.mxu0 }
0x228f   : > { %v7932_v0 = vadd.f32 %v7931_v48, %v7909_v5  ;;  %v9834_v48 = vld [vmem:[%s10685_s27 + $0x88] sm:$0xff]  ;;  %v8001_v5 = vadd.f32 %v8000_v33, %v7977_v12  ;;  %v8021_v15 = vadd.f32 %v8020_v30, %v7998_v39  ;;  %v9835_v30 = vld [vmem:[%s10685_s27 + $0x90] sm:$0xff] }
0x2293   : > { %v7951_v11 = vpop.f32.mrf.mxu3 }
0x2294   : > { %v7952_v26 = vadd.f32 %v7951_v11, %v7929_v59  ;;  %v8023_v11 = vpop.f32.mrf.mxu2 }
0x229b   : > { %v7954_v10 = vpop.f32.mrf.mxu3 }
0x229c   : > { %v7955_v6 = vadd.f32 %v7954_v10, %v7932_v0  ;;  %v10205_v0 = vld [vmem:[%s10690_s4 + $0x16a0] sm:$0xff]  ;;  %v8024_v10 = vadd.f32 %v8023_v11, %v8001_v5  ;;  %v10195_v11 = vld [vmem:[%s10690_s4 + $0x1650] sm:$0xff] }
0x229d   : > { %v10193_v5 = vld [vmem:[%s10690_s4 + $0x1640] sm:$0xff] }
0x229e   : > { %8133 = vmatpush.msra.mxu2 %v7955_v6 }
0x22a0   : > { %8134 = vmatpush.msra.mxu2 %v7952_v26  ;;  %v10203_v26 = vld [vmem:[%s10690_s4 + $0x1690] sm:$0xff] }
0x22a1   : > { %10033 = vmatmul.msk.f32.vlgmr.msra.gmra.mxu2 %vm1654_vm0, %v9833_v42 }
0x22a2   : > { %8511 = vmatpush.msrb.mxu2 %v10215_v54  ;;  %v10201_v54 = vld [vmem:[%s10690_s4 + $0x1680] sm:$0xff] }
0x22a3   : > { %v8043_v13 = vpop.f32.mrf.mxu3 }
0x22a4   : > { %8512 = vmatpush.msrb.mxu2 %v10213_v52  ;;  %v8044_v59 = vadd.f32 %v8043_v13, %v8021_v15  ;;  %v8092_v52 = vpop.f32.mrf.mxu1  ;;  %v9836_v15 = vld [vmem:[%s10685_s27 + $0x98] sm:$0xff] }
0x22a6   : > { %8513 = vmatpush.msrb.mxu2 %v10211_v36  ;;  %v8067_v12 = vadd.f32 %v8066_v2, %v8044_v59  ;;  %v10199_v36 = vld [vmem:[%s10690_s4 + $0x1670] sm:$0xff]  ;;  %v10241_v59 = vld [vmem:[%s10690_s4 + $0x17c0] sm:$0xff] }
0x22a7   : > { %v10247_v2 = vld [vmem:[%s10690_s4 + $0x17f0] sm:$0xff] }
0x22a8   : > { %8514 = vmatpush.msrb.mxu2 %v10209_v63  ;;  %v10197_v63 = vld [vmem:[%s10690_s4 + $0x1660] sm:$0xff]  ;;  %v8090_v39 = vadd.f32 %v8089_v47, %v8067_v12  ;;  %v10191_v47 = vld [vmem:[%s10690_s4 + $0x1630] sm:$0xff] }
0x22a9   : > { %10034 = vmatmul.msk.f32.gmra.mxu2 %vm1654_vm0, %v9834_v48  ;;  %v10235_v12 = vld [vmem:[%s10690_s4 + $0x1790] sm:$0xff] }
0x22aa   : > { %8515 = vmatpush.msrb.mxu2 %v10207_v40  ;;  %v10245_v40 = vld [vmem:[%s10690_s4 + $0x17e0] sm:$0xff] }
0x22ab   : > { %v8046_v6 = vpop.f32.mrf.mxu3 }
0x22ac   : > { %v8047_v35 = vadd.f32 %v8046_v6, %v8024_v10  ;;  %8516 = vmatpush.msrb.mxu2 %v10205_v0  ;;  %v10243_v0 = vld [vmem:[%s10690_s4 + $0x17d0] sm:$0xff]  ;;  %v10189_v10 = vld [vmem:[%s10690_s4 + $0x1620] sm:$0xff] }
0x22ad   : > { %v10239_v6 = vld [vmem:[%s10690_s4 + $0x17b0] sm:$0xff] }
0x22ae   : > { %v8070_v33 = vadd.f32 %v8069_v28, %v8047_v35  ;;  %8517 = vmatpush.msrb.mxu2 %v10203_v26  ;;  %v10185_v26 = vld [vmem:[%s10690_s4 + $0x1600] sm:$0xff] }
0x22af   : > { %v10237_v35 = vld [vmem:[%s10690_s4 + $0x17a0] sm:$0xff] }
0x22b0   : > { %v8093_v13 = vadd.f32 %v8092_v52, %v8070_v33  ;;  %8518 = vmatpush.msrb.mxu2 %v10201_v54  ;;  %v9837_v28 = vld [vmem:[%s10685_s27 + $0xa0] sm:$0xff]  ;;  %v10152_v54 = vld [vmem:[%s10690_s4 + $0x14f8] sm:$0xff]  ;;  %v10150_v33 = vld [vmem:[%s10690_s4 + $0x14e8] sm:$0xff] }
0x22b1   : > { %10035 = vmatmul.msk.f32.gmra.mxu2 %vm1654_vm0, %v9835_v30  ;;  %v10233_v52 = vld [vmem:[%s10690_s4 + $0x1780] sm:$0xff] }
0x22b2   : > { %8174 = vmatpush.msrb.mxu3 %v8093_v13  ;;  %8519 = vmatpush.msrb.mxu2 %v10199_v36  ;;  %v10231_v36 = vld [vmem:[%s10690_s4 + $0x1770] sm:$0xff]  ;;  %v10146_v13 = vld [vmem:[%s10690_s4 + $0x14c8] sm:$0xff] }
0x22b4   : > { %8175 = vmatpush.msrb.mxu3 %v8090_v39  ;;  %8520 = vmatpush.msrb.mxu2 %v10197_v63  ;;  %v10229_v63 = vld [vmem:[%s10690_s4 + $0x1760] sm:$0xff]  ;;  %v9838_v39 = vld [vmem:[%s10685_s27 + $0xa8] sm:$0xff] }
0x22b5   : > { %10041 = vmatmul.msk.f32.vlgmr.msrb.gmra.mxu3 %vm1654_vm0, %v9833_v42  ;;  %v10187_v42 = vld [vmem:[%s10690_s4 + $0x1610] sm:$0xff] }
0x22b6   : > { %8534 = vmatpush.msra.mxu3 %v10247_v2  ;;  %8521 = vmatpush.msrb.mxu2 %v10195_v11  ;;  %v10144_v2 = vld [vmem:[%s10690_s4 + $0x14b8] sm:$0xff]  ;;  %v10227_v11 = vld [vmem:[%s10690_s4 + $0x1750] sm:$0xff] }
0x22b8   : > { %8535 = vmatpush.msra.mxu3 %v10245_v40  ;;  %8522 = vmatpush.msrb.mxu2 %v10193_v5  ;;  %v10142_v40 = vld [vmem:[%s10690_s4 + $0x14a8] sm:$0xff]  ;;  %v10225_v5 = vld [vmem:[%s10690_s4 + $0x1740] sm:$0xff] }
0x22b9   : > { %10036 = vmatmul.msk.f32.gmra.mxu2 %vm1654_vm0, %v9836_v15 }
0x22ba   : > { %8536 = vmatpush.msra.mxu3 %v10243_v0  ;;  %8523 = vmatpush.msrb.mxu2 %v10191_v47  ;;  %v10223_v0 = vld [vmem:[%s10690_s4 + $0x1730] sm:$0xff]  ;;  %v10138_v47 = vld [vmem:[%s10690_s4 + $0x1488] sm:$0xff] }
0x22bc   : > { %8524 = vmatpush.msrb.mxu2 %v10189_v10  ;;  %8537 = vmatpush.msra.mxu3 %v10241_v59  ;;  %v10221_v10 = vld [vmem:[%s10690_s4 + $0x1720] sm:$0xff]  ;;  %v9839_v59 = vld [vmem:[%s10685_s27 + $0xb0] sm:$0xff] }
0x22bd   : > { %10042 = vmatmul.msk.f32.gmra.mxu3 %vm1654_vm0, %v9834_v48  ;;  %v10148_v48 = vld [vmem:[%s10690_s4 + $0x14d8] sm:$0xff] }
0x22be   : > { %8525 = vmatpush.msrb.mxu2 %v10187_v42  ;;  %8538 = vmatpush.msra.mxu3 %v10239_v6  ;;  %v10136_v42 = vld [vmem:[%s10690_s4 + $0x1478] sm:$0xff]  ;;  %v10219_v6 = vld [vmem:[%s10690_s4 + $0x1710] sm:$0xff] }
0x22c0   : > { %8526 = vmatpush.msrb.mxu2 %v10185_v26  ;;  %8539 = vmatpush.msra.mxu3 %v10237_v35  ;;  %v10134_v26 = vld [vmem:[%s10690_s4 + $0x1468] sm:$0xff]  ;;  %v10217_v35 = vld [vmem:[%s10690_s4 + $0x1700] sm:$0xff] }
0x22c1   : > { %10037 = vmatmul.msk.f32.gmra.mxu2 %vm1654_vm0, %v9837_v28 }
0x22c2   : > { %8603 = vmatpush.msra.mxu2 %v10152_v54  ;;  %8540 = vmatpush.msra.mxu3 %v10235_v12  ;;  %v10184_v54 = vld [vmem:[%s10690_s4 + $0x15f8] sm:$0xff]  ;;  %v10130_v12 = vld [vmem:[%s10690_s4 + $0x1448] sm:$0xff] }
0x22c4   : > { %8604 = vmatpush.msra.mxu2 %v10150_v33  ;;  %8541 = vmatpush.msra.mxu3 %v10233_v52  ;;  %v10182_v33 = vld [vmem:[%s10690_s4 + $0x15e8] sm:$0xff]  ;;  %v9840_v52 = vld [vmem:[%s10685_s27 + $0xb8] sm:$0xff] }
0x22c5   : > { %10043 = vmatmul.msk.f32.gmra.mxu3 %vm1654_vm0, %v9835_v30  ;;  %v10140_v30 = vld [vmem:[%s10690_s4 + $0x1498] sm:$0xff] }
0x22c6   : > { %8605 = vmatpush.msra.mxu2 %v10148_v48  ;;  %8542 = vmatpush.msra.mxu3 %v10231_v36  ;;  %v10128_v48 = vld [vmem:[%s10690_s4 + $0x1438] sm:$0xff] }
0x22c7   : > { %v10180_v36 = vld [vmem:[%s10690_s4 + $0x15d8] sm:$0xff] }
0x22c8   : > { %8606 = vmatpush.msra.mxu2 %v10146_v13  ;;  %8543 = vmatpush.msra.mxu3 %v10229_v63  ;;  %v10126_v13 = vld [vmem:[%s10690_s4 + $0x1428] sm:$0xff] }
0x22c9   : > { %10038 = vmatmul.msk.f32.gmra.mxu2 %vm1654_vm0, %v9838_v39  ;;  %v10178_v63 = vld [vmem:[%s10690_s4 + $0x15c8] sm:$0xff] }
0x22ca   : > { %8607 = vmatpush.msra.mxu2 %v10144_v2  ;;  %8544 = vmatpush.msra.mxu3 %v10227_v11  ;;  %v10176_v2 = vld [vmem:[%s10690_s4 + $0x15b8] sm:$0xff]  ;;  %v10122_v11 = vld [vmem:[%s10690_s4 + $0x1408] sm:$0xff] }
0x22cc   : > { %8608 = vmatpush.msra.mxu2 %v10142_v40  ;;  %8545 = vmatpush.msra.mxu3 %v10225_v5  ;;  %v10174_v40 = vld [vmem:[%s10690_s4 + $0x15a8] sm:$0xff]  ;;  %v10172_v5 = vld [vmem:[%s10690_s4 + $0x1598] sm:$0xff] }
0x22cd   : > { %10044 = vmatmul.msk.f32.gmra.mxu3 %vm1654_vm0, %v9836_v15  ;;  %v10132_v15 = vld [vmem:[%s10690_s4 + $0x1458] sm:$0xff] }
0x22ce   : > { %8609 = vmatpush.msra.mxu2 %v10140_v30  ;;  %8546 = vmatpush.msra.mxu3 %v10223_v0  ;;  %v10170_v30 = vld [vmem:[%s10690_s4 + $0x1588] sm:$0xff]  ;;  %v10168_v0 = vld [vmem:[%s10690_s4 + $0x1578] sm:$0xff] }
0x22d0   : > { %8610 = vmatpush.msra.mxu2 %v10138_v47  ;;  %8547 = vmatpush.msra.mxu3 %v10221_v10  ;;  %v10164_v47 = vld [vmem:[%s10690_s4 + $0x1558] sm:$0xff]  ;;  %v10162_v10 = vld [vmem:[%s10690_s4 + $0x1548] sm:$0xff] }
0x22d1   : > { %10039 = vmatmul.msk.f32.gmra.mxu2 %vm1654_vm0, %v9839_v59 }
0x22d2   : > { %8611 = vmatpush.msra.mxu2 %v10136_v42  ;;  %8548 = vmatpush.msra.mxu3 %v10219_v6  ;;  %v10160_v42 = vld [vmem:[%s10690_s4 + $0x1538] sm:$0xff] }
0x22d3   : > { %v10156_v6 = vld [vmem:[%s10690_s4 + $0x1518] sm:$0xff] }
0x22d4   : > { %8612 = vmatpush.msra.mxu2 %v10134_v26  ;;  %8549 = vmatpush.msra.mxu3 %v10217_v35 }
0x22d5   : > { %10045 = vmatmul.msk.f32.gmra.mxu3 %vm1654_vm0, %v9837_v28  ;;  %v10124_v28 = vld [vmem:[%s10690_s4 + $0x1418] sm:$0xff] }
0x22d6   : > { %8613 = vmatpush.msra.mxu2 %v10132_v15  ;;  %8626 = vmatpush.msrb.mxu3 %v10184_v54 }
0x22d8   : > { %8614 = vmatpush.msra.mxu2 %v10130_v12  ;;  %8627 = vmatpush.msrb.mxu3 %v10182_v33  ;;  %v8459_v12 = vpop.f32.mrf.mxu1 }
0x22d9   : > { %10040 = vmatmul.msk.f32.gmra.mxu2 %vm1654_vm0, %v9840_v52 }
0x22da   : > { %8615 = vmatpush.msra.mxu2 %v10128_v48  ;;  %8628 = vmatpush.msrb.mxu3 %v10180_v36 }
0x22dc   : > { %8616 = vmatpush.msra.mxu2 %v10126_v13  ;;  %8629 = vmatpush.msrb.mxu3 %v10178_v63 }
0x22dd   : > { %10046 = vmatmul.msk.f32.gmra.mxu3 %vm1654_vm0, %v9838_v39  ;;  %v10166_v39 = vld [vmem:[%s10690_s4 + $0x1568] sm:$0xff] }
0x22de   : > { %8617 = vmatpush.msra.mxu2 %v10124_v28  ;;  %8630 = vmatpush.msrb.mxu3 %v10176_v2 }
0x22e0   : > { %8618 = vmatpush.msra.mxu2 %v10122_v11  ;;  %8631 = vmatpush.msrb.mxu3 %v10174_v40  ;;  %v8462_v36 = vpop.f32.mrf.mxu1 }
0x22e1   : > { %8527 = vmatmul.f32.vlgmr.msrb.gmra.mxu2 %v12505_v27  ;;  %v10158_v27 = vld [vmem:[%s10690_s4 + $0x1528] sm:$0xff] }
0x22e2   : > { %8632 = vmatpush.msrb.mxu3 %v10172_v5 }
0x22e4   : > { %8633 = vmatpush.msrb.mxu3 %v10170_v30 }
0x22e5   : > { %10047 = vmatmul.msk.f32.gmra.mxu3 %vm1654_vm0, %v9839_v59  ;;  %v10154_v59 = vld [vmem:[%s10690_s4 + $0x1508] sm:$0xff] }
0x22e6   : > { %8634 = vmatpush.msrb.mxu3 %v10168_v0 }
0x22e8   : > { %8635 = vmatpush.msrb.mxu3 %v10166_v39  ;;  %v8505_v2 = vpop.f32.mrf.mxu1 }
0x22e9   : > { %8530 = vmatmul.f32.gmra.mxu2 %v12537_v8 }
0x22ea   : > { %8636 = vmatpush.msrb.mxu3 %v10164_v47 }
0x22ec   : > { %8637 = vmatpush.msrb.mxu3 %v10162_v10 }
0x22ed   : > { %10048 = vmatmul.msk.f32.gmra.mxu3 %vm1654_vm0, %v9840_v52 }
0x22ee   : > { %8638 = vmatpush.msrb.mxu3 %v10160_v42 }
0x22f0   : > { %8639 = vmatpush.msrb.mxu3 %v10158_v27  ;;  %v8508_v30 = vpop.f32.mrf.mxu1 }
0x22f1   : > { %8619 = vmatmul.f32.vlgmr.msra.gmra.mxu2 %v12457_v20 }
0x22f2   : > { %8640 = vmatpush.msrb.mxu3 %v10156_v6 }
0x22f4   : > { %8641 = vmatpush.msrb.mxu3 %v10154_v59 }
0x22f5   : > { %8550 = vmatmul.f32.vlgmr.msra.gmra.mxu3 %v12507_v18 }
0x22f8   : > { %v8597_v47 = vpop.f32.mrf.mxu1 }
0x22f9   : > { %8622 = vmatmul.f32.gmra.mxu2 %v12495_v56 }
0x22fd   : > { %8553 = vmatmul.f32.gmra.mxu3 %v12539_v46 }
0x2305   : > { %8642 = vmatmul.f32.vlgmr.msrb.gmra.mxu3 %v12459_v50 }
0x230d   : > { %8645 = vmatmul.f32.gmra.mxu3 %v12497_v3  ;;  %v8436_v3 = vpop.f32.mrf.mxu0 }
0x230e   : > { %v8460_v6 = vadd.f32 %v8459_v12, %v8436_v3 }
0x2315   : > { %v8439_v48 = vpop.f32.mrf.mxu0 }
0x2316   : > { %v8463_v27 = vadd.f32 %v8462_v36, %v8439_v48 }
0x231d   : > { %v8482_v63 = vpop.f32.mrf.mxu0 }
0x231e   : > { %v8483_v51 = vadd.f32 %v8482_v63, %v8460_v6 }
0x2320   : > { %v8506_v31 = vadd.f32 %v8505_v2, %v8483_v51  ;;  %v10050_v51 = vld [vmem:[%s10685_s27 + $0xc8] sm:$0xff] }
0x2324   : > { %v13432_v8 = vpop.f32.mrf.mxu2 }
0x2325   : > { %v8485_v40 = vpop.f32.mrf.mxu0 }
0x2326   : > { %v8486_v59 = vadd.f32 %v8485_v40, %v8463_v27 }
0x2328   : > { %v8509_v61 = vadd.f32 %v8508_v30, %v8486_v59  ;;  %v10051_v30 = vld [vmem:[%s10685_s27 + $0xd0] sm:$0xff] }
0x232c   : > { %v13434_v26 = vpop.f32.mrf.mxu2 }
0x232d   : > { %v8574_v39 = vpop.f32.mrf.mxu0 }
0x232e   : > { %v8598_v36 = vadd.f32 %v8597_v47, %v8574_v39  ;;  %v10054_v47 = vld [vmem:[%s10685_s27 + $0xe8] sm:$0xff] }
0x2334   : > { %v13436_v35 = vpop.f32.mrf.mxu2 }
0x2338   : > { %v13438_v20 = vpop.f32.mrf.mxu3 }
0x233c   : > { %v13440_v15 = vpop.f32.mrf.mxu2 }
0x2340   : > { %v13442_v54 = vpop.f32.mrf.mxu3 }
0x2344   : > { %v13444_v18 = vpop.f32.mrf.mxu2 }
0x2348   : > { %v13446_v56 = vpop.f32.mrf.mxu3 }
0x234c   : > { %v13448_v46 = vpop.f32.mrf.mxu2 }
0x2350   : > { %v13450_v50 = vpop.f32.mrf.mxu3 }
0x2354   : > { %v13454_v52 = vpop.f32.mrf.mxu2 }
0x2358   : > { %v13452_v33 = vpop.f32.mrf.mxu3 }
0x235c   : > { %v13458_v28 = vpop.f32.mrf.mxu2 }
0x235d   : > { %13786 = vst [vmem:[#allocation50_spill] sm:$0xff] %v13458_v28  ;;  %v8600_v28 = vpop.f32.mrf.mxu1 }
0x2360   : > { %v13456_v13 = vpop.f32.mrf.mxu3 }
0x2361   : > { %13785 = vst [vmem:[#allocation49_spill] sm:$0xff] %v13456_v13  ;;  %v8577_v13 = vpop.f32.mrf.mxu0 }
0x2362   : > { %v8601_v63 = vadd.f32 %v8600_v28, %v8577_v13  ;;  %v10052_v13 = vld [vmem:[%s10685_s27 + $0xd8] sm:$0xff]  ;;  %v10053_v28 = vld [vmem:[%s10685_s27 + $0xe0] sm:$0xff] }
0x2364   : > { %v8528_v5 = vpop.f32.mrf.mxu2 }
0x2365   : > { %v8529_v58 = vadd.f32 %v8528_v5, %v8506_v31  ;;  %v8689_v12 = vpop.f32.mrf.mxu1 }
0x2368   : > { %v13460_v11 = vpop.f32.mrf.mxu3 }
0x2369   : > { %13787 = vst [vmem:[#allocation51_spill] sm:$0xff] %v13460_v11  ;;  %v8666_v48 = vpop.f32.mrf.mxu0 }
0x236c   : > { %v8531_v10 = vpop.f32.mrf.mxu2 }
0x236d   : > { %v8532_v29 = vadd.f32 %v8531_v10, %v8509_v61  ;;  %v10055_v10 = vld [vmem:[%s10685_s27 + $0xf0] sm:$0xff] }
0x2370   : > { %v13462_v0 = vpop.f32.mrf.mxu3 }
0x2371   : > { %13788 = vst [vmem:[#allocation52_spill] sm:$0xff] %v13462_v0 }
0x2374   : > { %v8620_v41 = vpop.f32.mrf.mxu2 }
0x2375   : > { %v8621_v2 = vadd.f32 %v8620_v41, %v8598_v36 }
0x2378   : > { %v8551_v42 = vpop.f32.mrf.mxu3 }
0x2379   : > { %v8552_v0 = vadd.f32 %v8551_v42, %v8529_v58  ;;  %v7553_v42 = vadd.f32 %v13260_v32, %v13251_v45  ;;  %v7559_v45 = vadd.f32 %v13286_v4, %v13279_v9  ;;  %v7597_v4 = vadd.f32 %v13276_v16, %v13293_v7 }
0x237b   : > { %v8201_v27 = vadd.f32 %v13432_v8, %v7553_v42  ;;  %v8205_v32 = vadd.f32 %v13436_v35, %v7559_v45  ;;  %v13800_v45 = vld [vmem:[#allocation52_spill] sm:$0xff] }
0x237c   : > { %v8623_v61 = vpop.f32.mrf.mxu2 }
0x237d   : > { %v8624_v31 = vadd.f32 %v8623_v61, %v8601_v63 }
0x2380   : > { %v8554_v11 = vpop.f32.mrf.mxu3 }
0x2381   : > { %v8555_v21 = vadd.f32 %v8554_v11, %v8532_v29  ;;  %v8669_v11 = vpop.f32.mrf.mxu0 }
0x2383   : > { %8733 = vmatpush.msrb.mxu2 %v8555_v21 }
0x2385   : > { %8734 = vmatpush.msrb.mxu2 %v8552_v0  ;;  %v8692_v0 = vpop.f32.mrf.mxu1 }
0x2386   : > { %10249 = vmatmul.msk.f32.vlgmr.msrb.gmra.mxu2 %vm1654_vm0, %v10049_v37 }
0x2388   : > { %v8643_v3 = vpop.f32.mrf.mxu3 }
0x2389   : > { %v8644_v29 = vadd.f32 %v8643_v3, %v8621_v2 }
0x238b   : > { %v8667_v40 = vadd.f32 %v8666_v48, %v8644_v29  ;;  %v7556_v48 = vadd.f32 %v13273_v22, %v13267_v38  ;;  %v7562_v22 = vadd.f32 %v13295_v53, %v13291_v17  ;;  %v7568_v29 = vadd.f32 %v13314_v25, %v13310_v34 }
0x238d   : > { %v8690_v41 = vadd.f32 %v8689_v12, %v8667_v40  ;;  %v8203_v3 = vadd.f32 %v13434_v26, %v7556_v48  ;;  %v8207_v2 = vadd.f32 %v13440_v15, %v7562_v22  ;;  %v13789_v40 = vld [vmem:[#allocation44_spill] sm:$0xff] }
0x238e   : > { %10250 = vmatmul.msk.f32.gmra.mxu2 %vm1654_vm0, %v10050_v51 }
0x2390   : > { %v8646_v58 = vpop.f32.mrf.mxu3 }
0x2391   : > { %v8647_v21 = vadd.f32 %v8646_v58, %v8624_v31  ;;  %v7600_v31 = vadd.f32 %v13288_v14, %v13300_v24  ;;  %v7603_v58 = vadd.f32 %v13298_v55, %v13306_v19 }
0x2393   : > { %v8670_v5 = vadd.f32 %v8669_v11, %v8647_v21  ;;  %v8206_v7 = vadd.f32 %v13446_v56, %v7600_v31  ;;  %v8208_v24 = vadd.f32 %v13450_v50, %v7603_v58  ;;  %v7571_v21 = vadd.f32 %v13322_v1, %v13318_v57  ;;  %v13791_v1 = vld [vmem:[#allocation50_spill] sm:$0xff] }
0x2394   : > { %v7606_v11 = vadd.f32 %v13308_v44, %v13312_v62  ;;  %v13794_v62 = vld [vmem:[#allocation49_spill] sm:$0xff] }
0x2395   : > { %v8693_v39 = vadd.f32 %v8692_v0, %v8670_v5  ;;  %v8213_v25 = vadd.f32 %v13454_v52, %v7571_v21  ;;  %v13790_v5 = vld [vmem:[#allocation46_spill] sm:$0xff] }
0x2396   : > { %10251 = vmatmul.msk.f32.gmra.mxu2 %vm1654_vm0, %v10051_v30  ;;  %v8210_v19 = vadd.f32 %v13452_v33, %v7606_v11 }
0x2397   : > { %8774 = vmatpush.msra.mxu3 %v8693_v39  ;;  %v13792_v39 = vld [vmem:[#allocation42_spill] sm:$0xff] }
0x2399   : > { %8775 = vmatpush.msra.mxu3 %v8690_v41  ;;  %v13793_v41 = vld [vmem:[#allocation41_spill] sm:$0xff] }
0x239a   : > { %10257 = vmatmul.msk.f32.vlgmr.msra.gmra.mxu3 %vm1654_vm0, %v10049_v37  ;;  %v10056_v37 = vld [vmem:[%s10685_s27 + $0xf8] sm:$0xff] }
0x239e   : > { %10252 = vmatmul.msk.f32.gmra.mxu2 %vm1654_vm0, %v10052_v13 }
0x23a2   : > { %10258 = vmatmul.msk.f32.gmra.mxu3 %vm1654_vm0, %v10050_v51  ;;  %v7594_v51 = vadd.f32 %v13264_v23, %v13283_v60  ;;  %v8204_v60 = vadd.f32 %v13442_v54, %v7597_v4 }
0x23a4   : > { %v8202_v63 = vadd.f32 %v13438_v20, %v7594_v51  ;;  %v7565_v20 = vadd.f32 %v13304_v43, %v13302_v49  ;;  %v8211_v43 = vadd.f32 %v13448_v46, %v7568_v29 }
0x23a6   : > { %10253 = vmatmul.msk.f32.gmra.mxu2 %vm1654_vm0, %v10053_v28  ;;  %v8209_v53 = vadd.f32 %v13444_v18, %v7565_v20 }
0x23aa   : > { %10259 = vmatmul.msk.f32.gmra.mxu3 %vm1654_vm0, %v10051_v30  ;;  %v7574_v30 = vadd.f32 %v13790_v5, %v13789_v40 }
0x23ac   : > { %v8215_v52 = vadd.f32 %v13791_v1, %v7574_v30 }
0x23ae   : > { %10254 = vmatmul.msk.f32.gmra.mxu2 %vm1654_vm0, %v10054_v47 }
0x23b2   : > { %10260 = vmatmul.msk.f32.gmra.mxu3 %vm1654_vm0, %v10052_v13  ;;  %v7609_v13 = vadd.f32 %v13793_v41, %v13792_v39 }
0x23b6   : > { %10255 = vmatmul.msk.f32.gmra.mxu2 %vm1654_vm0, %v10055_v10 }
0x23ba   : > { %10261 = vmatmul.msk.f32.gmra.mxu3 %vm1654_vm0, %v10053_v28  ;;  %v8212_v28 = vadd.f32 %v13794_v62, %v7609_v13 }
0x23be   : > { %10256 = vmatmul.msk.f32.gmra.mxu2 %vm1654_vm0, %v10056_v37 }
0x23c2   : > { %10262 = vmatmul.msk.f32.gmra.mxu3 %vm1654_vm0, %v10054_v47 }
0x23ca   : > { %10263 = vmatmul.msk.f32.gmra.mxu3 %vm1654_vm0, %v10055_v10  ;;  %v13795_v10 = vld [vmem:[#allocation45_spill] sm:$0xff] }
0x23d2   : > { %10264 = vmatmul.msk.f32.gmra.mxu3 %vm1654_vm0, %v10056_v37  ;;  %v13796_v37 = vld [vmem:[#allocation43_spill] sm:$0xff] }
0x23d3   : > { %v7612_v42 = vadd.f32 %v13796_v37, %v13795_v10 }
0x2409   : > { %v8736_v6 = vpop.f32.mrf.mxu2 }
0x240a   : > { %v8801_v59 = vadd.f32 %v8736_v6, %v8201_v27  ;;  %v13797_v27 = vld [vmem:[#allocation51_spill] sm:$0xff] }
0x240b   : > { %v8214_v6 = vadd.f32 %v13797_v27, %v7612_v42 }
0x240c   : > { %8817 = vst [vmem:[%s13493_s0] sm:$0xff] %v8801_v59 }
0x2411   : > { %v8739_v12 = vpop.f32.mrf.mxu2 }
0x2412   : > { %v8803_v36 = vadd.f32 %v8739_v12, %v8203_v3  ;;  %v13798_v3 = vld [vmem:[#allocation48_spill] sm:$0xff]  ;;  %v13799_v12 = vld [vmem:[#allocation47_spill] sm:$0xff] }
0x2414   : > { %8819 = vst [vmem:[%s13493_s0 + $0x10] sm:$0xff] %v8803_v36  ;;  %v7615_v36 = vadd.f32 %v13799_v12, %v13798_v3 }
0x2419   : > { %v8742_v8 = vpop.f32.mrf.mxu2 }
0x241a   : > { %v8805_v61 = vadd.f32 %v8742_v8, %v8205_v32  ;;  %v8216_v32 = vadd.f32 %v13800_v45, %v7615_v36 }
0x241c   : > { %8821 = vst [vmem:[%s13493_s0 + $0x20] sm:$0xff] %v8805_v61 }
0x241d   : > { %v8777_v38 = vpop.f32.mrf.mxu3 }
0x241e   : > { %v8802_v26 = vadd.f32 %v8777_v38, %v8202_v63 }
0x2420   : > { %8818 = vst.msk [vmem:[%s13493_s0 + $0x8] sm:$0xff] %vm2045_vm2, %v8802_v26 }
0x2421   : > { %v8745_v9 = vpop.f32.mrf.mxu2 }
0x2422   : > { %v8807_v23 = vadd.f32 %v8745_v9, %v8207_v2 }
0x2424   : > { %8823 = vst [vmem:[%s13493_s0 + $0x30] sm:$0xff] %v8807_v23 }
0x2425   : > { %v8780_v35 = vpop.f32.mrf.mxu3 }
0x2426   : > { %v8804_v17 = vadd.f32 %v8780_v35, %v8204_v60 }
0x2428   : > { %8820 = vst.msk [vmem:[%s13493_s0 + $0x18] sm:$0xff] %vm2045_vm2, %v8804_v17 }
0x2429   : > { %v8748_v15 = vpop.f32.mrf.mxu2 }
0x242a   : > { %v8809_v16 = vadd.f32 %v8748_v15, %v8209_v53 }
0x242c   : > { %8825 = vst [vmem:[%s13493_s0 + $0x40] sm:$0xff] %v8809_v16 }
0x242d   : > { %v8783_v54 = vpop.f32.mrf.mxu3 }
0x242e   : > { %v8806_v49 = vadd.f32 %v8783_v54, %v8206_v7 }
0x2430   : > { %8822 = vst.msk [vmem:[%s13493_s0 + $0x28] sm:$0xff] %vm2045_vm2, %v8806_v49 }
0x2431   : > { %v8751_v18 = vpop.f32.mrf.mxu2 }
0x2432   : > { %v8811_v14 = vadd.f32 %v8751_v18, %v8211_v43 }
0x2434   : > { %8827 = vst [vmem:[%s13493_s0 + $0x50] sm:$0xff] %v8811_v14 }
0x2435   : > { %v8786_v56 = vpop.f32.mrf.mxu3 }
0x2436   : > { %v8808_v34 = vadd.f32 %v8786_v56, %v8208_v24 }
0x2438   : > { %8824 = vst.msk [vmem:[%s13493_s0 + $0x38] sm:$0xff] %vm2045_vm2, %v8808_v34 }
0x2439   : > { %v8754_v46 = vpop.f32.mrf.mxu2 }
0x243a   : > { %v8813_v55 = vadd.f32 %v8754_v46, %v8213_v25 }
0x243c   : > { %8829 = vst [vmem:[%s13493_s0 + $0x60] sm:$0xff] %v8813_v55 }
0x243d   : > { %v8789_v50 = vpop.f32.mrf.mxu3 }
0x243e   : > { %v8810_v57 = vadd.f32 %v8789_v50, %v8210_v19 }
0x2440   : > { %8826 = vst.msk [vmem:[%s13493_s0 + $0x48] sm:$0xff] %vm2045_vm2, %v8810_v57 }
0x2441   : > { %v8757_v0 = vpop.f32.mrf.mxu2 }
0x2442   : > { %v8815_v44 = vadd.f32 %v8757_v0, %v8215_v52 }
0x2444   : > { %8831 = vst [vmem:[%s13493_s0 + $0x70] sm:$0xff] %v8815_v44 }
0x2445   : > { %v8792_v33 = vpop.f32.mrf.mxu3 }
0x2446   : > { %v8812_v47 = vadd.f32 %v8792_v33, %v8212_v28 }
0x2448   : > { %8828 = vst.msk [vmem:[%s13493_s0 + $0x58] sm:$0xff] %vm2045_vm2, %v8812_v47 }
0x244d   : > { %v8795_v59 = vpop.f32.mrf.mxu3 }
0x244e   : > { %v8814_v48 = vadd.f32 %v8795_v59, %v8214_v6 }
0x2450   : > { %8830 = vst.msk [vmem:[%s13493_s0 + $0x68] sm:$0xff] %vm2045_vm2, %v8814_v48 }
0x2455   : > { %v8798_v8 = vpop.f32.mrf.mxu3 }
0x2456   : > { %v8816_v51 = vadd.f32 %v8798_v8, %v8216_v32 }
0x2458   : > { %8832 = vst.msk [vmem:[%s13493_s0 + $0x78] sm:$0xff] %vm2045_vm2, %v8816_v51 }
0x2459 PF: > { %s122_s22 = sadd.s32 1, %s10360_s22  }
0x245a   : > { %p119_p4 = scmp.ge.s32.totalorder %s122_s22, 4  }
0x245c   :  { %121 = sbr.rel (!%p119_p4) target bundleno = 116 (0x74), region = 390 }

</bundles_post_ra>
